<compile_context>
chip_gen: v6e
topology: v6e:2x2x1
jax: 0.10.0
libtpu: 0.0.40
codegen_flags: <defaults>
</compile_context>

<pallas_src>
import functools
import math

import jax
import jax.numpy as jnp
from jax.experimental import pallas as pl
from jax.experimental.pallas import tpu as pltpu


_VMEM_LIMIT = 32 * 1024 * 1024  # safe on v5e/v6e (128 MiB) and v7x (64 MiB)


# ----------------------------------------------------------------------------- helpers

def _ln(x, g, b, eps):
    """LayerNorm in f32. x: (S, D), g/b: (1, D)."""
    mu = jnp.mean(x, axis=-1, keepdims=True)
    xc = x - mu
    var = jnp.mean(xc * xc, axis=-1, keepdims=True)
    return xc * jax.lax.rsqrt(var + eps) * g + b


def _resident(shape):
    """Full-array BlockSpec whose block never changes across the grid (weights)."""
    idx = (0,) * len(shape)
    return pl.BlockSpec(shape, lambda i, _idx=idx: _idx)


def _transformer_layer(x, l, g1, b1, wqkv, bqkv, wo, bo, g2, b2, w1, fb1, w2, fb2,
                       num_heads, eps):
    """One pre-norm self_attn + FFN layer on a single (S, D) sequence.

    Weight refs are stacked (L, ...) arrays resident in VMEM; `l` is a static
    Python int so `ref[l]` is a static first-axis load.
    """
    D = x.shape[-1]
    hd = D // num_heads

    # ---- LN1 + fused QKV projection (1/sqrt(hd) already folded into the Q slice)
    h = _ln(x, g1[l], b1[l], eps)
    qkv = jnp.dot(h, wqkv[l], preferred_element_type=jnp.float32) + bqkv[l]
    q, k, v = qkv[:, :D], qkv[:, D:2 * D], qkv[:, 2 * D:]

    # ---- multi-head attention, heads handled in VMEM (static unroll, 2D matmuls)
    outs = []
    for hh in range(num_heads):
        sl = slice(hh * hd, (hh + 1) * hd)
        qh, kh, vh = q[:, sl], k[:, sl], v[:, sl]
        s = jax.lax.dot_general(qh, kh, (((1,), (1,)), ((), ())),
                                preferred_element_type=jnp.float32)     # (S, S)
        s = s - jnp.max(s, axis=-1, keepdims=True)
        p = jnp.exp(s)
        p = p * pl.reciprocal(jnp.sum(p, axis=-1, keepdims=True), approx=True)
        outs.append(jnp.dot(p, vh, preferred_element_type=jnp.float32))
    attn = jnp.concatenate(outs, axis=-1)                               # (S, D)

    # ---- output projection + residual
    x = x + jnp.dot(attn, wo[l], preferred_element_type=jnp.float32) + bo[l]

    # ---- LN2 + FFN + residual
    h = _ln(x, g2[l], b2[l], eps)
    hid = jnp.dot(h, w1[l], preferred_element_type=jnp.float32) + fb1[l]
    # TODO(synk): TransformerContainer's exact FFN activation is external; tanh-GELU used.
    hid = jax.nn.gelu(hid, approximate=True)
    return x + jnp.dot(hid, w2[l], preferred_element_type=jnp.float32) + fb2[l]


# ----------------------------------------------------------------------------- kernels

def _spatial_kernel(x_ref, wbe_ref, bbe_ref, cls_ref, pos_ref,
                    g1, b1, wqkv, bqkv, wo, bo, g2, b2, w1, fb1, w2, fb2,
                    o_ref, *, num_layers, num_heads, eps):
    """body_enc + cls concat + pos_embed + ALL spatial layers, one frame per step."""
    xin = x_ref[0].astype(jnp.float32)                                   # (V, C)
    emb = jnp.dot(xin, wbe_ref[...], preferred_element_type=jnp.float32) + bbe_ref[...]
    x = jnp.concatenate([cls_ref[...], emb], axis=0) + pos_ref[...]      # (P, D); dropout p=0
    # TODO(synk): skeleton_connection_mask_type graph adjacency (Graph class) is
    # external; spatial attention runs unmasked here.
    for l in range(num_layers):
        x = _transformer_layer(x, l, g1, b1, wqkv, bqkv, wo, bo, g2, b2,
                               w1, fb1, w2, fb2, num_heads, eps)
    o_ref[0] = x.astype(o_ref.dtype)


def _temporal_kernel(cls_ref, frames_ref, te_ref,
                     g1, b1, wqkv, bqkv, wo, bo, g2, b2, w1, fb1, w2, fb2,
                     gn_ref, bn_ref, wp_ref, bp_ref, o_ref,
                     *, num_layers, num_heads, eps, final_eps):
    """fact_encoder aggregation + ALL temporal layers + final norm/cls/ReLU/proj."""
    # reproduces the reference's `x[:b, 0]` quirk: row n of the (N*T, P, D) tensor.
    cls = cls_ref[0][0:1, :].astype(jnp.float32)                         # (1, D)
    frames = frames_ref[0].astype(jnp.float32)                           # (T, P, D)
    mean = jnp.mean(frames[:, 1:, :], axis=1)                            # (T, D), f32 accumulate
    x = jnp.concatenate([cls, mean], axis=0) + te_ref[...]               # (T+1, D); dropout p=0

    for l in range(num_layers):
        x = _transformer_layer(x, l, g1, b1, wqkv, bqkv, wo, bo, g2, b2,
                               w1, fb1, w2, fb2, num_heads, eps)

    # final LayerNorm (cls row only -- LN is per-row so equivalent) + ReLU + pose_proj.
    c = _ln(x[0:1, :], gn_ref[...], bn_ref[...], final_eps)
    c = jnp.maximum(c, 0.0)
    # TODO(synk): pose_proj Dropout(0.1) is identity at inference.
    out = jnp.dot(c, wp_ref[...], preferred_element_type=jnp.float32) + bp_ref[...]
    o_ref[0] = out.astype(o_ref.dtype)                                   # (1, Z)


# ----------------------------------------------------------------------------- wrappers

def spatial_stage(x_flat, params, cfg, eps=1e-5):
    """x_flat: (N*T, V, C) -> spatial tokens (N*T, V+1, D)."""
    M, V, C = x_flat.shape
    D, F, L, H = cfg['embed_dims'], cfg['ff_dims'], cfg['num_layers'], cfg['num_heads']
    P = V + 1
    sp = params['spatial']

    flops_seq = 2 * V * C * D + L * (8 * P * D * D + 4 * P * P * D + 4 * P * D * F)
    transc_seq = L * (H * P * P + P * F)
    bytes_acc = 4 * (M * (V * C + P * D) + C * D + (P + 2) * D
                     + L * (4 * D * D + 2 * D * F + 8 * D + F))

    kern = functools.partial(_spatial_kernel, num_layers=L, num_heads=H, eps=eps)
    return pl.pallas_call(
        kern,
        out_shape=jax.ShapeDtypeStruct((M, P, D), x_flat.dtype),
        grid=(M,),
        in_specs=[pl.BlockSpec((1, V, C), lambda i: (i, 0, 0)),
                  _resident((C, D)), _resident((1, D)),          # body_enc
                  _resident((1, D)), _resident((P, D)),          # cls, pos_embed
                  _resident((L, 1, D)), _resident((L, 1, D)),    # ln1
                  _resident((L, D, 3 * D)), _resident((L, 1, 3 * D)),   # fused qkv
                  _resident((L, D, D)), _resident((L, 1, D)),    # out proj
                  _resident((L, 1, D)), _resident((L, 1, D)),    # ln2
                  _resident((L, D, F)), _resident((L, 1, F)),    # ffn up
                  _resident((L, F, D)), _resident((L, 1, D))],   # ffn down
        out_specs=pl.BlockSpec((1, P, D), lambda i: (i, 0, 0)),
        compiler_params=pltpu.CompilerParams(
            dimension_semantics=("parallel",), vmem_limit_bytes=_VMEM_LIMIT),
        cost_estimate=pl.CostEstimate(flops=M * flops_seq,
                                      transcendentals=M * transc_seq,
                                      bytes_accessed=bytes_acc),
    )(x_flat, params['body_enc_w'], params['body_enc_b'],
      params['cls_token'], params['pos_embed'],
      sp['ln1_g'], sp['ln1_b'], sp['wqkv'], sp['bqkv'], sp['wo'], sp['bo'],
      sp['ln2_g'], sp['ln2_b'], sp['w1'], sp['b1'], sp['w2'], sp['b2'])


def temporal_stage(sp_out, params, cfg, eps=1e-5, final_eps=1e-6):
    """sp_out: (N, T, P, D) spatial tokens -> (N, 1, latent_dim)."""
    N, T, P, D = sp_out.shape
    F, L, H, Z = cfg['ff_dims'], cfg['num_layers'], cfg['num_heads'], cfg['latent_dim']
    S = T + 1
    tp = params['temporal']
    sp_flat = sp_out.reshape(N * T, P, D)       # same buffer, flat view for the cls quirk

    flops_seq = L * (8 * S * D * D + 4 * S * S * D + 4 * S * D * F) + 2 * D * Z
    transc_seq = L * (H * S * S + S * F)
    bytes_acc = 4 * (N * (T + 1) * P * D + S * D + D * Z + Z + 2 * D + N * Z
                     + L * (4 * D * D + 2 * D * F + 8 * D + F))

    kern = functools.partial(_temporal_kernel, num_layers=L, num_heads=H,
                             eps=eps, final_eps=final_eps)
    return pl.pallas_call(
        kern,
        out_shape=jax.ShapeDtypeStruct((N, 1, Z), sp_out.dtype),
        grid=(N,),
        in_specs=[pl.BlockSpec((1, P, D), lambda n: (n, 0, 0)),          # x[:b,0] quirk row n
                  pl.BlockSpec((1, T, P, D), lambda n: (n, 0, 0, 0)),    # frames of batch n
                  _resident((S, D)),                                     # time_embed
                  _resident((L, 1, D)), _resident((L, 1, D)),            # ln1
                  _resident((L, D, 3 * D)), _resident((L, 1, 3 * D)),    # fused qkv
                  _resident((L, D, D)), _resident((L, 1, D)),            # out proj
                  _resident((L, 1, D)), _resident((L, 1, D)),            # ln2
                  _resident((L, D, F)), _resident((L, 1, F)),            # ffn up
                  _resident((L, F, D)), _resident((L, 1, D)),            # ffn down
                  _resident((1, D)), _resident((1, D)),                  # final norm
                  _resident((D, Z)), _resident((1, Z))],                 # pose_proj
        out_specs=pl.BlockSpec((1, 1, Z), lambda n: (n, 0, 0)),
        compiler_params=pltpu.CompilerParams(
            dimension_semantics=("parallel",), vmem_limit_bytes=_VMEM_LIMIT),
        cost_estimate=pl.CostEstimate(flops=N * flops_seq,
                                      transcendentals=N * transc_seq,
                                      bytes_accessed=bytes_acc),
    )(sp_flat, sp_out, params['time_embed'],
      tp['ln1_g'], tp['ln1_b'], tp['wqkv'], tp['bqkv'], tp['wo'], tp['bo'],
      tp['ln2_g'], tp['ln2_b'], tp['w1'], tp['b1'], tp['w2'], tp['b2'],
      params['norm_g'], params['norm_b'], params['proj_w'], params['proj_b'])


# ----------------------------------------------------------------------------- model

def init_params(key, cfg):
    D, F, L = cfg['embed_dims'], cfg['ff_dims'], cfg['num_layers']
    V, T, C, Z = cfg['num_joints'], cfg['num_frames'], cfg['in_feats'], cfg['latent_dim']
    H = cfg['num_heads']
    scale = 1.0 / math.sqrt(D // H)

    keys = iter(jax.random.split(key, 256))

    def nrm(shape, std=0.02):
        return std * jax.random.normal(next(keys), shape, jnp.float32)

    def stacked_blocks():
        blocks = []
        for _ in range(L):
            wq, wk, wv = nrm((D, D)), nrm((D, D)), nrm((D, D))
            # fused QKV weight; attention scale 1/sqrt(head_dim) folded into the Q slice
            wqkv = jnp.concatenate([wq * scale, wk, wv], axis=1)        # (D, 3D)
            blocks.append(dict(
                ln1_g=jnp.ones((1, D), jnp.float32), ln1_b=jnp.zeros((1, D), jnp.float32),
                wqkv=wqkv, bqkv=jnp.zeros((1, 3 * D), jnp.float32),
                wo=nrm((D, D)), bo=jnp.zeros((1, D), jnp.float32),
                ln2_g=jnp.ones((1, D), jnp.float32), ln2_b=jnp.zeros((1, D), jnp.float32),
                w1=nrm((D, F)), b1=jnp.zeros((1, F), jnp.float32),
                w2=nrm((F, D)), b2=jnp.zeros((1, D), jnp.float32)))
        # stack along a leading layer axis so all layers ride in one resident block
        return {k: jnp.stack([blk[k] for blk in blocks], axis=0) for k in blocks[0]}

    return dict(
        body_enc_w=nrm((C, D)), body_enc_b=jnp.zeros((1, D), jnp.float32),
        cls_token=nrm((1, D)),
        pos_embed=nrm((V + 1, D)),      # fact_encoder: num_patches + 1
        time_embed=nrm((T + 1, D)),     # fact_encoder: num_frames + 1
        spatial=stacked_blocks(),
        temporal=stacked_blocks(),
        norm_g=jnp.ones((1, D), jnp.float32), norm_b=jnp.zeros((1, D), jnp.float32),
        proj_w=nrm((D, Z)), proj_b=jnp.zeros((1, Z), jnp.float32),
    )


def movit_forward(params, x, cfg):
    """fact_encoder / full body / return_cls_token=True / vae=False path.

    x: (N, T, V, C) -- already length==num_frames, post recover_rot_pos.
    """
    # TODO(synk): recover_rot_pos (263-d -> joint 6d) and per-sample length
    # crop/interpolate are data-dependent host preprocessing; input is assumed
    # already (N, T, V, C) at full length.
    N, T, V, C = x.shape
    D = cfg['embed_dims']

    # 1) body_enc + prepare_tokens + all spatial transformer layers (one fused call)
    tokens = spatial_stage(x.reshape(N * T, V, C), params, cfg)          # (N*T, V+1, D)

    # 2) fact-encoder aggregation + temporal transformer + norm/cls/ReLU/proj (one fused call)
    out = temporal_stage(tokens.reshape(N, T, V + 1, D), params, cfg)    # (N, 1, latent)
    return out                                                           # vae=False


# ----------------------------------------------------------------------------- main

if __name__ == "__main__":
    cfg = dict(
        num_frames=8,    # small test size
        embed_dims=64,
        ff_dims=128,
        num_heads=4,
        num_layers=2,
        num_joints=21,   # dataset='kit', body_repres='full'
        in_feats=6,      # data_rep='cont_6d'
        latent_dim=32,
    )
    key = jax.random.PRNGKey(0)
    pkey, xkey = jax.random.split(key)
    params = init_params(pkey, cfg)
    x = jax.random.normal(
        xkey, (2, cfg['num_frames'], cfg['num_joints'], cfg['in_feats']), jnp.float32)

    fwd = jax.jit(lambda p, inp: movit_forward(p, inp, cfg))
    out = fwd(params, x)
    out = jax.block_until_ready(out)
    assert out.shape == (2, 1, cfg['latent_dim']), out.shape
    assert bool(jnp.all(jnp.isfinite(out)))
    print("KERNEL_OK")
</pallas_src>

<mosaic_0001>
module attributes {stable_mosaic.version = 11 : i64} {
  func.func @_spatial_kernel(%arg0: i32, %arg1: memref<1x21x6xf32, #tpu.memory_space<vmem>>, %arg2: memref<6x64xf32, #tpu.memory_space<vmem>>, %arg3: memref<1x64xf32, #tpu.memory_space<vmem>>, %arg4: memref<1x64xf32, #tpu.memory_space<vmem>>, %arg5: memref<22x64xf32, #tpu.memory_space<vmem>>, %arg6: memref<2x1x64xf32, #tpu.memory_space<vmem>>, %arg7: memref<2x1x64xf32, #tpu.memory_space<vmem>>, %arg8: memref<2x64x192xf32, #tpu.memory_space<vmem>>, %arg9: memref<2x1x192xf32, #tpu.memory_space<vmem>>, %arg10: memref<2x64x64xf32, #tpu.memory_space<vmem>>, %arg11: memref<2x1x64xf32, #tpu.memory_space<vmem>>, %arg12: memref<2x1x64xf32, #tpu.memory_space<vmem>>, %arg13: memref<2x1x64xf32, #tpu.memory_space<vmem>>, %arg14: memref<2x64x128xf32, #tpu.memory_space<vmem>>, %arg15: memref<2x1x128xf32, #tpu.memory_space<vmem>>, %arg16: memref<2x128x64xf32, #tpu.memory_space<vmem>>, %arg17: memref<2x1x64xf32, #tpu.memory_space<vmem>>, %arg18: memref<1x22x64xf32, #tpu.memory_space<vmem>>) attributes {dimension_semantics = [#tpu.dimension_semantics<parallel>], iteration_bounds = array<i64: 16>, scalar_prefetch = 0 : i64, scratch_operands = 0 : i64, tpu.core_type = #tpu.core_type<tc>, window_params = [{transform_indices = @transform_0, window_bounds = array<i64: 1, 21, 6>}, {pipeline_mode = #tpu.pipeline_mode<synchronous>, transform_indices = @transform_1, window_bounds = array<i64: 6, 64>}, {pipeline_mode = #tpu.pipeline_mode<synchronous>, transform_indices = @transform_2, window_bounds = array<i64: 1, 64>}, {pipeline_mode = #tpu.pipeline_mode<synchronous>, transform_indices = @transform_3, window_bounds = array<i64: 1, 64>}, {pipeline_mode = #tpu.pipeline_mode<synchronous>, transform_indices = @transform_4, window_bounds = array<i64: 22, 64>}, {pipeline_mode = #tpu.pipeline_mode<synchronous>, transform_indices = @transform_5, window_bounds = array<i64: 2, 1, 64>}, {pipeline_mode = #tpu.pipeline_mode<synchronous>, transform_indices = @transform_6, window_bounds = array<i64: 2, 1, 64>}, {pipeline_mode = #tpu.pipeline_mode<synchronous>, transform_indices = @transform_7, window_bounds = array<i64: 2, 64, 192>}, {pipeline_mode = #tpu.pipeline_mode<synchronous>, transform_indices = @transform_8, window_bounds = array<i64: 2, 1, 192>}, {pipeline_mode = #tpu.pipeline_mode<synchronous>, transform_indices = @transform_9, window_bounds = array<i64: 2, 64, 64>}, {pipeline_mode = #tpu.pipeline_mode<synchronous>, transform_indices = @transform_10, window_bounds = array<i64: 2, 1, 64>}, {pipeline_mode = #tpu.pipeline_mode<synchronous>, transform_indices = @transform_11, window_bounds = array<i64: 2, 1, 64>}, {pipeline_mode = #tpu.pipeline_mode<synchronous>, transform_indices = @transform_12, window_bounds = array<i64: 2, 1, 64>}, {pipeline_mode = #tpu.pipeline_mode<synchronous>, transform_indices = @transform_13, window_bounds = array<i64: 2, 64, 128>}, {pipeline_mode = #tpu.pipeline_mode<synchronous>, transform_indices = @transform_14, window_bounds = array<i64: 2, 1, 128>}, {pipeline_mode = #tpu.pipeline_mode<synchronous>, transform_indices = @transform_15, window_bounds = array<i64: 2, 128, 64>}, {pipeline_mode = #tpu.pipeline_mode<synchronous>, transform_indices = @transform_16, window_bounds = array<i64: 2, 1, 64>}, {transform_indices = @transform_17, window_bounds = array<i64: 1, 22, 64>}]} {
    %c0 = arith.constant 0 : index
    %c0_0 = arith.constant 0 : index
    %c0_1 = arith.constant 0 : index
    %0 = vector.load %arg1[%c0, %c0_0, %c0_1] : memref<1x21x6xf32, #tpu.memory_space<vmem>>, vector<1x21x6xf32>
    %1 = vector.shape_cast %0 : vector<1x21x6xf32> to vector<21x6xf32>
    %c0_2 = arith.constant 0 : index
    %c0_3 = arith.constant 0 : index
    %2 = vector.load %arg2[%c0_2, %c0_3] : memref<6x64xf32, #tpu.memory_space<vmem>>, vector<6x64xf32>
    %cst = arith.constant dense<0.000000e+00> : vector<21x64xf32>
    %3 = tpu.matmul %1, %2, %cst {dimension_numbers = #tpu.dot_dimension_numbers<[1], [0], [0], [1], [0, 0, 1, 1], [], []>} : vector<21x6xf32>, vector<6x64xf32>, vector<21x64xf32> -> vector<21x64xf32>
    %c0_4 = arith.constant 0 : index
    %c0_5 = arith.constant 0 : index
    %4 = vector.load %arg3[%c0_4, %c0_5] : memref<1x64xf32, #tpu.memory_space<vmem>>, vector<1x64xf32>
    %5 = vector.broadcast %4 : vector<1x64xf32> to vector<21x64xf32>
    %6 = arith.addf %3, %5 : vector<21x64xf32>
    %c0_6 = arith.constant 0 : index
    %c0_7 = arith.constant 0 : index
    %7 = vector.load %arg4[%c0_6, %c0_7] : memref<1x64xf32, #tpu.memory_space<vmem>>, vector<1x64xf32>
    %8 = tpu.concatenate %7, %6 in 0 : vector<1x64xf32>, vector<21x64xf32> -> vector<22x64xf32>
    %c0_8 = arith.constant 0 : index
    %c0_9 = arith.constant 0 : index
    %9 = vector.load %arg5[%c0_8, %c0_9] : memref<22x64xf32, #tpu.memory_space<vmem>>, vector<22x64xf32>
    %10 = arith.addf %8, %9 : vector<22x64xf32>
    %c0_10 = arith.constant 0 : index
    %c0_11 = arith.constant 0 : index
    %c0_12 = arith.constant 0 : index
    %11 = vector.load %arg6[%c0_10, %c0_11, %c0_12] : memref<2x1x64xf32, #tpu.memory_space<vmem>>, vector<1x1x64xf32>
    %12 = vector.shape_cast %11 : vector<1x1x64xf32> to vector<1x64xf32>
    %c0_13 = arith.constant 0 : index
    %c0_14 = arith.constant 0 : index
    %c0_15 = arith.constant 0 : index
    %13 = vector.load %arg7[%c0_13, %c0_14, %c0_15] : memref<2x1x64xf32, #tpu.memory_space<vmem>>, vector<1x1x64xf32>
    %14 = vector.shape_cast %13 : vector<1x1x64xf32> to vector<1x64xf32>
    %cst_16 = arith.constant dense<0.000000e+00> : vector<22xf32>
    %15 = vector.multi_reduction <add>, %10, %cst_16 [1] : vector<22x64xf32> to vector<22xf32>
    %16 = vector.shape_cast %15 : vector<22xf32> to vector<22x1xf32>
    %cst_17 = arith.constant 6.400000e+01 : f32
    %17 = vector.broadcast %cst_17 : f32 to vector<22x1xf32>
    %18 = arith.divf %16, %17 : vector<22x1xf32>
    %19 = vector.broadcast %18 : vector<22x1xf32> to vector<22x64xf32>
    %20 = arith.subf %10, %19 : vector<22x64xf32>
    %21 = arith.mulf %20, %20 : vector<22x64xf32>
    %cst_18 = arith.constant dense<0.000000e+00> : vector<22xf32>
    %22 = vector.multi_reduction <add>, %21, %cst_18 [1] : vector<22x64xf32> to vector<22xf32>
    %23 = vector.shape_cast %22 : vector<22xf32> to vector<22x1xf32>
    %cst_19 = arith.constant 6.400000e+01 : f32
    %24 = vector.broadcast %cst_19 : f32 to vector<22x1xf32>
    %25 = arith.divf %23, %24 : vector<22x1xf32>
    %cst_20 = arith.constant 9.99999974E-6 : f32
    %26 = vector.broadcast %cst_20 : f32 to vector<22x1xf32>
    %27 = arith.addf %25, %26 : vector<22x1xf32>
    %28 = math.rsqrt %27 : vector<22x1xf32>
    %29 = vector.broadcast %28 : vector<22x1xf32> to vector<22x64xf32>
    %30 = arith.mulf %20, %29 : vector<22x64xf32>
    %31 = vector.broadcast %12 : vector<1x64xf32> to vector<22x64xf32>
    %32 = arith.mulf %30, %31 : vector<22x64xf32>
    %33 = vector.broadcast %14 : vector<1x64xf32> to vector<22x64xf32>
    %34 = arith.addf %32, %33 : vector<22x64xf32>
    %c0_21 = arith.constant 0 : index
    %c0_22 = arith.constant 0 : index
    %c0_23 = arith.constant 0 : index
    %35 = vector.load %arg8[%c0_21, %c0_22, %c0_23] : memref<2x64x192xf32, #tpu.memory_space<vmem>>, vector<1x64x192xf32>
    %36 = vector.shape_cast %35 : vector<1x64x192xf32> to vector<64x192xf32>
    %cst_24 = arith.constant dense<0.000000e+00> : vector<22x192xf32>
    %37 = tpu.matmul %34, %36, %cst_24 {dimension_numbers = #tpu.dot_dimension_numbers<[1], [0], [0], [1], [0, 0, 1, 1], [], []>} : vector<22x64xf32>, vector<64x192xf32>, vector<22x192xf32> -> vector<22x192xf32>
    %c0_25 = arith.constant 0 : index
    %c0_26 = arith.constant 0 : index
    %c0_27 = arith.constant 0 : index
    %38 = vector.load %arg9[%c0_25, %c0_26, %c0_27] : memref<2x1x192xf32, #tpu.memory_space<vmem>>, vector<1x1x192xf32>
    %39 = vector.shape_cast %38 : vector<1x1x192xf32> to vector<1x192xf32>
    %40 = vector.broadcast %39 : vector<1x192xf32> to vector<22x192xf32>
    %41 = arith.addf %37, %40 : vector<22x192xf32>
    %42 = vector.extract_strided_slice %41 {offsets = [0, 0], sizes = [22, 64], strides = [1, 1]} : vector<22x192xf32> to vector<22x64xf32>
    %43 = vector.extract_strided_slice %41 {offsets = [0, 64], sizes = [22, 64], strides = [1, 1]} : vector<22x192xf32> to vector<22x64xf32>
    %44 = vector.extract_strided_slice %41 {offsets = [0, 128], sizes = [22, 64], strides = [1, 1]} : vector<22x192xf32> to vector<22x64xf32>
    %45 = vector.extract_strided_slice %42 {offsets = [0, 0], sizes = [22, 16], strides = [1, 1]} : vector<22x64xf32> to vector<22x16xf32>
    %46 = vector.extract_strided_slice %43 {offsets = [0, 0], sizes = [22, 16], strides = [1, 1]} : vector<22x64xf32> to vector<22x16xf32>
    %47 = vector.extract_strided_slice %44 {offsets = [0, 0], sizes = [22, 16], strides = [1, 1]} : vector<22x64xf32> to vector<22x16xf32>
    %cst_28 = arith.constant dense<0.000000e+00> : vector<22x22xf32>
    %48 = tpu.matmul %45, %46, %cst_28 {dimension_numbers = #tpu.dot_dimension_numbers<[1], [1], [0], [0], [0, 0, 1, 0], [], []>} : vector<22x16xf32>, vector<22x16xf32>, vector<22x22xf32> -> vector<22x22xf32>
    %cst_29 = arith.constant dense<0xFF800000> : vector<22xf32>
    %49 = vector.multi_reduction <maximumf>, %48, %cst_29 [1] : vector<22x22xf32> to vector<22xf32>
    %50 = vector.shape_cast %49 : vector<22xf32> to vector<22x1xf32>
    %51 = vector.broadcast %50 : vector<22x1xf32> to vector<22x22xf32>
    %52 = arith.subf %48, %51 : vector<22x22xf32>
    %53 = math.exp %52 : vector<22x22xf32>
    %cst_30 = arith.constant dense<0.000000e+00> : vector<22xf32>
    %54 = vector.multi_reduction <add>, %53, %cst_30 [1] : vector<22x22xf32> to vector<22xf32>
    %55 = vector.shape_cast %54 : vector<22xf32> to vector<22x1xf32>
    %56 = tpu.reciprocal %55 {approx = true} : vector<22x1xf32> -> vector<22x1xf32>
    %57 = vector.broadcast %56 : vector<22x1xf32> to vector<22x22xf32>
    %58 = arith.mulf %53, %57 : vector<22x22xf32>
    %cst_31 = arith.constant dense<0.000000e+00> : vector<22x16xf32>
    %59 = tpu.matmul %58, %47, %cst_31 {dimension_numbers = #tpu.dot_dimension_numbers<[1], [0], [0], [1], [0, 0, 1, 1], [], []>} : vector<22x22xf32>, vector<22x16xf32>, vector<22x16xf32> -> vector<22x16xf32>
    %60 = vector.extract_strided_slice %42 {offsets = [0, 16], sizes = [22, 16], strides = [1, 1]} : vector<22x64xf32> to vector<22x16xf32>
    %61 = vector.extract_strided_slice %43 {offsets = [0, 16], sizes = [22, 16], strides = [1, 1]} : vector<22x64xf32> to vector<22x16xf32>
    %62 = vector.extract_strided_slice %44 {offsets = [0, 16], sizes = [22, 16], strides = [1, 1]} : vector<22x64xf32> to vector<22x16xf32>
    %cst_32 = arith.constant dense<0.000000e+00> : vector<22x22xf32>
    %63 = tpu.matmul %60, %61, %cst_32 {dimension_numbers = #tpu.dot_dimension_numbers<[1], [1], [0], [0], [0, 0, 1, 0], [], []>} : vector<22x16xf32>, vector<22x16xf32>, vector<22x22xf32> -> vector<22x22xf32>
    %cst_33 = arith.constant dense<0xFF800000> : vector<22xf32>
    %64 = vector.multi_reduction <maximumf>, %63, %cst_33 [1] : vector<22x22xf32> to vector<22xf32>
    %65 = vector.shape_cast %64 : vector<22xf32> to vector<22x1xf32>
    %66 = vector.broadcast %65 : vector<22x1xf32> to vector<22x22xf32>
    %67 = arith.subf %63, %66 : vector<22x22xf32>
    %68 = math.exp %67 : vector<22x22xf32>
    %cst_34 = arith.constant dense<0.000000e+00> : vector<22xf32>
    %69 = vector.multi_reduction <add>, %68, %cst_34 [1] : vector<22x22xf32> to vector<22xf32>
    %70 = vector.shape_cast %69 : vector<22xf32> to vector<22x1xf32>
    %71 = tpu.reciprocal %70 {approx = true} : vector<22x1xf32> -> vector<22x1xf32>
    %72 = vector.broadcast %71 : vector<22x1xf32> to vector<22x22xf32>
    %73 = arith.mulf %68, %72 : vector<22x22xf32>
    %cst_35 = arith.constant dense<0.000000e+00> : vector<22x16xf32>
    %74 = tpu.matmul %73, %62, %cst_35 {dimension_numbers = #tpu.dot_dimension_numbers<[1], [0], [0], [1], [0, 0, 1, 1], [], []>} : vector<22x22xf32>, vector<22x16xf32>, vector<22x16xf32> -> vector<22x16xf32>
    %75 = vector.extract_strided_slice %42 {offsets = [0, 32], sizes = [22, 16], strides = [1, 1]} : vector<22x64xf32> to vector<22x16xf32>
    %76 = vector.extract_strided_slice %43 {offsets = [0, 32], sizes = [22, 16], strides = [1, 1]} : vector<22x64xf32> to vector<22x16xf32>
    %77 = vector.extract_strided_slice %44 {offsets = [0, 32], sizes = [22, 16], strides = [1, 1]} : vector<22x64xf32> to vector<22x16xf32>
    %cst_36 = arith.constant dense<0.000000e+00> : vector<22x22xf32>
    %78 = tpu.matmul %75, %76, %cst_36 {dimension_numbers = #tpu.dot_dimension_numbers<[1], [1], [0], [0], [0, 0, 1, 0], [], []>} : vector<22x16xf32>, vector<22x16xf32>, vector<22x22xf32> -> vector<22x22xf32>
    %cst_37 = arith.constant dense<0xFF800000> : vector<22xf32>
    %79 = vector.multi_reduction <maximumf>, %78, %cst_37 [1] : vector<22x22xf32> to vector<22xf32>
    %80 = vector.shape_cast %79 : vector<22xf32> to vector<22x1xf32>
    %81 = vector.broadcast %80 : vector<22x1xf32> to vector<22x22xf32>
    %82 = arith.subf %78, %81 : vector<22x22xf32>
    %83 = math.exp %82 : vector<22x22xf32>
    %cst_38 = arith.constant dense<0.000000e+00> : vector<22xf32>
    %84 = vector.multi_reduction <add>, %83, %cst_38 [1] : vector<22x22xf32> to vector<22xf32>
    %85 = vector.shape_cast %84 : vector<22xf32> to vector<22x1xf32>
    %86 = tpu.reciprocal %85 {approx = true} : vector<22x1xf32> -> vector<22x1xf32>
    %87 = vector.broadcast %86 : vector<22x1xf32> to vector<22x22xf32>
    %88 = arith.mulf %83, %87 : vector<22x22xf32>
    %cst_39 = arith.constant dense<0.000000e+00> : vector<22x16xf32>
    %89 = tpu.matmul %88, %77, %cst_39 {dimension_numbers = #tpu.dot_dimension_numbers<[1], [0], [0], [1], [0, 0, 1, 1], [], []>} : vector<22x22xf32>, vector<22x16xf32>, vector<22x16xf32> -> vector<22x16xf32>
    %90 = vector.extract_strided_slice %42 {offsets = [0, 48], sizes = [22, 16], strides = [1, 1]} : vector<22x64xf32> to vector<22x16xf32>
    %91 = vector.extract_strided_slice %43 {offsets = [0, 48], sizes = [22, 16], strides = [1, 1]} : vector<22x64xf32> to vector<22x16xf32>
    %92 = vector.extract_strided_slice %44 {offsets = [0, 48], sizes = [22, 16], strides = [1, 1]} : vector<22x64xf32> to vector<22x16xf32>
    %cst_40 = arith.constant dense<0.000000e+00> : vector<22x22xf32>
    %93 = tpu.matmul %90, %91, %cst_40 {dimension_numbers = #tpu.dot_dimension_numbers<[1], [1], [0], [0], [0, 0, 1, 0], [], []>} : vector<22x16xf32>, vector<22x16xf32>, vector<22x22xf32> -> vector<22x22xf32>
    %cst_41 = arith.constant dense<0xFF800000> : vector<22xf32>
    %94 = vector.multi_reduction <maximumf>, %93, %cst_41 [1] : vector<22x22xf32> to vector<22xf32>
    %95 = vector.shape_cast %94 : vector<22xf32> to vector<22x1xf32>
    %96 = vector.broadcast %95 : vector<22x1xf32> to vector<22x22xf32>
    %97 = arith.subf %93, %96 : vector<22x22xf32>
    %98 = math.exp %97 : vector<22x22xf32>
    %cst_42 = arith.constant dense<0.000000e+00> : vector<22xf32>
    %99 = vector.multi_reduction <add>, %98, %cst_42 [1] : vector<22x22xf32> to vector<22xf32>
    %100 = vector.shape_cast %99 : vector<22xf32> to vector<22x1xf32>
    %101 = tpu.reciprocal %100 {approx = true} : vector<22x1xf32> -> vector<22x1xf32>
    %102 = vector.broadcast %101 : vector<22x1xf32> to vector<22x22xf32>
    %103 = arith.mulf %98, %102 : vector<22x22xf32>
    %cst_43 = arith.constant dense<0.000000e+00> : vector<22x16xf32>
    %104 = tpu.matmul %103, %92, %cst_43 {dimension_numbers = #tpu.dot_dimension_numbers<[1], [0], [0], [1], [0, 0, 1, 1], [], []>} : vector<22x22xf32>, vector<22x16xf32>, vector<22x16xf32> -> vector<22x16xf32>
    %105 = tpu.concatenate %59, %74, %89, %104 in 1 : vector<22x16xf32>, vector<22x16xf32>, vector<22x16xf32>, vector<22x16xf32> -> vector<22x64xf32>
    %c0_44 = arith.constant 0 : index
    %c0_45 = arith.constant 0 : index
    %c0_46 = arith.constant 0 : index
    %106 = vector.load %arg10[%c0_44, %c0_45, %c0_46] : memref<2x64x64xf32, #tpu.memory_space<vmem>>, vector<1x64x64xf32>
    %107 = vector.shape_cast %106 : vector<1x64x64xf32> to vector<64x64xf32>
    %cst_47 = arith.constant dense<0.000000e+00> : vector<22x64xf32>
    %108 = tpu.matmul %105, %107, %cst_47 {dimension_numbers = #tpu.dot_dimension_numbers<[1], [0], [0], [1], [0, 0, 1, 1], [], []>} : vector<22x64xf32>, vector<64x64xf32>, vector<22x64xf32> -> vector<22x64xf32>
    %109 = arith.addf %10, %108 : vector<22x64xf32>
    %c0_48 = arith.constant 0 : index
    %c0_49 = arith.constant 0 : index
    %c0_50 = arith.constant 0 : index
    %110 = vector.load %arg11[%c0_48, %c0_49, %c0_50] : memref<2x1x64xf32, #tpu.memory_space<vmem>>, vector<1x1x64xf32>
    %111 = vector.shape_cast %110 : vector<1x1x64xf32> to vector<1x64xf32>
    %112 = vector.broadcast %111 : vector<1x64xf32> to vector<22x64xf32>
    %113 = arith.addf %109, %112 : vector<22x64xf32>
    %c0_51 = arith.constant 0 : index
    %c0_52 = arith.constant 0 : index
    %c0_53 = arith.constant 0 : index
    %114 = vector.load %arg12[%c0_51, %c0_52, %c0_53] : memref<2x1x64xf32, #tpu.memory_space<vmem>>, vector<1x1x64xf32>
    %115 = vector.shape_cast %114 : vector<1x1x64xf32> to vector<1x64xf32>
    %c0_54 = arith.constant 0 : index
    %c0_55 = arith.constant 0 : index
    %c0_56 = arith.constant 0 : index
    %116 = vector.load %arg13[%c0_54, %c0_55, %c0_56] : memref<2x1x64xf32, #tpu.memory_space<vmem>>, vector<1x1x64xf32>
    %117 = vector.shape_cast %116 : vector<1x1x64xf32> to vector<1x64xf32>
    %cst_57 = arith.constant dense<0.000000e+00> : vector<22xf32>
    %118 = vector.multi_reduction <add>, %113, %cst_57 [1] : vector<22x64xf32> to vector<22xf32>
    %119 = vector.shape_cast %118 : vector<22xf32> to vector<22x1xf32>
    %cst_58 = arith.constant 6.400000e+01 : f32
    %120 = vector.broadcast %cst_58 : f32 to vector<22x1xf32>
    %121 = arith.divf %119, %120 : vector<22x1xf32>
    %122 = vector.broadcast %121 : vector<22x1xf32> to vector<22x64xf32>
    %123 = arith.subf %113, %122 : vector<22x64xf32>
    %124 = arith.mulf %123, %123 : vector<22x64xf32>
    %cst_59 = arith.constant dense<0.000000e+00> : vector<22xf32>
    %125 = vector.multi_reduction <add>, %124, %cst_59 [1] : vector<22x64xf32> to vector<22xf32>
    %126 = vector.shape_cast %125 : vector<22xf32> to vector<22x1xf32>
    %cst_60 = arith.constant 6.400000e+01 : f32
    %127 = vector.broadcast %cst_60 : f32 to vector<22x1xf32>
    %128 = arith.divf %126, %127 : vector<22x1xf32>
    %cst_61 = arith.constant 9.99999974E-6 : f32
    %129 = vector.broadcast %cst_61 : f32 to vector<22x1xf32>
    %130 = arith.addf %128, %129 : vector<22x1xf32>
    %131 = math.rsqrt %130 : vector<22x1xf32>
    %132 = vector.broadcast %131 : vector<22x1xf32> to vector<22x64xf32>
    %133 = arith.mulf %123, %132 : vector<22x64xf32>
    %134 = vector.broadcast %115 : vector<1x64xf32> to vector<22x64xf32>
    %135 = arith.mulf %133, %134 : vector<22x64xf32>
    %136 = vector.broadcast %117 : vector<1x64xf32> to vector<22x64xf32>
    %137 = arith.addf %135, %136 : vector<22x64xf32>
    %c0_62 = arith.constant 0 : index
    %c0_63 = arith.constant 0 : index
    %c0_64 = arith.constant 0 : index
    %138 = vector.load %arg14[%c0_62, %c0_63, %c0_64] : memref<2x64x128xf32, #tpu.memory_space<vmem>>, vector<1x64x128xf32>
    %139 = vector.shape_cast %138 : vector<1x64x128xf32> to vector<64x128xf32>
    %cst_65 = arith.constant dense<0.000000e+00> : vector<22x128xf32>
    %140 = tpu.matmul %137, %139, %cst_65 {dimension_numbers = #tpu.dot_dimension_numbers<[1], [0], [0], [1], [0, 0, 1, 1], [], []>} : vector<22x64xf32>, vector<64x128xf32>, vector<22x128xf32> -> vector<22x128xf32>
    %c0_66 = arith.constant 0 : index
    %c0_67 = arith.constant 0 : index
    %c0_68 = arith.constant 0 : index
    %141 = vector.load %arg15[%c0_66, %c0_67, %c0_68] : memref<2x1x128xf32, #tpu.memory_space<vmem>>, vector<1x1x128xf32>
    %142 = vector.shape_cast %141 : vector<1x1x128xf32> to vector<1x128xf32>
    %143 = vector.broadcast %142 : vector<1x128xf32> to vector<22x128xf32>
    %144 = arith.addf %140, %143 : vector<22x128xf32>
    %145 = arith.mulf %144, %144 : vector<22x128xf32>
    %146 = arith.mulf %144, %145 : vector<22x128xf32>
    %cst_69 = arith.constant 4.471500e-02 : f32
    %147 = vector.broadcast %cst_69 : f32 to vector<22x128xf32>
    %148 = arith.mulf %147, %146 : vector<22x128xf32>
    %149 = arith.addf %144, %148 : vector<22x128xf32>
    %cst_70 = arith.constant 0.797884583 : f32
    %150 = vector.broadcast %cst_70 : f32 to vector<22x128xf32>
    %151 = arith.mulf %150, %149 : vector<22x128xf32>
    %152 = math.tanh %151 : vector<22x128xf32>
    %cst_71 = arith.constant 1.000000e+00 : f32
    %153 = vector.broadcast %cst_71 : f32 to vector<22x128xf32>
    %154 = arith.addf %153, %152 : vector<22x128xf32>
    %cst_72 = arith.constant 5.000000e-01 : f32
    %155 = vector.broadcast %cst_72 : f32 to vector<22x128xf32>
    %156 = arith.mulf %155, %154 : vector<22x128xf32>
    %157 = arith.mulf %144, %156 : vector<22x128xf32>
    %c0_73 = arith.constant 0 : index
    %c0_74 = arith.constant 0 : index
    %c0_75 = arith.constant 0 : index
    %158 = vector.load %arg16[%c0_73, %c0_74, %c0_75] : memref<2x128x64xf32, #tpu.memory_space<vmem>>, vector<1x128x64xf32>
    %159 = vector.shape_cast %158 : vector<1x128x64xf32> to vector<128x64xf32>
    %cst_76 = arith.constant dense<0.000000e+00> : vector<22x64xf32>
    %160 = tpu.matmul %157, %159, %cst_76 {dimension_numbers = #tpu.dot_dimension_numbers<[1], [0], [0], [1], [0, 0, 1, 1], [], []>} : vector<22x128xf32>, vector<128x64xf32>, vector<22x64xf32> -> vector<22x64xf32>
    %161 = arith.addf %113, %160 : vector<22x64xf32>
    %c0_77 = arith.constant 0 : index
    %c0_78 = arith.constant 0 : index
    %c0_79 = arith.constant 0 : index
    %162 = vector.load %arg17[%c0_77, %c0_78, %c0_79] : memref<2x1x64xf32, #tpu.memory_space<vmem>>, vector<1x1x64xf32>
    %163 = vector.shape_cast %162 : vector<1x1x64xf32> to vector<1x64xf32>
    %164 = vector.broadcast %163 : vector<1x64xf32> to vector<22x64xf32>
    %165 = arith.addf %161, %164 : vector<22x64xf32>
    %c1 = arith.constant 1 : index
    %c0_80 = arith.constant 0 : index
    %c0_81 = arith.constant 0 : index
    %166 = vector.load %arg6[%c1, %c0_80, %c0_81] : memref<2x1x64xf32, #tpu.memory_space<vmem>>, vector<1x1x64xf32>
    %167 = vector.shape_cast %166 : vector<1x1x64xf32> to vector<1x64xf32>
    %c1_82 = arith.constant 1 : index
    %c0_83 = arith.constant 0 : index
    %c0_84 = arith.constant 0 : index
    %168 = vector.load %arg7[%c1_82, %c0_83, %c0_84] : memref<2x1x64xf32, #tpu.memory_space<vmem>>, vector<1x1x64xf32>
    %169 = vector.shape_cast %168 : vector<1x1x64xf32> to vector<1x64xf32>
    %cst_85 = arith.constant dense<0.000000e+00> : vector<22xf32>
    %170 = vector.multi_reduction <add>, %165, %cst_85 [1] : vector<22x64xf32> to vector<22xf32>
    %171 = vector.shape_cast %170 : vector<22xf32> to vector<22x1xf32>
    %cst_86 = arith.constant 6.400000e+01 : f32
    %172 = vector.broadcast %cst_86 : f32 to vector<22x1xf32>
    %173 = arith.divf %171, %172 : vector<22x1xf32>
    %174 = vector.broadcast %173 : vector<22x1xf32> to vector<22x64xf32>
    %175 = arith.subf %165, %174 : vector<22x64xf32>
    %176 = arith.mulf %175, %175 : vector<22x64xf32>
    %cst_87 = arith.constant dense<0.000000e+00> : vector<22xf32>
    %177 = vector.multi_reduction <add>, %176, %cst_87 [1] : vector<22x64xf32> to vector<22xf32>
    %178 = vector.shape_cast %177 : vector<22xf32> to vector<22x1xf32>
    %cst_88 = arith.constant 6.400000e+01 : f32
    %179 = vector.broadcast %cst_88 : f32 to vector<22x1xf32>
    %180 = arith.divf %178, %179 : vector<22x1xf32>
    %cst_89 = arith.constant 9.99999974E-6 : f32
    %181 = vector.broadcast %cst_89 : f32 to vector<22x1xf32>
    %182 = arith.addf %180, %181 : vector<22x1xf32>
    %183 = math.rsqrt %182 : vector<22x1xf32>
    %184 = vector.broadcast %183 : vector<22x1xf32> to vector<22x64xf32>
    %185 = arith.mulf %175, %184 : vector<22x64xf32>
    %186 = vector.broadcast %167 : vector<1x64xf32> to vector<22x64xf32>
    %187 = arith.mulf %185, %186 : vector<22x64xf32>
    %188 = vector.broadcast %169 : vector<1x64xf32> to vector<22x64xf32>
    %189 = arith.addf %187, %188 : vector<22x64xf32>
    %c1_90 = arith.constant 1 : index
    %c0_91 = arith.constant 0 : index
    %c0_92 = arith.constant 0 : index
    %190 = vector.load %arg8[%c1_90, %c0_91, %c0_92] : memref<2x64x192xf32, #tpu.memory_space<vmem>>, vector<1x64x192xf32>
    %191 = vector.shape_cast %190 : vector<1x64x192xf32> to vector<64x192xf32>
    %cst_93 = arith.constant dense<0.000000e+00> : vector<22x192xf32>
    %192 = tpu.matmul %189, %191, %cst_93 {dimension_numbers = #tpu.dot_dimension_numbers<[1], [0], [0], [1], [0, 0, 1, 1], [], []>} : vector<22x64xf32>, vector<64x192xf32>, vector<22x192xf32> -> vector<22x192xf32>
    %c1_94 = arith.constant 1 : index
    %c0_95 = arith.constant 0 : index
    %c0_96 = arith.constant 0 : index
    %193 = vector.load %arg9[%c1_94, %c0_95, %c0_96] : memref<2x1x192xf32, #tpu.memory_space<vmem>>, vector<1x1x192xf32>
    %194 = vector.shape_cast %193 : vector<1x1x192xf32> to vector<1x192xf32>
    %195 = vector.broadcast %194 : vector<1x192xf32> to vector<22x192xf32>
    %196 = arith.addf %192, %195 : vector<22x192xf32>
    %197 = vector.extract_strided_slice %196 {offsets = [0, 0], sizes = [22, 64], strides = [1, 1]} : vector<22x192xf32> to vector<22x64xf32>
    %198 = vector.extract_strided_slice %196 {offsets = [0, 64], sizes = [22, 64], strides = [1, 1]} : vector<22x192xf32> to vector<22x64xf32>
    %199 = vector.extract_strided_slice %196 {offsets = [0, 128], sizes = [22, 64], strides = [1, 1]} : vector<22x192xf32> to vector<22x64xf32>
    %200 = vector.extract_strided_slice %197 {offsets = [0, 0], sizes = [22, 16], strides = [1, 1]} : vector<22x64xf32> to vector<22x16xf32>
    %201 = vector.extract_strided_slice %198 {offsets = [0, 0], sizes = [22, 16], strides = [1, 1]} : vector<22x64xf32> to vector<22x16xf32>
    %202 = vector.extract_strided_slice %199 {offsets = [0, 0], sizes = [22, 16], strides = [1, 1]} : vector<22x64xf32> to vector<22x16xf32>
    %cst_97 = arith.constant dense<0.000000e+00> : vector<22x22xf32>
    %203 = tpu.matmul %200, %201, %cst_97 {dimension_numbers = #tpu.dot_dimension_numbers<[1], [1], [0], [0], [0, 0, 1, 0], [], []>} : vector<22x16xf32>, vector<22x16xf32>, vector<22x22xf32> -> vector<22x22xf32>
    %cst_98 = arith.constant dense<0xFF800000> : vector<22xf32>
    %204 = vector.multi_reduction <maximumf>, %203, %cst_98 [1] : vector<22x22xf32> to vector<22xf32>
    %205 = vector.shape_cast %204 : vector<22xf32> to vector<22x1xf32>
    %206 = vector.broadcast %205 : vector<22x1xf32> to vector<22x22xf32>
    %207 = arith.subf %203, %206 : vector<22x22xf32>
    %208 = math.exp %207 : vector<22x22xf32>
    %cst_99 = arith.constant dense<0.000000e+00> : vector<22xf32>
    %209 = vector.multi_reduction <add>, %208, %cst_99 [1] : vector<22x22xf32> to vector<22xf32>
    %210 = vector.shape_cast %209 : vector<22xf32> to vector<22x1xf32>
    %211 = tpu.reciprocal %210 {approx = true} : vector<22x1xf32> -> vector<22x1xf32>
    %212 = vector.broadcast %211 : vector<22x1xf32> to vector<22x22xf32>
    %213 = arith.mulf %208, %212 : vector<22x22xf32>
    %cst_100 = arith.constant dense<0.000000e+00> : vector<22x16xf32>
    %214 = tpu.matmul %213, %202, %cst_100 {dimension_numbers = #tpu.dot_dimension_numbers<[1], [0], [0], [1], [0, 0, 1, 1], [], []>} : vector<22x22xf32>, vector<22x16xf32>, vector<22x16xf32> -> vector<22x16xf32>
    %215 = vector.extract_strided_slice %197 {offsets = [0, 16], sizes = [22, 16], strides = [1, 1]} : vector<22x64xf32> to vector<22x16xf32>
    %216 = vector.extract_strided_slice %198 {offsets = [0, 16], sizes = [22, 16], strides = [1, 1]} : vector<22x64xf32> to vector<22x16xf32>
    %217 = vector.extract_strided_slice %199 {offsets = [0, 16], sizes = [22, 16], strides = [1, 1]} : vector<22x64xf32> to vector<22x16xf32>
    %cst_101 = arith.constant dense<0.000000e+00> : vector<22x22xf32>
    %218 = tpu.matmul %215, %216, %cst_101 {dimension_numbers = #tpu.dot_dimension_numbers<[1], [1], [0], [0], [0, 0, 1, 0], [], []>} : vector<22x16xf32>, vector<22x16xf32>, vector<22x22xf32> -> vector<22x22xf32>
    %cst_102 = arith.constant dense<0xFF800000> : vector<22xf32>
    %219 = vector.multi_reduction <maximumf>, %218, %cst_102 [1] : vector<22x22xf32> to vector<22xf32>
    %220 = vector.shape_cast %219 : vector<22xf32> to vector<22x1xf32>
    %221 = vector.broadcast %220 : vector<22x1xf32> to vector<22x22xf32>
    %222 = arith.subf %218, %221 : vector<22x22xf32>
    %223 = math.exp %222 : vector<22x22xf32>
    %cst_103 = arith.constant dense<0.000000e+00> : vector<22xf32>
    %224 = vector.multi_reduction <add>, %223, %cst_103 [1] : vector<22x22xf32> to vector<22xf32>
    %225 = vector.shape_cast %224 : vector<22xf32> to vector<22x1xf32>
    %226 = tpu.reciprocal %225 {approx = true} : vector<22x1xf32> -> vector<22x1xf32>
    %227 = vector.broadcast %226 : vector<22x1xf32> to vector<22x22xf32>
    %228 = arith.mulf %223, %227 : vector<22x22xf32>
    %cst_104 = arith.constant dense<0.000000e+00> : vector<22x16xf32>
    %229 = tpu.matmul %228, %217, %cst_104 {dimension_numbers = #tpu.dot_dimension_numbers<[1], [0], [0], [1], [0, 0, 1, 1], [], []>} : vector<22x22xf32>, vector<22x16xf32>, vector<22x16xf32> -> vector<22x16xf32>
    %230 = vector.extract_strided_slice %197 {offsets = [0, 32], sizes = [22, 16], strides = [1, 1]} : vector<22x64xf32> to vector<22x16xf32>
    %231 = vector.extract_strided_slice %198 {offsets = [0, 32], sizes = [22, 16], strides = [1, 1]} : vector<22x64xf32> to vector<22x16xf32>
    %232 = vector.extract_strided_slice %199 {offsets = [0, 32], sizes = [22, 16], strides = [1, 1]} : vector<22x64xf32> to vector<22x16xf32>
    %cst_105 = arith.constant dense<0.000000e+00> : vector<22x22xf32>
    %233 = tpu.matmul %230, %231, %cst_105 {dimension_numbers = #tpu.dot_dimension_numbers<[1], [1], [0], [0], [0, 0, 1, 0], [], []>} : vector<22x16xf32>, vector<22x16xf32>, vector<22x22xf32> -> vector<22x22xf32>
    %cst_106 = arith.constant dense<0xFF800000> : vector<22xf32>
    %234 = vector.multi_reduction <maximumf>, %233, %cst_106 [1] : vector<22x22xf32> to vector<22xf32>
    %235 = vector.shape_cast %234 : vector<22xf32> to vector<22x1xf32>
    %236 = vector.broadcast %235 : vector<22x1xf32> to vector<22x22xf32>
    %237 = arith.subf %233, %236 : vector<22x22xf32>
    %238 = math.exp %237 : vector<22x22xf32>
    %cst_107 = arith.constant dense<0.000000e+00> : vector<22xf32>
    %239 = vector.multi_reduction <add>, %238, %cst_107 [1] : vector<22x22xf32> to vector<22xf32>
    %240 = vector.shape_cast %239 : vector<22xf32> to vector<22x1xf32>
    %241 = tpu.reciprocal %240 {approx = true} : vector<22x1xf32> -> vector<22x1xf32>
    %242 = vector.broadcast %241 : vector<22x1xf32> to vector<22x22xf32>
    %243 = arith.mulf %238, %242 : vector<22x22xf32>
    %cst_108 = arith.constant dense<0.000000e+00> : vector<22x16xf32>
    %244 = tpu.matmul %243, %232, %cst_108 {dimension_numbers = #tpu.dot_dimension_numbers<[1], [0], [0], [1], [0, 0, 1, 1], [], []>} : vector<22x22xf32>, vector<22x16xf32>, vector<22x16xf32> -> vector<22x16xf32>
    %245 = vector.extract_strided_slice %197 {offsets = [0, 48], sizes = [22, 16], strides = [1, 1]} : vector<22x64xf32> to vector<22x16xf32>
    %246 = vector.extract_strided_slice %198 {offsets = [0, 48], sizes = [22, 16], strides = [1, 1]} : vector<22x64xf32> to vector<22x16xf32>
    %247 = vector.extract_strided_slice %199 {offsets = [0, 48], sizes = [22, 16], strides = [1, 1]} : vector<22x64xf32> to vector<22x16xf32>
    %cst_109 = arith.constant dense<0.000000e+00> : vector<22x22xf32>
    %248 = tpu.matmul %245, %246, %cst_109 {dimension_numbers = #tpu.dot_dimension_numbers<[1], [1], [0], [0], [0, 0, 1, 0], [], []>} : vector<22x16xf32>, vector<22x16xf32>, vector<22x22xf32> -> vector<22x22xf32>
    %cst_110 = arith.constant dense<0xFF800000> : vector<22xf32>
    %249 = vector.multi_reduction <maximumf>, %248, %cst_110 [1] : vector<22x22xf32> to vector<22xf32>
    %250 = vector.shape_cast %249 : vector<22xf32> to vector<22x1xf32>
    %251 = vector.broadcast %250 : vector<22x1xf32> to vector<22x22xf32>
    %252 = arith.subf %248, %251 : vector<22x22xf32>
    %253 = math.exp %252 : vector<22x22xf32>
    %cst_111 = arith.constant dense<0.000000e+00> : vector<22xf32>
    %254 = vector.multi_reduction <add>, %253, %cst_111 [1] : vector<22x22xf32> to vector<22xf32>
    %255 = vector.shape_cast %254 : vector<22xf32> to vector<22x1xf32>
    %256 = tpu.reciprocal %255 {approx = true} : vector<22x1xf32> -> vector<22x1xf32>
    %257 = vector.broadcast %256 : vector<22x1xf32> to vector<22x22xf32>
    %258 = arith.mulf %253, %257 : vector<22x22xf32>
    %cst_112 = arith.constant dense<0.000000e+00> : vector<22x16xf32>
    %259 = tpu.matmul %258, %247, %cst_112 {dimension_numbers = #tpu.dot_dimension_numbers<[1], [0], [0], [1], [0, 0, 1, 1], [], []>} : vector<22x22xf32>, vector<22x16xf32>, vector<22x16xf32> -> vector<22x16xf32>
    %260 = tpu.concatenate %214, %229, %244, %259 in 1 : vector<22x16xf32>, vector<22x16xf32>, vector<22x16xf32>, vector<22x16xf32> -> vector<22x64xf32>
    %c1_113 = arith.constant 1 : index
    %c0_114 = arith.constant 0 : index
    %c0_115 = arith.constant 0 : index
    %261 = vector.load %arg10[%c1_113, %c0_114, %c0_115] : memref<2x64x64xf32, #tpu.memory_space<vmem>>, vector<1x64x64xf32>
    %262 = vector.shape_cast %261 : vector<1x64x64xf32> to vector<64x64xf32>
    %cst_116 = arith.constant dense<0.000000e+00> : vector<22x64xf32>
    %263 = tpu.matmul %260, %262, %cst_116 {dimension_numbers = #tpu.dot_dimension_numbers<[1], [0], [0], [1], [0, 0, 1, 1], [], []>} : vector<22x64xf32>, vector<64x64xf32>, vector<22x64xf32> -> vector<22x64xf32>
    %264 = arith.addf %165, %263 : vector<22x64xf32>
    %c1_117 = arith.constant 1 : index
    %c0_118 = arith.constant 0 : index
    %c0_119 = arith.constant 0 : index
    %265 = vector.load %arg11[%c1_117, %c0_118, %c0_119] : memref<2x1x64xf32, #tpu.memory_space<vmem>>, vector<1x1x64xf32>
    %266 = vector.shape_cast %265 : vector<1x1x64xf32> to vector<1x64xf32>
    %267 = vector.broadcast %266 : vector<1x64xf32> to vector<22x64xf32>
    %268 = arith.addf %264, %267 : vector<22x64xf32>
    %c1_120 = arith.constant 1 : index
    %c0_121 = arith.constant 0 : index
    %c0_122 = arith.constant 0 : index
    %269 = vector.load %arg12[%c1_120, %c0_121, %c0_122] : memref<2x1x64xf32, #tpu.memory_space<vmem>>, vector<1x1x64xf32>
    %270 = vector.shape_cast %269 : vector<1x1x64xf32> to vector<1x64xf32>
    %c1_123 = arith.constant 1 : index
    %c0_124 = arith.constant 0 : index
    %c0_125 = arith.constant 0 : index
    %271 = vector.load %arg13[%c1_123, %c0_124, %c0_125] : memref<2x1x64xf32, #tpu.memory_space<vmem>>, vector<1x1x64xf32>
    %272 = vector.shape_cast %271 : vector<1x1x64xf32> to vector<1x64xf32>
    %cst_126 = arith.constant dense<0.000000e+00> : vector<22xf32>
    %273 = vector.multi_reduction <add>, %268, %cst_126 [1] : vector<22x64xf32> to vector<22xf32>
    %274 = vector.shape_cast %273 : vector<22xf32> to vector<22x1xf32>
    %cst_127 = arith.constant 6.400000e+01 : f32
    %275 = vector.broadcast %cst_127 : f32 to vector<22x1xf32>
    %276 = arith.divf %274, %275 : vector<22x1xf32>
    %277 = vector.broadcast %276 : vector<22x1xf32> to vector<22x64xf32>
    %278 = arith.subf %268, %277 : vector<22x64xf32>
    %279 = arith.mulf %278, %278 : vector<22x64xf32>
    %cst_128 = arith.constant dense<0.000000e+00> : vector<22xf32>
    %280 = vector.multi_reduction <add>, %279, %cst_128 [1] : vector<22x64xf32> to vector<22xf32>
    %281 = vector.shape_cast %280 : vector<22xf32> to vector<22x1xf32>
    %cst_129 = arith.constant 6.400000e+01 : f32
    %282 = vector.broadcast %cst_129 : f32 to vector<22x1xf32>
    %283 = arith.divf %281, %282 : vector<22x1xf32>
    %cst_130 = arith.constant 9.99999974E-6 : f32
    %284 = vector.broadcast %cst_130 : f32 to vector<22x1xf32>
    %285 = arith.addf %283, %284 : vector<22x1xf32>
    %286 = math.rsqrt %285 : vector<22x1xf32>
    %287 = vector.broadcast %286 : vector<22x1xf32> to vector<22x64xf32>
    %288 = arith.mulf %278, %287 : vector<22x64xf32>
    %289 = vector.broadcast %270 : vector<1x64xf32> to vector<22x64xf32>
    %290 = arith.mulf %288, %289 : vector<22x64xf32>
    %291 = vector.broadcast %272 : vector<1x64xf32> to vector<22x64xf32>
    %292 = arith.addf %290, %291 : vector<22x64xf32>
    %c1_131 = arith.constant 1 : index
    %c0_132 = arith.constant 0 : index
    %c0_133 = arith.constant 0 : index
    %293 = vector.load %arg14[%c1_131, %c0_132, %c0_133] : memref<2x64x128xf32, #tpu.memory_space<vmem>>, vector<1x64x128xf32>
    %294 = vector.shape_cast %293 : vector<1x64x128xf32> to vector<64x128xf32>
    %cst_134 = arith.constant dense<0.000000e+00> : vector<22x128xf32>
    %295 = tpu.matmul %292, %294, %cst_134 {dimension_numbers = #tpu.dot_dimension_numbers<[1], [0], [0], [1], [0, 0, 1, 1], [], []>} : vector<22x64xf32>, vector<64x128xf32>, vector<22x128xf32> -> vector<22x128xf32>
    %c1_135 = arith.constant 1 : index
    %c0_136 = arith.constant 0 : index
    %c0_137 = arith.constant 0 : index
    %296 = vector.load %arg15[%c1_135, %c0_136, %c0_137] : memref<2x1x128xf32, #tpu.memory_space<vmem>>, vector<1x1x128xf32>
    %297 = vector.shape_cast %296 : vector<1x1x128xf32> to vector<1x128xf32>
    %298 = vector.broadcast %297 : vector<1x128xf32> to vector<22x128xf32>
    %299 = arith.addf %295, %298 : vector<22x128xf32>
    %300 = arith.mulf %299, %299 : vector<22x128xf32>
    %301 = arith.mulf %299, %300 : vector<22x128xf32>
    %cst_138 = arith.constant 4.471500e-02 : f32
    %302 = vector.broadcast %cst_138 : f32 to vector<22x128xf32>
    %303 = arith.mulf %302, %301 : vector<22x128xf32>
    %304 = arith.addf %299, %303 : vector<22x128xf32>
    %cst_139 = arith.constant 0.797884583 : f32
    %305 = vector.broadcast %cst_139 : f32 to vector<22x128xf32>
    %306 = arith.mulf %305, %304 : vector<22x128xf32>
    %307 = math.tanh %306 : vector<22x128xf32>
    %cst_140 = arith.constant 1.000000e+00 : f32
    %308 = vector.broadcast %cst_140 : f32 to vector<22x128xf32>
    %309 = arith.addf %308, %307 : vector<22x128xf32>
    %cst_141 = arith.constant 5.000000e-01 : f32
    %310 = vector.broadcast %cst_141 : f32 to vector<22x128xf32>
    %311 = arith.mulf %310, %309 : vector<22x128xf32>
    %312 = arith.mulf %299, %311 : vector<22x128xf32>
    %c1_142 = arith.constant 1 : index
    %c0_143 = arith.constant 0 : index
    %c0_144 = arith.constant 0 : index
    %313 = vector.load %arg16[%c1_142, %c0_143, %c0_144] : memref<2x128x64xf32, #tpu.memory_space<vmem>>, vector<1x128x64xf32>
    %314 = vector.shape_cast %313 : vector<1x128x64xf32> to vector<128x64xf32>
    %cst_145 = arith.constant dense<0.000000e+00> : vector<22x64xf32>
    %315 = tpu.matmul %312, %314, %cst_145 {dimension_numbers = #tpu.dot_dimension_numbers<[1], [0], [0], [1], [0, 0, 1, 1], [], []>} : vector<22x128xf32>, vector<128x64xf32>, vector<22x64xf32> -> vector<22x64xf32>
    %316 = arith.addf %268, %315 : vector<22x64xf32>
    %c1_146 = arith.constant 1 : index
    %c0_147 = arith.constant 0 : index
    %c0_148 = arith.constant 0 : index
    %317 = vector.load %arg17[%c1_146, %c0_147, %c0_148] : memref<2x1x64xf32, #tpu.memory_space<vmem>>, vector<1x1x64xf32>
    %318 = vector.shape_cast %317 : vector<1x1x64xf32> to vector<1x64xf32>
    %319 = vector.broadcast %318 : vector<1x64xf32> to vector<22x64xf32>
    %320 = arith.addf %316, %319 : vector<22x64xf32>
    %c0_149 = arith.constant 0 : index
    %c0_150 = arith.constant 0 : index
    %c0_151 = arith.constant 0 : index
    %321 = vector.load %arg18[%c0_149, %c0_150, %c0_151] : memref<1x22x64xf32, #tpu.memory_space<vmem>>, vector<1x22x64xf32>
    %322 = vector.shape_cast %321 : vector<1x22x64xf32> to vector<22x64xf32>
    %323 = vector.shape_cast %320 : vector<22x64xf32> to vector<1x22x64xf32>
    tpu.vector_store %arg18[%c0_149, %c0_150, %c0_151], %323 {strides = array<i32>} : memref<1x22x64xf32, #tpu.memory_space<vmem>>, vector<1x22x64xf32>,
    return
  }
  func.func @transform_0(%arg0: i32) -> (i32, i32, i32) {
    %c0_i32 = arith.constant 0 : i32
    %c0_i32_0 = arith.constant 0 : i32
    %c0_i32_1 = arith.constant 0 : i32
    return %arg0, %c0_i32, %c0_i32_0 : i32, i32, i32
  }
  func.func @transform_1(%arg0: i32) -> (i32, i32) {
    %c0_i32 = arith.constant 0 : i32
    %c0_i32_0 = arith.constant 0 : i32
    %c0_i32_1 = arith.constant 0 : i32
    return %c0_i32, %c0_i32_0 : i32, i32
  }
  func.func @transform_2(%arg0: i32) -> (i32, i32) {
    %c0_i32 = arith.constant 0 : i32
    %c0_i32_0 = arith.constant 0 : i32
    %c0_i32_1 = arith.constant 0 : i32
    return %c0_i32, %c0_i32_0 : i32, i32
  }
  func.func @transform_3(%arg0: i32) -> (i32, i32) {
    %c0_i32 = arith.constant 0 : i32
    %c0_i32_0 = arith.constant 0 : i32
    %c0_i32_1 = arith.constant 0 : i32
    return %c0_i32, %c0_i32_0 : i32, i32
  }
  func.func @transform_4(%arg0: i32) -> (i32, i32) {
    %c0_i32 = arith.constant 0 : i32
    %c0_i32_0 = arith.constant 0 : i32
    %c0_i32_1 = arith.constant 0 : i32
    return %c0_i32, %c0_i32_0 : i32, i32
  }
  func.func @transform_5(%arg0: i32) -> (i32, i32, i32) {
    %c0_i32 = arith.constant 0 : i32
    %c0_i32_0 = arith.constant 0 : i32
    %c0_i32_1 = arith.constant 0 : i32
    %c0_i32_2 = arith.constant 0 : i32
    return %c0_i32, %c0_i32_0, %c0_i32_1 : i32, i32, i32
  }
  func.func @transform_6(%arg0: i32) -> (i32, i32, i32) {
    %c0_i32 = arith.constant 0 : i32
    %c0_i32_0 = arith.constant 0 : i32
    %c0_i32_1 = arith.constant 0 : i32
    %c0_i32_2 = arith.constant 0 : i32
    return %c0_i32, %c0_i32_0, %c0_i32_1 : i32, i32, i32
  }
  func.func @transform_7(%arg0: i32) -> (i32, i32, i32) {
    %c0_i32 = arith.constant 0 : i32
    %c0_i32_0 = arith.constant 0 : i32
    %c0_i32_1 = arith.constant 0 : i32
    %c0_i32_2 = arith.constant 0 : i32
    return %c0_i32, %c0_i32_0, %c0_i32_1 : i32, i32, i32
  }
  func.func @transform_8(%arg0: i32) -> (i32, i32, i32) {
    %c0_i32 = arith.constant 0 : i32
    %c0_i32_0 = arith.constant 0 : i32
    %c0_i32_1 = arith.constant 0 : i32
    %c0_i32_2 = arith.constant 0 : i32
    return %c0_i32, %c0_i32_0, %c0_i32_1 : i32, i32, i32
  }
  func.func @transform_9(%arg0: i32) -> (i32, i32, i32) {
    %c0_i32 = arith.constant 0 : i32
    %c0_i32_0 = arith.constant 0 : i32
    %c0_i32_1 = arith.constant 0 : i32
    %c0_i32_2 = arith.constant 0 : i32
    return %c0_i32, %c0_i32_0, %c0_i32_1 : i32, i32, i32
  }
  func.func @transform_10(%arg0: i32) -> (i32, i32, i32) {
    %c0_i32 = arith.constant 0 : i32
    %c0_i32_0 = arith.constant 0 : i32
    %c0_i32_1 = arith.constant 0 : i32
    %c0_i32_2 = arith.constant 0 : i32
    return %c0_i32, %c0_i32_0, %c0_i32_1 : i32, i32, i32
  }
  func.func @transform_11(%arg0: i32) -> (i32, i32, i32) {
    %c0_i32 = arith.constant 0 : i32
    %c0_i32_0 = arith.constant 0 : i32
    %c0_i32_1 = arith.constant 0 : i32
    %c0_i32_2 = arith.constant 0 : i32
    return %c0_i32, %c0_i32_0, %c0_i32_1 : i32, i32, i32
  }
  func.func @transform_12(%arg0: i32) -> (i32, i32, i32) {
    %c0_i32 = arith.constant 0 : i32
    %c0_i32_0 = arith.constant 0 : i32
    %c0_i32_1 = arith.constant 0 : i32
    %c0_i32_2 = arith.constant 0 : i32
    return %c0_i32, %c0_i32_0, %c0_i32_1 : i32, i32, i32
  }
  func.func @transform_13(%arg0: i32) -> (i32, i32, i32) {
    %c0_i32 = arith.constant 0 : i32
    %c0_i32_0 = arith.constant 0 : i32
    %c0_i32_1 = arith.constant 0 : i32
    %c0_i32_2 = arith.constant 0 : i32
    return %c0_i32, %c0_i32_0, %c0_i32_1 : i32, i32, i32
  }
  func.func @transform_14(%arg0: i32) -> (i32, i32, i32) {
    %c0_i32 = arith.constant 0 : i32
    %c0_i32_0 = arith.constant 0 : i32
    %c0_i32_1 = arith.constant 0 : i32
    %c0_i32_2 = arith.constant 0 : i32
    return %c0_i32, %c0_i32_0, %c0_i32_1 : i32, i32, i32
  }
  func.func @transform_15(%arg0: i32) -> (i32, i32, i32) {
    %c0_i32 = arith.constant 0 : i32
    %c0_i32_0 = arith.constant 0 : i32
    %c0_i32_1 = arith.constant 0 : i32
    %c0_i32_2 = arith.constant 0 : i32
    return %c0_i32, %c0_i32_0, %c0_i32_1 : i32, i32, i32
  }
  func.func @transform_16(%arg0: i32) -> (i32, i32, i32) {
    %c0_i32 = arith.constant 0 : i32
    %c0_i32_0 = arith.constant 0 : i32
    %c0_i32_1 = arith.constant 0 : i32
    %c0_i32_2 = arith.constant 0 : i32
    return %c0_i32, %c0_i32_0, %c0_i32_1 : i32, i32, i32
  }
  func.func @transform_17(%arg0: i32) -> (i32, i32, i32) {
    %c0_i32 = arith.constant 0 : i32
    %c0_i32_0 = arith.constant 0 : i32
    %c0_i32_1 = arith.constant 0 : i32
    return %arg0, %c0_i32, %c0_i32_0 : i32, i32, i32
  }
}

module attributes {stable_mosaic.version = 11 : i64} {
  func.func @_temporal_kernel(%arg0: i32, %arg1: memref<1x22x64xf32, #tpu.memory_space<vmem>>, %arg2: memref<1x8x22x64xf32, #tpu.memory_space<vmem>>, %arg3: memref<9x64xf32, #tpu.memory_space<vmem>>, %arg4: memref<2x1x64xf32, #tpu.memory_space<vmem>>, %arg5: memref<2x1x64xf32, #tpu.memory_space<vmem>>, %arg6: memref<2x64x192xf32, #tpu.memory_space<vmem>>, %arg7: memref<2x1x192xf32, #tpu.memory_space<vmem>>, %arg8: memref<2x64x64xf32, #tpu.memory_space<vmem>>, %arg9: memref<2x1x64xf32, #tpu.memory_space<vmem>>, %arg10: memref<2x1x64xf32, #tpu.memory_space<vmem>>, %arg11: memref<2x1x64xf32, #tpu.memory_space<vmem>>, %arg12: memref<2x64x128xf32, #tpu.memory_space<vmem>>, %arg13: memref<2x1x128xf32, #tpu.memory_space<vmem>>, %arg14: memref<2x128x64xf32, #tpu.memory_space<vmem>>, %arg15: memref<2x1x64xf32, #tpu.memory_space<vmem>>, %arg16: memref<1x64xf32, #tpu.memory_space<vmem>>, %arg17: memref<1x64xf32, #tpu.memory_space<vmem>>, %arg18: memref<64x32xf32, #tpu.memory_space<vmem>>, %arg19: memref<1x32xf32, #tpu.memory_space<vmem>>, %arg20: memref<1x1x32xf32, #tpu.memory_space<vmem>>) attributes {dimension_semantics = [#tpu.dimension_semantics<parallel>], iteration_bounds = array<i64: 2>, scalar_prefetch = 0 : i64, scratch_operands = 0 : i64, tpu.core_type = #tpu.core_type<tc>, window_params = [{transform_indices = @transform_0, window_bounds = array<i64: 1, 22, 64>}, {transform_indices = @transform_1, window_bounds = array<i64: 1, 8, 22, 64>}, {pipeline_mode = #tpu.pipeline_mode<synchronous>, transform_indices = @transform_2, window_bounds = array<i64: 9, 64>}, {pipeline_mode = #tpu.pipeline_mode<synchronous>, transform_indices = @transform_3, window_bounds = array<i64: 2, 1, 64>}, {pipeline_mode = #tpu.pipeline_mode<synchronous>, transform_indices = @transform_4, window_bounds = array<i64: 2, 1, 64>}, {pipeline_mode = #tpu.pipeline_mode<synchronous>, transform_indices = @transform_5, window_bounds = array<i64: 2, 64, 192>}, {pipeline_mode = #tpu.pipeline_mode<synchronous>, transform_indices = @transform_6, window_bounds = array<i64: 2, 1, 192>}, {pipeline_mode = #tpu.pipeline_mode<synchronous>, transform_indices = @transform_7, window_bounds = array<i64: 2, 64, 64>}, {pipeline_mode = #tpu.pipeline_mode<synchronous>, transform_indices = @transform_8, window_bounds = array<i64: 2, 1, 64>}, {pipeline_mode = #tpu.pipeline_mode<synchronous>, transform_indices = @transform_9, window_bounds = array<i64: 2, 1, 64>}, {pipeline_mode = #tpu.pipeline_mode<synchronous>, transform_indices = @transform_10, window_bounds = array<i64: 2, 1, 64>}, {pipeline_mode = #tpu.pipeline_mode<synchronous>, transform_indices = @transform_11, window_bounds = array<i64: 2, 64, 128>}, {pipeline_mode = #tpu.pipeline_mode<synchronous>, transform_indices = @transform_12, window_bounds = array<i64: 2, 1, 128>}, {pipeline_mode = #tpu.pipeline_mode<synchronous>, transform_indices = @transform_13, window_bounds = array<i64: 2, 128, 64>}, {pipeline_mode = #tpu.pipeline_mode<synchronous>, transform_indices = @transform_14, window_bounds = array<i64: 2, 1, 64>}, {pipeline_mode = #tpu.pipeline_mode<synchronous>, transform_indices = @transform_15, window_bounds = array<i64: 1, 64>}, {pipeline_mode = #tpu.pipeline_mode<synchronous>, transform_indices = @transform_16, window_bounds = array<i64: 1, 64>}, {pipeline_mode = #tpu.pipeline_mode<synchronous>, transform_indices = @transform_17, window_bounds = array<i64: 64, 32>}, {pipeline_mode = #tpu.pipeline_mode<synchronous>, transform_indices = @transform_18, window_bounds = array<i64: 1, 32>}, {transform_indices = @transform_19, window_bounds = array<i64: 1, 1, 32>}]} {
    %c0 = arith.constant 0 : index
    %c0_0 = arith.constant 0 : index
    %c0_1 = arith.constant 0 : index
    %0 = vector.load %arg1[%c0, %c0_0, %c0_1] : memref<1x22x64xf32, #tpu.memory_space<vmem>>, vector<1x22x64xf32>
    %1 = vector.shape_cast %0 : vector<1x22x64xf32> to vector<22x64xf32>
    %2 = vector.extract_strided_slice %1 {offsets = [0, 0], sizes = [1, 64], strides = [1, 1]} : vector<22x64xf32> to vector<1x64xf32>
    %c0_2 = arith.constant 0 : index
    %c0_3 = arith.constant 0 : index
    %c0_4 = arith.constant 0 : index
    %c0_5 = arith.constant 0 : index
    %3 = vector.load %arg2[%c0_2, %c0_3, %c0_4, %c0_5] : memref<1x8x22x64xf32, #tpu.memory_space<vmem>>, vector<1x8x22x64xf32>
    %4 = vector.shape_cast %3 : vector<1x8x22x64xf32> to vector<8x22x64xf32>
    %5 = vector.extract_strided_slice %4 {offsets = [0, 1, 0], sizes = [8, 21, 64], strides = [1, 1, 1]} : vector<8x22x64xf32> to vector<8x21x64xf32>
    %cst = arith.constant dense<0.000000e+00> : vector<8x64xf32>
    %6 = vector.multi_reduction <add>, %5, %cst [1] : vector<8x21x64xf32> to vector<8x64xf32>
    %cst_6 = arith.constant 2.100000e+01 : f32
    %7 = vector.broadcast %cst_6 : f32 to vector<8x64xf32>
    %8 = arith.divf %6, %7 : vector<8x64xf32>
    %9 = tpu.concatenate %2, %8 in 0 : vector<1x64xf32>, vector<8x64xf32> -> vector<9x64xf32>
    %c0_7 = arith.constant 0 : index
    %c0_8 = arith.constant 0 : index
    %10 = vector.load %arg3[%c0_7, %c0_8] : memref<9x64xf32, #tpu.memory_space<vmem>>, vector<9x64xf32>
    %11 = arith.addf %9, %10 : vector<9x64xf32>
    %c0_9 = arith.constant 0 : index
    %c0_10 = arith.constant 0 : index
    %c0_11 = arith.constant 0 : index
    %12 = vector.load %arg4[%c0_9, %c0_10, %c0_11] : memref<2x1x64xf32, #tpu.memory_space<vmem>>, vector<1x1x64xf32>
    %13 = vector.shape_cast %12 : vector<1x1x64xf32> to vector<1x64xf32>
    %c0_12 = arith.constant 0 : index
    %c0_13 = arith.constant 0 : index
    %c0_14 = arith.constant 0 : index
    %14 = vector.load %arg5[%c0_12, %c0_13, %c0_14] : memref<2x1x64xf32, #tpu.memory_space<vmem>>, vector<1x1x64xf32>
    %15 = vector.shape_cast %14 : vector<1x1x64xf32> to vector<1x64xf32>
    %cst_15 = arith.constant dense<0.000000e+00> : vector<9xf32>
    %16 = vector.multi_reduction <add>, %11, %cst_15 [1] : vector<9x64xf32> to vector<9xf32>
    %17 = vector.shape_cast %16 : vector<9xf32> to vector<9x1xf32>
    %cst_16 = arith.constant 6.400000e+01 : f32
    %18 = vector.broadcast %cst_16 : f32 to vector<9x1xf32>
    %19 = arith.divf %17, %18 : vector<9x1xf32>
    %20 = vector.broadcast %19 : vector<9x1xf32> to vector<9x64xf32>
    %21 = arith.subf %11, %20 : vector<9x64xf32>
    %22 = arith.mulf %21, %21 : vector<9x64xf32>
    %cst_17 = arith.constant dense<0.000000e+00> : vector<9xf32>
    %23 = vector.multi_reduction <add>, %22, %cst_17 [1] : vector<9x64xf32> to vector<9xf32>
    %24 = vector.shape_cast %23 : vector<9xf32> to vector<9x1xf32>
    %cst_18 = arith.constant 6.400000e+01 : f32
    %25 = vector.broadcast %cst_18 : f32 to vector<9x1xf32>
    %26 = arith.divf %24, %25 : vector<9x1xf32>
    %cst_19 = arith.constant 9.99999974E-6 : f32
    %27 = vector.broadcast %cst_19 : f32 to vector<9x1xf32>
    %28 = arith.addf %26, %27 : vector<9x1xf32>
    %29 = math.rsqrt %28 : vector<9x1xf32>
    %30 = vector.broadcast %29 : vector<9x1xf32> to vector<9x64xf32>
    %31 = arith.mulf %21, %30 : vector<9x64xf32>
    %32 = vector.broadcast %13 : vector<1x64xf32> to vector<9x64xf32>
    %33 = arith.mulf %31, %32 : vector<9x64xf32>
    %34 = vector.broadcast %15 : vector<1x64xf32> to vector<9x64xf32>
    %35 = arith.addf %33, %34 : vector<9x64xf32>
    %c0_20 = arith.constant 0 : index
    %c0_21 = arith.constant 0 : index
    %c0_22 = arith.constant 0 : index
    %36 = vector.load %arg6[%c0_20, %c0_21, %c0_22] : memref<2x64x192xf32, #tpu.memory_space<vmem>>, vector<1x64x192xf32>
    %37 = vector.shape_cast %36 : vector<1x64x192xf32> to vector<64x192xf32>
    %cst_23 = arith.constant dense<0.000000e+00> : vector<9x192xf32>
    %38 = tpu.matmul %35, %37, %cst_23 {dimension_numbers = #tpu.dot_dimension_numbers<[1], [0], [0], [1], [0, 0, 1, 1], [], []>} : vector<9x64xf32>, vector<64x192xf32>, vector<9x192xf32> -> vector<9x192xf32>
    %c0_24 = arith.constant 0 : index
    %c0_25 = arith.constant 0 : index
    %c0_26 = arith.constant 0 : index
    %39 = vector.load %arg7[%c0_24, %c0_25, %c0_26] : memref<2x1x192xf32, #tpu.memory_space<vmem>>, vector<1x1x192xf32>
    %40 = vector.shape_cast %39 : vector<1x1x192xf32> to vector<1x192xf32>
    %41 = vector.broadcast %40 : vector<1x192xf32> to vector<9x192xf32>
    %42 = arith.addf %38, %41 : vector<9x192xf32>
    %43 = vector.extract_strided_slice %42 {offsets = [0, 0], sizes = [9, 64], strides = [1, 1]} : vector<9x192xf32> to vector<9x64xf32>
    %44 = vector.extract_strided_slice %42 {offsets = [0, 64], sizes = [9, 64], strides = [1, 1]} : vector<9x192xf32> to vector<9x64xf32>
    %45 = vector.extract_strided_slice %42 {offsets = [0, 128], sizes = [9, 64], strides = [1, 1]} : vector<9x192xf32> to vector<9x64xf32>
    %46 = vector.extract_strided_slice %43 {offsets = [0, 0], sizes = [9, 16], strides = [1, 1]} : vector<9x64xf32> to vector<9x16xf32>
    %47 = vector.extract_strided_slice %44 {offsets = [0, 0], sizes = [9, 16], strides = [1, 1]} : vector<9x64xf32> to vector<9x16xf32>
    %48 = vector.extract_strided_slice %45 {offsets = [0, 0], sizes = [9, 16], strides = [1, 1]} : vector<9x64xf32> to vector<9x16xf32>
    %cst_27 = arith.constant dense<0.000000e+00> : vector<9x9xf32>
    %49 = tpu.matmul %46, %47, %cst_27 {dimension_numbers = #tpu.dot_dimension_numbers<[1], [1], [0], [0], [0, 0, 1, 0], [], []>} : vector<9x16xf32>, vector<9x16xf32>, vector<9x9xf32> -> vector<9x9xf32>
    %cst_28 = arith.constant dense<0xFF800000> : vector<9xf32>
    %50 = vector.multi_reduction <maximumf>, %49, %cst_28 [1] : vector<9x9xf32> to vector<9xf32>
    %51 = vector.shape_cast %50 : vector<9xf32> to vector<9x1xf32>
    %52 = vector.broadcast %51 : vector<9x1xf32> to vector<9x9xf32>
    %53 = arith.subf %49, %52 : vector<9x9xf32>
    %54 = math.exp %53 : vector<9x9xf32>
    %cst_29 = arith.constant dense<0.000000e+00> : vector<9xf32>
    %55 = vector.multi_reduction <add>, %54, %cst_29 [1] : vector<9x9xf32> to vector<9xf32>
    %56 = vector.shape_cast %55 : vector<9xf32> to vector<9x1xf32>
    %57 = tpu.reciprocal %56 {approx = true} : vector<9x1xf32> -> vector<9x1xf32>
    %58 = vector.broadcast %57 : vector<9x1xf32> to vector<9x9xf32>
    %59 = arith.mulf %54, %58 : vector<9x9xf32>
    %cst_30 = arith.constant dense<0.000000e+00> : vector<9x16xf32>
    %60 = tpu.matmul %59, %48, %cst_30 {dimension_numbers = #tpu.dot_dimension_numbers<[1], [0], [0], [1], [0, 0, 1, 1], [], []>} : vector<9x9xf32>, vector<9x16xf32>, vector<9x16xf32> -> vector<9x16xf32>
    %61 = vector.extract_strided_slice %43 {offsets = [0, 16], sizes = [9, 16], strides = [1, 1]} : vector<9x64xf32> to vector<9x16xf32>
    %62 = vector.extract_strided_slice %44 {offsets = [0, 16], sizes = [9, 16], strides = [1, 1]} : vector<9x64xf32> to vector<9x16xf32>
    %63 = vector.extract_strided_slice %45 {offsets = [0, 16], sizes = [9, 16], strides = [1, 1]} : vector<9x64xf32> to vector<9x16xf32>
    %cst_31 = arith.constant dense<0.000000e+00> : vector<9x9xf32>
    %64 = tpu.matmul %61, %62, %cst_31 {dimension_numbers = #tpu.dot_dimension_numbers<[1], [1], [0], [0], [0, 0, 1, 0], [], []>} : vector<9x16xf32>, vector<9x16xf32>, vector<9x9xf32> -> vector<9x9xf32>
    %cst_32 = arith.constant dense<0xFF800000> : vector<9xf32>
    %65 = vector.multi_reduction <maximumf>, %64, %cst_32 [1] : vector<9x9xf32> to vector<9xf32>
    %66 = vector.shape_cast %65 : vector<9xf32> to vector<9x1xf32>
    %67 = vector.broadcast %66 : vector<9x1xf32> to vector<9x9xf32>
    %68 = arith.subf %64, %67 : vector<9x9xf32>
    %69 = math.exp %68 : vector<9x9xf32>
    %cst_33 = arith.constant dense<0.000000e+00> : vector<9xf32>
    %70 = vector.multi_reduction <add>, %69, %cst_33 [1] : vector<9x9xf32> to vector<9xf32>
    %71 = vector.shape_cast %70 : vector<9xf32> to vector<9x1xf32>
    %72 = tpu.reciprocal %71 {approx = true} : vector<9x1xf32> -> vector<9x1xf32>
    %73 = vector.broadcast %72 : vector<9x1xf32> to vector<9x9xf32>
    %74 = arith.mulf %69, %73 : vector<9x9xf32>
    %cst_34 = arith.constant dense<0.000000e+00> : vector<9x16xf32>
    %75 = tpu.matmul %74, %63, %cst_34 {dimension_numbers = #tpu.dot_dimension_numbers<[1], [0], [0], [1], [0, 0, 1, 1], [], []>} : vector<9x9xf32>, vector<9x16xf32>, vector<9x16xf32> -> vector<9x16xf32>
    %76 = vector.extract_strided_slice %43 {offsets = [0, 32], sizes = [9, 16], strides = [1, 1]} : vector<9x64xf32> to vector<9x16xf32>
    %77 = vector.extract_strided_slice %44 {offsets = [0, 32], sizes = [9, 16], strides = [1, 1]} : vector<9x64xf32> to vector<9x16xf32>
    %78 = vector.extract_strided_slice %45 {offsets = [0, 32], sizes = [9, 16], strides = [1, 1]} : vector<9x64xf32> to vector<9x16xf32>
    %cst_35 = arith.constant dense<0.000000e+00> : vector<9x9xf32>
    %79 = tpu.matmul %76, %77, %cst_35 {dimension_numbers = #tpu.dot_dimension_numbers<[1], [1], [0], [0], [0, 0, 1, 0], [], []>} : vector<9x16xf32>, vector<9x16xf32>, vector<9x9xf32> -> vector<9x9xf32>
    %cst_36 = arith.constant dense<0xFF800000> : vector<9xf32>
    %80 = vector.multi_reduction <maximumf>, %79, %cst_36 [1] : vector<9x9xf32> to vector<9xf32>
    %81 = vector.shape_cast %80 : vector<9xf32> to vector<9x1xf32>
    %82 = vector.broadcast %81 : vector<9x1xf32> to vector<9x9xf32>
    %83 = arith.subf %79, %82 : vector<9x9xf32>
    %84 = math.exp %83 : vector<9x9xf32>
    %cst_37 = arith.constant dense<0.000000e+00> : vector<9xf32>
    %85 = vector.multi_reduction <add>, %84, %cst_37 [1] : vector<9x9xf32> to vector<9xf32>
    %86 = vector.shape_cast %85 : vector<9xf32> to vector<9x1xf32>
    %87 = tpu.reciprocal %86 {approx = true} : vector<9x1xf32> -> vector<9x1xf32>
    %88 = vector.broadcast %87 : vector<9x1xf32> to vector<9x9xf32>
    %89 = arith.mulf %84, %88 : vector<9x9xf32>
    %cst_38 = arith.constant dense<0.000000e+00> : vector<9x16xf32>
    %90 = tpu.matmul %89, %78, %cst_38 {dimension_numbers = #tpu.dot_dimension_numbers<[1], [0], [0], [1], [0, 0, 1, 1], [], []>} : vector<9x9xf32>, vector<9x16xf32>, vector<9x16xf32> -> vector<9x16xf32>
    %91 = vector.extract_strided_slice %43 {offsets = [0, 48], sizes = [9, 16], strides = [1, 1]} : vector<9x64xf32> to vector<9x16xf32>
    %92 = vector.extract_strided_slice %44 {offsets = [0, 48], sizes = [9, 16], strides = [1, 1]} : vector<9x64xf32> to vector<9x16xf32>
    %93 = vector.extract_strided_slice %45 {offsets = [0, 48], sizes = [9, 16], strides = [1, 1]} : vector<9x64xf32> to vector<9x16xf32>
    %cst_39 = arith.constant dense<0.000000e+00> : vector<9x9xf32>
    %94 = tpu.matmul %91, %92, %cst_39 {dimension_numbers = #tpu.dot_dimension_numbers<[1], [1], [0], [0], [0, 0, 1, 0], [], []>} : vector<9x16xf32>, vector<9x16xf32>, vector<9x9xf32> -> vector<9x9xf32>
    %cst_40 = arith.constant dense<0xFF800000> : vector<9xf32>
    %95 = vector.multi_reduction <maximumf>, %94, %cst_40 [1] : vector<9x9xf32> to vector<9xf32>
    %96 = vector.shape_cast %95 : vector<9xf32> to vector<9x1xf32>
    %97 = vector.broadcast %96 : vector<9x1xf32> to vector<9x9xf32>
    %98 = arith.subf %94, %97 : vector<9x9xf32>
    %99 = math.exp %98 : vector<9x9xf32>
    %cst_41 = arith.constant dense<0.000000e+00> : vector<9xf32>
    %100 = vector.multi_reduction <add>, %99, %cst_41 [1] : vector<9x9xf32> to vector<9xf32>
    %101 = vector.shape_cast %100 : vector<9xf32> to vector<9x1xf32>
    %102 = tpu.reciprocal %101 {approx = true} : vector<9x1xf32> -> vector<9x1xf32>
    %103 = vector.broadcast %102 : vector<9x1xf32> to vector<9x9xf32>
    %104 = arith.mulf %99, %103 : vector<9x9xf32>
    %cst_42 = arith.constant dense<0.000000e+00> : vector<9x16xf32>
    %105 = tpu.matmul %104, %93, %cst_42 {dimension_numbers = #tpu.dot_dimension_numbers<[1], [0], [0], [1], [0, 0, 1, 1], [], []>} : vector<9x9xf32>, vector<9x16xf32>, vector<9x16xf32> -> vector<9x16xf32>
    %106 = tpu.concatenate %60, %75, %90, %105 in 1 : vector<9x16xf32>, vector<9x16xf32>, vector<9x16xf32>, vector<9x16xf32> -> vector<9x64xf32>
    %c0_43 = arith.constant 0 : index
    %c0_44 = arith.constant 0 : index
    %c0_45 = arith.constant 0 : index
    %107 = vector.load %arg8[%c0_43, %c0_44, %c0_45] : memref<2x64x64xf32, #tpu.memory_space<vmem>>, vector<1x64x64xf32>
    %108 = vector.shape_cast %107 : vector<1x64x64xf32> to vector<64x64xf32>
    %cst_46 = arith.constant dense<0.000000e+00> : vector<9x64xf32>
    %109 = tpu.matmul %106, %108, %cst_46 {dimension_numbers = #tpu.dot_dimension_numbers<[1], [0], [0], [1], [0, 0, 1, 1], [], []>} : vector<9x64xf32>, vector<64x64xf32>, vector<9x64xf32> -> vector<9x64xf32>
    %110 = arith.addf %11, %109 : vector<9x64xf32>
    %c0_47 = arith.constant 0 : index
    %c0_48 = arith.constant 0 : index
    %c0_49 = arith.constant 0 : index
    %111 = vector.load %arg9[%c0_47, %c0_48, %c0_49] : memref<2x1x64xf32, #tpu.memory_space<vmem>>, vector<1x1x64xf32>
    %112 = vector.shape_cast %111 : vector<1x1x64xf32> to vector<1x64xf32>
    %113 = vector.broadcast %112 : vector<1x64xf32> to vector<9x64xf32>
    %114 = arith.addf %110, %113 : vector<9x64xf32>
    %c0_50 = arith.constant 0 : index
    %c0_51 = arith.constant 0 : index
    %c0_52 = arith.constant 0 : index
    %115 = vector.load %arg10[%c0_50, %c0_51, %c0_52] : memref<2x1x64xf32, #tpu.memory_space<vmem>>, vector<1x1x64xf32>
    %116 = vector.shape_cast %115 : vector<1x1x64xf32> to vector<1x64xf32>
    %c0_53 = arith.constant 0 : index
    %c0_54 = arith.constant 0 : index
    %c0_55 = arith.constant 0 : index
    %117 = vector.load %arg11[%c0_53, %c0_54, %c0_55] : memref<2x1x64xf32, #tpu.memory_space<vmem>>, vector<1x1x64xf32>
    %118 = vector.shape_cast %117 : vector<1x1x64xf32> to vector<1x64xf32>
    %cst_56 = arith.constant dense<0.000000e+00> : vector<9xf32>
    %119 = vector.multi_reduction <add>, %114, %cst_56 [1] : vector<9x64xf32> to vector<9xf32>
    %120 = vector.shape_cast %119 : vector<9xf32> to vector<9x1xf32>
    %cst_57 = arith.constant 6.400000e+01 : f32
    %121 = vector.broadcast %cst_57 : f32 to vector<9x1xf32>
    %122 = arith.divf %120, %121 : vector<9x1xf32>
    %123 = vector.broadcast %122 : vector<9x1xf32> to vector<9x64xf32>
    %124 = arith.subf %114, %123 : vector<9x64xf32>
    %125 = arith.mulf %124, %124 : vector<9x64xf32>
    %cst_58 = arith.constant dense<0.000000e+00> : vector<9xf32>
    %126 = vector.multi_reduction <add>, %125, %cst_58 [1] : vector<9x64xf32> to vector<9xf32>
    %127 = vector.shape_cast %126 : vector<9xf32> to vector<9x1xf32>
    %cst_59 = arith.constant 6.400000e+01 : f32
    %128 = vector.broadcast %cst_59 : f32 to vector<9x1xf32>
    %129 = arith.divf %127, %128 : vector<9x1xf32>
    %cst_60 = arith.constant 9.99999974E-6 : f32
    %130 = vector.broadcast %cst_60 : f32 to vector<9x1xf32>
    %131 = arith.addf %129, %130 : vector<9x1xf32>
    %132 = math.rsqrt %131 : vector<9x1xf32>
    %133 = vector.broadcast %132 : vector<9x1xf32> to vector<9x64xf32>
    %134 = arith.mulf %124, %133 : vector<9x64xf32>
    %135 = vector.broadcast %116 : vector<1x64xf32> to vector<9x64xf32>
    %136 = arith.mulf %134, %135 : vector<9x64xf32>
    %137 = vector.broadcast %118 : vector<1x64xf32> to vector<9x64xf32>
    %138 = arith.addf %136, %137 : vector<9x64xf32>
    %c0_61 = arith.constant 0 : index
    %c0_62 = arith.constant 0 : index
    %c0_63 = arith.constant 0 : index
    %139 = vector.load %arg12[%c0_61, %c0_62, %c0_63] : memref<2x64x128xf32, #tpu.memory_space<vmem>>, vector<1x64x128xf32>
    %140 = vector.shape_cast %139 : vector<1x64x128xf32> to vector<64x128xf32>
    %cst_64 = arith.constant dense<0.000000e+00> : vector<9x128xf32>
    %141 = tpu.matmul %138, %140, %cst_64 {dimension_numbers = #tpu.dot_dimension_numbers<[1], [0], [0], [1], [0, 0, 1, 1], [], []>} : vector<9x64xf32>, vector<64x128xf32>, vector<9x128xf32> -> vector<9x128xf32>
    %c0_65 = arith.constant 0 : index
    %c0_66 = arith.constant 0 : index
    %c0_67 = arith.constant 0 : index
    %142 = vector.load %arg13[%c0_65, %c0_66, %c0_67] : memref<2x1x128xf32, #tpu.memory_space<vmem>>, vector<1x1x128xf32>
    %143 = vector.shape_cast %142 : vector<1x1x128xf32> to vector<1x128xf32>
    %144 = vector.broadcast %143 : vector<1x128xf32> to vector<9x128xf32>
    %145 = arith.addf %141, %144 : vector<9x128xf32>
    %146 = arith.mulf %145, %145 : vector<9x128xf32>
    %147 = arith.mulf %145, %146 : vector<9x128xf32>
    %cst_68 = arith.constant 4.471500e-02 : f32
    %148 = vector.broadcast %cst_68 : f32 to vector<9x128xf32>
    %149 = arith.mulf %148, %147 : vector<9x128xf32>
    %150 = arith.addf %145, %149 : vector<9x128xf32>
    %cst_69 = arith.constant 0.797884583 : f32
    %151 = vector.broadcast %cst_69 : f32 to vector<9x128xf32>
    %152 = arith.mulf %151, %150 : vector<9x128xf32>
    %153 = math.tanh %152 : vector<9x128xf32>
    %cst_70 = arith.constant 1.000000e+00 : f32
    %154 = vector.broadcast %cst_70 : f32 to vector<9x128xf32>
    %155 = arith.addf %154, %153 : vector<9x128xf32>
    %cst_71 = arith.constant 5.000000e-01 : f32
    %156 = vector.broadcast %cst_71 : f32 to vector<9x128xf32>
    %157 = arith.mulf %156, %155 : vector<9x128xf32>
    %158 = arith.mulf %145, %157 : vector<9x128xf32>
    %c0_72 = arith.constant 0 : index
    %c0_73 = arith.constant 0 : index
    %c0_74 = arith.constant 0 : index
    %159 = vector.load %arg14[%c0_72, %c0_73, %c0_74] : memref<2x128x64xf32, #tpu.memory_space<vmem>>, vector<1x128x64xf32>
    %160 = vector.shape_cast %159 : vector<1x128x64xf32> to vector<128x64xf32>
    %cst_75 = arith.constant dense<0.000000e+00> : vector<9x64xf32>
    %161 = tpu.matmul %158, %160, %cst_75 {dimension_numbers = #tpu.dot_dimension_numbers<[1], [0], [0], [1], [0, 0, 1, 1], [], []>} : vector<9x128xf32>, vector<128x64xf32>, vector<9x64xf32> -> vector<9x64xf32>
    %162 = arith.addf %114, %161 : vector<9x64xf32>
    %c0_76 = arith.constant 0 : index
    %c0_77 = arith.constant 0 : index
    %c0_78 = arith.constant 0 : index
    %163 = vector.load %arg15[%c0_76, %c0_77, %c0_78] : memref<2x1x64xf32, #tpu.memory_space<vmem>>, vector<1x1x64xf32>
    %164 = vector.shape_cast %163 : vector<1x1x64xf32> to vector<1x64xf32>
    %165 = vector.broadcast %164 : vector<1x64xf32> to vector<9x64xf32>
    %166 = arith.addf %162, %165 : vector<9x64xf32>
    %c1 = arith.constant 1 : index
    %c0_79 = arith.constant 0 : index
    %c0_80 = arith.constant 0 : index
    %167 = vector.load %arg4[%c1, %c0_79, %c0_80] : memref<2x1x64xf32, #tpu.memory_space<vmem>>, vector<1x1x64xf32>
    %168 = vector.shape_cast %167 : vector<1x1x64xf32> to vector<1x64xf32>
    %c1_81 = arith.constant 1 : index
    %c0_82 = arith.constant 0 : index
    %c0_83 = arith.constant 0 : index
    %169 = vector.load %arg5[%c1_81, %c0_82, %c0_83] : memref<2x1x64xf32, #tpu.memory_space<vmem>>, vector<1x1x64xf32>
    %170 = vector.shape_cast %169 : vector<1x1x64xf32> to vector<1x64xf32>
    %cst_84 = arith.constant dense<0.000000e+00> : vector<9xf32>
    %171 = vector.multi_reduction <add>, %166, %cst_84 [1] : vector<9x64xf32> to vector<9xf32>
    %172 = vector.shape_cast %171 : vector<9xf32> to vector<9x1xf32>
    %cst_85 = arith.constant 6.400000e+01 : f32
    %173 = vector.broadcast %cst_85 : f32 to vector<9x1xf32>
    %174 = arith.divf %172, %173 : vector<9x1xf32>
    %175 = vector.broadcast %174 : vector<9x1xf32> to vector<9x64xf32>
    %176 = arith.subf %166, %175 : vector<9x64xf32>
    %177 = arith.mulf %176, %176 : vector<9x64xf32>
    %cst_86 = arith.constant dense<0.000000e+00> : vector<9xf32>
    %178 = vector.multi_reduction <add>, %177, %cst_86 [1] : vector<9x64xf32> to vector<9xf32>
    %179 = vector.shape_cast %178 : vector<9xf32> to vector<9x1xf32>
    %cst_87 = arith.constant 6.400000e+01 : f32
    %180 = vector.broadcast %cst_87 : f32 to vector<9x1xf32>
    %181 = arith.divf %179, %180 : vector<9x1xf32>
    %cst_88 = arith.constant 9.99999974E-6 : f32
    %182 = vector.broadcast %cst_88 : f32 to vector<9x1xf32>
    %183 = arith.addf %181, %182 : vector<9x1xf32>
    %184 = math.rsqrt %183 : vector<9x1xf32>
    %185 = vector.broadcast %184 : vector<9x1xf32> to vector<9x64xf32>
    %186 = arith.mulf %176, %185 : vector<9x64xf32>
    %187 = vector.broadcast %168 : vector<1x64xf32> to vector<9x64xf32>
    %188 = arith.mulf %186, %187 : vector<9x64xf32>
    %189 = vector.broadcast %170 : vector<1x64xf32> to vector<9x64xf32>
    %190 = arith.addf %188, %189 : vector<9x64xf32>
    %c1_89 = arith.constant 1 : index
    %c0_90 = arith.constant 0 : index
    %c0_91 = arith.constant 0 : index
    %191 = vector.load %arg6[%c1_89, %c0_90, %c0_91] : memref<2x64x192xf32, #tpu.memory_space<vmem>>, vector<1x64x192xf32>
    %192 = vector.shape_cast %191 : vector<1x64x192xf32> to vector<64x192xf32>
    %cst_92 = arith.constant dense<0.000000e+00> : vector<9x192xf32>
    %193 = tpu.matmul %190, %192, %cst_92 {dimension_numbers = #tpu.dot_dimension_numbers<[1], [0], [0], [1], [0, 0, 1, 1], [], []>} : vector<9x64xf32>, vector<64x192xf32>, vector<9x192xf32> -> vector<9x192xf32>
    %c1_93 = arith.constant 1 : index
    %c0_94 = arith.constant 0 : index
    %c0_95 = arith.constant 0 : index
    %194 = vector.load %arg7[%c1_93, %c0_94, %c0_95] : memref<2x1x192xf32, #tpu.memory_space<vmem>>, vector<1x1x192xf32>
    %195 = vector.shape_cast %194 : vector<1x1x192xf32> to vector<1x192xf32>
    %196 = vector.broadcast %195 : vector<1x192xf32> to vector<9x192xf32>
    %197 = arith.addf %193, %196 : vector<9x192xf32>
    %198 = vector.extract_strided_slice %197 {offsets = [0, 0], sizes = [9, 64], strides = [1, 1]} : vector<9x192xf32> to vector<9x64xf32>
    %199 = vector.extract_strided_slice %197 {offsets = [0, 64], sizes = [9, 64], strides = [1, 1]} : vector<9x192xf32> to vector<9x64xf32>
    %200 = vector.extract_strided_slice %197 {offsets = [0, 128], sizes = [9, 64], strides = [1, 1]} : vector<9x192xf32> to vector<9x64xf32>
    %201 = vector.extract_strided_slice %198 {offsets = [0, 0], sizes = [9, 16], strides = [1, 1]} : vector<9x64xf32> to vector<9x16xf32>
    %202 = vector.extract_strided_slice %199 {offsets = [0, 0], sizes = [9, 16], strides = [1, 1]} : vector<9x64xf32> to vector<9x16xf32>
    %203 = vector.extract_strided_slice %200 {offsets = [0, 0], sizes = [9, 16], strides = [1, 1]} : vector<9x64xf32> to vector<9x16xf32>
    %cst_96 = arith.constant dense<0.000000e+00> : vector<9x9xf32>
    %204 = tpu.matmul %201, %202, %cst_96 {dimension_numbers = #tpu.dot_dimension_numbers<[1], [1], [0], [0], [0, 0, 1, 0], [], []>} : vector<9x16xf32>, vector<9x16xf32>, vector<9x9xf32> -> vector<9x9xf32>
    %cst_97 = arith.constant dense<0xFF800000> : vector<9xf32>
    %205 = vector.multi_reduction <maximumf>, %204, %cst_97 [1] : vector<9x9xf32> to vector<9xf32>
    %206 = vector.shape_cast %205 : vector<9xf32> to vector<9x1xf32>
    %207 = vector.broadcast %206 : vector<9x1xf32> to vector<9x9xf32>
    %208 = arith.subf %204, %207 : vector<9x9xf32>
    %209 = math.exp %208 : vector<9x9xf32>
    %cst_98 = arith.constant dense<0.000000e+00> : vector<9xf32>
    %210 = vector.multi_reduction <add>, %209, %cst_98 [1] : vector<9x9xf32> to vector<9xf32>
    %211 = vector.shape_cast %210 : vector<9xf32> to vector<9x1xf32>
    %212 = tpu.reciprocal %211 {approx = true} : vector<9x1xf32> -> vector<9x1xf32>
    %213 = vector.broadcast %212 : vector<9x1xf32> to vector<9x9xf32>
    %214 = arith.mulf %209, %213 : vector<9x9xf32>
    %cst_99 = arith.constant dense<0.000000e+00> : vector<9x16xf32>
    %215 = tpu.matmul %214, %203, %cst_99 {dimension_numbers = #tpu.dot_dimension_numbers<[1], [0], [0], [1], [0, 0, 1, 1], [], []>} : vector<9x9xf32>, vector<9x16xf32>, vector<9x16xf32> -> vector<9x16xf32>
    %216 = vector.extract_strided_slice %198 {offsets = [0, 16], sizes = [9, 16], strides = [1, 1]} : vector<9x64xf32> to vector<9x16xf32>
    %217 = vector.extract_strided_slice %199 {offsets = [0, 16], sizes = [9, 16], strides = [1, 1]} : vector<9x64xf32> to vector<9x16xf32>
    %218 = vector.extract_strided_slice %200 {offsets = [0, 16], sizes = [9, 16], strides = [1, 1]} : vector<9x64xf32> to vector<9x16xf32>
    %cst_100 = arith.constant dense<0.000000e+00> : vector<9x9xf32>
    %219 = tpu.matmul %216, %217, %cst_100 {dimension_numbers = #tpu.dot_dimension_numbers<[1], [1], [0], [0], [0, 0, 1, 0], [], []>} : vector<9x16xf32>, vector<9x16xf32>, vector<9x9xf32> -> vector<9x9xf32>
    %cst_101 = arith.constant dense<0xFF800000> : vector<9xf32>
    %220 = vector.multi_reduction <maximumf>, %219, %cst_101 [1] : vector<9x9xf32> to vector<9xf32>
    %221 = vector.shape_cast %220 : vector<9xf32> to vector<9x1xf32>
    %222 = vector.broadcast %221 : vector<9x1xf32> to vector<9x9xf32>
    %223 = arith.subf %219, %222 : vector<9x9xf32>
    %224 = math.exp %223 : vector<9x9xf32>
    %cst_102 = arith.constant dense<0.000000e+00> : vector<9xf32>
    %225 = vector.multi_reduction <add>, %224, %cst_102 [1] : vector<9x9xf32> to vector<9xf32>
    %226 = vector.shape_cast %225 : vector<9xf32> to vector<9x1xf32>
    %227 = tpu.reciprocal %226 {approx = true} : vector<9x1xf32> -> vector<9x1xf32>
    %228 = vector.broadcast %227 : vector<9x1xf32> to vector<9x9xf32>
    %229 = arith.mulf %224, %228 : vector<9x9xf32>
    %cst_103 = arith.constant dense<0.000000e+00> : vector<9x16xf32>
    %230 = tpu.matmul %229, %218, %cst_103 {dimension_numbers = #tpu.dot_dimension_numbers<[1], [0], [0], [1], [0, 0, 1, 1], [], []>} : vector<9x9xf32>, vector<9x16xf32>, vector<9x16xf32> -> vector<9x16xf32>
    %231 = vector.extract_strided_slice %198 {offsets = [0, 32], sizes = [9, 16], strides = [1, 1]} : vector<9x64xf32> to vector<9x16xf32>
    %232 = vector.extract_strided_slice %199 {offsets = [0, 32], sizes = [9, 16], strides = [1, 1]} : vector<9x64xf32> to vector<9x16xf32>
    %233 = vector.extract_strided_slice %200 {offsets = [0, 32], sizes = [9, 16], strides = [1, 1]} : vector<9x64xf32> to vector<9x16xf32>
    %cst_104 = arith.constant dense<0.000000e+00> : vector<9x9xf32>
    %234 = tpu.matmul %231, %232, %cst_104 {dimension_numbers = #tpu.dot_dimension_numbers<[1], [1], [0], [0], [0, 0, 1, 0], [], []>} : vector<9x16xf32>, vector<9x16xf32>, vector<9x9xf32> -> vector<9x9xf32>
    %cst_105 = arith.constant dense<0xFF800000> : vector<9xf32>
    %235 = vector.multi_reduction <maximumf>, %234, %cst_105 [1] : vector<9x9xf32> to vector<9xf32>
    %236 = vector.shape_cast %235 : vector<9xf32> to vector<9x1xf32>
    %237 = vector.broadcast %236 : vector<9x1xf32> to vector<9x9xf32>
    %238 = arith.subf %234, %237 : vector<9x9xf32>
    %239 = math.exp %238 : vector<9x9xf32>
    %cst_106 = arith.constant dense<0.000000e+00> : vector<9xf32>
    %240 = vector.multi_reduction <add>, %239, %cst_106 [1] : vector<9x9xf32> to vector<9xf32>
    %241 = vector.shape_cast %240 : vector<9xf32> to vector<9x1xf32>
    %242 = tpu.reciprocal %241 {approx = true} : vector<9x1xf32> -> vector<9x1xf32>
    %243 = vector.broadcast %242 : vector<9x1xf32> to vector<9x9xf32>
    %244 = arith.mulf %239, %243 : vector<9x9xf32>
    %cst_107 = arith.constant dense<0.000000e+00> : vector<9x16xf32>
    %245 = tpu.matmul %244, %233, %cst_107 {dimension_numbers = #tpu.dot_dimension_numbers<[1], [0], [0], [1], [0, 0, 1, 1], [], []>} : vector<9x9xf32>, vector<9x16xf32>, vector<9x16xf32> -> vector<9x16xf32>
    %246 = vector.extract_strided_slice %198 {offsets = [0, 48], sizes = [9, 16], strides = [1, 1]} : vector<9x64xf32> to vector<9x16xf32>
    %247 = vector.extract_strided_slice %199 {offsets = [0, 48], sizes = [9, 16], strides = [1, 1]} : vector<9x64xf32> to vector<9x16xf32>
    %248 = vector.extract_strided_slice %200 {offsets = [0, 48], sizes = [9, 16], strides = [1, 1]} : vector<9x64xf32> to vector<9x16xf32>
    %cst_108 = arith.constant dense<0.000000e+00> : vector<9x9xf32>
    %249 = tpu.matmul %246, %247, %cst_108 {dimension_numbers = #tpu.dot_dimension_numbers<[1], [1], [0], [0], [0, 0, 1, 0], [], []>} : vector<9x16xf32>, vector<9x16xf32>, vector<9x9xf32> -> vector<9x9xf32>
    %cst_109 = arith.constant dense<0xFF800000> : vector<9xf32>
    %250 = vector.multi_reduction <maximumf>, %249, %cst_109 [1] : vector<9x9xf32> to vector<9xf32>
    %251 = vector.shape_cast %250 : vector<9xf32> to vector<9x1xf32>
    %252 = vector.broadcast %251 : vector<9x1xf32> to vector<9x9xf32>
    %253 = arith.subf %249, %252 : vector<9x9xf32>
    %254 = math.exp %253 : vector<9x9xf32>
    %cst_110 = arith.constant dense<0.000000e+00> : vector<9xf32>
    %255 = vector.multi_reduction <add>, %254, %cst_110 [1] : vector<9x9xf32> to vector<9xf32>
    %256 = vector.shape_cast %255 : vector<9xf32> to vector<9x1xf32>
    %257 = tpu.reciprocal %256 {approx = true} : vector<9x1xf32> -> vector<9x1xf32>
    %258 = vector.broadcast %257 : vector<9x1xf32> to vector<9x9xf32>
    %259 = arith.mulf %254, %258 : vector<9x9xf32>
    %cst_111 = arith.constant dense<0.000000e+00> : vector<9x16xf32>
    %260 = tpu.matmul %259, %248, %cst_111 {dimension_numbers = #tpu.dot_dimension_numbers<[1], [0], [0], [1], [0, 0, 1, 1], [], []>} : vector<9x9xf32>, vector<9x16xf32>, vector<9x16xf32> -> vector<9x16xf32>
    %261 = tpu.concatenate %215, %230, %245, %260 in 1 : vector<9x16xf32>, vector<9x16xf32>, vector<9x16xf32>, vector<9x16xf32> -> vector<9x64xf32>
    %c1_112 = arith.constant 1 : index
    %c0_113 = arith.constant 0 : index
    %c0_114 = arith.constant 0 : index
    %262 = vector.load %arg8[%c1_112, %c0_113, %c0_114] : memref<2x64x64xf32, #tpu.memory_space<vmem>>, vector<1x64x64xf32>
    %263 = vector.shape_cast %262 : vector<1x64x64xf32> to vector<64x64xf32>
    %cst_115 = arith.constant dense<0.000000e+00> : vector<9x64xf32>
    %264 = tpu.matmul %261, %263, %cst_115 {dimension_numbers = #tpu.dot_dimension_numbers<[1], [0], [0], [1], [0, 0, 1, 1], [], []>} : vector<9x64xf32>, vector<64x64xf32>, vector<9x64xf32> -> vector<9x64xf32>
    %265 = arith.addf %166, %264 : vector<9x64xf32>
    %c1_116 = arith.constant 1 : index
    %c0_117 = arith.constant 0 : index
    %c0_118 = arith.constant 0 : index
    %266 = vector.load %arg9[%c1_116, %c0_117, %c0_118] : memref<2x1x64xf32, #tpu.memory_space<vmem>>, vector<1x1x64xf32>
    %267 = vector.shape_cast %266 : vector<1x1x64xf32> to vector<1x64xf32>
    %268 = vector.broadcast %267 : vector<1x64xf32> to vector<9x64xf32>
    %269 = arith.addf %265, %268 : vector<9x64xf32>
    %c1_119 = arith.constant 1 : index
    %c0_120 = arith.constant 0 : index
    %c0_121 = arith.constant 0 : index
    %270 = vector.load %arg10[%c1_119, %c0_120, %c0_121] : memref<2x1x64xf32, #tpu.memory_space<vmem>>, vector<1x1x64xf32>
    %271 = vector.shape_cast %270 : vector<1x1x64xf32> to vector<1x64xf32>
    %c1_122 = arith.constant 1 : index
    %c0_123 = arith.constant 0 : index
    %c0_124 = arith.constant 0 : index
    %272 = vector.load %arg11[%c1_122, %c0_123, %c0_124] : memref<2x1x64xf32, #tpu.memory_space<vmem>>, vector<1x1x64xf32>
    %273 = vector.shape_cast %272 : vector<1x1x64xf32> to vector<1x64xf32>
    %cst_125 = arith.constant dense<0.000000e+00> : vector<9xf32>
    %274 = vector.multi_reduction <add>, %269, %cst_125 [1] : vector<9x64xf32> to vector<9xf32>
    %275 = vector.shape_cast %274 : vector<9xf32> to vector<9x1xf32>
    %cst_126 = arith.constant 6.400000e+01 : f32
    %276 = vector.broadcast %cst_126 : f32 to vector<9x1xf32>
    %277 = arith.divf %275, %276 : vector<9x1xf32>
    %278 = vector.broadcast %277 : vector<9x1xf32> to vector<9x64xf32>
    %279 = arith.subf %269, %278 : vector<9x64xf32>
    %280 = arith.mulf %279, %279 : vector<9x64xf32>
    %cst_127 = arith.constant dense<0.000000e+00> : vector<9xf32>
    %281 = vector.multi_reduction <add>, %280, %cst_127 [1] : vector<9x64xf32> to vector<9xf32>
    %282 = vector.shape_cast %281 : vector<9xf32> to vector<9x1xf32>
    %cst_128 = arith.constant 6.400000e+01 : f32
    %283 = vector.broadcast %cst_128 : f32 to vector<9x1xf32>
    %284 = arith.divf %282, %283 : vector<9x1xf32>
    %cst_129 = arith.constant 9.99999974E-6 : f32
    %285 = vector.broadcast %cst_129 : f32 to vector<9x1xf32>
    %286 = arith.addf %284, %285 : vector<9x1xf32>
    %287 = math.rsqrt %286 : vector<9x1xf32>
    %288 = vector.broadcast %287 : vector<9x1xf32> to vector<9x64xf32>
    %289 = arith.mulf %279, %288 : vector<9x64xf32>
    %290 = vector.broadcast %271 : vector<1x64xf32> to vector<9x64xf32>
    %291 = arith.mulf %289, %290 : vector<9x64xf32>
    %292 = vector.broadcast %273 : vector<1x64xf32> to vector<9x64xf32>
    %293 = arith.addf %291, %292 : vector<9x64xf32>
    %c1_130 = arith.constant 1 : index
    %c0_131 = arith.constant 0 : index
    %c0_132 = arith.constant 0 : index
    %294 = vector.load %arg12[%c1_130, %c0_131, %c0_132] : memref<2x64x128xf32, #tpu.memory_space<vmem>>, vector<1x64x128xf32>
    %295 = vector.shape_cast %294 : vector<1x64x128xf32> to vector<64x128xf32>
    %cst_133 = arith.constant dense<0.000000e+00> : vector<9x128xf32>
    %296 = tpu.matmul %293, %295, %cst_133 {dimension_numbers = #tpu.dot_dimension_numbers<[1], [0], [0], [1], [0, 0, 1, 1], [], []>} : vector<9x64xf32>, vector<64x128xf32>, vector<9x128xf32> -> vector<9x128xf32>
    %c1_134 = arith.constant 1 : index
    %c0_135 = arith.constant 0 : index
    %c0_136 = arith.constant 0 : index
    %297 = vector.load %arg13[%c1_134, %c0_135, %c0_136] : memref<2x1x128xf32, #tpu.memory_space<vmem>>, vector<1x1x128xf32>
    %298 = vector.shape_cast %297 : vector<1x1x128xf32> to vector<1x128xf32>
    %299 = vector.broadcast %298 : vector<1x128xf32> to vector<9x128xf32>
    %300 = arith.addf %296, %299 : vector<9x128xf32>
    %301 = arith.mulf %300, %300 : vector<9x128xf32>
    %302 = arith.mulf %300, %301 : vector<9x128xf32>
    %cst_137 = arith.constant 4.471500e-02 : f32
    %303 = vector.broadcast %cst_137 : f32 to vector<9x128xf32>
    %304 = arith.mulf %303, %302 : vector<9x128xf32>
    %305 = arith.addf %300, %304 : vector<9x128xf32>
    %cst_138 = arith.constant 0.797884583 : f32
    %306 = vector.broadcast %cst_138 : f32 to vector<9x128xf32>
    %307 = arith.mulf %306, %305 : vector<9x128xf32>
    %308 = math.tanh %307 : vector<9x128xf32>
    %cst_139 = arith.constant 1.000000e+00 : f32
    %309 = vector.broadcast %cst_139 : f32 to vector<9x128xf32>
    %310 = arith.addf %309, %308 : vector<9x128xf32>
    %cst_140 = arith.constant 5.000000e-01 : f32
    %311 = vector.broadcast %cst_140 : f32 to vector<9x128xf32>
    %312 = arith.mulf %311, %310 : vector<9x128xf32>
    %313 = arith.mulf %300, %312 : vector<9x128xf32>
    %c1_141 = arith.constant 1 : index
    %c0_142 = arith.constant 0 : index
    %c0_143 = arith.constant 0 : index
    %314 = vector.load %arg14[%c1_141, %c0_142, %c0_143] : memref<2x128x64xf32, #tpu.memory_space<vmem>>, vector<1x128x64xf32>
    %315 = vector.shape_cast %314 : vector<1x128x64xf32> to vector<128x64xf32>
    %cst_144 = arith.constant dense<0.000000e+00> : vector<9x64xf32>
    %316 = tpu.matmul %313, %315, %cst_144 {dimension_numbers = #tpu.dot_dimension_numbers<[1], [0], [0], [1], [0, 0, 1, 1], [], []>} : vector<9x128xf32>, vector<128x64xf32>, vector<9x64xf32> -> vector<9x64xf32>
    %317 = arith.addf %269, %316 : vector<9x64xf32>
    %c1_145 = arith.constant 1 : index
    %c0_146 = arith.constant 0 : index
    %c0_147 = arith.constant 0 : index
    %318 = vector.load %arg15[%c1_145, %c0_146, %c0_147] : memref<2x1x64xf32, #tpu.memory_space<vmem>>, vector<1x1x64xf32>
    %319 = vector.shape_cast %318 : vector<1x1x64xf32> to vector<1x64xf32>
    %320 = vector.broadcast %319 : vector<1x64xf32> to vector<9x64xf32>
    %321 = arith.addf %317, %320 : vector<9x64xf32>
    %322 = vector.extract_strided_slice %321 {offsets = [0, 0], sizes = [1, 64], strides = [1, 1]} : vector<9x64xf32> to vector<1x64xf32>
    %c0_148 = arith.constant 0 : index
    %c0_149 = arith.constant 0 : index
    %323 = vector.load %arg16[%c0_148, %c0_149] : memref<1x64xf32, #tpu.memory_space<vmem>>, vector<1x64xf32>
    %c0_150 = arith.constant 0 : index
    %c0_151 = arith.constant 0 : index
    %324 = vector.load %arg17[%c0_150, %c0_151] : memref<1x64xf32, #tpu.memory_space<vmem>>, vector<1x64xf32>
    %cst_152 = arith.constant dense<0.000000e+00> : vector<1xf32>
    %325 = vector.multi_reduction <add>, %322, %cst_152 [1] : vector<1x64xf32> to vector<1xf32>
    %326 = vector.shape_cast %325 : vector<1xf32> to vector<1x1xf32>
    %cst_153 = arith.constant 6.400000e+01 : f32
    %327 = vector.broadcast %cst_153 : f32 to vector<1x1xf32>
    %328 = arith.divf %326, %327 : vector<1x1xf32>
    %329 = vector.broadcast %328 : vector<1x1xf32> to vector<1x64xf32>
    %330 = arith.subf %322, %329 : vector<1x64xf32>
    %331 = arith.mulf %330, %330 : vector<1x64xf32>
    %cst_154 = arith.constant dense<0.000000e+00> : vector<1xf32>
    %332 = vector.multi_reduction <add>, %331, %cst_154 [1] : vector<1x64xf32> to vector<1xf32>
    %333 = vector.shape_cast %332 : vector<1xf32> to vector<1x1xf32>
    %cst_155 = arith.constant 6.400000e+01 : f32
    %334 = vector.broadcast %cst_155 : f32 to vector<1x1xf32>
    %335 = arith.divf %333, %334 : vector<1x1xf32>
    %cst_156 = arith.constant 9.99999997E-7 : f32
    %336 = vector.broadcast %cst_156 : f32 to vector<1x1xf32>
    %337 = arith.addf %335, %336 : vector<1x1xf32>
    %338 = math.rsqrt %337 : vector<1x1xf32>
    %339 = vector.broadcast %338 : vector<1x1xf32> to vector<1x64xf32>
    %340 = arith.mulf %330, %339 : vector<1x64xf32>
    %341 = arith.mulf %340, %323 : vector<1x64xf32>
    %342 = arith.addf %341, %324 : vector<1x64xf32>
    %cst_157 = arith.constant 0.000000e+00 : f32
    %343 = vector.broadcast %cst_157 : f32 to vector<1x64xf32>
    %344 = arith.maximumf %342, %343 : vector<1x64xf32>
    %c0_158 = arith.constant 0 : index
    %c0_159 = arith.constant 0 : index
    %345 = vector.load %arg18[%c0_158, %c0_159] : memref<64x32xf32, #tpu.memory_space<vmem>>, vector<64x32xf32>
    %cst_160 = arith.constant dense<0.000000e+00> : vector<1x32xf32>
    %346 = tpu.matmul %344, %345, %cst_160 {dimension_numbers = #tpu.dot_dimension_numbers<[1], [0], [0], [1], [0, 0, 1, 1], [], []>} : vector<1x64xf32>, vector<64x32xf32>, vector<1x32xf32> -> vector<1x32xf32>
    %c0_161 = arith.constant 0 : index
    %c0_162 = arith.constant 0 : index
    %347 = vector.load %arg19[%c0_161, %c0_162] : memref<1x32xf32, #tpu.memory_space<vmem>>, vector<1x32xf32>
    %348 = arith.addf %346, %347 : vector<1x32xf32>
    %c0_163 = arith.constant 0 : index
    %c0_164 = arith.constant 0 : index
    %c0_165 = arith.constant 0 : index
    %349 = vector.load %arg20[%c0_163, %c0_164, %c0_165] : memref<1x1x32xf32, #tpu.memory_space<vmem>>, vector<1x1x32xf32>
    %350 = vector.shape_cast %349 : vector<1x1x32xf32> to vector<1x32xf32>
    %351 = vector.shape_cast %348 : vector<1x32xf32> to vector<1x1x32xf32>
    tpu.vector_store %arg20[%c0_163, %c0_164, %c0_165], %351 {strides = array<i32>} : memref<1x1x32xf32, #tpu.memory_space<vmem>>, vector<1x1x32xf32>,
    return
  }
  func.func @transform_0(%arg0: i32) -> (i32, i32, i32) {
    %c0_i32 = arith.constant 0 : i32
    %c0_i32_0 = arith.constant 0 : i32
    %c0_i32_1 = arith.constant 0 : i32
    return %arg0, %c0_i32, %c0_i32_0 : i32, i32, i32
  }
  func.func @transform_1(%arg0: i32) -> (i32, i32, i32, i32) {
    %c0_i32 = arith.constant 0 : i32
    %c0_i32_0 = arith.constant 0 : i32
    %c0_i32_1 = arith.constant 0 : i32
    %c0_i32_2 = arith.constant 0 : i32
    return %arg0, %c0_i32, %c0_i32_0, %c0_i32_1 : i32, i32, i32, i32
  }
  func.func @transform_2(%arg0: i32) -> (i32, i32) {
    %c0_i32 = arith.constant 0 : i32
    %c0_i32_0 = arith.constant 0 : i32
    %c0_i32_1 = arith.constant 0 : i32
    return %c0_i32, %c0_i32_0 : i32, i32
  }
  func.func @transform_3(%arg0: i32) -> (i32, i32, i32) {
    %c0_i32 = arith.constant 0 : i32
    %c0_i32_0 = arith.constant 0 : i32
    %c0_i32_1 = arith.constant 0 : i32
    %c0_i32_2 = arith.constant 0 : i32
    return %c0_i32, %c0_i32_0, %c0_i32_1 : i32, i32, i32
  }
  func.func @transform_4(%arg0: i32) -> (i32, i32, i32) {
    %c0_i32 = arith.constant 0 : i32
    %c0_i32_0 = arith.constant 0 : i32
    %c0_i32_1 = arith.constant 0 : i32
    %c0_i32_2 = arith.constant 0 : i32
    return %c0_i32, %c0_i32_0, %c0_i32_1 : i32, i32, i32
  }
  func.func @transform_5(%arg0: i32) -> (i32, i32, i32) {
    %c0_i32 = arith.constant 0 : i32
    %c0_i32_0 = arith.constant 0 : i32
    %c0_i32_1 = arith.constant 0 : i32
    %c0_i32_2 = arith.constant 0 : i32
    return %c0_i32, %c0_i32_0, %c0_i32_1 : i32, i32, i32
  }
  func.func @transform_6(%arg0: i32) -> (i32, i32, i32) {
    %c0_i32 = arith.constant 0 : i32
    %c0_i32_0 = arith.constant 0 : i32
    %c0_i32_1 = arith.constant 0 : i32
    %c0_i32_2 = arith.constant 0 : i32
    return %c0_i32, %c0_i32_0, %c0_i32_1 : i32, i32, i32
  }
  func.func @transform_7(%arg0: i32) -> (i32, i32, i32) {
    %c0_i32 = arith.constant 0 : i32
    %c0_i32_0 = arith.constant 0 : i32
    %c0_i32_1 = arith.constant 0 : i32
    %c0_i32_2 = arith.constant 0 : i32
    return %c0_i32, %c0_i32_0, %c0_i32_1 : i32, i32, i32
  }
  func.func @transform_8(%arg0: i32) -> (i32, i32, i32) {
    %c0_i32 = arith.constant 0 : i32
    %c0_i32_0 = arith.constant 0 : i32
    %c0_i32_1 = arith.constant 0 : i32
    %c0_i32_2 = arith.constant 0 : i32
    return %c0_i32, %c0_i32_0, %c0_i32_1 : i32, i32, i32
  }
  func.func @transform_9(%arg0: i32) -> (i32, i32, i32) {
    %c0_i32 = arith.constant 0 : i32
    %c0_i32_0 = arith.constant 0 : i32
    %c0_i32_1 = arith.constant 0 : i32
    %c0_i32_2 = arith.constant 0 : i32
    return %c0_i32, %c0_i32_0, %c0_i32_1 : i32, i32, i32
  }
  func.func @transform_10(%arg0: i32) -> (i32, i32, i32) {
    %c0_i32 = arith.constant 0 : i32
    %c0_i32_0 = arith.constant 0 : i32
    %c0_i32_1 = arith.constant 0 : i32
    %c0_i32_2 = arith.constant 0 : i32
    return %c0_i32, %c0_i32_0, %c0_i32_1 : i32, i32, i32
  }
  func.func @transform_11(%arg0: i32) -> (i32, i32, i32) {
    %c0_i32 = arith.constant 0 : i32
    %c0_i32_0 = arith.constant 0 : i32
    %c0_i32_1 = arith.constant 0 : i32
    %c0_i32_2 = arith.constant 0 : i32
    return %c0_i32, %c0_i32_0, %c0_i32_1 : i32, i32, i32
  }
  func.func @transform_12(%arg0: i32) -> (i32, i32, i32) {
    %c0_i32 = arith.constant 0 : i32
    %c0_i32_0 = arith.constant 0 : i32
    %c0_i32_1 = arith.constant 0 : i32
    %c0_i32_2 = arith.constant 0 : i32
    return %c0_i32, %c0_i32_0, %c0_i32_1 : i32, i32, i32
  }
  func.func @transform_13(%arg0: i32) -> (i32, i32, i32) {
    %c0_i32 = arith.constant 0 : i32
    %c0_i32_0 = arith.constant 0 : i32
    %c0_i32_1 = arith.constant 0 : i32
    %c0_i32_2 = arith.constant 0 : i32
    return %c0_i32, %c0_i32_0, %c0_i32_1 : i32, i32, i32
  }
  func.func @transform_14(%arg0: i32) -> (i32, i32, i32) {
    %c0_i32 = arith.constant 0 : i32
    %c0_i32_0 = arith.constant 0 : i32
    %c0_i32_1 = arith.constant 0 : i32
    %c0_i32_2 = arith.constant 0 : i32
    return %c0_i32, %c0_i32_0, %c0_i32_1 : i32, i32, i32
  }
  func.func @transform_15(%arg0: i32) -> (i32, i32) {
    %c0_i32 = arith.constant 0 : i32
    %c0_i32_0 = arith.constant 0 : i32
    %c0_i32_1 = arith.constant 0 : i32
    return %c0_i32, %c0_i32_0 : i32, i32
  }
  func.func @transform_16(%arg0: i32) -> (i32, i32) {
    %c0_i32 = arith.constant 0 : i32
    %c0_i32_0 = arith.constant 0 : i32
    %c0_i32_1 = arith.constant 0 : i32
    return %c0_i32, %c0_i32_0 : i32, i32
  }
  func.func @transform_17(%arg0: i32) -> (i32, i32) {
    %c0_i32 = arith.constant 0 : i32
    %c0_i32_0 = arith.constant 0 : i32
    %c0_i32_1 = arith.constant 0 : i32
    return %c0_i32, %c0_i32_0 : i32, i32
  }
  func.func @transform_18(%arg0: i32) -> (i32, i32) {
    %c0_i32 = arith.constant 0 : i32
    %c0_i32_0 = arith.constant 0 : i32
    %c0_i32_1 = arith.constant 0 : i32
    return %c0_i32, %c0_i32_0 : i32, i32
  }
  func.func @transform_19(%arg0: i32) -> (i32, i32, i32) {
    %c0_i32 = arith.constant 0 : i32
    %c0_i32_0 = arith.constant 0 : i32
    %c0_i32_1 = arith.constant 0 : i32
    return %arg0, %c0_i32, %c0_i32_0 : i32, i32, i32
  }
}

</mosaic_0001>

<bundles_post_ra>
// kernel: _lambda_.2
= control target key start
LH: loop header
LB: loop body
LE: loop exit
PB: predicated region body
PF: predicated region fallthrough
CT: control target
= control target key end

     0   :  { %s4944_s24 = smov 0   ;;  %s6188_s0 = inlined_call_operand.vmem [shape: f32[16,21,6], index: 0, kind: input, shape index: {}]   ;;  %s6189_s1 = inlined_call_operand.vmem [shape: f32[6,64], index: 1, kind: input, shape index: {}]   ;;  %s6190_s2 = inlined_call_operand.vmem [shape: f32[1,64], index: 2, kind: input, shape index: {}]   ;;  %s6191_s3 = inlined_call_operand.vmem [shape: f32[1,64], index: 3, kind: input, shape index: {}]   ;;  %s6192_s4 = inlined_call_operand.vmem [shape: f32[22,64], index: 4, kind: input, shape index: {}]   ;;  %s6193_s5 = inlined_call_operand.vmem [shape: f32[2,1,64], index: 5, kind: input, shape index: {}]   ;;  %s6194_s6 = inlined_call_operand.vmem [shape: f32[2,1,64], index: 6, kind: input, shape index: {}]   ;;  %s6195_s7 = inlined_call_operand.vmem [shape: f32[2,64,192], index: 7, kind: input, shape index: {}]   ;;  %s6196_s8 = inlined_call_operand.vmem [shape: f32[2,1,192], index: 8, kind: input, shape index: {}]   ;;  %s6197_s9 = inlined_call_operand.vmem [shape: f32[2,64,64], index: 9, kind: input, shape index: {}]   ;;  %s6198_s10 = inlined_call_operand.vmem [shape: f32[2,1,64], index: 10, kind: input, shape index: {}]   ;;  %s6199_s11 = inlined_call_operand.vmem [shape: f32[2,1,64], index: 11, kind: input, shape index: {}]   ;;  %s6200_s12 = inlined_call_operand.vmem [shape: f32[2,1,64], index: 12, kind: input, shape index: {}]   ;;  %s6201_s13 = inlined_call_operand.vmem [shape: f32[2,64,128], index: 13, kind: input, shape index: {}]   ;;  %s6202_s14 = inlined_call_operand.vmem [shape: f32[2,1,128], index: 14, kind: input, shape index: {}]   ;;  %s6203_s15 = inlined_call_operand.vmem [shape: f32[2,128,64], index: 15, kind: input, shape index: {}]   ;;  %s6204_s16 = inlined_call_operand.vmem [shape: f32[2,1,64], index: 16, kind: input, shape index: {}]   ;;  %s6205_s17 = inlined_call_operand.vmem [shape: f32[16,22,64], index: 17, kind: output, shape index: {}]  }
   0x1   :  { %6215 = sst [smem:[#allocation2_spill]] %s6188_s0 }
   0x2   :  { %6216 = sst [smem:[#allocation3_spill]] %s6189_s1 }
   0x3 LB: > { %s3890_s25 = sadd.s32 4294967295, %s4843_s24   ;;  %p3894_p0 = scmp.ge.s32.totalorder %s4843_s24, 1  ;;  %s4843_s24 = sphi %s4944_s24, %s27_s24  }
   0x4   : > { %p487_p1 = scmp.lt.s32.totalorder %s4843_s24, 17 }
   0x6   : > { %p488_p2 = pnand %p3894_p0, %p487_p1 }
   0x7   : > { %s6217_s28 = sld [smem:[#allocation3_spill]] (!%p488_p2)  ;;  %p539_p3 = scmp.lt.s32.totalorder (!%p488_p2), %s3890_s25, 15 }
   0x8   : > { %491 = sbr.rel (%p488_p2) target bundleno = 5192 (0x1448), region = 88  ;;  %s6218_s18 = sld [smem:[#allocation2_spill]] (!%p488_p2) }
   0x9   : > { %s4847_s1 = smov (!%p488_p2), 64   ;;  %s4848_s20 = smov (!%p488_p2), 48  }
   0xa   : > { %s6211_s21 = smov (!%p488_p2), 112   ;;  %s4850_s22 = smov (!%p488_p2), 32  }
   0xb   : > { %s6207_s23 = smov (!%p488_p2), 96   ;;  %s6213_s26 = smov (!%p488_p2), 16  }
   0xc   : > { %s6209_s27 = smov (!%p488_p2), 80   ;;  %s6222_s30 = smov (!%p488_p2), 96  }
   0xd   : > { %v552_v0 = vld [vmem:[%s6217_s28] sm:$0x3f]  ;;  %vm570_vm0 = vcmask 1045504   ;;  %v4845_v1 = vmov 0.0   ;;  %vm4846_vm1 = vmmov 0   ;;  %s6225_s25 = smov (!%p539_p3, %s3890_s25), 15 }
   0xe   : > { %4254 = vmatprep.subr.mxu0 %v4845_v1  ;;  %4256 = vmatprep.mubr.msk.f32.mxu0 %vm4846_vm1, %v4845_v1  ;;  %s6206_s29 = smul.u32 24, %s6225_s25  ;;  %vm560_vm2 = vcmask 48128   ;;  %v3897_v5 = vld [vmem:[%s6190_s2] ss:$0 sm:$0xff]  ;;  %vm658_vm3 = vcmask 1040384   ;;  %vm676_vm4 = vcmask 523264  }
   0xf   : > { %4255 = vmatpush3.msk.msra.mxu0 %vm570_vm0, %v552_v0  ;;  %837 = vmatprep.mubr.f32.mxu1 %v4845_v1  ;;  %v654_v9 = vld [vmem:[%s6191_s3] sm:$0x1]  ;;  %v669_v18 = vld [vmem:[%s6192_s4 + $0x8] sm:$0xff]  ;;  %v670_v26 = vld [vmem:[%s6192_s4 + $0x10] sm:$0x3f]  ;;  %vm683_vm5 = vcmask 521216  }
  0x10   : > { %4280 = vmatprep.subr.mxu0 %v4845_v1  ;;  %s543_s19 = scalar_lea.vmem %s6218_s18, %s6206_s29  ;;  %v668_v11 = vld [vmem:[%s6192_s4] sm:$0xff]  ;;  %v751_v46 = vld [vmem:[%s6195_s7 + $0x78] sm:$0xff]  ;;  %v750_v47 = vld [vmem:[%s6195_s7 + $0x70] sm:$0xff]  ;;  %vm865_vm6 = vcmask 130048   ;;  %vm958_vm7 = vcmask 179200   ;;  %vm965_vm8 = vcmask 177152  }
  0x11   : > { %v549_v2 = vld [vmem:[%s543_s19] sm:$0xff]  ;;  %v550_v3 = vld [vmem:[%s543_s19 + $0x8] sm:$0xff]  ;;  %v551_v4 = vld [vmem:[%s543_s19 + $0x10] sm:$0x1f]  ;;  %789 = vmatprep.subr.mxu1 %v751_v46  ;;  %vm1834_vm9 = vcmask 261120   ;;  %vm1838_vm10 = vcmask 392192  }
  0x12   : > { %4257 = vmatmul.mubr.msk.f32.vlgmr.msra.gmra.mxu0 %vm560_vm2, %v549_v2  ;;  %790 = vmatpush1.msra.mxu1 %v750_v47  ;;  %v749_v48 = vld [vmem:[%s6195_s7 + $0x68] sm:$0xff]  ;;  %v748_v49 = vld [vmem:[%s6195_s7 + $0x60] sm:$0xff]  ;;  %v747_v50 = vld [vmem:[%s6195_s7 + $0x58] sm:$0xff] }
  0x13   : > { %4259 = vmatprep.mubr.msk.f32.mxu0 %vm4846_vm1, %v4845_v1  ;;  %791 = vmatprep.subr.mxu1 %v749_v48  ;;  %v746_v51 = vld [vmem:[%s6195_s7 + $0x50] sm:$0xff]  ;;  %v745_v52 = vld [vmem:[%s6195_s7 + $0x48] sm:$0xff]  ;;  %v744_v53 = vld [vmem:[%s6195_s7 + $0x40] sm:$0xff] }
  0x14   : > { %792 = vmatpush1.msra.mxu1 %v748_v49  ;;  %v743_v54 = vld [vmem:[%s6195_s7 + $0x38] sm:$0xff]  ;;  %v742_v55 = vld [vmem:[%s6195_s7 + $0x30] sm:$0xff]  ;;  %v741_v56 = vld [vmem:[%s6195_s7 + $0x28] sm:$0xff] }
  0x15   : > { %793 = vmatprep.subr.mxu1 %v747_v50  ;;  %v740_v57 = vld [vmem:[%s6195_s7 + $0x20] sm:$0xff]  ;;  %v739_v58 = vld [vmem:[%s6195_s7 + $0x18] sm:$0xff]  ;;  %v738_v59 = vld [vmem:[%s6195_s7 + $0x10] sm:$0xff] }
  0x16   : > { %4260 = vmatmul.mubr.msk.f32.gmra.mxu0 %vm560_vm2, %v550_v3  ;;  %794 = vmatpush1.msra.mxu1 %v746_v51  ;;  %v737_v60 = vld [vmem:[%s6195_s7 + $0x8] sm:$0xff]  ;;  %v736_v61 = vld [vmem:[%s6195_s7] sm:$0xff] }
  0x17   : > { %4262 = vmatprep.mubr.msk.f32.mxu0 %vm4846_vm1, %v4845_v1  ;;  %795 = vmatprep.subr.mxu1 %v745_v52 }
  0x18   : > { %796 = vmatpush1.msra.mxu1 %v744_v53 }
  0x19   : > { %797 = vmatprep.subr.mxu1 %v743_v54 }
  0x1a   : > { %4263 = vmatmul.mubr.msk.f32.gmra.mxu0 %vm560_vm2, %v551_v4  ;;  %798 = vmatpush1.msra.mxu1 %v742_v55 }
  0x1b   : > { %4286 = vmatprep.mubr.msk.f32.mxu0 %vm4846_vm1, %v4845_v1  ;;  %799 = vmatprep.subr.mxu1 %v741_v56 }
  0x1c   : > { %800 = vmatpush1.msra.mxu1 %v740_v57 }
  0x1d   : > { %801 = vmatprep.subr.mxu1 %v739_v58 }
  0x1e   : > { %802 = vmatpush1.msra.mxu1 %v738_v59 }
  0x1f   : > { %803 = vmatprep.subr.mxu1 %v737_v60 }
  0x20   : > { %804 = vmatpush1.msra.mxu1 %v736_v61 }
  0x21   : > { %4265 = vmatprep.subr.mxu1 %v4845_v1 }
  0xd2   : > { %v640_v6 = vpop.f32.mrf.mxu0 }
  0xd3   : > { %v641_v7 = vadd.f32 %v3897_v5, %v640_v6 }
  0xd4   : > { %v4258_v8 = vpop.f32.mrf.mxu0 }
  0xd5   : > { %v659_v10 = vrot.slane %v641_v7, 7 }
  0xd6   : > { %v645_v12 = vpop.f32.mrf.mxu0 }
  0xd7   : > { %v646_v13 = vadd.f32 %v3897_v5, %v645_v12  ;;  %v667_v14 = vsel %vm658_vm3, %v654_v9, %v659_v10  ;;  %v3902_v9 = vld [vmem:[%s6193_s5] ss:$0 sm:$0xff] }
  0xd8   : > { %v4261_v15 = vpop.f32.mrf.mxu0  ;;  %v4985_v16 = vadd.f32 %v668_v11, %v667_v14  ;;  %v3903_v11 = vld [vmem:[%s6194_s6] ss:$0 sm:$0xff] }
  0xd9   : > { %v660_v17 = vrot.slane %v646_v13, 7 }
  0xda   : > { %v650_v19 = vpop.f32.mrf.mxu0  ;;  %v677_v20 = vsel %vm676_vm4, %v4985_v16, 0.0 }
  0xdb   : > { %v661_v21 = vsel %vm658_vm3, %v659_v10, %v660_v17  ;;  %v651_v22 = vadd.f32 %v3897_v5, %v650_v19  ;;  %678 = vadd.xlane.f32.xlu0 %v677_v20 }
  0xdc   : > { %v4264_v23 = vpop.f32.mrf.mxu0  ;;  %v4993_v24 = vadd.f32 %v669_v18, %v661_v21 }
  0xdd   : > { %v662_v25 = vrot.slane %v651_v22, 7  ;;  %v754_v23 = vlaneseq }
  0xde   : > { %v680_v27 = vsel %vm676_vm4, %v4993_v24, 0.0 }
  0xdf   : > { %681 = vadd.xlane.f32.xlu0 %v680_v27  ;;  %v663_v28 = vsel %vm658_vm3, %v660_v17, %v662_v25  ;;  %v5088_v25 = vshrl.u32 %v754_v23, 7  ;;  %v752_v27 = vld [vmem:[%s6196_s8] sm:$0x3] }
  0xe0   : > { %v5001_v29 = vadd.f32 %v670_v26, %v663_v28 }
  0xe1   : > { %v756_v26 = vsub.s32 0, %v5088_v25 }
  0xe2   : > { %v684_v30 = vsel %vm683_vm5, %v5001_v29, 0.0 }
  0xe3   : > { %685 = vadd.xlane.f32.xlu1 %v684_v30 }
 0x164   : > { %v679_v31 = vpop.xlane.xlu0 %678 }
 0x165   : > { %v688_v32 = vmul.f32 0.015625, %v679_v31  ;;  %v757_v31 = vrot.slane %v752_v27, %v756_v26 }
 0x167   : > { %v5006_v33 = vsub.f32 %v4985_v16, %v688_v32 }
 0x168   : > { %v682_v34 = vpop.xlane.xlu0 %681 }
 0x169   : > { %v689_v35 = vmul.f32 0.015625, %v682_v34  ;;  %v694_v36 = vmul.f32 %v5006_v33, %v5006_v33 }
 0x16b   : > { %v5011_v37 = vsub.f32 %v4993_v24, %v689_v35  ;;  %v697_v38 = vsel %vm676_vm4, %v694_v36, 0.0 }
 0x16c   : > { %698 = vadd.xlane.f32.xlu1 %v697_v38  ;;  %v686_v39 = vpop.xlane.xlu1 %685 }
 0x16d   : > { %v690_v40 = vmul.f32 0.015625, %v686_v39  ;;  %v695_v41 = vmul.f32 %v5011_v37, %v5011_v37 }
 0x16f   : > { %v5017_v42 = vsub.f32 %v5001_v29, %v690_v40  ;;  %v700_v43 = vsel %vm676_vm4, %v695_v41, 0.0 }
 0x170   : > { %701 = vadd.xlane.f32.xlu0 %v700_v43 }
 0x171   : > { %v696_v44 = vmul.f32 %v5017_v42, %v5017_v42 }
 0x173   : > { %v703_v45 = vsel %vm683_vm5, %v696_v44, 0.0 }
 0x174   : > { %704 = vadd.xlane.f32.xlu1 %v703_v45 }
 0x1f5   : > { %v699_v62 = vpop.xlane.xlu1 %698 }
 0x1f6   : > { %v706_v63 = vmul.f32 0.015625, %v699_v62 }
 0x1f8   : > { %v709_v0 = vadd.f32 1e-05, %v706_v63 }
 0x1f9   : > { %v702_v2 = vpop.xlane.xlu0 %701 }
 0x1fa   : > { %4705 = vrsqrt.f32 %v709_v0  ;;  %v707_v3 = vmul.f32 0.015625, %v702_v2 }
 0x1fc   : > { %v710_v4 = vadd.f32 1e-05, %v707_v3 }
 0x1fd   : > { %v705_v5 = vpop.xlane.xlu1 %704 }
 0x1fe   : > { %4707 = vrsqrt.f32 %v710_v4  ;;  %v708_v6 = vmul.f32 0.015625, %v705_v5 }
 0x200   : > { %v711_v7 = vadd.f32 1e-05, %v708_v6 }
 0x202   : > { %4709 = vrsqrt.f32 %v711_v7 }
 0x207   : > { %v4706_v8 = vpop.eup %4705 }
 0x208   : > { %v715_v10 = vmul.f32 %v4706_v8, %v5006_v33  ;;  %v760_v33 = vsub.s32 1, %v5088_v25 }
 0x20a   : > { %v724_v12 = vmul.f32 %v3902_v9, %v715_v10  ;;  %v761_v38 = vrot.slane %v752_v27, %v760_v33 }
 0x20b   : > { %v4708_v13 = vpop.eup %4707 }
 0x20c   : > { %v733_v14 = vadd.f32 %v3903_v11, %v724_v12  ;;  %v716_v15 = vmul.f32 %v4708_v13, %v5011_v37 }
 0x20e   : > { %3904 = vmatmul.mubr.msk.f32.vlgmr.msra.gmra.mxu1 %vm676_vm4, %v733_v14  ;;  %v725_v17 = vmul.f32 %v3902_v9, %v716_v15 }
 0x20f   : > { %v4710_v18 = vpop.eup %4709  ;;  %843 = vmatprep.mubr.f32.mxu1 %v4845_v1 }
 0x210   : > { %v734_v19 = vadd.f32 %v3903_v11, %v725_v17  ;;  %v717_v20 = vmul.f32 %v4710_v18, %v5017_v42 }
 0x212   : > { %3905 = vmatmul.mubr.msk.f32.gmra.mxu1 %vm676_vm4, %v734_v19  ;;  %v726_v21 = vmul.f32 %v3902_v9, %v717_v20 }
 0x213   : > { %849 = vmatprep.mubr.f32.mxu1 %v4845_v1 }
 0x214   : > { %v735_v22 = vadd.f32 %v3903_v11, %v726_v21 }
 0x216   : > { %3906 = vmatmul.mubr.msk.f32.gmra.mxu1 %vm676_vm4, %v735_v22 }
 0x217   : > { %4271 = vmatprep.mubr.msk.f32.mxu1 %vm4846_vm1, %v4845_v1 }
 0x2ce   : > { %v839_v28 = vpop.f32.mrf.mxu1 }
 0x2cf   : > { %v840_v37 = vadd.f32 %v839_v28, %v757_v31 }
 0x2d0   : > { %v841_v30 = vpop.f32.mrf.mxu1 }
 0x2d1   : > { %v5115_v43 = vadd.f32 %v841_v30, %v761_v38 }
 0x2d2   : > { %v845_v32 = vpop.f32.mrf.mxu1 }
 0x2d3   : > { %v5097_v34 = vadd.f32 %v845_v32, %v757_v31 }
 0x2d4   : > { %v847_v35 = vpop.f32.mrf.mxu1 }
 0x2d5   : > { %861 = vrot.lane.b32.xlu1 %v5097_v34, %s4847_s1  ;;  %v5110_v42 = vadd.f32 %v847_v35, %v761_v38 }
 0x2d6   : > { %v851_v36 = vpop.f32.mrf.mxu1 }
 0x2d7   : > { %v5103_v39 = vadd.f32 %v851_v36, %v757_v31 }
 0x2d8   : > { %v853_v40 = vpop.f32.mrf.mxu1 }
 0x2d9   : > { %v5105_v41 = vadd.f32 %v853_v40, %v761_v38  ;;  %859 = vrot.lane.b32.xlu1 %v840_v37, %s4847_s1  ;;  %863 = vrot.lane.b32.xlu0 %v5103_v39, %s4847_s1 }
 0x2db   : > { %4281 = vmatpush3.msk.msra.mxu0 %vm570_vm0, %v5105_v41 }
 0x2dc   : > { %4282 = vmatprep.subr.mxu0 %v4845_v1 }
 0x2dd   : > { %4283 = vmatpush3.msra.mxu0 %v5110_v42  ;;  %1095 = vrot.lane.b32.xlu1 %v5103_v39, %s4848_s20 }
 0x2de   : > { %1093 = vrot.lane.b32.xlu0 %v5097_v34, %s4848_s20  ;;  %4284 = vmatprep.subr.mxu0 %v4845_v1 }
 0x2df   : > { %4285 = vmatpush3.msra.mxu0 %v5115_v43 }
 0x2e0   : > { %4310 = vmatprep.subr.mxu0 %v4845_v1 }
 0x2e1   : > { %1091 = vrot.lane.b32.xlu1 %v840_v37, %s4848_s20 }
 0x2e2   : > { %1085 = vrot.lane.b32.xlu0 %v840_v37, %s6211_s21 }
 0x2e5   : > { %1333 = vrot.lane.b32.xlu1 %v5103_v39, %s4850_s22 }
 0x2e6   : > { %1087 = vrot.lane.b32.xlu0 %v5097_v34, %s6211_s21 }
 0x2e9   : > { %1331 = vrot.lane.b32.xlu1 %v5097_v34, %s4850_s22 }
 0x2ea   : > { %1089 = vrot.lane.b32.xlu0 %v5103_v39, %s6211_s21 }
 0x2ed   : > { %1329 = vrot.lane.b32.xlu1 %v840_v37, %s4850_s22 }
 0x2ee   : > { %1323 = vrot.lane.b32.xlu0 %v840_v37, %s6207_s23 }
 0x2f1   : > { %1569 = vrot.lane.b32.xlu1 %v5103_v39, %s6213_s26 }
 0x2f2   : > { %1325 = vrot.lane.b32.xlu0 %v5097_v34, %s6207_s23 }
 0x2f5   : > { %1567 = vrot.lane.b32.xlu1 %v5097_v34, %s6213_s26 }
 0x2f6   : > { %1327 = vrot.lane.b32.xlu0 %v5103_v39, %s6207_s23 }
 0x2f9   : > { %1565 = vrot.lane.b32.xlu1 %v840_v37, %s6213_s26 }
 0x2fa   : > { %1559 = vrot.lane.b32.xlu0 %v840_v37, %s6209_s27 }
 0x2fd   : > { %1561 = vrot.lane.b32.xlu1 %v5097_v34, %s6209_s27 }
 0x2fe   : > { %1563 = vrot.lane.b32.xlu0 %v5103_v39, %s6209_s27 }
 0x301   : > { %1226 = vrot.lane.b32.xlu1 %v5110_v42, %s6211_s21 }
 0x302   : > { %1228 = vrot.lane.b32.xlu0 %v5105_v41, %s6211_s21 }
 0x305   : > { %1224 = vrot.lane.b32.xlu1 %v5115_v43, %s6211_s21  ;;  %s6219_s21 = smov 16  }
 0x347   : > { %v862_v44 = vpop.permute.xlu1 %861 }
 0x34b   : > { %v864_v45 = vpop.permute.xlu0 %863  ;;  %v860_v46 = vpop.permute.xlu1 %859 }
 0x34c   : > { %4266 = vmatpush3.xpose.msk.msra.mxu1 %vm865_vm6, %v864_v45 }
 0x34d   : > { %4267 = vmatprep.subr.mxu1 %v4845_v1 }
 0x34f   : > { %v1096_v47 = vpop.permute.xlu1 %1095 }
 0x350   : > { %v1094_v48 = vpop.permute.xlu0 %1093  ;;  %4268 = vmatpush3.xpose.msk.msra.mxu1 %vm865_vm6, %v862_v44 }
 0x351   : > { %4269 = vmatprep.subr.mxu1 %v4845_v1 }
 0x353   : > { %v1092_v49 = vpop.permute.xlu1 %1091 }
 0x354   : > { %4270 = vmatpush3.xpose.msk.msra.mxu1 %vm865_vm6, %v860_v46  ;;  %v1086_v50 = vpop.permute.xlu0 %1085 }
 0x355   : > { %4295 = vmatprep.subr.mxu1 %v4845_v1 }
 0x357   : > { %4272 = vmatmul.mubr.msk.f32.vlgmr.msra.gmra.mxu1 %vm865_vm6, %v840_v37  ;;  %v1334_v51 = vpop.permute.xlu1 %1333 }
 0x358   : > { %4296 = vmatpush3.xpose.msk.msra.mxu1 %vm865_vm6, %v1096_v47  ;;  %4274 = vmatprep.mubr.msk.f32.mxu1 %vm4846_vm1, %v4845_v1  ;;  %v1088_v52 = vpop.permute.xlu0 %1087 }
 0x359   : > { %4297 = vmatprep.subr.mxu1 %v4845_v1 }
 0x35b   : > { %4275 = vmatmul.mubr.msk.f32.gmra.mxu1 %vm865_vm6, %v5097_v34  ;;  %v1332_v53 = vpop.permute.xlu1 %1331 }
 0x35c   : > { %4298 = vmatpush3.xpose.msk.msra.mxu1 %vm865_vm6, %v1094_v48  ;;  %4277 = vmatprep.mubr.msk.f32.mxu1 %vm4846_vm1, %v4845_v1  ;;  %v1090_v54 = vpop.permute.xlu0 %1089 }
 0x35d   : > { %4299 = vmatprep.subr.mxu1 %v4845_v1 }
 0x35f   : > { %4278 = vmatmul.mubr.msk.f32.gmra.mxu1 %vm865_vm6, %v5103_v39  ;;  %v1330_v55 = vpop.permute.xlu1 %1329 }
 0x360   : > { %4300 = vmatpush3.xpose.msk.msra.mxu1 %vm865_vm6, %v1092_v49  ;;  %4301 = vmatprep.mubr.msk.f32.mxu1 %vm4846_vm1, %v4845_v1  ;;  %v1324_v56 = vpop.permute.xlu0 %1323 }
 0x361   : > { %4325 = vmatprep.subr.mxu1 %v4845_v1 }
 0x363   : > { %4302 = vmatmul.mubr.msk.f32.vlgmr.msra.gmra.mxu1 %vm865_vm6, %v1086_v50  ;;  %v1570_v57 = vpop.permute.xlu1 %1569 }
 0x364   : > { %4326 = vmatpush3.xpose.msk.msra.mxu1 %vm865_vm6, %v1334_v51  ;;  %4304 = vmatprep.mubr.msk.f32.mxu1 %vm4846_vm1, %v4845_v1  ;;  %v1326_v58 = vpop.permute.xlu0 %1325 }
 0x365   : > { %4327 = vmatprep.subr.mxu1 %v4845_v1 }
 0x367   : > { %4305 = vmatmul.mubr.msk.f32.gmra.mxu1 %vm865_vm6, %v1088_v52  ;;  %v1568_v59 = vpop.permute.xlu1 %1567 }
 0x368   : > { %4328 = vmatpush3.xpose.msk.msra.mxu1 %vm865_vm6, %v1332_v53  ;;  %4307 = vmatprep.mubr.msk.f32.mxu1 %vm4846_vm1, %v4845_v1  ;;  %v1328_v60 = vpop.permute.xlu0 %1327 }
 0x369   : > { %4329 = vmatprep.subr.mxu1 %v4845_v1 }
 0x36b   : > { %4308 = vmatmul.mubr.msk.f32.gmra.mxu1 %vm865_vm6, %v1090_v54  ;;  %v1566_v61 = vpop.permute.xlu1 %1565 }
 0x36c   : > { %4330 = vmatpush3.xpose.msk.msra.mxu1 %vm865_vm6, %v1330_v55  ;;  %4331 = vmatprep.mubr.msk.f32.mxu1 %vm4846_vm1, %v4845_v1  ;;  %v1560_v62 = vpop.permute.xlu0 %1559 }
 0x36d   : > { %4355 = vmatprep.subr.mxu1 %v4845_v1 }
 0x36f   : > { %4332 = vmatmul.mubr.msk.f32.vlgmr.msra.gmra.mxu1 %vm865_vm6, %v1324_v56  ;;  %v1562_v63 = vpop.permute.xlu1 %1561 }
 0x370   : > { %4356 = vmatpush3.xpose.msk.msra.mxu1 %vm865_vm6, %v1570_v57  ;;  %4334 = vmatprep.mubr.msk.f32.mxu1 %vm4846_vm1, %v4845_v1  ;;  %v1564_v0 = vpop.permute.xlu0 %1563 }
 0x371   : > { %4357 = vmatprep.subr.mxu1 %v4845_v1 }
 0x373   : > { %4335 = vmatmul.mubr.msk.f32.gmra.mxu1 %vm865_vm6, %v1326_v58  ;;  %v5253_v47 = vpop.permute.xlu1 %1226 }
 0x374   : > { %4358 = vmatpush3.xpose.msk.msra.mxu1 %vm865_vm6, %v1568_v59  ;;  %4337 = vmatprep.mubr.msk.f32.mxu1 %vm4846_vm1, %v4845_v1  ;;  %v5257_v49 = vpop.permute.xlu0 %1228 }
 0x375   : > { %4359 = vmatprep.subr.mxu1 %v4845_v1 }
 0x377   : > { %4338 = vmatmul.mubr.msk.f32.gmra.mxu1 %vm865_vm6, %v1328_v60  ;;  %v5255_v48 = vpop.permute.xlu1 %1224 }
 0x378   : > { %4360 = vmatpush3.xpose.msk.msra.mxu1 %vm865_vm6, %v1566_v61  ;;  %4361 = vmatprep.mubr.msk.f32.mxu1 %vm4846_vm1, %v4845_v1 }
 0x379   : > { %4385 = vmatprep.subr.mxu1 %v4845_v1 }
 0x37b   : > { %4362 = vmatmul.mubr.msk.f32.vlgmr.msra.gmra.mxu1 %vm865_vm6, %v1560_v62 }
 0x37c   : > { %4364 = vmatprep.mubr.msk.f32.mxu1 %vm4846_vm1, %v4845_v1 }
 0x37f   : > { %4365 = vmatmul.mubr.msk.f32.gmra.mxu1 %vm865_vm6, %v1562_v63 }
 0x380   : > { %4367 = vmatprep.mubr.msk.f32.mxu1 %vm4846_vm1, %v4845_v1 }
 0x383   : > { %4368 = vmatmul.mubr.msk.f32.gmra.mxu1 %vm865_vm6, %v1564_v0 }
 0x384   : > { %4401 = vmatprep.mubr.msk.f32.mxu1 %vm4846_vm1, %v4845_v1 }
 0x417   : > { %v944_v2 = vpop.f32.mrf.mxu1 }
 0x418   : > { %v959_v3 = vsel %vm958_vm7, %v944_v2, -inf }
 0x419   : > { %960 = vmax.xlane.f32.xlu1 %v959_v3  ;;  %v4273_v4 = vpop.f32.mrf.mxu1 }
 0x41b   : > { %v949_v5 = vpop.f32.mrf.mxu1 }
 0x41c   : > { %v962_v6 = vsel %vm958_vm7, %v949_v5, -inf }
 0x41d   : > { %963 = vmax.xlane.f32.xlu0 %v962_v6  ;;  %v4276_v7 = vpop.f32.mrf.mxu1 }
 0x41f   : > { %v954_v8 = vpop.f32.mrf.mxu1 }
 0x420   : > { %v966_v9 = vsel %vm965_vm8, %v954_v8, -inf }
 0x421   : > { %967 = vmax.xlane.f32.xlu0 %v966_v9  ;;  %v4279_v10 = vpop.f32.mrf.mxu1 }
 0x423   : > { %v1175_v11 = vpop.f32.mrf.mxu1 }
 0x424   : > { %v1189_v12 = vsel %vm958_vm7, %v1175_v11, -inf }
 0x425   : > { %1190 = vmax.xlane.f32.xlu0 %v1189_v12  ;;  %v4303_v13 = vpop.f32.mrf.mxu1 }
 0x427   : > { %v1180_v14 = vpop.f32.mrf.mxu1 }
 0x428   : > { %v1192_v15 = vsel %vm958_vm7, %v1180_v14, -inf }
 0x429   : > { %1193 = vmax.xlane.f32.xlu1 %v1192_v15  ;;  %v4306_v17 = vpop.f32.mrf.mxu1 }
 0x42b   : > { %v1185_v18 = vpop.f32.mrf.mxu1 }
 0x42c   : > { %v1195_v19 = vsel %vm965_vm8, %v1185_v18, -inf }
 0x42d   : > { %1196 = vmax.xlane.f32.xlu0 %v1195_v19  ;;  %v4309_v20 = vpop.f32.mrf.mxu1 }
 0x42f   : > { %v5225_v21 = vpop.f32.mrf.mxu1 }
 0x430   : > { %v1427_v22 = vsel %vm958_vm7, %v5225_v21, -inf }
 0x431   : > { %1428 = vmax.xlane.f32.xlu1 %v1427_v22  ;;  %v4333_v23 = vpop.f32.mrf.mxu1 }
 0x433   : > { %v5229_v27 = vpop.f32.mrf.mxu1 }
 0x434   : > { %v1430_v28 = vsel %vm958_vm7, %v5229_v27, -inf }
 0x435   : > { %1431 = vmax.xlane.f32.xlu0 %v1430_v28  ;;  %v4336_v30 = vpop.f32.mrf.mxu1 }
 0x437   : > { %v5233_v31 = vpop.f32.mrf.mxu1 }
 0x438   : > { %v1433_v32 = vsel %vm965_vm8, %v5233_v31, -inf }
 0x439   : > { %1434 = vmax.xlane.f32.xlu1 %v1433_v32  ;;  %v4339_v34 = vpop.f32.mrf.mxu1 }
 0x43b   : > { %v5237_v35 = vpop.f32.mrf.mxu1 }
 0x43c   : > { %v1663_v36 = vsel %vm958_vm7, %v5237_v35, -inf }
 0x43d   : > { %1664 = vmax.xlane.f32.xlu0 %v1663_v36  ;;  %v4363_v37 = vpop.f32.mrf.mxu1 }
 0x43f   : > { %v5241_v38 = vpop.f32.mrf.mxu1 }
 0x440   : > { %v1666_v39 = vsel %vm958_vm7, %v5241_v38, -inf }
 0x441   : > { %1667 = vmax.xlane.f32.xlu1 %v1666_v39  ;;  %v4366_v40 = vpop.f32.mrf.mxu1 }
 0x443   : > { %v5245_v44 = vpop.f32.mrf.mxu1 }
 0x444   : > { %v1669_v45 = vsel %vm965_vm8, %v5245_v44, -inf }
 0x445   : > { %1670 = vmax.xlane.f32.xlu0 %v1669_v45  ;;  %v4369_v46 = vpop.f32.mrf.mxu1 }
 0x452   : > { %1462 = vrot.lane.b32.xlu1 %v5110_v42, %s6207_s23 }
 0x45b   : > { %1464 = vrot.lane.b32.xlu0 %v5105_v41, %s6207_s23 }
 0x4a2   : > { %v961_v50 = vpop.xlane.xlu1 %960 }
 0x4a3   : > { %v969_v51 = vsub.f32 %v944_v2, %v961_v50 }
 0x4a5   : > { %v972_v52 = vmul.f32 1.442695, %v969_v51 }
 0x4a6   : > { %v964_v53 = vpop.xlane.xlu0 %963 }
 0x4a7   : > { %4711 = vpow2.f32 %v972_v52  ;;  %v970_v54 = vsub.f32 %v949_v5, %v964_v53 }
 0x4a9   : > { %v974_v55 = vmul.f32 1.442695, %v970_v54 }
 0x4aa   : > { %v968_v56 = vpop.xlane.xlu0 %967 }
 0x4ab   : > { %4713 = vpow2.f32 %v974_v55  ;;  %v971_v57 = vsub.f32 %v954_v8, %v968_v56 }
 0x4ad   : > { %v976_v58 = vmul.f32 1.442695, %v971_v57 }
 0x4ae   : > { %v1191_v59 = vpop.xlane.xlu0 %1190 }
 0x4af   : > { %4715 = vpow2.f32 %v976_v58  ;;  %v1198_v60 = vsub.f32 %v1175_v11, %v1191_v59 }
 0x4b1   : > { %v1201_v61 = vmul.f32 1.442695, %v1198_v60 }
 0x4b2   : > { %v1194_v62 = vpop.xlane.xlu1 %1193 }
 0x4b3   : > { %4717 = vpow2.f32 %v1201_v61  ;;  %v1199_v63 = vsub.f32 %v1180_v14, %v1194_v62 }
 0x4b4   : > { %v5259_v0 = vpop.eup %4711 }
 0x4b5   : > { %v1203_v3 = vmul.f32 1.442695, %v1199_v63  ;;  %v978_v2 = vsel %vm958_vm7, %v5259_v0, 0.0 }
 0x4b6   : > { %v1197_v4 = vpop.xlane.xlu0 %1196  ;;  %979 = vadd.xlane.f32.xlu1 %v978_v2 }
 0x4b7   : > { %4719 = vpow2.f32 %v1203_v3  ;;  %v1200_v5 = vsub.f32 %v1185_v18, %v1197_v4 }
 0x4b8   : > { %v5263_v6 = vpop.eup %4713 }
 0x4b9   : > { %v1205_v7 = vmul.f32 1.442695, %v1200_v5  ;;  %v981_v8 = vsel %vm958_vm7, %v5263_v6, 0.0 }
 0x4ba   : > { %982 = vadd.xlane.f32.xlu0 %v981_v8  ;;  %v1429_v18 = vpop.xlane.xlu1 %1428 }
 0x4bb   : > { %4721 = vpow2.f32 %v1205_v7  ;;  %v1436_v19 = vsub.f32 %v5225_v21, %v1429_v18 }
 0x4bc   : > { %v5267_v9 = vpop.eup %4715 }
 0x4bd   : > { %v984_v10 = vsel %vm965_vm8, %v5267_v9, 0.0  ;;  %v1439_v28 = vmul.f32 1.442695, %v1436_v19 }
 0x4be   : > { %985 = vadd.xlane.f32.xlu1 %v984_v10  ;;  %v1432_v20 = vpop.xlane.xlu0 %1431 }
 0x4bf   : > { %v1437_v23 = vsub.f32 %v5229_v27, %v1432_v20  ;;  %4723 = vpow2.f32 %v1439_v28 }
 0x4c0   : > { %v5271_v11 = vpop.eup %4717 }
 0x4c1   : > { %v1207_v12 = vsel %vm958_vm7, %v5271_v11, 0.0  ;;  %v1441_v36 = vmul.f32 1.442695, %v1437_v23 }
 0x4c2   : > { %1208 = vadd.xlane.f32.xlu0 %v1207_v12  ;;  %v1435_v22 = vpop.xlane.xlu1 %1434 }
 0x4c3   : > { %v1438_v30 = vsub.f32 %v5233_v31, %v1435_v22  ;;  %4725 = vpow2.f32 %v1441_v36 }
 0x4c4   : > { %v5275_v13 = vpop.eup %4719 }
 0x4c5   : > { %v1210_v14 = vsel %vm958_vm7, %v5275_v13, 0.0 }
 0x4c6   : > { %1211 = vadd.xlane.f32.xlu1 %v1210_v14  ;;  %v1665_v32 = vpop.xlane.xlu0 %1664 }
 0x4c7   : > { %v1672_v37 = vsub.f32 %v5237_v35, %v1665_v32 }
 0x4c8   : > { %v5279_v15 = vpop.eup %4721 }
 0x4c9   : > { %v1213_v17 = vsel %vm965_vm8, %v5279_v15, 0.0  ;;  %v1675_v45 = vmul.f32 1.442695, %v1672_v37 }
 0x4ca   : > { %1214 = vadd.xlane.f32.xlu0 %v1213_v17  ;;  %v1668_v34 = vpop.xlane.xlu1 %1667 }
 0x4cb   : > { %v1673_v39 = vsub.f32 %v5241_v38, %v1668_v34 }
 0x4cc   : > { %v5293_v31 = vpop.eup %4723 }
 0x4cd   : > { %v1677_v21 = vmul.f32 1.442695, %v1673_v39  ;;  %v1445_v35 = vsel %vm958_vm7, %v5293_v31, 0.0 }
 0x4ce   : > { %v1671_v40 = vpop.xlane.xlu0 %1670  ;;  %v1463_v58 = vpop.permute.xlu1 %1462 }
 0x4cf   : > { %v1674_v46 = vsub.f32 %v5245_v44, %v1671_v40 }
 0x4d0   : > { %v5295_v50 = vpop.eup %4725 }
 0x4d1   : > { %v1679_v27 = vmul.f32 1.442695, %v1674_v46  ;;  %v1448_v52 = vsel %vm958_vm7, %v5295_v50, 0.0 }
 0x4d2   : > { %v1465_v59 = vpop.permute.xlu0 %1464 }
 0x4d7   : > { %1700 = vrot.lane.b32.xlu1 %v5105_v41, %s6209_s27  ;;  %v1443_v41 = vmul.f32 1.442695, %v1438_v30 }
 0x4d9   : > { %4727 = vpow2.f32 %v1443_v41 }
 0x4da   : > { %4729 = vpow2.f32 %v1675_v45 }
 0x4db   : > { %4731 = vpow2.f32 %v1677_v21 }
 0x4dc   : > { %4733 = vpow2.f32 %v1679_v27 }
 0x4e0   : > { %1460 = vrot.lane.b32.xlu0 %v5115_v43, %s6207_s23 }
 0x4e6   : > { %v5299_v51 = vpop.eup %4727 }
 0x4e7   : > { %v5301_v38 = vpop.eup %4729  ;;  %v1451_v44 = vsel %vm965_vm8, %v5299_v51, 0.0 }
 0x4e8   : > { %v5307_v53 = vpop.eup %4731  ;;  %v1681_v54 = vsel %vm958_vm7, %v5301_v38, 0.0 }
 0x4e9   : > { %v1684_v55 = vsel %vm958_vm7, %v5307_v53, 0.0  ;;  %v5313_v56 = vpop.eup %4733 }
 0x4ea   : > { %v1687_v57 = vsel %vm965_vm8, %v5313_v56, 0.0 }
 0x4fb   : > { %1446 = vadd.xlane.f32.xlu1 %v1445_v35 }
 0x4ff   : > { %1449 = vadd.xlane.f32.xlu0 %v1448_v52  ;;  %1452 = vadd.xlane.f32.xlu1 %v1451_v44 }
 0x503   : > { %1682 = vadd.xlane.f32.xlu1 %v1681_v54  ;;  %1685 = vadd.xlane.f32.xlu0 %v1684_v55 }
 0x507   : > { %1688 = vadd.xlane.f32.xlu1 %v1687_v57  ;;  %v1847_v57 = vld [vmem:[%s6197_s9 + $0x28] sm:$0xff] }
 0x518   : > { %1696 = vrot.lane.b32.xlu1 %v5115_v43, %s6209_s27 }
 0x519   : > { %1698 = vrot.lane.b32.xlu0 %v5110_v42, %s6209_s27 }
 0x53f   : > { %v980_v60 = vpop.xlane.xlu1 %979 }
 0x540   : > { %4735 = vrcp.f32 %v980_v60  ;;  %v1844_v60 = vld [vmem:[%s6197_s9 + $0x10] sm:$0xff] }
 0x543   : > { %v983_v61 = vpop.xlane.xlu0 %982 }
 0x544   : > { %4737 = vrcp.f32 %v983_v61  ;;  %v1843_v61 = vld [vmem:[%s6197_s9 + $0x8] sm:$0xff] }
 0x547   : > { %v986_v62 = vpop.xlane.xlu1 %985 }
 0x548   : > { %4739 = vrcp.f32 %v986_v62 }
 0x54b   : > { %v1209_v63 = vpop.xlane.xlu0 %1208 }
 0x54c   : > { %4741 = vrcp.f32 %v1209_v63  ;;  %v1842_v63 = vld [vmem:[%s6197_s9] sm:$0xff] }
 0x54d   : > { %v4736_v3 = vpop.eup %4735 }
 0x54e   : > { %v990_v2 = vmul.f32 %v4736_v3, %v5259_v0 }
 0x54f   : > { %v1212_v4 = vpop.xlane.xlu1 %1211 }
 0x550   : > { %4743 = vrcp.f32 %v1212_v4  ;;  %4287 = vmatmul.mubr.msk.f32.vlgmr.msra.gmra.mxu0 %vm958_vm7, %v990_v2 }
 0x551   : > { %v4738_v43 = vpop.eup %4737  ;;  %4311 = vmatpush3.msk.msra.mxu0 %vm570_vm0, %v5257_v49  ;;  %4289 = vmatprep.mubr.msk.f32.mxu0 %vm4846_vm1, %v4845_v1 }
 0x552   : > { %4312 = vmatprep.subr.mxu0 %v4845_v1  ;;  %v991_v42 = vmul.f32 %v4738_v43, %v5263_v6 }
 0x553   : > { %4313 = vmatpush3.msra.mxu0 %v5253_v47  ;;  %v1215_v5 = vpop.xlane.xlu0 %1214 }
 0x554   : > { %4745 = vrcp.f32 %v1215_v5  ;;  %4314 = vmatprep.subr.mxu0 %v4845_v1  ;;  %4290 = vmatmul.mubr.msk.f32.gmra.mxu0 %vm958_vm7, %v991_v42 }
 0x555   : > { %v4740_v0 = vpop.eup %4739  ;;  %4315 = vmatpush3.msra.mxu0 %v5255_v48  ;;  %4292 = vmatprep.mubr.msk.f32.mxu0 %vm4846_vm1, %v4845_v1 }
 0x556   : > { %v992_v49 = vmul.f32 %v4740_v0, %v5267_v9  ;;  %4340 = vmatprep.subr.mxu0 %v4845_v1 }
 0x557   : > { %v1461_v8 = vpop.permute.xlu0 %1460 }
 0x558   : > { %4293 = vmatmul.mubr.msk.f32.gmra.mxu0 %vm958_vm7, %v992_v49 }
 0x559   : > { %v4742_v6 = vpop.eup %4741  ;;  %4316 = vmatprep.mubr.msk.f32.mxu0 %vm4846_vm1, %v4845_v1 }
 0x55a   : > { %v1219_v47 = vmul.f32 %v4742_v6, %v5271_v11  ;;  %v1701_v11 = vpop.permute.xlu1 %1700 }
 0x55c   : > { %4317 = vmatmul.mubr.msk.f32.vlgmr.msra.gmra.mxu0 %vm958_vm7, %v1219_v47 }
 0x55d   : > { %v4744_v7 = vpop.eup %4743  ;;  %4341 = vmatpush3.msk.msra.mxu0 %vm570_vm0, %v1465_v59  ;;  %4319 = vmatprep.mubr.msk.f32.mxu0 %vm4846_vm1, %v4845_v1  ;;  %v1845_v59 = vld [vmem:[%s6197_s9 + $0x18] sm:$0xff] }
 0x55e   : > { %4342 = vmatprep.subr.mxu0 %v4845_v1  ;;  %v1220_v48 = vmul.f32 %v4744_v7, %v5275_v13 }
 0x55f   : > { %4343 = vmatpush3.msra.mxu0 %v1463_v58  ;;  %v1846_v58 = vld [vmem:[%s6197_s9 + $0x20] sm:$0xff] }
 0x560   : > { %4344 = vmatprep.subr.mxu0 %v4845_v1  ;;  %4320 = vmatmul.mubr.msk.f32.gmra.mxu0 %vm958_vm7, %v1220_v48 }
 0x561   : > { %v4746_v9 = vpop.eup %4745  ;;  %4345 = vmatpush3.msra.mxu0 %v1461_v8  ;;  %4322 = vmatprep.mubr.msk.f32.mxu0 %vm4846_vm1, %v4845_v1 }
 0x562   : > { %v1221_v10 = vmul.f32 %v4746_v9, %v5279_v15  ;;  %4370 = vmatprep.subr.mxu0 %v4845_v1 }
 0x564   : > { %4323 = vmatmul.mubr.msk.f32.gmra.mxu0 %vm958_vm7, %v1221_v10 }
 0x565   : > { %4346 = vmatprep.mubr.msk.f32.mxu0 %vm4846_vm1, %v4845_v1 }
 0x584   : > { %v1447_v12 = vpop.xlane.xlu1 %1446 }
 0x585   : > { %4747 = vrcp.f32 %v1447_v12 }
 0x588   : > { %v1450_v13 = vpop.xlane.xlu0 %1449  ;;  %v1453_v14 = vpop.xlane.xlu1 %1452 }
 0x589   : > { %4749 = vrcp.f32 %v1450_v13 }
 0x58a   : > { %4751 = vrcp.f32 %v1453_v14 }
 0x58c   : > { %v1683_v17 = vpop.xlane.xlu1 %1682  ;;  %v1686_v18 = vpop.xlane.xlu0 %1685 }
 0x58d   : > { %4753 = vrcp.f32 %v1683_v17 }
 0x58e   : > { %4755 = vrcp.f32 %v1686_v18 }
 0x590   : > { %v1689_v20 = vpop.xlane.xlu1 %1688  ;;  %v1699_v23 = vpop.permute.xlu0 %1698 }
 0x591   : > { %4757 = vrcp.f32 %v1689_v20 }
 0x592   : > { %v4748_v19 = vpop.eup %4747 }
 0x593   : > { %v1457_v15 = vmul.f32 %v4748_v19, %v5293_v31  ;;  %v1849_v31 = vld [vmem:[%s6197_s9 + $0x38] sm:$0xff] }
 0x594   : > { %v1697_v32 = vpop.permute.xlu1 %1696  ;;  %4386 = vmatpush3.msra.mxu1 %v1849_v31 }
 0x595   : > { %4347 = vmatmul.mubr.msk.f32.vlgmr.msra.gmra.mxu0 %vm958_vm7, %v1457_v15  ;;  %4387 = vmatprep.subr.mxu1 %v4845_v1 }
 0x596   : > { %v4750_v22 = vpop.eup %4749  ;;  %4371 = vmatpush3.msk.msra.mxu0 %vm570_vm0, %v1701_v11  ;;  %4349 = vmatprep.mubr.msk.f32.mxu0 %vm4846_vm1, %v4845_v1 }
 0x597   : > { %4372 = vmatprep.subr.mxu0 %v4845_v1  ;;  %v1458_v28 = vmul.f32 %v4750_v22, %v5295_v50  ;;  %v4752_v30 = vpop.eup %4751 }
 0x598   : > { %4373 = vmatpush3.msra.mxu0 %v1699_v23  ;;  %v1459_v34 = vmul.f32 %v4752_v30, %v5299_v51 }
 0x599   : > { %4374 = vmatprep.subr.mxu0 %v4845_v1  ;;  %4350 = vmatmul.mubr.msk.f32.gmra.mxu0 %vm958_vm7, %v1458_v28 }
 0x59a   : > { %4375 = vmatpush3.msra.mxu0 %v1697_v32  ;;  %4352 = vmatprep.mubr.msk.f32.mxu0 %vm4846_vm1, %v4845_v1  ;;  %v4754_v36 = vpop.eup %4753 }
 0x59b   : > { %4410 = vmatprep.subr.mxu0 %v4845_v1  ;;  %v1693_v37 = vmul.f32 %v4754_v36, %v5301_v38  ;;  %v4756_v41 = vpop.eup %4755  ;;  %v3950_v36 = vld [vmem:[%s6198_s10] ss:$0 sm:$0xff] }
 0x59c   : > { %v1694_v39 = vmul.f32 %v4756_v41, %v5307_v53 }
 0x59d   : > { %4353 = vmatmul.mubr.msk.f32.gmra.mxu0 %vm958_vm7, %v1459_v34 }
 0x59e   : > { %4376 = vmatprep.mubr.msk.f32.mxu0 %vm4846_vm1, %v4845_v1  ;;  %v4758_v40 = vpop.eup %4757 }
 0x59f   : > { %v1695_v45 = vmul.f32 %v4758_v40, %v5313_v56  ;;  %v1848_v56 = vld [vmem:[%s6197_s9 + $0x30] sm:$0xff] }
 0x5a0   : > { %4388 = vmatpush3.msra.mxu1 %v1848_v56 }
 0x5a1   : > { %4377 = vmatmul.mubr.msk.f32.vlgmr.msra.gmra.mxu0 %vm958_vm7, %v1693_v37  ;;  %4389 = vmatprep.subr.mxu1 %v4845_v1 }
 0x5a2   : > { %4379 = vmatprep.mubr.msk.f32.mxu0 %vm4846_vm1, %v4845_v1  ;;  %4390 = vmatpush3.msra.mxu1 %v1847_v57 }
 0x5a3   : > { %4391 = vmatprep.subr.mxu1 %v4845_v1 }
 0x5a4   : > { %4392 = vmatpush3.msra.mxu1 %v1846_v58 }
 0x5a5   : > { %4380 = vmatmul.mubr.msk.f32.gmra.mxu0 %vm958_vm7, %v1694_v39  ;;  %4393 = vmatprep.subr.mxu1 %v4845_v1 }
 0x5a6   : > { %4382 = vmatprep.mubr.msk.f32.mxu0 %vm4846_vm1, %v4845_v1  ;;  %4394 = vmatpush3.msra.mxu1 %v1845_v59 }
 0x5a7   : > { %4395 = vmatprep.subr.mxu1 %v4845_v1 }
 0x5a8   : > { %4396 = vmatpush3.msra.mxu1 %v1844_v60 }
 0x5a9   : > { %4383 = vmatmul.mubr.msk.f32.gmra.mxu0 %vm958_vm7, %v1695_v45  ;;  %4397 = vmatprep.subr.mxu1 %v4845_v1 }
 0x5aa   : > { %4426 = vmatprep.mubr.msk.f32.mxu0 %vm4846_vm1, %v4845_v1  ;;  %4398 = vmatpush3.msra.mxu1 %v1843_v61 }
 0x5ab   : > { %4399 = vmatprep.subr.mxu1 %v4845_v1 }
 0x5ac   : > { %4400 = vmatpush3.msra.mxu1 %v1842_v63 }
 0x5ad   : > { %4435 = vmatprep.subr.mxu1 %v4845_v1 }
 0x610   : > { %v5384_v21 = vpop.f32.mrf.mxu0 }
 0x612   : > { %v4288_v46 = vpop.f32.mrf.mxu0 }
 0x614   : > { %v5386_v27 = vpop.f32.mrf.mxu0 }
 0x616   : > { %v4291_v50 = vpop.f32.mrf.mxu0 }
 0x618   : > { %v5392_v35 = vpop.f32.mrf.mxu0 }
 0x61a   : > { %v4294_v51 = vpop.f32.mrf.mxu0 }
 0x61c   : > { %v1309_v38 = vpop.f32.mrf.mxu0 }
 0x61d   : > { %1798 = vrot.lane.b32.xlu0 %v1309_v38, %s6213_s26 }
 0x61e   : > { %v4318_v52 = vpop.f32.mrf.mxu0 }
 0x620   : > { %v1314_v44 = vpop.f32.mrf.mxu0 }
 0x621   : > { %1800 = vrot.lane.b32.xlu1 %v1314_v44, %s6213_s26 }
 0x622   : > { %v4321_v53 = vpop.f32.mrf.mxu0 }
 0x624   : > { %v1319_v54 = vpop.f32.mrf.mxu0 }
 0x626   : > { %v4324_v55 = vpop.f32.mrf.mxu0 }
 0x655   : > { %v1545_v62 = vpop.f32.mrf.mxu0 }
 0x656   : > { %1810 = vrot.lane.b32.xlu1 %v1545_v62, %s4850_s22 }
 0x657   : > { %v4348_v3 = vpop.f32.mrf.mxu0 }
 0x658   : > { %v2018_v3 = vld [vmem:[%s6201_s13 + $0x38] sm:$0xff] }
 0x659   : > { %v1550_v2 = vpop.f32.mrf.mxu0  ;;  %4411 = vmatpush3.msra.mxu0 %v2018_v3 }
 0x65a   : > { %1812 = vrot.lane.b32.xlu0 %v1550_v2, %s4850_s22  ;;  %4412 = vmatprep.subr.mxu0 %v4845_v1  ;;  %v2017_v2 = vld [vmem:[%s6201_s13 + $0x30] sm:$0xff] }
 0x65b   : > { %v4351_v4 = vpop.f32.mrf.mxu0  ;;  %4413 = vmatpush3.msra.mxu0 %v2017_v2 }
 0x65c   : > { %4414 = vmatprep.subr.mxu0 %v4845_v1  ;;  %v2016_v4 = vld [vmem:[%s6201_s13 + $0x28] sm:$0xff] }
 0x65d   : > { %v1555_v43 = vpop.f32.mrf.mxu0  ;;  %4415 = vmatpush3.msra.mxu0 %v2016_v4 }
 0x65e   : > { %4416 = vmatprep.subr.mxu0 %v4845_v1 }
 0x65f   : > { %v4354_v42 = vpop.f32.mrf.mxu0 }
 0x660   : > { %v2014_v42 = vld [vmem:[%s6201_s13 + $0x18] sm:$0xff] }
 0x661   : > { %v1781_v5 = vpop.f32.mrf.mxu0 }
 0x662   : > { %1822 = vrot.lane.b32.xlu0 %v1781_v5, %s4848_s20  ;;  %v2013_v5 = vld [vmem:[%s6201_s13 + $0x10] sm:$0xff] }
 0x663   : > { %v4378_v0 = vpop.f32.mrf.mxu0 }
 0x664   : > { %v2012_v0 = vld [vmem:[%s6201_s13 + $0x8] sm:$0xff] }
 0x665   : > { %v1786_v49 = vpop.f32.mrf.mxu0 }
 0x666   : > { %1802 = vrot.lane.b32.xlu0 %v1319_v54, %s6213_s26  ;;  %1824 = vrot.lane.b32.xlu1 %v1786_v49, %s4848_s20  ;;  %v2011_v49 = vld [vmem:[%s6201_s13] sm:$0xff]  ;;  %s6220_s26 = smov 112  }
 0x667   : > { %v4381_v6 = vpop.f32.mrf.mxu0 }
 0x669   : > { %v1791_v47 = vpop.f32.mrf.mxu0 }
 0x66a   : > { %1814 = vrot.lane.b32.xlu1 %v1555_v43, %s4850_s22  ;;  %1826 = vrot.lane.b32.xlu0 %v1791_v47, %s4848_s20  ;;  %v2015_v43 = vld [vmem:[%s6201_s13 + $0x20] sm:$0xff] }
 0x66b   : > { %v4384_v7 = vpop.f32.mrf.mxu0  ;;  %4417 = vmatpush3.msra.mxu0 %v2015_v43 }
 0x66c   : > { %4418 = vmatprep.subr.mxu0 %v4845_v1 }
 0x66d   : > { %4419 = vmatpush3.msra.mxu0 %v2014_v42 }
 0x66e   : > { %4420 = vmatprep.subr.mxu0 %v4845_v1 }
 0x66f   : > { %4421 = vmatpush3.msra.mxu0 %v2013_v5 }
 0x670   : > { %4422 = vmatprep.subr.mxu0 %v4845_v1 }
 0x671   : > { %4423 = vmatpush3.msra.mxu0 %v2012_v0 }
 0x672   : > { %4424 = vmatprep.subr.mxu0 %v4845_v1 }
 0x673   : > { %4425 = vmatpush3.msra.mxu0 %v2011_v49 }
 0x68f   : > { %v1799_v48 = vpop.permute.xlu0 %1798 }
 0x690   : > { %v1831_v11 = vsel %vm865_vm6, %v5384_v21, %v1799_v48 }
 0x693   : > { %v1801_v8 = vpop.permute.xlu1 %1800 }
 0x694   : > { %v1832_v17 = vsel %vm865_vm6, %v5386_v27, %v1801_v8 }
 0x6c8   : > { %v1811_v10 = vpop.permute.xlu1 %1810 }
 0x6c9   : > { %v1835_v12 = vsel %vm1834_vm9, %v1831_v11, %v1811_v10 }
 0x6cc   : > { %v1813_v9 = vpop.permute.xlu0 %1812 }
 0x6cd   : > { %v1836_v18 = vsel %vm1834_vm9, %v1832_v17, %v1813_v9 }
 0x6d4   : > { %v1823_v13 = vpop.permute.xlu0 %1822 }
 0x6d5   : > { %v1839_v14 = vsel %vm1838_vm10, %v1835_v12, %v1823_v13 }
 0x6d6   : > { %4402 = vmatmul.mubr.msk.f32.vlgmr.msra.gmra.mxu1 %vm676_vm4, %v1839_v14  ;;  %v3951_v14 = vld [vmem:[%s6199_s11] ss:$0 sm:$0xff] }
 0x6d7   : > { %4404 = vmatprep.mubr.msk.f32.mxu1 %vm4846_vm1, %v4845_v1 }
 0x6d8   : > { %v1803_v19 = vpop.permute.xlu0 %1802  ;;  %v1825_v15 = vpop.permute.xlu1 %1824 }
 0x6d9   : > { %v1840_v20 = vsel %vm1838_vm10, %v1836_v18, %v1825_v15  ;;  %v1833_v22 = vsel %vm865_vm6, %v5392_v35, %v1803_v19  ;;  %v3952_v18 = vld [vmem:[%s6200_s12] ss:$0 sm:$0xff] }
 0x6da   : > { %4405 = vmatmul.mubr.msk.f32.gmra.mxu1 %vm676_vm4, %v1840_v20 }
 0x6db   : > { %4407 = vmatprep.mubr.msk.f32.mxu1 %vm4846_vm1, %v4845_v1 }
 0x6dc   : > { %v1815_v23 = vpop.permute.xlu1 %1814  ;;  %v1827_v28 = vpop.permute.xlu0 %1826 }
 0x6dd   : > { %v1837_v30 = vsel %vm1834_vm9, %v1833_v22, %v1815_v23 }
 0x6de   : > { %v1841_v32 = vsel %vm1838_vm10, %v1837_v30, %v1827_v28 }
 0x6df   : > { %4408 = vmatmul.mubr.msk.f32.gmra.mxu1 %vm676_vm4, %v1841_v32 }
 0x6e0   : > { %4467 = vmatprep.mubr.msk.f32.mxu1 %vm4846_vm1, %v4845_v1 }
 0x796   : > { %v1925_v34 = vpop.f32.mrf.mxu1 }
 0x797   : > { %v1939_v37 = vadd.f32 %v1925_v34, %v4985_v16 }
 0x798   : > { %v4403_v41 = vpop.f32.mrf.mxu1 }
 0x799   : > { %v5456_v39 = vadd.f32 %v3950_v36, %v1939_v37  ;;  %v2157_v37 = vld [vmem:[%s6203_s15 + $0x78] sm:$0xff]  ;;  %v2156_v41 = vld [vmem:[%s6203_s15 + $0x70] sm:$0xff] }
 0x79a   : > { %v1930_v40 = vpop.f32.mrf.mxu1  ;;  %4436 = vmatpush3.msra.mxu1 %v2157_v37 }
 0x79b   : > { %v1940_v45 = vadd.f32 %v1930_v40, %v4993_v24  ;;  %v1954_v21 = vsel %vm676_vm4, %v5456_v39, 0.0  ;;  %4437 = vmatprep.subr.mxu1 %v4845_v1  ;;  %v2155_v40 = vld [vmem:[%s6203_s15 + $0x68] sm:$0xff] }
 0x79c   : > { %1955 = vadd.xlane.f32.xlu1 %v1954_v21  ;;  %v4406_v46 = vpop.f32.mrf.mxu1  ;;  %4438 = vmatpush3.msra.mxu1 %v2156_v41  ;;  %v2153_v21 = vld [vmem:[%s6203_s15 + $0x58] sm:$0xff] }
 0x79d   : > { %v5461_v27 = vadd.f32 %v3950_v36, %v1940_v45  ;;  %4439 = vmatprep.subr.mxu1 %v4845_v1  ;;  %v2154_v45 = vld [vmem:[%s6203_s15 + $0x60] sm:$0xff]  ;;  %v2152_v46 = vld [vmem:[%s6203_s15 + $0x50] sm:$0xff] }
 0x79e   : > { %4440 = vmatpush3.msra.mxu1 %v2155_v40 }
 0x79f   : > { %v1935_v31 = vpop.f32.mrf.mxu1  ;;  %v1957_v50 = vsel %vm676_vm4, %v5461_v27, 0.0  ;;  %4441 = vmatprep.subr.mxu1 %v4845_v1 }
 0x7a0   : > { %v1941_v35 = vadd.f32 %v1935_v31, %v5001_v29  ;;  %1958 = vadd.xlane.f32.xlu0 %v1957_v50  ;;  %4442 = vmatpush3.msra.mxu1 %v2154_v45  ;;  %v2151_v31 = vld [vmem:[%s6203_s15 + $0x48] sm:$0xff]  ;;  %v2150_v50 = vld [vmem:[%s6203_s15 + $0x40] sm:$0xff] }
 0x7a1   : > { %v4409_v16 = vpop.f32.mrf.mxu1  ;;  %4443 = vmatprep.subr.mxu1 %v4845_v1 }
 0x7a2   : > { %v5466_v51 = vadd.f32 %v3950_v36, %v1941_v35  ;;  %4444 = vmatpush3.msra.mxu1 %v2153_v21  ;;  %v2149_v35 = vld [vmem:[%s6203_s15 + $0x38] sm:$0xff]  ;;  %v2148_v16 = vld [vmem:[%s6203_s15 + $0x30] sm:$0xff] }
 0x7a3   : > { %4445 = vmatprep.subr.mxu1 %v4845_v1 }
 0x7a4   : > { %v1960_v24 = vsel %vm683_vm5, %v5466_v51, 0.0  ;;  %4446 = vmatpush3.msra.mxu1 %v2152_v46 }
 0x7a5   : > { %1961 = vadd.xlane.f32.xlu0 %v1960_v24  ;;  %4447 = vmatprep.subr.mxu1 %v4845_v1  ;;  %v2147_v24 = vld [vmem:[%s6203_s15 + $0x28] sm:$0xff] }
 0x7a6   : > { %4448 = vmatpush3.msra.mxu1 %v2151_v31 }
 0x7a7   : > { %4449 = vmatprep.subr.mxu1 %v4845_v1 }
 0x7a8   : > { %4450 = vmatpush3.msra.mxu1 %v2150_v50 }
 0x7a9   : > { %4451 = vmatprep.subr.mxu1 %v4845_v1 }
 0x7aa   : > { %4452 = vmatpush3.msra.mxu1 %v2149_v35 }
 0x7ab   : > { %4453 = vmatprep.subr.mxu1 %v4845_v1 }
 0x7ac   : > { %4454 = vmatpush3.msra.mxu1 %v2148_v16 }
 0x7ad   : > { %4455 = vmatprep.subr.mxu1 %v4845_v1 }
 0x7ae   : > { %4456 = vmatpush3.msra.mxu1 %v2147_v24 }
 0x7af   : > { %4457 = vmatprep.subr.mxu1 %v4845_v1 }
 0x825   : > { %v1956_v38 = vpop.xlane.xlu1 %1955 }
 0x826   : > { %v1963_v52 = vmul.f32 0.015625, %v1956_v38  ;;  %v2146_v38 = vld [vmem:[%s6203_s15 + $0x20] sm:$0xff] }
 0x827   : > { %4458 = vmatpush3.msra.mxu1 %v2146_v38 }
 0x828   : > { %v1966_v44 = vsub.f32 %v5456_v39, %v1963_v52  ;;  %4459 = vmatprep.subr.mxu1 %v4845_v1  ;;  %v2145_v52 = vld [vmem:[%s6203_s15 + $0x18] sm:$0xff] }
 0x829   : > { %v1959_v53 = vpop.xlane.xlu0 %1958  ;;  %4460 = vmatpush3.msra.mxu1 %v2145_v52 }
 0x82a   : > { %v1964_v54 = vmul.f32 0.015625, %v1959_v53  ;;  %v1969_v55 = vmul.f32 %v1966_v44, %v1966_v44  ;;  %4461 = vmatprep.subr.mxu1 %v4845_v1  ;;  %v2143_v53 = vld [vmem:[%s6203_s15 + $0x8] sm:$0xff] }
 0x82c   : > { %v1967_v56 = vsub.f32 %v5461_v27, %v1964_v54  ;;  %v1972_v57 = vsel %vm676_vm4, %v1969_v55, 0.0  ;;  %v2142_v54 = vld [vmem:[%s6203_s15] sm:$0xff] }
 0x82d   : > { %1973 = vadd.xlane.f32.xlu0 %v1972_v57  ;;  %v3953_v55 = vld [vmem:[%s6202_s14] ss:$0 sm:$0xff] }
 0x82e   : > { %v1962_v29 = vpop.xlane.xlu0 %1961  ;;  %v1970_v58 = vmul.f32 %v1967_v56, %v1967_v56 }
 0x82f   : > { %v1965_v59 = vmul.f32 0.015625, %v1962_v29 }
 0x830   : > { %v1975_v60 = vsel %vm676_vm4, %v1970_v58, 0.0 }
 0x831   : > { %v1968_v61 = vsub.f32 %v5466_v51, %v1965_v59  ;;  %1976 = vadd.xlane.f32.xlu1 %v1975_v60 }
 0x833   : > { %v1971_v62 = vmul.f32 %v1968_v61, %v1968_v61 }
 0x835   : > { %v1978_v63 = vsel %vm683_vm5, %v1971_v62, 0.0 }
 0x836   : > { %1979 = vadd.xlane.f32.xlu0 %v1978_v63 }
 0x8b6   : > { %v1974_v6 = vpop.xlane.xlu0 %1973 }
 0x8b7   : > { %v1981_v47 = vmul.f32 0.015625, %v1974_v6 }
 0x8b9   : > { %v1984_v7 = vadd.f32 1e-05, %v1981_v47 }
 0x8ba   : > { %v1977_v48 = vpop.xlane.xlu1 %1976 }
 0x8bb   : > { %4759 = vrsqrt.f32 %v1984_v7  ;;  %v1982_v8 = vmul.f32 0.015625, %v1977_v48 }
 0x8bd   : > { %v1985_v9 = vadd.f32 1e-05, %v1982_v8 }
 0x8bf   : > { %4761 = vrsqrt.f32 %v1985_v9  ;;  %v1980_v10 = vpop.xlane.xlu0 %1979 }
 0x8c0   : > { %v1983_v11 = vmul.f32 0.015625, %v1980_v10 }
 0x8c2   : > { %v1986_v12 = vadd.f32 1e-05, %v1983_v11 }
 0x8c4   : > { %4763 = vrsqrt.f32 %v1986_v12 }
 0x8c8   : > { %v4760_v13 = vpop.eup %4759 }
 0x8c9   : > { %v1990_v17 = vmul.f32 %v4760_v13, %v1966_v44  ;;  %v2144_v44 = vld [vmem:[%s6203_s15 + $0x10] sm:$0xff] }
 0x8ca   : > { %4462 = vmatpush3.msra.mxu1 %v2144_v44 }
 0x8cb   : > { %v1999_v19 = vmul.f32 %v3951_v14, %v1990_v17  ;;  %4463 = vmatprep.subr.mxu1 %v4845_v1 }
 0x8cc   : > { %v4762_v15 = vpop.eup %4761  ;;  %4464 = vmatpush3.msra.mxu1 %v2143_v53 }
 0x8cd   : > { %v2008_v20 = vadd.f32 %v3952_v18, %v1999_v19  ;;  %v1991_v22 = vmul.f32 %v4762_v15, %v1967_v56  ;;  %4465 = vmatprep.subr.mxu1 %v4845_v1 }
 0x8ce   : > { %4466 = vmatpush3.msra.mxu1 %v2142_v54 }
 0x8cf   : > { %4427 = vmatmul.mubr.msk.f32.vlgmr.msra.gmra.mxu0 %vm676_vm4, %v2008_v20  ;;  %v2000_v23 = vmul.f32 %v3951_v14, %v1991_v22  ;;  %4491 = vmatprep.subr.mxu1 %v4845_v1 }
 0x8d0   : > { %4429 = vmatprep.mubr.msk.f32.mxu0 %vm4846_vm1, %v4845_v1 }
 0x8d1   : > { %v4764_v28 = vpop.eup %4763  ;;  %v2009_v30 = vadd.f32 %v3952_v18, %v2000_v23 }
 0x8d2   : > { %v1992_v32 = vmul.f32 %v4764_v28, %v1968_v61 }
 0x8d3   : > { %4430 = vmatmul.mubr.msk.f32.gmra.mxu0 %vm676_vm4, %v2009_v30 }
 0x8d4   : > { %4432 = vmatprep.mubr.msk.f32.mxu0 %vm4846_vm1, %v4845_v1  ;;  %v2001_v34 = vmul.f32 %v3951_v14, %v1992_v32  ;;  %v3957_v32 = vld [vmem:[%s6204_s16] ss:$0 sm:$0xff] }
 0x8d6   : > { %v2010_v36 = vadd.f32 %v3952_v18, %v2001_v34 }
 0x8d8   : > { %4433 = vmatmul.mubr.msk.f32.gmra.mxu0 %vm676_vm4, %v2010_v36 }
 0x8d9   : > { %2415 = vmatprep.mubr.f32.mxu0 %v4845_v1 }
 0x98f   : > { %v2101_v56 = vpop.f32.mrf.mxu0 }
 0x990   : > { %v2102_v57 = vadd.f32 %v3953_v55, %v2101_v56 }
 0x991   : > { %v4428_v29 = vpop.f32.mrf.mxu0 }
 0x992   : > { %v2115_v58 = vmul.f32 %v2102_v57, %v2102_v57 }
 0x993   : > { %v2106_v59 = vpop.f32.mrf.mxu0 }
 0x994   : > { %v2118_v60 = vmul.f32 %v2115_v58, %v2102_v57  ;;  %v2107_v61 = vadd.f32 %v3953_v55, %v2106_v59 }
 0x995   : > { %v4431_v62 = vpop.f32.mrf.mxu0 }
 0x996   : > { %v2121_v63 = vmul.f32 0.044715, %v2118_v60  ;;  %v2116_v3 = vmul.f32 %v2107_v61, %v2107_v61  ;;  %v3977_v62 = vld [vmem:[%s6195_s7 + $0xf8] sm:$0xff] }
 0x997   : > { %2367 = vmatprep.subr.mxu0 %v3977_v62 }
 0x998   : > { %v2124_v2 = vadd.f32 %v2121_v63, %v2102_v57  ;;  %v2119_v4 = vmul.f32 %v2116_v3, %v2107_v61  ;;  %v2111_v43 = vpop.f32.mrf.mxu0  ;;  %v3976_v63 = vld [vmem:[%s6195_s7 + $0xf0] sm:$0xff]  ;;  %v3975_v3 = vld [vmem:[%s6195_s7 + $0xe8] sm:$0xff] }
 0x999   : > { %v2112_v42 = vadd.f32 %v3953_v55, %v2111_v43  ;;  %2368 = vmatpush1.msra.mxu0 %v3976_v63  ;;  %v3972_v43 = vld [vmem:[%s6195_s7 + $0xd0] sm:$0xff] }
 0x99a   : > { %v2127_v5 = vmul.f32 0.7978846, %v2124_v2  ;;  %v2122_v0 = vmul.f32 0.044715, %v2119_v4  ;;  %v4434_v49 = vpop.f32.mrf.mxu0  ;;  %2369 = vmatprep.subr.mxu0 %v3975_v3  ;;  %v3974_v2 = vld [vmem:[%s6195_s7 + $0xe0] sm:$0xff]  ;;  %v3973_v4 = vld [vmem:[%s6195_s7 + $0xd8] sm:$0xff] }
 0x99b   : > { %v2117_v6 = vmul.f32 %v2112_v42, %v2112_v42  ;;  %2370 = vmatpush1.msra.mxu0 %v3974_v2  ;;  %v3968_v49 = vld [vmem:[%s6195_s7 + $0xb0] sm:$0xff] }
 0x99c   : > { %4765 = vtanh.f32 %v2127_v5  ;;  %v2125_v47 = vadd.f32 %v2122_v0, %v2107_v61  ;;  %2371 = vmatprep.subr.mxu0 %v3973_v4  ;;  %v3970_v5 = vld [vmem:[%s6195_s7 + $0xc0] sm:$0xff]  ;;  %v3969_v0 = vld [vmem:[%s6195_s7 + $0xb8] sm:$0xff] }
 0x99d   : > { %v2120_v7 = vmul.f32 %v2117_v6, %v2112_v42  ;;  %2372 = vmatpush1.msra.mxu0 %v3972_v43  ;;  %v3967_v6 = vld [vmem:[%s6195_s7 + $0xa8] sm:$0xff] }
 0x99e   : > { %v2128_v48 = vmul.f32 0.7978846, %v2125_v47  ;;  %v3966_v47 = vld [vmem:[%s6195_s7 + $0xa0] sm:$0xff] }
 0x99f   : > { %v2123_v8 = vmul.f32 0.044715, %v2120_v7  ;;  %v3965_v7 = vld [vmem:[%s6195_s7 + $0x98] sm:$0xff] }
 0x9a0   : > { %4767 = vtanh.f32 %v2128_v48  ;;  %v3964_v48 = vld [vmem:[%s6195_s7 + $0x90] sm:$0xff] }
 0x9a1   : > { %v2126_v9 = vadd.f32 %v2123_v8, %v2112_v42  ;;  %v3963_v8 = vld [vmem:[%s6195_s7 + $0x88] sm:$0xff] }
 0x9a3   : > { %v2129_v10 = vmul.f32 0.7978846, %v2126_v9  ;;  %v3962_v9 = vld [vmem:[%s6195_s7 + $0x80] sm:$0xff] }
 0x9a5   : > { %4769 = vtanh.f32 %v2129_v10 }
 0x9a9   : > { %v4766_v11 = vpop.eup %4765 }
 0x9aa   : > { %v2133_v12 = vadd.f32 1.0, %v4766_v11 }
 0x9ac   : > { %v2136_v13 = vmul.f32 0.5, %v2133_v12 }
 0x9ad   : > { %v4768_v14 = vpop.eup %4767 }
 0x9ae   : > { %v2139_v17 = vmul.f32 %v2136_v13, %v2102_v57  ;;  %v2134_v18 = vadd.f32 1.0, %v4768_v14 }
 0x9b0   : > { %4468 = vmatmul.mubr.f32.vlgmr.msra.gmra.mxu1 %v2139_v17  ;;  %v2137_v19 = vmul.f32 0.5, %v2134_v18 }
 0x9b1   : > { %4470 = vmatprep.mubr.msk.f32.mxu1 %vm4846_vm1, %v4845_v1 }
 0x9b2   : > { %v4770_v15 = vpop.eup %4769  ;;  %v2140_v20 = vmul.f32 %v2137_v19, %v2107_v61 }
 0x9b3   : > { %v2135_v22 = vadd.f32 1.0, %v4770_v15 }
 0x9b4   : > { %4471 = vmatmul.mubr.f32.gmra.mxu1 %v2140_v20 }
 0x9b5   : > { %4473 = vmatprep.mubr.msk.f32.mxu1 %vm4846_vm1, %v4845_v1  ;;  %v2138_v23 = vmul.f32 0.5, %v2135_v22  ;;  %v3960_v22 = vld [vmem:[%s6193_s5 + $0x1] ss:$0 sm:$0xff] }
 0x9b7   : > { %v2141_v28 = vmul.f32 %v2138_v23, %v2112_v42  ;;  %v3971_v42 = vld [vmem:[%s6195_s7 + $0xc8] sm:$0xff] }
 0x9b8   : > { %2373 = vmatprep.subr.mxu0 %v3971_v42 }
 0x9b9   : > { %4474 = vmatmul.mubr.f32.gmra.mxu1 %v2141_v28  ;;  %2374 = vmatpush1.msra.mxu0 %v3970_v5  ;;  %v3961_v28 = vld [vmem:[%s6194_s6 + $0x1] ss:$0 sm:$0xff] }
 0x9ba   : > { %4497 = vmatprep.mubr.msk.f32.mxu1 %vm4846_vm1, %v4845_v1  ;;  %2375 = vmatprep.subr.mxu0 %v3969_v0 }
 0x9bb   : > { %2376 = vmatpush1.msra.mxu0 %v3968_v49 }
 0x9bc   : > { %2377 = vmatprep.subr.mxu0 %v3967_v6 }
 0x9bd   : > { %2378 = vmatpush1.msra.mxu0 %v3966_v47 }
 0x9be   : > { %2379 = vmatprep.subr.mxu0 %v3965_v7 }
 0x9bf   : > { %2380 = vmatpush1.msra.mxu0 %v3964_v48 }
 0x9c0   : > { %2381 = vmatprep.subr.mxu0 %v3963_v8 }
 0x9c1   : > { %2382 = vmatpush1.msra.mxu0 %v3962_v9 }
 0x9c2   : > { %4476 = vmatprep.subr.mxu0 %v4845_v1 }
 0xa70   : > { %v2224_v30 = vpop.f32.mrf.mxu1 }
 0xa71   : > { %v2238_v34 = vadd.f32 %v2224_v30, %v5456_v39 }
 0xa72   : > { %v4469_v36 = vpop.f32.mrf.mxu1 }
 0xa73   : > { %v5598_v37 = vadd.f32 %v3957_v32, %v2238_v34 }
 0xa74   : > { %v2229_v41 = vpop.f32.mrf.mxu1 }
 0xa75   : > { %v2239_v40 = vadd.f32 %v2229_v41, %v5461_v27  ;;  %v2255_v45 = vsel %vm676_vm4, %v5598_v37, 0.0 }
 0xa76   : > { %2256 = vadd.xlane.f32.xlu1 %v2255_v45  ;;  %v4472_v21 = vpop.f32.mrf.mxu1 }
 0xa77   : > { %v5603_v46 = vadd.f32 %v3957_v32, %v2239_v40 }
 0xa79   : > { %v2234_v31 = vpop.f32.mrf.mxu1  ;;  %v2258_v50 = vsel %vm676_vm4, %v5603_v46, 0.0 }
 0xa7a   : > { %v2240_v35 = vadd.f32 %v2234_v31, %v5466_v51  ;;  %2259 = vadd.xlane.f32.xlu0 %v2258_v50 }
 0xa7b   : > { %v4475_v39 = vpop.f32.mrf.mxu1 }
 0xa7c   : > { %v5608_v16 = vadd.f32 %v3957_v32, %v2240_v35  ;;  %v3978_v35 = vld [vmem:[%s6196_s8 + $0x2] sm:$0x3] }
 0xa7e   : > { %v2261_v27 = vsel %vm683_vm5, %v5608_v16, 0.0 }
 0xa7f   : > { %2262 = vadd.xlane.f32.xlu1 %v2261_v27 }
 0xaff   : > { %v2257_v24 = vpop.xlane.xlu1 %2256 }
 0xb00   : > { %v2264_v38 = vmul.f32 0.015625, %v2257_v24  ;;  %v2335_v24 = vrot.slane %v3978_v35, %v756_v26 }
 0xb02   : > { %v5613_v52 = vsub.f32 %v5598_v37, %v2264_v38 }
 0xb03   : > { %v2260_v44 = vpop.xlane.xlu0 %2259 }
 0xb04   : > { %v2265_v53 = vmul.f32 0.015625, %v2260_v44  ;;  %v2270_v54 = vmul.f32 %v5613_v52, %v5613_v52 }
 0xb06   : > { %v5618_v51 = vsub.f32 %v5603_v46, %v2265_v53  ;;  %v2273_v55 = vsel %vm676_vm4, %v2270_v54, 0.0 }
 0xb07   : > { %2274 = vadd.xlane.f32.xlu0 %v2273_v55 }
 0xb08   : > { %v2263_v56 = vpop.xlane.xlu1 %2262  ;;  %v2271_v57 = vmul.f32 %v5618_v51, %v5618_v51 }
 0xb09   : > { %v2266_v29 = vmul.f32 0.015625, %v2263_v56 }
 0xb0a   : > { %v2276_v58 = vsel %vm676_vm4, %v2271_v57, 0.0 }
 0xb0b   : > { %v5625_v59 = vsub.f32 %v5608_v16, %v2266_v29  ;;  %2277 = vadd.xlane.f32.xlu1 %v2276_v58 }
 0xb0d   : > { %v2272_v60 = vmul.f32 %v5625_v59, %v5625_v59 }
 0xb0f   : > { %v2279_v61 = vsel %vm683_vm5, %v2272_v60, 0.0 }
 0xb10   : > { %2280 = vadd.xlane.f32.xlu0 %v2279_v61 }
 0xb90   : > { %v2275_v10 = vpop.xlane.xlu0 %2274 }
 0xb91   : > { %v2282_v11 = vmul.f32 0.015625, %v2275_v10 }
 0xb93   : > { %v2285_v12 = vadd.f32 1e-05, %v2282_v11 }
 0xb94   : > { %v2278_v13 = vpop.xlane.xlu1 %2277 }
 0xb95   : > { %4771 = vrsqrt.f32 %v2285_v12  ;;  %v2283_v14 = vmul.f32 0.015625, %v2278_v13 }
 0xb97   : > { %v2286_v17 = vadd.f32 1e-05, %v2283_v14 }
 0xb99   : > { %4773 = vrsqrt.f32 %v2286_v17  ;;  %v2281_v18 = vpop.xlane.xlu0 %2280 }
 0xb9a   : > { %v2284_v19 = vmul.f32 0.015625, %v2281_v18 }
 0xb9c   : > { %v2287_v15 = vadd.f32 1e-05, %v2284_v19 }
 0xb9e   : > { %4775 = vrsqrt.f32 %v2287_v15 }
 0xba2   : > { %v4772_v20 = vpop.eup %4771 }
 0xba3   : > { %v2291_v23 = vmul.f32 %v4772_v20, %v5613_v52 }
 0xba5   : > { %v2300_v30 = vmul.f32 %v3960_v22, %v2291_v23 }
 0xba6   : > { %v4774_v32 = vpop.eup %4773 }
 0xba7   : > { %v2309_v34 = vadd.f32 %v3961_v28, %v2300_v30  ;;  %v2292_v36 = vmul.f32 %v4774_v32, %v5618_v51  ;;  %v2339_v51 = vrot.slane %v3978_v35, %v760_v33 }
 0xba9   : > { %3979 = vmatmul.mubr.msk.f32.vlgmr.msra.gmra.mxu0 %vm676_vm4, %v2309_v34  ;;  %v2301_v41 = vmul.f32 %v3960_v22, %v2292_v36 }
 0xbaa   : > { %2421 = vmatprep.mubr.f32.mxu0 %v4845_v1 }
 0xbab   : > { %v4776_v40 = vpop.eup %4775  ;;  %v2310_v45 = vadd.f32 %v3961_v28, %v2301_v41 }
 0xbac   : > { %v2293_v21 = vmul.f32 %v4776_v40, %v5625_v59 }
 0xbad   : > { %3980 = vmatmul.mubr.msk.f32.gmra.mxu0 %vm676_vm4, %v2310_v45 }
 0xbae   : > { %2427 = vmatprep.mubr.f32.mxu0 %v4845_v1  ;;  %v2302_v31 = vmul.f32 %v3960_v22, %v2293_v21 }
 0xbb0   : > { %v2311_v50 = vadd.f32 %v3961_v28, %v2302_v31 }
 0xbb2   : > { %3981 = vmatmul.mubr.msk.f32.gmra.mxu0 %vm676_vm4, %v2311_v50 }
 0xbb3   : > { %4482 = vmatprep.mubr.msk.f32.mxu0 %vm4846_vm1, %v4845_v1 }
 0xc69   : > { %v2417_v39 = vpop.f32.mrf.mxu0 }
 0xc6a   : > { %v2418_v53 = vadd.f32 %v2417_v39, %v2335_v24 }
 0xc6b   : > { %v2419_v27 = vpop.f32.mrf.mxu0 }
 0xc6c   : > { %v5713_v26 = vadd.f32 %v2419_v27, %v2339_v51 }
 0xc6d   : > { %v2423_v38 = vpop.f32.mrf.mxu0 }
 0xc6e   : > { %v2424_v52 = vadd.f32 %v2423_v38, %v2335_v24 }
 0xc6f   : > { %v2425_v44 = vpop.f32.mrf.mxu0 }
 0xc70   : > { %2439 = vrot.lane.b32.xlu0 %v2424_v52, %s4847_s1  ;;  %v5707_v29 = vadd.f32 %v2425_v44, %v2339_v51 }
 0xc72   : > { %v2429_v54 = vpop.f32.mrf.mxu0 }
 0xc73   : > { %v2430_v55 = vadd.f32 %v2429_v54, %v2335_v24 }
 0xc74   : > { %v2431_v56 = vpop.f32.mrf.mxu0  ;;  %2666 = vrot.lane.b32.xlu0 %v2418_v53, %s4848_s20 }
 0xc75   : > { %v5704_v57 = vadd.f32 %v2431_v56, %v2339_v51  ;;  %2441 = vrot.lane.b32.xlu1 %v2430_v55, %s4847_s1 }
 0xc77   : > { %4492 = vmatpush3.msk.msra.mxu1 %vm570_vm0, %v5704_v57 }
 0xc78   : > { %4493 = vmatprep.subr.mxu1 %v4845_v1  ;;  %2908 = vrot.lane.b32.xlu0 %v2430_v55, %s4850_s22 }
 0xc79   : > { %4494 = vmatpush3.msra.mxu1 %v5707_v29  ;;  %2437 = vrot.lane.b32.xlu1 %v2418_v53, %s4847_s1  ;;  %s6221_s1 = smov 80  }
 0xc7a   : > { %4495 = vmatprep.subr.mxu1 %v4845_v1 }
 0xc7b   : > { %4496 = vmatpush3.msra.mxu1 %v5713_v26 }
 0xc7c   : > { %2906 = vrot.lane.b32.xlu0 %v2424_v52, %s4850_s22  ;;  %4521 = vmatprep.subr.mxu1 %v4845_v1 }
 0xc7d   : > { %2670 = vrot.lane.b32.xlu1 %v2430_v55, %s4848_s20 }
 0xc80   : > { %2904 = vrot.lane.b32.xlu0 %v2418_v53, %s4850_s22 }
 0xc81   : > { %2668 = vrot.lane.b32.xlu1 %v2424_v52, %s4848_s20 }
 0xc84   : > { %3144 = vrot.lane.b32.xlu0 %v2430_v55, %s6219_s21 }
 0xc85   : > { %2660 = vrot.lane.b32.xlu1 %v2418_v53, %s6220_s26 }
 0xc88   : > { %3142 = vrot.lane.b32.xlu0 %v2424_v52, %s6219_s21 }
 0xc89   : > { %2662 = vrot.lane.b32.xlu1 %v2424_v52, %s6220_s26 }
 0xc8c   : > { %3140 = vrot.lane.b32.xlu0 %v2418_v53, %s6219_s21 }
 0xc8d   : > { %2664 = vrot.lane.b32.xlu1 %v2430_v55, %s6220_s26 }
 0xc90   : > { %3136 = vrot.lane.b32.xlu0 %v2424_v52, %s6221_s1 }
 0xc91   : > { %2898 = vrot.lane.b32.xlu1 %v2418_v53, %s6222_s30 }
 0xc95   : > { %2900 = vrot.lane.b32.xlu1 %v2424_v52, %s6222_s30 }
 0xc99   : > { %2902 = vrot.lane.b32.xlu1 %v2430_v55, %s6222_s30 }
 0xc9d   : > { %3134 = vrot.lane.b32.xlu1 %v2418_v53, %s6221_s1 }
 0xca1   : > { %3138 = vrot.lane.b32.xlu1 %v2430_v55, %s6221_s1 }
 0xca5   : > { %2803 = vrot.lane.b32.xlu1 %v5704_v57, %s6220_s26 }
 0xce2   : > { %v2440_v33 = vpop.permute.xlu0 %2439 }
 0xce6   : > { %v2667_v59 = vpop.permute.xlu0 %2666 }
 0xce7   : > { %v2442_v25 = vpop.permute.xlu1 %2441 }
 0xce8   : > { %4477 = vmatpush3.xpose.msk.msra.mxu0 %vm865_vm6, %v2442_v25 }
 0xce9   : > { %4478 = vmatprep.subr.mxu0 %v4845_v1 }
 0xcea   : > { %v2909_v62 = vpop.permute.xlu0 %2908 }
 0xceb   : > { %v2438_v58 = vpop.permute.xlu1 %2437 }
 0xcec   : > { %4479 = vmatpush3.xpose.msk.msra.mxu0 %vm865_vm6, %v2440_v33 }
 0xced   : > { %4480 = vmatprep.subr.mxu0 %v4845_v1 }
 0xcee   : > { %v2907_v3 = vpop.permute.xlu0 %2906 }
 0xcef   : > { %v2671_v60 = vpop.permute.xlu1 %2670 }
 0xcf0   : > { %4481 = vmatpush3.xpose.msk.msra.mxu0 %vm865_vm6, %v2438_v58 }
 0xcf1   : > { %4506 = vmatprep.subr.mxu0 %v4845_v1 }
 0xcf2   : > { %v2905_v43 = vpop.permute.xlu0 %2904 }
 0xcf3   : > { %4483 = vmatmul.mubr.msk.f32.vlgmr.msra.gmra.mxu0 %vm865_vm6, %v2418_v53  ;;  %v2669_v61 = vpop.permute.xlu1 %2668 }
 0xcf4   : > { %4507 = vmatpush3.xpose.msk.msra.mxu0 %vm865_vm6, %v2671_v60  ;;  %4485 = vmatprep.mubr.msk.f32.mxu0 %vm4846_vm1, %v4845_v1 }
 0xcf5   : > { %4508 = vmatprep.subr.mxu0 %v4845_v1 }
 0xcf6   : > { %v3145_v5 = vpop.permute.xlu0 %3144 }
 0xcf7   : > { %4486 = vmatmul.mubr.msk.f32.gmra.mxu0 %vm865_vm6, %v2424_v52  ;;  %v2661_v63 = vpop.permute.xlu1 %2660 }
 0xcf8   : > { %4509 = vmatpush3.xpose.msk.msra.mxu0 %vm865_vm6, %v2669_v61  ;;  %4488 = vmatprep.mubr.msk.f32.mxu0 %vm4846_vm1, %v4845_v1 }
 0xcf9   : > { %4510 = vmatprep.subr.mxu0 %v4845_v1 }
 0xcfa   : > { %v3143_v49 = vpop.permute.xlu0 %3142 }
 0xcfb   : > { %4489 = vmatmul.mubr.msk.f32.gmra.mxu0 %vm865_vm6, %v2430_v55  ;;  %v2663_v2 = vpop.permute.xlu1 %2662 }
 0xcfc   : > { %4511 = vmatpush3.xpose.msk.msra.mxu0 %vm865_vm6, %v2667_v59  ;;  %4512 = vmatprep.mubr.msk.f32.mxu0 %vm4846_vm1, %v4845_v1 }
 0xcfd   : > { %4536 = vmatprep.subr.mxu0 %v4845_v1 }
 0xcfe   : > { %v3141_v47 = vpop.permute.xlu0 %3140 }
 0xcff   : > { %4513 = vmatmul.mubr.msk.f32.vlgmr.msra.gmra.mxu0 %vm865_vm6, %v2661_v63  ;;  %v2665_v4 = vpop.permute.xlu1 %2664 }
 0xd00   : > { %4537 = vmatpush3.xpose.msk.msra.mxu0 %vm865_vm6, %v2909_v62  ;;  %4515 = vmatprep.mubr.msk.f32.mxu0 %vm4846_vm1, %v4845_v1 }
 0xd01   : > { %4538 = vmatprep.subr.mxu0 %v4845_v1 }
 0xd02   : > { %v3137_v48 = vpop.permute.xlu0 %3136 }
 0xd03   : > { %4516 = vmatmul.mubr.msk.f32.gmra.mxu0 %vm865_vm6, %v2663_v2  ;;  %v2899_v42 = vpop.permute.xlu1 %2898 }
 0xd04   : > { %4539 = vmatpush3.xpose.msk.msra.mxu0 %vm865_vm6, %v2907_v3  ;;  %4518 = vmatprep.mubr.msk.f32.mxu0 %vm4846_vm1, %v4845_v1 }
 0xd05   : > { %4540 = vmatprep.subr.mxu0 %v4845_v1 }
 0xd07   : > { %4519 = vmatmul.mubr.msk.f32.gmra.mxu0 %vm865_vm6, %v2665_v4  ;;  %v2901_v0 = vpop.permute.xlu1 %2900 }
 0xd08   : > { %4541 = vmatpush3.xpose.msk.msra.mxu0 %vm865_vm6, %v2905_v43  ;;  %4542 = vmatprep.mubr.msk.f32.mxu0 %vm4846_vm1, %v4845_v1 }
 0xd09   : > { %4566 = vmatprep.subr.mxu0 %v4845_v1 }
 0xd0b   : > { %4543 = vmatmul.mubr.msk.f32.vlgmr.msra.gmra.mxu0 %vm865_vm6, %v2899_v42  ;;  %v2903_v6 = vpop.permute.xlu1 %2902 }
 0xd0c   : > { %4567 = vmatpush3.xpose.msk.msra.mxu0 %vm865_vm6, %v3145_v5  ;;  %4545 = vmatprep.mubr.msk.f32.mxu0 %vm4846_vm1, %v4845_v1 }
 0xd0d   : > { %4568 = vmatprep.subr.mxu0 %v4845_v1 }
 0xd0f   : > { %4546 = vmatmul.mubr.msk.f32.gmra.mxu0 %vm865_vm6, %v2901_v0  ;;  %v3135_v7 = vpop.permute.xlu1 %3134 }
 0xd10   : > { %4569 = vmatpush3.xpose.msk.msra.mxu0 %vm865_vm6, %v3143_v49  ;;  %4548 = vmatprep.mubr.msk.f32.mxu0 %vm4846_vm1, %v4845_v1 }
 0xd11   : > { %4570 = vmatprep.subr.mxu0 %v4845_v1 }
 0xd13   : > { %4549 = vmatmul.mubr.msk.f32.gmra.mxu0 %vm865_vm6, %v2903_v6  ;;  %v3139_v8 = vpop.permute.xlu1 %3138 }
 0xd14   : > { %4571 = vmatpush3.xpose.msk.msra.mxu0 %vm865_vm6, %v3141_v47  ;;  %4572 = vmatprep.mubr.msk.f32.mxu0 %vm4846_vm1, %v4845_v1 }
 0xd15   : > { %4596 = vmatprep.subr.mxu0 %v4845_v1 }
 0xd17   : > { %4573 = vmatmul.mubr.msk.f32.vlgmr.msra.gmra.mxu0 %vm865_vm6, %v3135_v7  ;;  %v5837_v25 = vpop.permute.xlu1 %2803 }
 0xd18   : > { %4575 = vmatprep.mubr.msk.f32.mxu0 %vm4846_vm1, %v4845_v1 }
 0xd1b   : > { %4576 = vmatmul.mubr.msk.f32.gmra.mxu0 %vm865_vm6, %v3137_v48 }
 0xd1c   : > { %4578 = vmatprep.mubr.msk.f32.mxu0 %vm4846_vm1, %v4845_v1 }
 0xd1f   : > { %4579 = vmatmul.mubr.msk.f32.gmra.mxu0 %vm865_vm6, %v3139_v8 }
 0xd20   : > { %4612 = vmatprep.mubr.msk.f32.mxu0 %vm4846_vm1, %v4845_v1 }
 0xdb3   : > { %v2521_v9 = vpop.f32.mrf.mxu0 }
 0xdb4   : > { %v2535_v10 = vsel %vm958_vm7, %v2521_v9, -inf }
 0xdb5   : > { %2536 = vmax.xlane.f32.xlu0 %v2535_v10  ;;  %v4484_v11 = vpop.f32.mrf.mxu0 }
 0xdb7   : > { %v2526_v12 = vpop.f32.mrf.mxu0 }
 0xdb8   : > { %v2538_v13 = vsel %vm958_vm7, %v2526_v12, -inf }
 0xdb9   : > { %2539 = vmax.xlane.f32.xlu1 %v2538_v13  ;;  %v4487_v14 = vpop.f32.mrf.mxu0 }
 0xdbb   : > { %v2531_v17 = vpop.f32.mrf.mxu0 }
 0xdbc   : > { %v2541_v18 = vsel %vm965_vm8, %v2531_v17, -inf }
 0xdbd   : > { %2542 = vmax.xlane.f32.xlu0 %v2541_v18  ;;  %v4490_v19 = vpop.f32.mrf.mxu0 }
 0xdbf   : > { %v5801_v15 = vpop.f32.mrf.mxu0 }
 0xdc0   : > { %v2764_v20 = vsel %vm958_vm7, %v5801_v15, -inf }
 0xdc1   : > { %2765 = vmax.xlane.f32.xlu0 %v2764_v20  ;;  %v4514_v22 = vpop.f32.mrf.mxu0 }
 0xdc3   : > { %v5805_v23 = vpop.f32.mrf.mxu0 }
 0xdc4   : > { %v2767_v28 = vsel %vm958_vm7, %v5805_v23, -inf }
 0xdc5   : > { %2768 = vmax.xlane.f32.xlu0 %v2767_v28  ;;  %v4517_v30 = vpop.f32.mrf.mxu0 }
 0xdc7   : > { %v5809_v32 = vpop.f32.mrf.mxu0 }
 0xdc8   : > { %v2770_v34 = vsel %vm965_vm8, %v5809_v32, -inf }
 0xdc9   : > { %2771 = vmax.xlane.f32.xlu1 %v2770_v34  ;;  %v4520_v36 = vpop.f32.mrf.mxu0 }
 0xdcb   : > { %v5813_v41 = vpop.f32.mrf.mxu0 }
 0xdcc   : > { %v3002_v40 = vsel %vm958_vm7, %v5813_v41, -inf }
 0xdcd   : > { %3003 = vmax.xlane.f32.xlu0 %v3002_v40  ;;  %v4544_v45 = vpop.f32.mrf.mxu0 }
 0xdcf   : > { %v5817_v21 = vpop.f32.mrf.mxu0 }
 0xdd0   : > { %v3005_v31 = vsel %vm958_vm7, %v5817_v21, -inf }
 0xdd1   : > { %3006 = vmax.xlane.f32.xlu1 %v3005_v31  ;;  %v4547_v50 = vpop.f32.mrf.mxu0 }
 0xdd3   : > { %v2998_v35 = vpop.f32.mrf.mxu0 }
 0xdd4   : > { %v3008_v39 = vsel %vm965_vm8, %v2998_v35, -inf }
 0xdd5   : > { %3009 = vmax.xlane.f32.xlu0 %v3008_v39  ;;  %v4550_v27 = vpop.f32.mrf.mxu0 }
 0xdd7   : > { %v3224_v24 = vpop.f32.mrf.mxu0 }
 0xdd8   : > { %v3238_v38 = vsel %vm958_vm7, %v3224_v24, -inf }
 0xdd9   : > { %3239 = vmax.xlane.f32.xlu1 %v3238_v38  ;;  %v4574_v52 = vpop.f32.mrf.mxu0 }
 0xddb   : > { %v5823_v44 = vpop.f32.mrf.mxu0 }
 0xddc   : > { %v3241_v53 = vsel %vm958_vm7, %v5823_v44, -inf }
 0xddd   : > { %3242 = vmax.xlane.f32.xlu0 %v3241_v53  ;;  %v4577_v54 = vpop.f32.mrf.mxu0 }
 0xddf   : > { %v5827_v51 = vpop.f32.mrf.mxu0 }
 0xde0   : > { %v3244_v56 = vsel %vm965_vm8, %v5827_v51, -inf }
 0xde1   : > { %v4580_v55 = vpop.f32.mrf.mxu0 }
 0xdea   : > { %2799 = vrot.lane.b32.xlu1 %v5713_v26, %s6220_s26 }
 0xdee   : > { %3039 = vrot.lane.b32.xlu1 %v5704_v57, %s6222_s30 }
 0xdf3   : > { %2801 = vrot.lane.b32.xlu0 %v5707_v29, %s6220_s26 }
 0xe12   : > { %3245 = vmax.xlane.f32.xlu1 %v3244_v56 }
 0xe3e   : > { %v2537_v33 = vpop.xlane.xlu0 %2536 }
 0xe3f   : > { %v2544_v58 = vsub.f32 %v2521_v9, %v2537_v33 }
 0xe41   : > { %v2547_v59 = vmul.f32 1.442695, %v2544_v58 }
 0xe42   : > { %v2540_v60 = vpop.xlane.xlu1 %2539 }
 0xe43   : > { %4777 = vpow2.f32 %v2547_v59  ;;  %v2545_v61 = vsub.f32 %v2526_v12, %v2540_v60 }
 0xe45   : > { %v2549_v62 = vmul.f32 1.442695, %v2545_v61 }
 0xe46   : > { %v2543_v63 = vpop.xlane.xlu0 %2542 }
 0xe47   : > { %4779 = vpow2.f32 %v2549_v62  ;;  %v2546_v3 = vsub.f32 %v2531_v17, %v2543_v63 }
 0xe49   : > { %v2551_v2 = vmul.f32 1.442695, %v2546_v3 }
 0xe4a   : > { %v2766_v6 = vpop.xlane.xlu0 %2765 }
 0xe4b   : > { %4781 = vpow2.f32 %v2551_v2  ;;  %v2773_v47 = vsub.f32 %v5801_v15, %v2766_v6 }
 0xe4d   : > { %v2776_v48 = vmul.f32 1.442695, %v2773_v47 }
 0xe4e   : > { %v2769_v7 = vpop.xlane.xlu0 %2768 }
 0xe4f   : > { %v2774_v8 = vsub.f32 %v5805_v23, %v2769_v7  ;;  %4783 = vpow2.f32 %v2776_v48 }
 0xe50   : > { %v5839_v4 = vpop.eup %4777 }
 0xe51   : > { %v2553_v43 = vsel %vm958_vm7, %v5839_v4, 0.0  ;;  %v2778_v11 = vmul.f32 1.442695, %v2774_v8 }
 0xe52   : > { %2554 = vadd.xlane.f32.xlu0 %v2553_v43  ;;  %v2772_v9 = vpop.xlane.xlu1 %2771 }
 0xe53   : > { %4785 = vpow2.f32 %v2778_v11  ;;  %v2775_v52 = vsub.f32 %v5809_v32, %v2772_v9 }
 0xe54   : > { %v5843_v42 = vpop.eup %4779 }
 0xe55   : > { %v2556_v5 = vsel %vm958_vm7, %v5843_v42, 0.0  ;;  %v2780_v53 = vmul.f32 1.442695, %v2775_v52 }
 0xe56   : > { %2557 = vadd.xlane.f32.xlu1 %v2556_v5  ;;  %v3004_v10 = vpop.xlane.xlu0 %3003 }
 0xe57   : > { %v3011_v12 = vsub.f32 %v5813_v41, %v3004_v10 }
 0xe58   : > { %v5847_v0 = vpop.eup %4781 }
 0xe59   : > { %v2559_v49 = vsel %vm965_vm8, %v5847_v0, 0.0  ;;  %v3014_v17 = vmul.f32 1.442695, %v3011_v12 }
 0xe5a   : > { %2560 = vadd.xlane.f32.xlu0 %v2559_v49  ;;  %v3007_v13 = vpop.xlane.xlu1 %3006 }
 0xe5b   : > { %4787 = vpow2.f32 %v3014_v17  ;;  %v3012_v54 = vsub.f32 %v5817_v21, %v3007_v13 }
 0xe5c   : > { %v5858_v28 = vpop.eup %4783 }
 0xe5d   : > { %v2782_v23 = vsel %vm958_vm7, %v5858_v28, 0.0  ;;  %v3016_v58 = vmul.f32 1.442695, %v3012_v54 }
 0xe5e   : > { %v3010_v14 = vpop.xlane.xlu0 %3009 }
 0xe5f   : > { %v3013_v18 = vsub.f32 %v2998_v35, %v3010_v14 }
 0xe60   : > { %v5862_v30 = vpop.eup %4785 }
 0xe61   : > { %v3018_v20 = vmul.f32 1.442695, %v3013_v18  ;;  %v2785_v34 = vsel %vm958_vm7, %v5862_v30, 0.0 }
 0xe62   : > { %v3240_v19 = vpop.xlane.xlu1 %3239 }
 0xe63   : > { %v3247_v22 = vsub.f32 %v3224_v24, %v3240_v19  ;;  %4789 = vpow2.f32 %v3018_v20 }
 0xe65   : > { %v3250_v15 = vmul.f32 1.442695, %v3247_v22 }
 0xe66   : > { %v2800_v41 = vpop.permute.xlu1 %2799  ;;  %v3243_v55 = vpop.xlane.xlu0 %3242 }
 0xe67   : > { %3035 = vrot.lane.b32.xlu1 %v5713_v26, %s6222_s30  ;;  %4791 = vpow2.f32 %v3250_v15 }
 0xe68   : > { %v5866_v36 = vpop.eup %4787 }
 0xe69   : > { %v3020_v40 = vsel %vm958_vm7, %v5866_v36, 0.0 }
 0xe6a   : > { %v5876_v35 = vpop.permute.xlu1 %3039  ;;  %v2802_v62 = vpop.permute.xlu0 %2801 }
 0xe70   : > { %3037 = vrot.lane.b32.xlu0 %v5707_v29, %s6222_s30  ;;  %v5870_v45 = vpop.eup %4789  ;;  %s6223_s30 = smul.u32 24, %s6225_s25 }
 0xe71   : > { %v3026_v31 = vsel %vm965_vm8, %v5870_v45, 0.0 }
 0xe72   : > { %s548_s28 = scalar_lea.vmem %s6205_s17, %s6223_s30 }
 0xe74   : > { %v5874_v50 = vpop.eup %4791 }
 0xe75   : > { %v3256_v39 = vsel %vm958_vm7, %v5874_v50, 0.0 }
 0xe8b   : > { %2783 = vadd.xlane.f32.xlu1 %v2782_v23 }
 0xe8f   : > { %2786 = vadd.xlane.f32.xlu0 %v2785_v34 }
 0xe93   : > { %3021 = vadd.xlane.f32.xlu0 %v3020_v40 }
 0xe97   : > { %3027 = vadd.xlane.f32.xlu0 %v3026_v31 }
 0xe9b   : > { %3257 = vadd.xlane.f32.xlu0 %v3256_v39  ;;  %v3246_v27 = vpop.xlane.xlu1 %3245 }
 0xe9c   : > { %v3249_v24 = vsub.f32 %v5827_v51, %v3246_v27  ;;  %3275 = vrot.lane.b32.xlu1 %v5704_v57, %s6221_s1  ;;  %v3248_v51 = vsub.f32 %v5823_v44, %v3243_v55  ;;  %v4029_v55 = vld [vmem:[%s6197_s9 + $0x78] sm:$0xff] }
 0xe9d   : > { %4597 = vmatpush3.msra.mxu0 %v4029_v55 }
 0xe9e   : > { %v3254_v38 = vmul.f32 1.442695, %v3249_v24  ;;  %v3252_v57 = vmul.f32 1.442695, %v3248_v51  ;;  %4598 = vmatprep.subr.mxu0 %v4845_v1 }
 0xea0   : > { %4793 = vpow2.f32 %v3254_v38 }
 0xea1   : > { %4795 = vpow2.f32 %v2780_v53 }
 0xea2   : > { %4797 = vpow2.f32 %v3016_v58 }
 0xea3   : > { %4799 = vpow2.f32 %v3252_v57  ;;  %v4028_v57 = vld [vmem:[%s6197_s9 + $0x70] sm:$0xff] }
 0xea4   : > { %4599 = vmatpush3.msra.mxu0 %v4028_v57 }
 0xea5   : > { %4600 = vmatprep.subr.mxu0 %v4845_v1 }
 0xead   : > { %v5885_v56 = vpop.eup %4793 }
 0xeae   : > { %v3262_v33 = vsel %vm965_vm8, %v5885_v56, 0.0  ;;  %v5890_v59 = vpop.eup %4795 }
 0xeaf   : > { %3263 = vadd.xlane.f32.xlu0 %v3262_v33  ;;  %v2788_v32 = vsel %vm965_vm8, %v5890_v59, 0.0  ;;  %v5894_v21 = vpop.eup %4797 }
 0xeb0   : > { %v3023_v60 = vsel %vm958_vm7, %v5894_v21, 0.0  ;;  %v5898_v61 = vpop.eup %4799 }
 0xeb1   : > { %v3259_v44 = vsel %vm958_vm7, %v5898_v61, 0.0 }
 0xec0   : > { %2789 = vadd.xlane.f32.xlu1 %v2788_v32  ;;  %v4026_v32 = vld [vmem:[%s6197_s9 + $0x60] sm:$0xff] }
 0xec4   : > { %3024 = vadd.xlane.f32.xlu1 %v3023_v60  ;;  %v4024_v60 = vld [vmem:[%s6197_s9 + $0x50] sm:$0xff] }
 0xec5   : > { %3271 = vrot.lane.b32.xlu0 %v5713_v26, %s6221_s1 }
 0xec8   : > { %3260 = vadd.xlane.f32.xlu1 %v3259_v44  ;;  %v4023_v44 = vld [vmem:[%s6197_s9 + $0x48] sm:$0xff] }
 0xed9   : > { %3273 = vrot.lane.b32.xlu1 %v5707_v29, %s6221_s1 }
 0xedb   : > { %v2555_v63 = vpop.xlane.xlu0 %2554 }
 0xedc   : > { %4801 = vrcp.f32 %v2555_v63 }
 0xedf   : > { %v2558_v3 = vpop.xlane.xlu1 %2557 }
 0xee0   : > { %4803 = vrcp.f32 %v2558_v3  ;;  %v4022_v3 = vld [vmem:[%s6197_s9 + $0x40] sm:$0xff] }
 0xee3   : > { %v2561_v2 = vpop.xlane.xlu0 %2560 }
 0xee4   : > { %4805 = vrcp.f32 %v2561_v2 }
 0xee9   : > { %v4802_v43 = vpop.eup %4801 }
 0xeea   : > { %v2565_v5 = vmul.f32 %v4802_v43, %v5839_v4 }
 0xeec   : > { %4498 = vmatmul.mubr.msk.f32.vlgmr.msra.gmra.mxu1 %vm958_vm7, %v2565_v5 }
 0xeed   : > { %v4804_v26 = vpop.eup %4803  ;;  %4522 = vmatpush3.msk.msra.mxu1 %vm570_vm0, %v5837_v25  ;;  %4500 = vmatprep.mubr.msk.f32.mxu1 %vm4846_vm1, %v4845_v1  ;;  %v3036_v25 = vpop.permute.xlu1 %3035 }
 0xeee   : > { %4523 = vmatprep.subr.mxu1 %v4845_v1  ;;  %v2566_v29 = vmul.f32 %v4804_v26, %v5843_v42  ;;  %v3038_v42 = vpop.permute.xlu0 %3037 }
 0xeef   : > { %4524 = vmatpush3.msra.mxu1 %v2802_v62 }
 0xef0   : > { %4525 = vmatprep.subr.mxu1 %v4845_v1  ;;  %4501 = vmatmul.mubr.msk.f32.gmra.mxu1 %vm958_vm7, %v2566_v29 }
 0xef1   : > { %v4806_v49 = vpop.eup %4805  ;;  %4526 = vmatpush3.msra.mxu1 %v2800_v41  ;;  %4503 = vmatprep.mubr.msk.f32.mxu1 %vm4846_vm1, %v4845_v1 }
 0xef2   : > { %v2567_v4 = vmul.f32 %v4806_v49, %v5847_v0  ;;  %4551 = vmatprep.subr.mxu1 %v4845_v1 }
 0xef4   : > { %4504 = vmatmul.mubr.msk.f32.gmra.mxu1 %vm958_vm7, %v2567_v4 }
 0xef5   : > { %4527 = vmatprep.mubr.msk.f32.mxu1 %vm4846_vm1, %v4845_v1 }
 0xf14   : > { %v2784_v6 = vpop.xlane.xlu1 %2783 }
 0xf15   : > { %4807 = vrcp.f32 %v2784_v6 }
 0xf18   : > { %v2787_v47 = vpop.xlane.xlu0 %2786  ;;  %v3276_v9 = vpop.permute.xlu1 %3275 }
 0xf19   : > { %4809 = vrcp.f32 %v2787_v47 }
 0xf1c   : > { %v3022_v10 = vpop.xlane.xlu0 %3021 }
 0xf20   : > { %v3028_v13 = vpop.xlane.xlu0 %3027 }
 0xf22   : > { %v4808_v7 = vpop.eup %4807 }
 0xf23   : > { %v2794_v48 = vmul.f32 %v4808_v7, %v5858_v28 }
 0xf24   : > { %v3258_v14 = vpop.xlane.xlu0 %3257 }
 0xf25   : > { %4528 = vmatmul.mubr.msk.f32.vlgmr.msra.gmra.mxu1 %vm958_vm7, %v2794_v48 }
 0xf26   : > { %v4810_v8 = vpop.eup %4809  ;;  %4552 = vmatpush3.msk.msra.mxu1 %vm570_vm0, %v5876_v35  ;;  %4530 = vmatprep.mubr.msk.f32.mxu1 %vm4846_vm1, %v4845_v1 }
 0xf27   : > { %4553 = vmatprep.subr.mxu1 %v4845_v1  ;;  %v2795_v0 = vmul.f32 %v4810_v8, %v5862_v30 }
 0xf28   : > { %4554 = vmatpush3.msra.mxu1 %v3038_v42 }
 0xf29   : > { %4555 = vmatprep.subr.mxu1 %v4845_v1  ;;  %4531 = vmatmul.mubr.msk.f32.gmra.mxu1 %vm958_vm7, %v2795_v0 }
 0xf2a   : > { %4556 = vmatpush3.msra.mxu1 %v3036_v25  ;;  %4533 = vmatprep.mubr.msk.f32.mxu1 %vm4846_vm1, %v4845_v1 }
 0xf2b   : > { %4581 = vmatprep.subr.mxu1 %v4845_v1 }
 0xf38   : > { %v3264_v15 = vpop.xlane.xlu0 %3263 }
 0xf3c   : > { %v3272_v41 = vpop.permute.xlu0 %3271 }
 0xf49   : > { %v2790_v11 = vpop.xlane.xlu1 %2789 }
 0xf4a   : > { %4811 = vrcp.f32 %v2790_v11 }
 0xf4b   : > { %4813 = vrcp.f32 %v3022_v10 }
 0xf4d   : > { %v3025_v12 = vpop.xlane.xlu1 %3024 }
 0xf4e   : > { %4815 = vrcp.f32 %v3025_v12 }
 0xf4f   : > { %4817 = vrcp.f32 %v3028_v13 }
 0xf50   : > { %4819 = vrcp.f32 %v3258_v14 }
 0xf51   : > { %v3261_v20 = vpop.xlane.xlu1 %3260 }
 0xf52   : > { %4821 = vrcp.f32 %v3261_v20 }
 0xf53   : > { %4823 = vrcp.f32 %v3264_v15 }
 0xf55   : > { %v3274_v23 = vpop.permute.xlu1 %3273 }
 0xf57   : > { %v4812_v17 = vpop.eup %4811 }
 0xf58   : > { %v2796_v18 = vmul.f32 %v4812_v17, %v5890_v59  ;;  %v4814_v19 = vpop.eup %4813  ;;  %v4027_v59 = vld [vmem:[%s6197_s9 + $0x68] sm:$0xff] }
 0xf59   : > { %v3032_v22 = vmul.f32 %v4814_v19, %v5866_v36  ;;  %4601 = vmatpush3.msra.mxu0 %v4027_v59 }
 0xf5a   : > { %4534 = vmatmul.mubr.msk.f32.gmra.mxu1 %vm958_vm7, %v2796_v18  ;;  %4602 = vmatprep.subr.mxu0 %v4845_v1 }
 0xf5b   : > { %4557 = vmatprep.mubr.msk.f32.mxu1 %vm4846_vm1, %v4845_v1  ;;  %v4816_v28 = vpop.eup %4815  ;;  %4603 = vmatpush3.msra.mxu0 %v4026_v32 }
 0xf5c   : > { %v3033_v30 = vmul.f32 %v4816_v28, %v5894_v21  ;;  %v4818_v34 = vpop.eup %4817  ;;  %v4025_v21 = vld [vmem:[%s6197_s9 + $0x58] sm:$0xff]  ;;  %4604 = vmatprep.subr.mxu0 %v4845_v1 }
 0xf5d   : > { %v3034_v36 = vmul.f32 %v4818_v34, %v5870_v45  ;;  %v4820_v40 = vpop.eup %4819  ;;  %4605 = vmatpush3.msra.mxu0 %v4025_v21  ;;  %v4034_v34 = vld [vmem:[%s6198_s10 + $0x1] ss:$0 sm:$0xff] }
 0xf5e   : > { %4558 = vmatmul.mubr.msk.f32.vlgmr.msra.gmra.mxu1 %vm958_vm7, %v3032_v22  ;;  %v3268_v31 = vmul.f32 %v4820_v40, %v5874_v50  ;;  %4606 = vmatprep.subr.mxu0 %v4845_v1 }
 0xf5f   : > { %4582 = vmatpush3.msk.msra.mxu1 %vm570_vm0, %v3276_v9  ;;  %4560 = vmatprep.mubr.msk.f32.mxu1 %vm4846_vm1, %v4845_v1  ;;  %v4822_v35 = vpop.eup %4821 }
 0xf60   : > { %4583 = vmatprep.subr.mxu1 %v4845_v1  ;;  %v3269_v39 = vmul.f32 %v4822_v35, %v5898_v61  ;;  %v4824_v27 = vpop.eup %4823  ;;  %4607 = vmatpush3.msra.mxu0 %v4024_v60 }
 0xf61   : > { %4584 = vmatpush3.msra.mxu1 %v3274_v23  ;;  %v3270_v45 = vmul.f32 %v4824_v27, %v5885_v56  ;;  %4608 = vmatprep.subr.mxu0 %v4845_v1 }
 0xf62   : > { %4585 = vmatprep.subr.mxu1 %v4845_v1  ;;  %4561 = vmatmul.mubr.msk.f32.gmra.mxu1 %vm958_vm7, %v3033_v30 }
 0xf63   : > { %4586 = vmatpush3.msra.mxu1 %v3272_v41  ;;  %4563 = vmatprep.mubr.msk.f32.mxu1 %vm4846_vm1, %v4845_v1 }
 0xf64   : > { %4621 = vmatprep.subr.mxu1 %v4845_v1  ;;  %4609 = vmatpush3.msra.mxu0 %v4023_v44 }
 0xf65   : > { %4610 = vmatprep.subr.mxu0 %v4845_v1 }
 0xf66   : > { %4564 = vmatmul.mubr.msk.f32.gmra.mxu1 %vm958_vm7, %v3034_v36  ;;  %4611 = vmatpush3.msra.mxu0 %v4022_v3  ;;  %v4044_v3 = vld [vmem:[%s6201_s13 + $0x68] sm:$0xff] }
 0xf67   : > { %4587 = vmatprep.mubr.msk.f32.mxu1 %vm4846_vm1, %v4845_v1  ;;  %4646 = vmatprep.subr.mxu0 %v4845_v1 }
 0xf6a   : > { %4588 = vmatmul.mubr.msk.f32.vlgmr.msra.gmra.mxu1 %vm958_vm7, %v3268_v31 }
 0xf6b   : > { %4590 = vmatprep.mubr.msk.f32.mxu1 %vm4846_vm1, %v4845_v1 }
 0xf6e   : > { %4591 = vmatmul.mubr.msk.f32.gmra.mxu1 %vm958_vm7, %v3269_v39 }
 0xf6f   : > { %4593 = vmatprep.mubr.msk.f32.mxu1 %vm4846_vm1, %v4845_v1 }
 0xf72   : > { %4594 = vmatmul.mubr.msk.f32.gmra.mxu1 %vm958_vm7, %v3270_v45 }
 0xf73   : > { %4637 = vmatprep.mubr.msk.f32.mxu1 %vm4846_vm1, %v4845_v1 }
 0xfac   : > { %v2646_v50 = vpop.f32.mrf.mxu1 }
 0xfae   : > { %v4499_v24 = vpop.f32.mrf.mxu1 }
 0xfb0   : > { %v5968_v38 = vpop.f32.mrf.mxu1 }
 0xfb2   : > { %v4502_v52 = vpop.f32.mrf.mxu1 }
 0xfb4   : > { %v5970_v53 = vpop.f32.mrf.mxu1 }
 0xfb6   : > { %v4505_v54 = vpop.f32.mrf.mxu1 }
 0xfe5   : > { %v2884_v56 = vpop.f32.mrf.mxu1 }
 0xfe6   : > { %3373 = vrot.lane.b32.xlu1 %v2884_v56, %s6219_s21 }
 0xfe7   : > { %v4529_v33 = vpop.f32.mrf.mxu1 }
 0xfe9   : > { %v2889_v58 = vpop.f32.mrf.mxu1 }
 0xfea   : > { %3375 = vrot.lane.b32.xlu0 %v2889_v58, %s6219_s21 }
 0xfeb   : > { %v4532_v51 = vpop.f32.mrf.mxu1 }
0x101a   : > { %v2894_v61 = vpop.f32.mrf.mxu1 }
0x101c   : > { %v4535_v62 = vpop.f32.mrf.mxu1 }
0x101d   : > { %v4046_v62 = vld [vmem:[%s6201_s13 + $0x78] sm:$0xff] }
0x101e   : > { %v3120_v63 = vpop.f32.mrf.mxu1  ;;  %4622 = vmatpush3.msra.mxu1 %v4046_v62 }
0x101f   : > { %3385 = vrot.lane.b32.xlu0 %v3120_v63, %s4850_s22  ;;  %4623 = vmatprep.subr.mxu1 %v4845_v1  ;;  %v4045_v63 = vld [vmem:[%s6201_s13 + $0x70] sm:$0xff] }
0x1020   : > { %v4559_v2 = vpop.f32.mrf.mxu1  ;;  %4624 = vmatpush3.msra.mxu1 %v4045_v63 }
0x1021   : > { %4625 = vmatprep.subr.mxu1 %v4845_v1  ;;  %v4043_v2 = vld [vmem:[%s6201_s13 + $0x60] sm:$0xff] }
0x1022   : > { %v3125_v43 = vpop.f32.mrf.mxu1  ;;  %4626 = vmatpush3.msra.mxu1 %v4044_v3 }
0x1023   : > { %3387 = vrot.lane.b32.xlu1 %v3125_v43, %s4850_s22  ;;  %4627 = vmatprep.subr.mxu1 %v4845_v1  ;;  %v4042_v43 = vld [vmem:[%s6201_s13 + $0x58] sm:$0xff] }
0x1024   : > { %v4562_v5 = vpop.f32.mrf.mxu1  ;;  %4628 = vmatpush3.msra.mxu1 %v4043_v2 }
0x1025   : > { %4629 = vmatprep.subr.mxu1 %v4845_v1  ;;  %v4041_v5 = vld [vmem:[%s6201_s13 + $0x50] sm:$0xff] }
0x1026   : > { %v3130_v26 = vpop.f32.mrf.mxu1  ;;  %4630 = vmatpush3.msra.mxu1 %v4042_v43 }
0x1027   : > { %4631 = vmatprep.subr.mxu1 %v4845_v1 }
0x1028   : > { %v4565_v29 = vpop.f32.mrf.mxu1  ;;  %4632 = vmatpush3.msra.mxu1 %v4041_v5 }
0x1029   : > { %4633 = vmatprep.subr.mxu1 %v4845_v1  ;;  %v4039_v29 = vld [vmem:[%s6201_s13 + $0x40] sm:$0xff] }
0x102a   : > { %v3356_v49 = vpop.f32.mrf.mxu1 }
0x102b   : > { %3397 = vrot.lane.b32.xlu1 %v3356_v49, %s4848_s20 }
0x102c   : > { %v4589_v4 = vpop.f32.mrf.mxu1 }
0x102e   : > { %v3361_v25 = vpop.f32.mrf.mxu1 }
0x102f   : > { %3377 = vrot.lane.b32.xlu1 %v2894_v61, %s6219_s21  ;;  %3399 = vrot.lane.b32.xlu0 %v3361_v25, %s4848_s20 }
0x1030   : > { %v4592_v42 = vpop.f32.mrf.mxu1 }
0x1032   : > { %v3366_v6 = vpop.f32.mrf.mxu1 }
0x1033   : > { %3389 = vrot.lane.b32.xlu0 %v3130_v26, %s4850_s22  ;;  %3401 = vrot.lane.b32.xlu1 %v3366_v6, %s4848_s20  ;;  %v4040_v26 = vld [vmem:[%s6201_s13 + $0x48] sm:$0xff] }
0x1034   : > { %v4595_v47 = vpop.f32.mrf.mxu1  ;;  %4634 = vmatpush3.msra.mxu1 %v4040_v26 }
0x1035   : > { %4635 = vmatprep.subr.mxu1 %v4845_v1 }
0x1036   : > { %4636 = vmatpush3.msra.mxu1 %v4039_v29 }
0x1058   : > { %v3374_v7 = vpop.permute.xlu1 %3373 }
0x1059   : > { %v3406_v9 = vsel %vm865_vm6, %v2646_v50, %v3374_v7 }
0x105c   : > { %v3376_v48 = vpop.permute.xlu0 %3375 }
0x105d   : > { %v3407_v13 = vsel %vm865_vm6, %v5968_v38, %v3376_v48 }
0x1091   : > { %v3386_v0 = vpop.permute.xlu0 %3385 }
0x1092   : > { %v3409_v10 = vsel %vm1834_vm9, %v3406_v9, %v3386_v0  ;;  %v4037_v9 = vld [vmem:[%s6199_s11 + $0x1] ss:$0 sm:$0xff] }
0x1095   : > { %v3388_v8 = vpop.permute.xlu1 %3387 }
0x1096   : > { %v3410_v14 = vsel %vm1834_vm9, %v3407_v13, %v3388_v8 }
0x109d   : > { %v3398_v11 = vpop.permute.xlu1 %3397 }
0x109e   : > { %v3412_v12 = vsel %vm1838_vm10, %v3409_v10, %v3398_v11  ;;  %v4038_v11 = vld [vmem:[%s6200_s12 + $0x1] ss:$0 sm:$0xff] }
0x109f   : > { %4613 = vmatmul.mubr.msk.f32.vlgmr.msra.gmra.mxu0 %vm676_vm4, %v3412_v12 }
0x10a0   : > { %4615 = vmatprep.mubr.msk.f32.mxu0 %vm4846_vm1, %v4845_v1 }
0x10a1   : > { %v3400_v17 = vpop.permute.xlu0 %3399  ;;  %v3378_v18 = vpop.permute.xlu1 %3377 }
0x10a2   : > { %v3413_v19 = vsel %vm1838_vm10, %v3410_v14, %v3400_v17  ;;  %v3408_v20 = vsel %vm865_vm6, %v5970_v53, %v3378_v18 }
0x10a3   : > { %4616 = vmatmul.mubr.msk.f32.gmra.mxu0 %vm676_vm4, %v3413_v19 }
0x10a4   : > { %4618 = vmatprep.mubr.msk.f32.mxu0 %vm4846_vm1, %v4845_v1 }
0x10a5   : > { %v3390_v22 = vpop.permute.xlu0 %3389  ;;  %v3402_v15 = vpop.permute.xlu1 %3401 }
0x10a6   : > { %v3411_v28 = vsel %vm1834_vm9, %v3408_v20, %v3390_v22 }
0x10a7   : > { %v3414_v23 = vsel %vm1838_vm10, %v3411_v28, %v3402_v15 }
0x10a8   : > { %4619 = vmatmul.mubr.msk.f32.gmra.mxu0 %vm676_vm4, %v3414_v23  ;;  %v4067_v23 = vld [vmem:[%s6203_s15 + $0xf8] sm:$0xff] }
0x10a9   : > { %4678 = vmatprep.mubr.msk.f32.mxu0 %vm4846_vm1, %v4845_v1  ;;  %4647 = vmatpush3.msra.mxu0 %v4067_v23 }
0x10aa   : > { %4648 = vmatprep.subr.mxu0 %v4845_v1 }
0x115f   : > { %v3499_v30 = vpop.f32.mrf.mxu0 }
0x1160   : > { %v3513_v41 = vadd.f32 %v3499_v30, %v5598_v37  ;;  %v4066_v30 = vld [vmem:[%s6203_s15 + $0xf0] sm:$0xff] }
0x1161   : > { %v4614_v36 = vpop.f32.mrf.mxu0  ;;  %4649 = vmatpush3.msra.mxu0 %v4066_v30 }
0x1162   : > { %v6037_v40 = vadd.f32 %v4034_v34, %v3513_v41  ;;  %4650 = vmatprep.subr.mxu0 %v4845_v1  ;;  %v4064_v41 = vld [vmem:[%s6203_s15 + $0xe0] sm:$0xff]  ;;  %v4063_v36 = vld [vmem:[%s6203_s15 + $0xd8] sm:$0xff] }
0x1163   : > { %v3504_v31 = vpop.f32.mrf.mxu0 }
0x1164   : > { %v3514_v35 = vadd.f32 %v3504_v31, %v5603_v46  ;;  %v3531_v39 = vsel %vm676_vm4, %v6037_v40, 0.0  ;;  %v4062_v31 = vld [vmem:[%s6203_s15 + $0xd0] sm:$0xff] }
0x1165   : > { %3532 = vadd.xlane.f32.xlu0 %v3531_v39  ;;  %v4617_v27 = vpop.f32.mrf.mxu0  ;;  %v4060_v39 = vld [vmem:[%s6203_s15 + $0xc0] sm:$0xff] }
0x1166   : > { %v6042_v45 = vadd.f32 %v4034_v34, %v3514_v35  ;;  %v4061_v35 = vld [vmem:[%s6203_s15 + $0xc8] sm:$0xff]  ;;  %v4059_v27 = vld [vmem:[%s6203_s15 + $0xb8] sm:$0xff] }
0x1168   : > { %v3509_v50 = vpop.f32.mrf.mxu0  ;;  %v3534_v24 = vsel %vm676_vm4, %v6042_v45, 0.0 }
0x1169   : > { %v3515_v38 = vadd.f32 %v3509_v50, %v5608_v16  ;;  %3535 = vadd.xlane.f32.xlu1 %v3534_v24  ;;  %v4058_v50 = vld [vmem:[%s6203_s15 + $0xb0] sm:$0xff]  ;;  %v4057_v24 = vld [vmem:[%s6203_s15 + $0xa8] sm:$0xff] }
0x116a   : > { %v4620_v37 = vpop.f32.mrf.mxu0 }
0x116b   : > { %v6047_v52 = vadd.f32 %v4034_v34, %v3515_v38  ;;  %v4065_v34 = vld [vmem:[%s6203_s15 + $0xe8] sm:$0xff]  ;;  %v4056_v38 = vld [vmem:[%s6203_s15 + $0xa0] sm:$0xff]  ;;  %v4055_v37 = vld [vmem:[%s6203_s15 + $0x98] sm:$0xff] }
0x116c   : > { %4651 = vmatpush3.msra.mxu0 %v4065_v34 }
0x116d   : > { %v3537_v46 = vsel %vm683_vm5, %v6047_v52, 0.0  ;;  %4652 = vmatprep.subr.mxu0 %v4845_v1 }
0x116e   : > { %3538 = vadd.xlane.f32.xlu0 %v3537_v46  ;;  %4653 = vmatpush3.msra.mxu0 %v4064_v41  ;;  %v4054_v46 = vld [vmem:[%s6203_s15 + $0x90] sm:$0xff] }
0x116f   : > { %4654 = vmatprep.subr.mxu0 %v4845_v1 }
0x1170   : > { %4655 = vmatpush3.msra.mxu0 %v4063_v36 }
0x1171   : > { %4656 = vmatprep.subr.mxu0 %v4845_v1 }
0x1172   : > { %4657 = vmatpush3.msra.mxu0 %v4062_v31 }
0x1173   : > { %4658 = vmatprep.subr.mxu0 %v4845_v1 }
0x1174   : > { %4659 = vmatpush3.msra.mxu0 %v4061_v35 }
0x1175   : > { %4660 = vmatprep.subr.mxu0 %v4845_v1 }
0x1176   : > { %4661 = vmatpush3.msra.mxu0 %v4060_v39 }
0x1177   : > { %4662 = vmatprep.subr.mxu0 %v4845_v1 }
0x1178   : > { %4663 = vmatpush3.msra.mxu0 %v4059_v27 }
0x1179   : > { %4664 = vmatprep.subr.mxu0 %v4845_v1 }
0x117a   : > { %4665 = vmatpush3.msra.mxu0 %v4058_v50 }
0x117b   : > { %4666 = vmatprep.subr.mxu0 %v4845_v1 }
0x117c   : > { %4667 = vmatpush3.msra.mxu0 %v4057_v24 }
0x117d   : > { %4668 = vmatprep.subr.mxu0 %v4845_v1 }
0x117e   : > { %4669 = vmatpush3.msra.mxu0 %v4056_v38 }
0x117f   : > { %4670 = vmatprep.subr.mxu0 %v4845_v1 }
0x1180   : > { %4671 = vmatpush3.msra.mxu0 %v4055_v37 }
0x1181   : > { %4672 = vmatprep.subr.mxu0 %v4845_v1 }
0x1182   : > { %4673 = vmatpush3.msra.mxu0 %v4054_v46 }
0x1183   : > { %4674 = vmatprep.subr.mxu0 %v4845_v1 }
0x11ee   : > { %v3533_v53 = vpop.xlane.xlu0 %3532 }
0x11ef   : > { %v3540_v54 = vmul.f32 0.015625, %v3533_v53  ;;  %v4053_v53 = vld [vmem:[%s6203_s15 + $0x88] sm:$0xff] }
0x11f0   : > { %4675 = vmatpush3.msra.mxu0 %v4053_v53 }
0x11f1   : > { %v3543_v55 = vsub.f32 %v6037_v40, %v3540_v54  ;;  %v4052_v54 = vld [vmem:[%s6203_s15 + $0x80] sm:$0xff]  ;;  %4676 = vmatprep.subr.mxu0 %v4845_v1 }
0x11f2   : > { %v3536_v56 = vpop.xlane.xlu1 %3535  ;;  %4677 = vmatpush3.msra.mxu0 %v4052_v54 }
0x11f3   : > { %v3541_v33 = vmul.f32 0.015625, %v3536_v56  ;;  %v3546_v58 = vmul.f32 %v3543_v55, %v3543_v55 }
0x11f5   : > { %v3544_v51 = vsub.f32 %v6042_v45, %v3541_v33  ;;  %v3549_v57 = vsel %vm676_vm4, %v3546_v58, 0.0 }
0x11f6   : > { %3550 = vadd.xlane.f32.xlu0 %v3549_v57 }
0x11f7   : > { %v3539_v16 = vpop.xlane.xlu0 %3538  ;;  %v3547_v59 = vmul.f32 %v3544_v51, %v3544_v51 }
0x11f8   : > { %v3542_v32 = vmul.f32 0.015625, %v3539_v16 }
0x11f9   : > { %v3552_v21 = vsel %vm676_vm4, %v3547_v59, 0.0 }
0x11fa   : > { %v3545_v60 = vsub.f32 %v6047_v52, %v3542_v32  ;;  %3553 = vadd.xlane.f32.xlu0 %v3552_v21 }
0x11fc   : > { %v3548_v61 = vmul.f32 %v3545_v60, %v3545_v60 }
0x11fe   : > { %v3555_v44 = vsel %vm683_vm5, %v3548_v61, 0.0 }
0x11ff   : > { %3556 = vadd.xlane.f32.xlu1 %v3555_v44 }
0x127f   : > { %v3551_v49 = vpop.xlane.xlu0 %3550 }
0x1280   : > { %v3558_v4 = vmul.f32 0.015625, %v3551_v49 }
0x1282   : > { %v3561_v25 = vadd.f32 1e-05, %v3558_v4 }
0x1283   : > { %v3554_v42 = vpop.xlane.xlu0 %3553 }
0x1284   : > { %4825 = vrsqrt.f32 %v3561_v25  ;;  %v3559_v6 = vmul.f32 0.015625, %v3554_v42 }
0x1286   : > { %v3562_v47 = vadd.f32 1e-05, %v3559_v6 }
0x1288   : > { %4827 = vrsqrt.f32 %v3562_v47  ;;  %v3557_v7 = vpop.xlane.xlu1 %3556 }
0x1289   : > { %v3560_v48 = vmul.f32 0.015625, %v3557_v7 }
0x128b   : > { %v3563_v8 = vadd.f32 1e-05, %v3560_v48 }
0x128d   : > { %4829 = vrsqrt.f32 %v3563_v8 }
0x1291   : > { %v4826_v0 = vpop.eup %4825 }
0x1292   : > { %v3567_v10 = vmul.f32 %v4826_v0, %v3543_v55  ;;  %v4048_v55 = vld [vmem:[%s6202_s14 + $0x1] ss:$0 sm:$0xff] }
0x1294   : > { %v3576_v12 = vmul.f32 %v4037_v9, %v3567_v10 }
0x1295   : > { %v4828_v13 = vpop.eup %4827 }
0x1296   : > { %v3585_v14 = vadd.f32 %v4038_v11, %v3576_v12  ;;  %v3568_v17 = vmul.f32 %v4828_v13, %v3544_v51 }
0x1298   : > { %4638 = vmatmul.mubr.msk.f32.vlgmr.msra.gmra.mxu1 %vm676_vm4, %v3585_v14  ;;  %v3577_v18 = vmul.f32 %v4037_v9, %v3568_v17 }
0x1299   : > { %4640 = vmatprep.mubr.msk.f32.mxu1 %vm4846_vm1, %v4845_v1 }
0x129a   : > { %v4830_v19 = vpop.eup %4829  ;;  %v3586_v20 = vadd.f32 %v4038_v11, %v3577_v18  ;;  %v4069_v18 = vld [vmem:[%s6204_s16 + $0x1] ss:$0 sm:$0xff] }
0x129b   : > { %v3569_v22 = vmul.f32 %v4830_v19, %v3545_v60 }
0x129c   : > { %4641 = vmatmul.mubr.msk.f32.gmra.mxu1 %vm676_vm4, %v3586_v20 }
0x129d   : > { %4643 = vmatprep.mubr.msk.f32.mxu1 %vm4846_vm1, %v4845_v1  ;;  %v3578_v15 = vmul.f32 %v4037_v9, %v3569_v22 }
0x129f   : > { %v3587_v28 = vadd.f32 %v4038_v11, %v3578_v15 }
0x12a1   : > { %4644 = vmatmul.mubr.msk.f32.gmra.mxu1 %vm676_vm4, %v3587_v28 }
0x1358   : > { %v3680_v56 = vpop.f32.mrf.mxu1 }
0x1359   : > { %v3681_v33 = vadd.f32 %v4048_v55, %v3680_v56 }
0x135a   : > { %v4639_v58 = vpop.f32.mrf.mxu1 }
0x135b   : > { %v3694_v51 = vmul.f32 %v3681_v33, %v3681_v33 }
0x135c   : > { %v3685_v57 = vpop.f32.mrf.mxu1 }
0x135d   : > { %v3697_v16 = vmul.f32 %v3694_v51, %v3681_v33  ;;  %v3686_v59 = vadd.f32 %v4048_v55, %v3685_v57 }
0x135e   : > { %v4642_v32 = vpop.f32.mrf.mxu1 }
0x135f   : > { %v3700_v21 = vmul.f32 0.044715, %v3697_v16  ;;  %v3695_v60 = vmul.f32 %v3686_v59, %v3686_v59 }
0x1361   : > { %v3703_v61 = vadd.f32 %v3700_v21, %v3681_v33  ;;  %v3698_v44 = vmul.f32 %v3695_v60, %v3686_v59  ;;  %v3690_v62 = vpop.f32.mrf.mxu1 }
0x1362   : > { %v3691_v63 = vadd.f32 %v4048_v55, %v3690_v62 }
0x1363   : > { %v3706_v3 = vmul.f32 0.7978846, %v3703_v61  ;;  %v3701_v2 = vmul.f32 0.044715, %v3698_v44  ;;  %v4645_v43 = vpop.f32.mrf.mxu1 }
0x1364   : > { %v3696_v5 = vmul.f32 %v3691_v63, %v3691_v63 }
0x1365   : > { %4831 = vtanh.f32 %v3706_v3  ;;  %v3704_v26 = vadd.f32 %v3701_v2, %v3686_v59 }
0x1366   : > { %v3699_v29 = vmul.f32 %v3696_v5, %v3691_v63 }
0x1367   : > { %v3707_v49 = vmul.f32 0.7978846, %v3704_v26 }
0x1368   : > { %v3702_v4 = vmul.f32 0.044715, %v3699_v29 }
0x1369   : > { %4833 = vtanh.f32 %v3707_v49 }
0x136a   : > { %v3705_v25 = vadd.f32 %v3702_v4, %v3691_v63 }
0x136c   : > { %v3708_v42 = vmul.f32 0.7978846, %v3705_v25 }
0x136e   : > { %4835 = vtanh.f32 %v3708_v42 }
0x1372   : > { %v4832_v6 = vpop.eup %4831 }
0x1373   : > { %v3712_v47 = vadd.f32 1.0, %v4832_v6 }
0x1375   : > { %v3715_v7 = vmul.f32 0.5, %v3712_v47 }
0x1376   : > { %v4834_v48 = vpop.eup %4833 }
0x1377   : > { %v3718_v8 = vmul.f32 %v3715_v7, %v3681_v33  ;;  %v3713_v0 = vadd.f32 1.0, %v4834_v48 }
0x1379   : > { %4679 = vmatmul.mubr.f32.vlgmr.msra.gmra.mxu0 %v3718_v8  ;;  %v3716_v9 = vmul.f32 0.5, %v3713_v0 }
0x137a   : > { %4681 = vmatprep.mubr.msk.f32.mxu0 %vm4846_vm1, %v4845_v1 }
0x137b   : > { %v4836_v10 = vpop.eup %4835  ;;  %v3719_v11 = vmul.f32 %v3716_v9, %v3686_v59 }
0x137c   : > { %v3714_v12 = vadd.f32 1.0, %v4836_v10 }
0x137d   : > { %4682 = vmatmul.mubr.f32.gmra.mxu0 %v3719_v11 }
0x137e   : > { %4684 = vmatprep.mubr.msk.f32.mxu0 %vm4846_vm1, %v4845_v1  ;;  %v3717_v13 = vmul.f32 0.5, %v3714_v12 }
0x1380   : > { %v3720_v14 = vmul.f32 %v3717_v13, %v3691_v63 }
0x1382   : > { %4685 = vmatmul.mubr.f32.gmra.mxu0 %v3720_v14 }
0x1439   : > { %v3804_v17 = vpop.f32.mrf.mxu0 }
0x143a   : > { %v3818_v19 = vadd.f32 %v3804_v17, %v6037_v40 }
0x143b   : > { %v4680_v20 = vpop.f32.mrf.mxu0 }
0x143c   : > { %v3829_v22 = vadd.f32 %v4069_v18, %v3818_v19 }
0x143d   : > { %v3809_v15 = vpop.f32.mrf.mxu0 }
0x143e   : > { %3832 = vst.msk [vmem:[%s548_s28] sm:$0xff] %vm676_vm4, %v3829_v22  ;;  %v3819_v1 = vadd.f32 %v3809_v15, %v6042_v45 }
0x143f   : > { %v4683_v28 = vpop.f32.mrf.mxu0 }
0x1440   : > { %v3830_v23 = vadd.f32 %v4069_v18, %v3819_v1 }
0x1442   : > { %3833 = vst.msk [vmem:[%s548_s28 + $0x8] sm:$0xff] %vm676_vm4, %v3830_v23  ;;  %v3814_v30 = vpop.f32.mrf.mxu0 }
0x1443   : > { %v3820_v34 = vadd.f32 %v3814_v30, %v6047_v52 }
0x1444   : > { %v4686_v40 = vpop.f32.mrf.mxu0 }
0x1445   : > { %v3831_v41 = vadd.f32 %v4069_v18, %v3820_v34 }
0x1447   : > { %3834 = vst.msk [vmem:[%s548_s28 + $0x10] sm:$0x3f] %vm683_vm5, %v3831_v41 }
0x1448 PF: > { %s27_s24 = sadd.s32 1, %s4843_s24  }
0x1449   : > { %p24_p4 = scmp.ge.s32.totalorder %s27_s24, 18  }
0x144b   :  { %26 = sbr.rel (!%p24_p4) target bundleno = 3 (0x3), region = 130 }

// kernel: _lambda_.3
= control target key start
LH: loop header
LB: loop body
LE: loop exit
PB: predicated region body
PF: predicated region fallthrough
CT: control target
= control target key end

     0   :  { %s5535_s0 = inlined_call_operand.vmem [shape: f32[16,22,64], index: 0, kind: input, shape index: {}, may-alias: {0,1}]   ;;  %s5536_s1 = inlined_call_operand.vmem [shape: f32[2,8,22,64], index: 1, kind: input, shape index: {}, may-alias: {0,1}]   ;;  %s5537_s2 = inlined_call_operand.vmem [shape: f32[9,64], index: 2, kind: input, shape index: {}]   ;;  %s5538_s3 = inlined_call_operand.vmem [shape: f32[2,1,64], index: 3, kind: input, shape index: {}]   ;;  %s5539_s4 = inlined_call_operand.vmem [shape: f32[2,1,64], index: 4, kind: input, shape index: {}]   ;;  %s5540_s5 = inlined_call_operand.vmem [shape: f32[2,64,192], index: 5, kind: input, shape index: {}]   ;;  %s5541_s6 = inlined_call_operand.vmem [shape: f32[2,1,192], index: 6, kind: input, shape index: {}]   ;;  %s5542_s7 = inlined_call_operand.vmem [shape: f32[2,64,64], index: 7, kind: input, shape index: {}]   ;;  %s5543_s8 = inlined_call_operand.vmem [shape: f32[2,1,64], index: 8, kind: input, shape index: {}]   ;;  %s5544_s9 = inlined_call_operand.vmem [shape: f32[2,1,64], index: 9, kind: input, shape index: {}]   ;;  %s5545_s10 = inlined_call_operand.vmem [shape: f32[2,1,64], index: 10, kind: input, shape index: {}]   ;;  %s5546_s11 = inlined_call_operand.vmem [shape: f32[2,64,128], index: 11, kind: input, shape index: {}]   ;;  %s5547_s12 = inlined_call_operand.vmem [shape: f32[2,1,128], index: 12, kind: input, shape index: {}]   ;;  %s5548_s13 = inlined_call_operand.vmem [shape: f32[2,128,64], index: 13, kind: input, shape index: {}]   ;;  %s5549_s14 = inlined_call_operand.vmem [shape: f32[2,1,64], index: 14, kind: input, shape index: {}]   ;;  %s5550_s15 = inlined_call_operand.vmem [shape: f32[1,64], index: 15, kind: input, shape index: {}]   ;;  %s5551_s16 = inlined_call_operand.vmem [shape: f32[1,64], index: 16, kind: input, shape index: {}]   ;;  %s5552_s17 = inlined_call_operand.vmem [shape: f32[64,32], index: 17, kind: input, shape index: {}]   ;;  %s5553_s18 = inlined_call_operand.vmem [shape: f32[1,32], index: 18, kind: input, shape index: {}]   ;;  %s5554_s19 = inlined_call_operand.hbm [shape: f32[2,1,32], index: 19, kind: output, shape index: {}]  }
   0x1   :  { %5577 = sst [smem:[#allocation10_spill]] %s5535_s0 }
   0x2   :  { %5578 = sst [smem:[#allocation11_spill]] %s5536_s1 }
   0x3   :  { %5579 = sst [smem:[#allocation12_spill]] %s5537_s2 }
   0x4   :  { %5580 = sst [smem:[#allocation13_spill]] %s5538_s3 }
   0x5   :  { %5581 = sst [smem:[#allocation14_spill]] %s5539_s4 }
   0x6   :  { %24 = vsyncpa [#allocation3], 0 }
   0x7   :  { %26 = vsyncpa [#allocation3 + $0x1], 0  ;;  %s4633_s0 = smov 0   ;;  %s4635_s30 = smov 0  }
   0x8   :  { %s4637_s20 = smov 0   ;;  %s4639_s21 = smov 0  }
   0x9 LB: > { %5582 = sst [smem:[#allocation5_spill]] %s4509_s0  ;;  %s4654_s1 = sadd.s32 4294967295, %s4521_s21   ;;  %s4521_s21 = sphi %s4639_s21, %s5604_s21   ;;  %s4517_s20 = sphi %s4637_s20, %s5606_s20   ;;  %s4513_s30 = sphi %s4635_s30, %s5608_s30   ;;  %s4509_s0 = sphi %s4633_s0, %s5607_s0  }
   0xa   : > { %5583 = sst [smem:[#allocation6_spill]] %s4517_s20  ;;  %s3747_s22 = sadd.s32 4294967294, %s4521_s21  }
   0xb   : > { %s4658_s2 = sadd.s32 1, %s4521_s21   ;;  %s448_s23 = sadd.s32 1, %s4517_s20 }
   0xc   : > { %5584 = sst [smem:[#allocation7_spill]] %s4658_s2  ;;  %s445_s24 = ssub.s32 %s4521_s21, %s4658_s2 }
   0xd   : > { %p458_p0 = scmp.ne.s32.totalorder %s4517_s20, %s4513_s30  ;;  %p446_p1 = scmp.eq.s32.totalorder %s445_s24, 0 }
   0xe   : > { %p459_p2 = scmp.eq.s32.totalorder %s4654_s1, 1  ;;  %p464_p3 = scmp.ne.s32.totalorder %s4513_s30, %s4509_s0 }
   0xf   : > { %p465_p4 = scmp.eq.s32.totalorder %s3747_s22, 1  ;;  %p3750_p7 = scmp.ge.s32.totalorder %s4521_s21, 1 }
  0x10   : > { %s4669_s25 = scalar_select %p446_p1, %s4517_s20, %s448_s23  }
  0x11   : > { %p4671_p5 = por %p459_p2, %p458_p0  ;;  %p4675_p6 = por %p465_p4, %p464_p3 }
  0x12   : > { %5585 = sst [smem:[#allocation8_spill]] %s4669_s25  ;;  %p550_p8 = scmp.lt.s32.totalorder %s4521_s21, 3 }
  0x13   : > { %s5587_s26 = scalar_select %p4675_p6, 1, 0 }
  0x14   : > { %p551_p9 = pnand %p3750_p7, %p550_p8 }
  0x15   : > { %5588 = sst [smem:[#allocation9_spill]] %s5587_s26  ;;  %p615_p10 = scmp.lt.s32.totalorder (!%p551_p9), %s4654_s1, 1 }
  0x16   : > { %554 = sbr.rel (%p551_p9) target bundleno = 7975 (0x1f27), region = 96  ;;  %s5589_s23 = sld [smem:[#allocation11_spill]] (!%p551_p9) }
  0x17   : > { %p610_p11 = scmp.lt.s32.totalorder (!%p551_p9), %s4654_s1, 15  ;;  %s5591_s20 = sld [smem:[#allocation12_spill]] (!%p551_p9) }
  0x18   : > { %s5594_s4 = sld [smem:[#allocation14_spill]] (!%p551_p9)  ;;  %s5572_s29 = smov (!%p551_p9), 64  }
  0x19   : > { %s5570_s25 = smov (!%p551_p9), 112   ;;  %s5568_s22 = smov (!%p551_p9), 32  }
  0x1a   : > { %s5595_s0 = smov (!%p551_p9), 64  }
  0x1b   : > { %s616_s27 = scalar_select %p615_p10, %s4654_s1, 1  ;;  %vm669_vm0 = vcmask 1046528   ;;  %vm734_vm1 = vcmask 523264   ;;  %vm738_vm2 = vcmask 520192   ;;  %vm841_vm3 = vcmask 1042434  }
  0x1c   : > { %vm843_vm4 = vcmask 1043459   ;;  %vm845_vm5 = vcmask 1044484   ;;  %vm847_vm6 = vcmask 1045509   ;;  %vm849_vm7 = vcmask 1046534  }
  0x1d   : > { %s4322_s28 = smul.u32 192, %s616_s27  ;;  %vm851_vm8 = vcmask 1047559   ;;  %vm855_vm9 = vcmask 1040384   ;;  %s5592_s2 = smov %s5591_s20  ;;  %vm866_vm10 = vcmask 516096   ;;  %vm1024_vm11 = vcmask 130048  }
  0x1e   : > { %s4753_s27 = scalar_select %p610_p11, %s4654_s1, 15  ;;  %vm1112_vm12 = vcmask 65536   ;;  %vm1108_vm13 = vcmask 72704   ;;  %vm1846_vm14 = vcmask 261120   ;;  %vm1849_vm15 = vcmask 392192  }
  0x1f   : > { %s4686_s24 = scalar_lea.vmem %s5589_s23, %s4322_s28  ;;  %s5590_s23 = sld [smem:[#allocation10_spill]] }
  0x20   : > { %v621_v0 = vld [vmem:[%s4686_s24] sm:$0xff]  ;;  %v622_v1 = vld [vmem:[%s4686_s24 + $0x8] sm:$0xff]  ;;  %v623_v2 = vld [vmem:[%s4686_s24 + $0x10] sm:$0x3f]  ;;  %s4321_s28 = smul.u32 24, %s4753_s27  ;;  %s5564_s27 = smov 16  }
  0x21   : > { %v624_v3 = vld [vmem:[%s4686_s24 + $0x18] sm:$0xff]  ;;  %v625_v4 = vld [vmem:[%s4686_s24 + $0x20] sm:$0xff]  ;;  %v626_v5 = vld [vmem:[%s4686_s24 + $0x28] sm:$0x3f]  ;;  %v670_v6 = vrot.slane %v621_v0, 1  ;;  %v671_v7 = vrot.slane %v622_v1, 1 }
  0x22   : > { %v627_v8 = vld [vmem:[%s4686_s24 + $0x30] sm:$0xff]  ;;  %v628_v9 = vld [vmem:[%s4686_s24 + $0x38] sm:$0xff]  ;;  %v629_v10 = vld [vmem:[%s4686_s24 + $0x40] sm:$0x3f]  ;;  %v673_v11 = vrot.slane %v623_v2, 1  ;;  %v675_v12 = vrot.slane %v624_v3, 1 }
  0x23   : > { %v630_v13 = vld [vmem:[%s4686_s24 + $0x48] sm:$0xff]  ;;  %v631_v14 = vld [vmem:[%s4686_s24 + $0x50] sm:$0xff]  ;;  %v632_v15 = vld [vmem:[%s4686_s24 + $0x58] sm:$0x3f]  ;;  %v676_v16 = vrot.slane %v625_v4, 1  ;;  %v678_v17 = vrot.slane %v626_v5, 1  ;;  %v672_v21 = vsel %vm669_vm0, %v670_v6, %v671_v7 }
  0x24   : > { %v633_v18 = vld [vmem:[%s4686_s24 + $0x60] sm:$0xff]  ;;  %v634_v19 = vld [vmem:[%s4686_s24 + $0x68] sm:$0xff]  ;;  %v635_v20 = vld [vmem:[%s4686_s24 + $0x70] sm:$0x3f]  ;;  %v680_v22 = vrot.slane %v627_v8, 1  ;;  %v681_v23 = vrot.slane %v628_v9, 1  ;;  %v674_v26 = vsel %vm669_vm0, %v671_v7, %v673_v11 }
  0x25   : > { %v636_v24 = vld [vmem:[%s4686_s24 + $0x78] sm:$0xff]  ;;  %v637_v25 = vld [vmem:[%s4686_s24 + $0x80] sm:$0xff]  ;;  %v677_v27 = vsel %vm669_vm0, %v675_v12, %v676_v16  ;;  %v683_v28 = vrot.slane %v629_v10, 1  ;;  %v685_v29 = vrot.slane %v630_v13, 1  ;;  %v638_v30 = vld [vmem:[%s4686_s24 + $0x88] sm:$0x3f]  ;;  %v679_v32 = vsel %vm669_vm0, %v676_v16, %v678_v17 }
  0x26   : > { %v639_v31 = vld [vmem:[%s4686_s24 + $0x90] sm:$0xff]  ;;  %v682_v33 = vsel %vm669_vm0, %v680_v22, %v681_v23  ;;  %v686_v34 = vrot.slane %v631_v14, 1  ;;  %v688_v35 = vrot.slane %v632_v15, 1  ;;  %v640_v36 = vld [vmem:[%s4686_s24 + $0x98] sm:$0xff]  ;;  %v4714_v37 = vld [vmem:[%s4686_s24 + $0xa0] sm:$0x3f] }
  0x27   : > { %v684_v38 = vsel %vm669_vm0, %v681_v23, %v683_v28  ;;  %v690_v39 = vrot.slane %v633_v18, 1  ;;  %v691_v40 = vrot.slane %v634_v19, 1  ;;  %v693_v41 = vrot.slane %v635_v20, 1 }
  0x28   : > { %v687_v42 = vsel %vm669_vm0, %v685_v29, %v686_v34  ;;  %v689_v43 = vsel %vm669_vm0, %v686_v34, %v688_v35  ;;  %v695_v44 = vrot.slane %v636_v24, 1  ;;  %v696_v45 = vrot.slane %v637_v25, 1 }
  0x29   : > { %v692_v46 = vsel %vm669_vm0, %v690_v39, %v691_v40  ;;  %v694_v47 = vsel %vm669_vm0, %v691_v40, %v693_v41  ;;  %v698_v48 = vrot.slane %v638_v30, 1  ;;  %v700_v49 = vrot.slane %v639_v31, 1 }
  0x2a   : > { %v697_v50 = vsel %vm669_vm0, %v695_v44, %v696_v45  ;;  %v701_v51 = vrot.slane %v640_v36, 1  ;;  %v703_v52 = vrot.slane %v4714_v37, 1  ;;  %v735_v53 = vsel %vm734_vm1, %v672_v21, 0.0 }
  0x2b   : > { %v699_v54 = vsel %vm669_vm0, %v696_v45, %v698_v48  ;;  %v736_v55 = vsel %vm734_vm1, %v674_v26, 0.0  ;;  %v739_v56 = vsel %vm738_vm2, %v673_v11, 0.0  ;;  %v747_v57 = vsel %vm734_vm1, %v677_v27, 0.0 }
  0x2c   : > { %v702_v58 = vsel %vm669_vm0, %v700_v49, %v701_v51  ;;  %v704_v59 = vsel %vm669_vm0, %v701_v51, %v703_v52  ;;  %v737_v60 = vadd.f32 %v736_v55, %v735_v53  ;;  %v748_v61 = vsel %vm734_vm1, %v679_v32, 0.0 }
  0x2d   : > { %v749_v62 = vadd.f32 %v748_v61, %v747_v57  ;;  %v750_v63 = vsel %vm738_vm2, %v678_v17, 0.0  ;;  %v758_v0 = vsel %vm734_vm1, %v682_v33, 0.0  ;;  %v759_v1 = vsel %vm734_vm1, %v684_v38, 0.0  ;;  %v642_v38 = vld [vmem:[%s4686_s24 + $0xa8] sm:$0xff] }
  0x2e   : > { %v740_v2 = vadd.f32 %v739_v56, %v737_v60  ;;  %v760_v3 = vadd.f32 %v759_v1, %v758_v0  ;;  %v761_v4 = vsel %vm738_vm2, %v683_v28, 0.0  ;;  %v769_v5 = vsel %vm734_vm1, %v687_v42, 0.0 }
  0x2f   : > { %v751_v6 = vadd.f32 %v750_v63, %v749_v62  ;;  %v770_v7 = vsel %vm734_vm1, %v689_v43, 0.0  ;;  %v772_v8 = vsel %vm738_vm2, %v688_v35, 0.0  ;;  %v780_v9 = vsel %vm734_vm1, %v692_v46, 0.0 }
  0x30   : > { %v741_v10 = vrot.slane %v740_v2, 4  ;;  %v762_v11 = vadd.f32 %v761_v4, %v760_v3  ;;  %v771_v12 = vadd.f32 %v770_v7, %v769_v5  ;;  %v781_v13 = vsel %vm734_vm1, %v694_v47, 0.0  ;;  %v643_v47 = vld [vmem:[%s4686_s24 + $0xb0] sm:$0xff] }
  0x31   : > { %v752_v14 = vrot.slane %v751_v6, 4  ;;  %v782_v15 = vadd.f32 %v781_v13, %v780_v9  ;;  %v783_v16 = vsel %vm738_vm2, %v693_v41, 0.0  ;;  %v791_v17 = vsel %vm734_vm1, %v697_v50, 0.0 }
  0x32   : > { %v742_v18 = vadd.f32 %v741_v10, %v740_v2  ;;  %v763_v19 = vrot.slane %v762_v11, 4  ;;  %v773_v20 = vadd.f32 %v772_v8, %v771_v12  ;;  %v792_v21 = vsel %vm734_vm1, %v699_v54, 0.0 }
  0x33   : > { %v753_v22 = vadd.f32 %v752_v14, %v751_v6  ;;  %v784_v23 = vadd.f32 %v783_v16, %v782_v15  ;;  %v793_v24 = vadd.f32 %v792_v21, %v791_v17  ;;  %v794_v25 = vsel %vm738_vm2, %v698_v48, 0.0 }
  0x34   : > { %v743_v26 = vrot.slane %v742_v18, 2  ;;  %v764_v27 = vadd.f32 %v763_v19, %v762_v11  ;;  %v774_v28 = vrot.slane %v773_v20, 4  ;;  %v802_v29 = vsel %vm734_vm1, %v702_v58, 0.0 }
  0x35   : > { %v754_v30 = vrot.slane %v753_v22, 2  ;;  %v785_v31 = vrot.slane %v784_v23, 4  ;;  %v795_v32 = vadd.f32 %v794_v25, %v793_v24  ;;  %v803_v33 = vsel %vm734_vm1, %v704_v59, 0.0  ;;  %v644_v59 = vld [vmem:[%s4686_s24 + $0xb8] sm:$0x3f]  ;;  %s614_s24 = scalar_lea.vmem %s5590_s23, %s4321_s28  ;;  %s5566_s23 = smov 96  }
  0x36   : > { %v744_v34 = vadd.f32 %v743_v26, %v742_v18  ;;  %v765_v35 = vrot.slane %v764_v27, 2  ;;  %v775_v36 = vadd.f32 %v774_v28, %v773_v20  ;;  %v804_v37 = vadd.f32 %v803_v33, %v802_v29  ;;  %v620_v29 = vld [vmem:[%s614_s24] sm:$0xff]  ;;  %s5593_s24 = sld [smem:[#allocation13_spill]] }
  0x37   : > { %v755_v39 = vadd.f32 %v754_v30, %v753_v22  ;;  %v786_v40 = vadd.f32 %v785_v31, %v784_v23  ;;  %v796_v41 = vrot.slane %v795_v32, 4  ;;  %v805_v42 = vsel %vm738_vm2, %v703_v52, 0.0 }
  0x38   : > { %v745_v43 = vrot.slane %v744_v34, 1  ;;  %v766_v44 = vadd.f32 %v765_v35, %v764_v27  ;;  %v776_v45 = vrot.slane %v775_v36, 2  ;;  %v806_v46 = vadd.f32 %v805_v42, %v804_v37  ;;  %v858_v42 = vld [vmem:[%s5592_s2 + $0x8] sm:$0x1]  ;;  %s5562_s2 = smov 80  }
  0x39   : > { %v756_v48 = vrot.slane %v755_v39, 1  ;;  %v787_v49 = vrot.slane %v786_v40, 2  ;;  %v797_v50 = vadd.f32 %v796_v41, %v795_v32  ;;  %v705_v51 = vrot.slane %v642_v38, 1  ;;  %v857_v32 = vld [vmem:[%s5591_s20] sm:$0xff]  ;;  %s5574_s20 = smov 48  }
  0x3a   : > { %v746_v53 = vadd.f32 %v745_v43, %v744_v34  ;;  %v767_v54 = vrot.slane %v766_v44, 1  ;;  %v777_v55 = vadd.f32 %v776_v45, %v775_v36  ;;  %v807_v56 = vrot.slane %v806_v46, 4 }
  0x3b   : > { %v757_v52 = vadd.f32 %v756_v48, %v755_v39  ;;  %v788_v57 = vadd.f32 %v787_v49, %v786_v40  ;;  %v798_v58 = vrot.slane %v797_v50, 2  ;;  %v706_v60 = vrot.slane %v643_v47, 1 }
  0x3c   : > { %v768_v61 = vadd.f32 %v767_v54, %v766_v44  ;;  %v778_v62 = vrot.slane %v777_v55, 1  ;;  %v808_v63 = vadd.f32 %v807_v56, %v806_v46  ;;  %v825_v0 = vmul.f32 0.04761905, %v746_v53 }
  0x3d   : > { %v789_v1 = vrot.slane %v788_v57, 1  ;;  %v799_v2 = vadd.f32 %v798_v58, %v797_v50  ;;  %v826_v3 = vmul.f32 0.04761905, %v757_v52  ;;  %v707_v4 = vsel %vm669_vm0, %v705_v51, %v706_v60  ;;  %v922_v52 = vld [vmem:[%s5540_s5 + $0x78] sm:$0xff]  ;;  %v920_v58 = vld [vmem:[%s5540_s5 + $0x68] sm:$0xff] }
  0x3e   : > { %v779_v5 = vadd.f32 %v778_v62, %v777_v55  ;;  %v809_v6 = vrot.slane %v808_v63, 2  ;;  %v827_v7 = vmul.f32 0.04761905, %v768_v61  ;;  %v708_v8 = vrot.slane %v644_v59, 1  ;;  %957 = vmatprep.subr.mxu0 %v922_v52  ;;  %v919_v59 = vld [vmem:[%s5540_s5 + $0x60] sm:$0xff]  ;;  %v917_v62 = vld [vmem:[%s5540_s5 + $0x50] sm:$0xff] }
  0x3f   : > { %v790_v9 = vadd.f32 %v789_v1, %v788_v57  ;;  %v800_v10 = vrot.slane %v799_v2, 1  ;;  %v842_v11 = vsel %vm841_vm3, %v826_v3, %v825_v0  ;;  %v813_v12 = vsel %vm734_vm1, %v707_v4, 0.0  ;;  %v921_v57 = vld [vmem:[%s5540_s5 + $0x70] sm:$0xff]  ;;  %v915_v0 = vld [vmem:[%s5540_s5 + $0x40] sm:$0xff]  ;;  %v914_v1 = vld [vmem:[%s5540_s5 + $0x38] sm:$0xff] }
  0x40   : > { %v810_v13 = vadd.f32 %v809_v6, %v808_v63  ;;  %v828_v14 = vmul.f32 0.04761905, %v779_v5  ;;  %v844_v15 = vsel %vm843_vm4, %v827_v7, %v842_v11  ;;  %v709_v16 = vsel %vm669_vm0, %v706_v60, %v708_v8  ;;  %958 = vmatpush1.msra.mxu0 %v921_v57  ;;  %v918_v60 = vld [vmem:[%s5540_s5 + $0x58] sm:$0xff]  ;;  %v916_v63 = vld [vmem:[%s5540_s5 + $0x48] sm:$0xff]  ;;  %v911_v4 = vld [vmem:[%s5540_s5 + $0x20] sm:$0xff] }
  0x41   : > { %v801_v17 = vadd.f32 %v800_v10, %v799_v2  ;;  %v829_v18 = vmul.f32 0.04761905, %v790_v9  ;;  %v814_v19 = vsel %vm734_vm1, %v709_v16, 0.0  ;;  %v816_v20 = vsel %vm738_vm2, %v708_v8, 0.0  ;;  %959 = vmatprep.subr.mxu0 %v920_v58  ;;  %v913_v2 = vld [vmem:[%s5540_s5 + $0x30] sm:$0xff]  ;;  %v912_v3 = vld [vmem:[%s5540_s5 + $0x28] sm:$0xff] }
  0x42   : > { %v811_v21 = vrot.slane %v810_v13, 1  ;;  %v846_v22 = vsel %vm845_vm5, %v828_v14, %v844_v15  ;;  %v815_v23 = vadd.f32 %v814_v19, %v813_v12  ;;  %v4523_v61 = vmov 0.0   ;;  %960 = vmatpush1.msra.mxu0 %v919_v59  ;;  %v910_v5 = vld [vmem:[%s5540_s5 + $0x18] sm:$0xff]  ;;  %v909_v6 = vld [vmem:[%s5540_s5 + $0x10] sm:$0xff]  ;;  %v908_v7 = vld [vmem:[%s5540_s5 + $0x8] sm:$0xff] }
  0x43   : > { %v830_v24 = vmul.f32 0.04761905, %v801_v17  ;;  %v848_v25 = vsel %vm847_vm6, %v829_v18, %v846_v22  ;;  %1005 = vmatprep.mubr.f32.mxu0 %v4523_v61  ;;  %961 = vmatprep.subr.mxu0 %v918_v60  ;;  %v907_v8 = vld [vmem:[%s5540_s5] sm:$0xff]  ;;  %vm4531_vm0 = vmmov 0   ;;  %vm3665_vm2 = vcmask 253952  }
  0x44   : > { %v812_v26 = vadd.f32 %v811_v21, %v810_v13  ;;  %v817_v27 = vadd.f32 %v816_v20, %v815_v23  ;;  %962 = vmatpush1.msra.mxu0 %v917_v62  ;;  %v3753_v16 = vld [vmem:[%s5593_s24] ss:$0 sm:$0xff] }
  0x45   : > { %v850_v28 = vsel %vm849_vm7, %v830_v24, %v848_v25  ;;  %963 = vmatprep.subr.mxu0 %v916_v63  ;;  %v3754_v18 = vld [vmem:[%s5594_s4] ss:$0 sm:$0xff]  ;;  %v925_v25 = vlaneseq }
  0x46   : > { %v831_v30 = vmul.f32 0.04761905, %v812_v26  ;;  %v818_v31 = vrot.slane %v817_v27, 4  ;;  %964 = vmatpush1.msra.mxu0 %v915_v0 }
  0x47   : > { %965 = vmatprep.subr.mxu0 %v914_v1  ;;  %v4846_v26 = vshrl.u32 %v925_v25, 7 }
  0x48   : > { %v852_v33 = vsel %vm851_vm8, %v831_v30, %v850_v28  ;;  %v819_v34 = vadd.f32 %v818_v31, %v817_v27  ;;  %966 = vmatpush1.msra.mxu0 %v913_v2  ;;  %v923_v28 = vld [vmem:[%s5541_s6] sm:$0x3] }
  0x49   : > { %v856_v35 = vsel %vm855_vm9, %v620_v29, %v852_v33  ;;  %967 = vmatprep.subr.mxu0 %v912_v3  ;;  %v927_v27 = vsub.s32 0, %v4846_v26  ;;  %v931_v33 = vsub.s32 1, %v4846_v26 }
  0x4a   : > { %v4773_v36 = vadd.f32 %v857_v32, %v856_v35  ;;  %v820_v37 = vrot.slane %v819_v34, 2  ;;  %968 = vmatpush1.msra.mxu0 %v911_v4 }
  0x4b   : > { %969 = vmatprep.subr.mxu0 %v910_v5  ;;  %v928_v29 = vrot.slane %v923_v28, %v927_v27  ;;  %v932_v35 = vrot.slane %v923_v28, %v931_v33 }
  0x4c   : > { %v863_v38 = vsel %vm734_vm1, %v4773_v36, 0.0  ;;  %v821_v39 = vadd.f32 %v820_v37, %v819_v34  ;;  %970 = vmatpush1.msra.mxu0 %v909_v6 }
  0x4d   : > { %864 = vadd.xlane.f32.xlu0 %v863_v38  ;;  %971 = vmatprep.subr.mxu0 %v908_v7 }
  0x4e   : > { %v822_v40 = vrot.slane %v821_v39, 1  ;;  %972 = vmatpush1.msra.mxu0 %v907_v8 }
  0x50   : > { %v823_v41 = vadd.f32 %v822_v40, %v821_v39 }
  0x52   : > { %v832_v43 = vmul.f32 0.04761905, %v823_v41 }
  0x54   : > { %v4780_v44 = vadd.f32 %v858_v42, %v832_v43 }
  0x56   : > { %v867_v45 = vsel %vm866_vm10, %v4780_v44, 0.0 }
  0x57   : > { %868 = vadd.xlane.f32.xlu0 %v867_v45 }
  0xd6   : > { %v865_v46 = vpop.xlane.xlu0 %864 }
  0xd7   : > { %v871_v47 = vmul.f32 0.015625, %v865_v46 }
  0xd9   : > { %v873_v48 = vsub.f32 %v4773_v36, %v871_v47 }
  0xdb   : > { %v875_v49 = vmul.f32 %v873_v48, %v873_v48 }
  0xdd   : > { %v877_v50 = vsel %vm734_vm1, %v875_v49, 0.0 }
  0xde   : > { %878 = vadd.xlane.f32.xlu1 %v877_v50 }
  0xe0   : > { %v869_v51 = vpop.xlane.xlu0 %868 }
  0xe1   : > { %v872_v53 = vmul.f32 0.015625, %v869_v51 }
  0xe3   : > { %v874_v54 = vsub.f32 %v4780_v44, %v872_v53 }
  0xe5   : > { %v876_v55 = vmul.f32 %v874_v54, %v874_v54 }
  0xe7   : > { %v880_v56 = vsel %vm866_vm10, %v876_v55, 0.0 }
  0xe8   : > { %881 = vadd.xlane.f32.xlu1 %v880_v56 }
 0x167   : > { %v879_v9 = vpop.xlane.xlu1 %878 }
 0x168   : > { %v883_v10 = vmul.f32 0.015625, %v879_v9 }
 0x16a   : > { %v885_v11 = vadd.f32 1e-05, %v883_v10 }
 0x16c   : > { %4371 = vrsqrt.f32 %v885_v11 }
 0x171   : > { %v882_v12 = vpop.xlane.xlu1 %881 }
 0x172   : > { %v884_v13 = vmul.f32 0.015625, %v882_v12 }
 0x174   : > { %v886_v14 = vadd.f32 1e-05, %v884_v13 }
 0x176   : > { %4373 = vrsqrt.f32 %v886_v14 }
 0x179   : > { %v4372_v15 = vpop.eup %4371 }
 0x17a   : > { %v889_v17 = vmul.f32 %v4372_v15, %v873_v48 }
 0x17c   : > { %v897_v19 = vmul.f32 %v3753_v16, %v889_v17 }
 0x17e   : > { %v905_v20 = vadd.f32 %v3754_v18, %v897_v19 }
 0x180   : > { %3755 = vmatmul.mubr.msk.f32.vlgmr.msra.gmra.mxu0 %vm734_vm1, %v905_v20 }
 0x181   : > { %1011 = vmatprep.mubr.f32.mxu0 %v4523_v61 }
 0x183   : > { %v4374_v21 = vpop.eup %4373 }
 0x184   : > { %v890_v22 = vmul.f32 %v4374_v21, %v874_v54 }
 0x186   : > { %v898_v23 = vmul.f32 %v3753_v16, %v890_v22 }
 0x188   : > { %v906_v24 = vadd.f32 %v3754_v18, %v898_v23 }
 0x18a   : > { %3756 = vmatmul.mubr.msk.f32.gmra.mxu0 %vm734_vm1, %v906_v24 }
 0x240   : > { %v1007_v30 = vpop.f32.mrf.mxu0 }
 0x241   : > { %v4854_v31 = vadd.f32 %v1007_v30, %v928_v29 }
 0x242   : > { %v1009_v32 = vpop.f32.mrf.mxu0 }
 0x243   : > { %1020 = vrot.lane.b32.xlu1 %v4854_v31, %s5572_s29  ;;  %4048 = vmatprep.mubr.msk.f32.mxu0 %vm1024_vm11, %v4854_v31  ;;  %v4869_v40 = vadd.f32 %v1009_v32, %v932_v35 }
 0x24a   : > { %v1013_v34 = vpop.f32.mrf.mxu0 }
 0x24b   : > { %v4863_v37 = vadd.f32 %v1013_v34, %v928_v29 }
 0x24c   : > { %v1015_v38 = vpop.f32.mrf.mxu0 }
 0x24d   : > { %v4865_v39 = vadd.f32 %v1015_v38, %v932_v35  ;;  %1022 = vrot.lane.b32.xlu0 %v4863_v37, %s5572_s29  ;;  %s5601_s29 = smov 80  }
 0x24f   : > { %4051 = vmatprep.subr.msk.mxu1 %vm855_vm9, %v4865_v39 }
 0x250   : > { %4052 = vmatpush3.msk.msra.mxu1 %vm855_vm9, %v4865_v39 }
 0x251   : > { %4053 = vmatprep.subr.mxu1 %v4869_v40 }
 0x252   : > { %4054 = vmatpush3.msra.mxu1 %v4869_v40 }
 0x2b5   : > { %v1021_v42 = vpop.permute.xlu1 %1020 }
 0x2bf   : > { %v1023_v41 = vpop.permute.xlu0 %1022 }
 0x2c0   : > { %4044 = vmatprep.subr.msk.mxu0 %vm1024_vm11, %v1023_v41 }
 0x2c1   : > { %4045 = vmatpush3.xpose.msk.msra.mxu0 %vm1024_vm11, %v1023_v41 }
 0x2c2   : > { %4046 = vmatprep.subr.msk.mxu0 %vm1024_vm11, %v1021_v42 }
 0x2c5   : > { %4047 = vmatpush3.xpose.msk.msra.mxu0 %vm1024_vm11, %v1021_v42 }
 0x2c8   : > { %4049 = vmatmul.mubr.msk.f32.vlgmr.msra.gmra.mxu0 %vm1024_vm11, %v4863_v37 }
 0x388   : > { %v4050_v43 = vpop.f32.mrf.mxu0 }
 0x389   : > { %v1113_v45 = vsel %vm1112_vm12, %v4050_v43, -inf }
 0x38a   : > { %1114 = vmax.xlane.f32.xlu0 %v1113_v45  ;;  %v1099_v46 = vpop.f32.mrf.mxu0 }
 0x38b   : > { %v1109_v47 = vsel %vm1108_vm13, %v1099_v46, -inf }
 0x38c   : > { %1110 = vmax.xlane.f32.xlu1 %v1109_v47 }
 0x413   : > { %v1115_v48 = vpop.xlane.xlu0 %1114 }
 0x414   : > { %v1117_v49 = vsub.f32 %v4050_v43, %v1115_v48 }
 0x415   : > { %v1111_v50 = vpop.xlane.xlu1 %1110 }
 0x416   : > { %v1120_v51 = vmul.f32 1.442695, %v1117_v49  ;;  %v1116_v53 = vsub.f32 %v1099_v46, %v1111_v50 }
 0x418   : > { %4375 = vpow2.f32 %v1120_v51  ;;  %v1118_v54 = vmul.f32 1.442695, %v1116_v53 }
 0x41a   : > { %4377 = vpow2.f32 %v1118_v54 }
 0x425   : > { %v4376_v55 = vpop.eup %4375 }
 0x426   : > { %v1125_v56 = vsel %vm1112_vm12, %v4376_v55, 0.0 }
 0x427   : > { %v4378_v52 = vpop.eup %4377  ;;  %1126 = vadd.xlane.f32.xlu1 %v1125_v56 }
 0x428   : > { %v1122_v57 = vsel %vm1108_vm13, %v4378_v52, 0.0 }
 0x429   : > { %1123 = vadd.xlane.f32.xlu0 %v1122_v57 }
 0x438   : > { %1220 = vrot.lane.b32.xlu1 %v4854_v31, %s5574_s20 }
 0x43c   : > { %1216 = vrot.lane.b32.xlu1 %v4854_v31, %s5570_s25 }
 0x43f   : > { %1222 = vrot.lane.b32.xlu0 %v4863_v37, %s5574_s20 }
 0x440   : > { %1424 = vrot.lane.b32.xlu1 %v4863_v37, %s5568_s22 }
 0x443   : > { %1218 = vrot.lane.b32.xlu0 %v4863_v37, %s5570_s25 }
 0x444   : > { %1422 = vrot.lane.b32.xlu1 %v4854_v31, %s5568_s22 }
 0x447   : > { %1418 = vrot.lane.b32.xlu0 %v4854_v31, %s5566_s23 }
 0x448   : > { %1420 = vrot.lane.b32.xlu1 %v4863_v37, %s5566_s23 }
 0x4b0   : > { %v1127_v58 = vpop.xlane.xlu1 %1126 }
 0x4b1   : > { %4379 = vrcp.f32 %v1127_v58 }
 0x4b2   : > { %v1124_v59 = vpop.xlane.xlu0 %1123 }
 0x4b3   : > { %4381 = vrcp.f32 %v1124_v59 }
 0x4b4   : > { %v1221_v62 = vpop.permute.xlu1 %1220 }
 0x4b6   : > { %v1223_v60 = vpop.permute.xlu0 %1222 }
 0x4b7   : > { %4058 = vmatprep.subr.msk.mxu1 %vm1024_vm11, %v1223_v60 }
 0x4b8   : > { %v1217_v1 = vpop.permute.xlu1 %1216 }
 0x4ba   : > { %v1219_v4 = vpop.permute.xlu0 %1218 }
 0x4bc   : > { %v1425_v5 = vpop.permute.xlu1 %1424 }
 0x4be   : > { %v4380_v63 = vpop.eup %4379  ;;  %v1419_v6 = vpop.permute.xlu0 %1418 }
 0x4bf   : > { %v1131_v3 = vmul.f32 %v4380_v63, %v4376_v55 }
 0x4c0   : > { %v4382_v0 = vpop.eup %4381  ;;  %v1423_v7 = vpop.permute.xlu1 %1422 }
 0x4c1   : > { %v1130_v2 = vmul.f32 %v4382_v0, %v4378_v52 }
 0x4c3   : > { %4055 = vmatprep.mubr.msk.f32.mxu1 %vm1108_vm13, %v1130_v2 }
 0x4c4   : > { %4056 = vmatmul.mubr.msk.f32.vlgmr.msra.gmra.mxu1 %vm1108_vm13, %v1131_v3  ;;  %v1421_v8 = vpop.permute.xlu1 %1420 }
 0x4c5   : > { %4059 = vmatpush3.xpose.msk.msra.mxu1 %vm1024_vm11, %v1223_v60  ;;  %4062 = vmatprep.mubr.msk.f32.mxu1 %vm1024_vm11, %v1217_v1 }
 0x4c6   : > { %4060 = vmatprep.subr.msk.mxu1 %vm1024_vm11, %v1221_v62 }
 0x4c9   : > { %4061 = vmatpush3.xpose.msk.msra.mxu1 %vm1024_vm11, %v1221_v62 }
 0x4ca   : > { %4072 = vmatprep.subr.msk.mxu1 %vm1024_vm11, %v1425_v5 }
 0x4cc   : > { %4063 = vmatmul.mubr.msk.f32.vlgmr.msra.gmra.mxu1 %vm1024_vm11, %v1219_v4 }
 0x4cd   : > { %4073 = vmatpush3.xpose.msk.msra.mxu1 %vm1024_vm11, %v1425_v5  ;;  %4076 = vmatprep.mubr.msk.f32.mxu1 %vm1024_vm11, %v1419_v6 }
 0x4ce   : > { %4074 = vmatprep.subr.msk.mxu1 %vm1024_vm11, %v1423_v7 }
 0x4d1   : > { %4075 = vmatpush3.xpose.msk.msra.mxu1 %vm1024_vm11, %v1423_v7 }
 0x4d4   : > { %4077 = vmatmul.mubr.msk.f32.vlgmr.msra.gmra.mxu1 %vm1024_vm11, %v1421_v8 }
 0x584   : > { %v4917_v9 = vpop.f32.mrf.mxu1 }
 0x586   : > { %v4919_v10 = vpop.f32.mrf.mxu1 }
 0x58c   : > { %v4064_v11 = vpop.f32.mrf.mxu1 }
 0x58d   : > { %v1310_v12 = vsel %vm1112_vm12, %v4064_v11, -inf }
 0x58e   : > { %1311 = vmax.xlane.f32.xlu1 %v1310_v12  ;;  %v1298_v13 = vpop.f32.mrf.mxu1 }
 0x58f   : > { %v1307_v14 = vsel %vm1108_vm13, %v1298_v13, -inf }
 0x590   : > { %1308 = vmax.xlane.f32.xlu0 %v1307_v14 }
 0x594   : > { %v4078_v15 = vpop.f32.mrf.mxu1 }
 0x595   : > { %v1512_v18 = vsel %vm1112_vm12, %v4078_v15, -inf }
 0x596   : > { %v1500_v16 = vpop.f32.mrf.mxu1 }
 0x597   : > { %v1509_v17 = vsel %vm1108_vm13, %v1500_v16, -inf }
 0x598   : > { %1510 = vmax.xlane.f32.xlu0 %v1509_v17 }
 0x59c   : > { %1513 = vmax.xlane.f32.xlu0 %v1512_v18 }
 0x59f   : > { %1330 = vrot.lane.b32.xlu1 %v4869_v40, %s5570_s25 }
 0x5a3   : > { %1533 = vrot.lane.b32.xlu1 %v4865_v39, %s5566_s23 }
 0x5a7   : > { %1531 = vrot.lane.b32.xlu1 %v4869_v40, %s5566_s23  ;;  %s5600_s23 = smov 16  }
 0x5b2   : > { %1332 = vrot.lane.b32.xlu0 %v4865_v39, %s5570_s25 }
 0x617   : > { %v1312_v19 = vpop.xlane.xlu1 %1311 }
 0x618   : > { %v1314_v20 = vsub.f32 %v4064_v11, %v1312_v19 }
 0x619   : > { %v1309_v21 = vpop.xlane.xlu0 %1308 }
 0x61a   : > { %v1317_v22 = vmul.f32 1.442695, %v1314_v20  ;;  %v1313_v23 = vsub.f32 %v1298_v13, %v1309_v21 }
 0x61b   : > { %v1331_v34 = vpop.permute.xlu1 %1330 }
 0x61c   : > { %4383 = vpow2.f32 %v1317_v22  ;;  %v1315_v24 = vmul.f32 1.442695, %v1313_v23 }
 0x61e   : > { %4385 = vpow2.f32 %v1315_v24 }
 0x61f   : > { %v1534_v46 = vpop.permute.xlu1 %1533 }
 0x621   : > { %v1511_v25 = vpop.xlane.xlu0 %1510 }
 0x622   : > { %v1515_v28 = vsub.f32 %v1500_v16, %v1511_v25 }
 0x623   : > { %v1532_v51 = vpop.permute.xlu1 %1531 }
 0x624   : > { %v1517_v29 = vmul.f32 1.442695, %v1515_v28 }
 0x625   : > { %v1514_v30 = vpop.xlane.xlu0 %1513 }
 0x626   : > { %4387 = vpow2.f32 %v1517_v29  ;;  %v1516_v32 = vsub.f32 %v4078_v15, %v1514_v30 }
 0x628   : > { %v1519_v35 = vmul.f32 1.442695, %v1516_v32 }
 0x629   : > { %v4384_v38 = vpop.eup %4383  ;;  %v1333_v41 = vpop.permute.xlu0 %1332 }
 0x62a   : > { %4389 = vpow2.f32 %v1519_v35  ;;  %4065 = vmatprep.subr.msk.mxu0 %vm855_vm9, %v1333_v41  ;;  %v1322_v42 = vsel %vm1112_vm12, %v4384_v38, 0.0  ;;  %v1857_v35 = vld [vmem:[%s5542_s7 + $0x28] sm:$0xff] }
 0x62b   : > { %v4386_v43 = vpop.eup %4385  ;;  %4066 = vmatpush3.msk.msra.mxu0 %vm855_vm9, %v1333_v41  ;;  %1323 = vadd.xlane.f32.xlu1 %v1322_v42  ;;  %v1855_v41 = vld [vmem:[%s5542_s7 + $0x18] sm:$0xff]  ;;  %v1854_v42 = vld [vmem:[%s5542_s7 + $0x10] sm:$0xff] }
 0x62c   : > { %4067 = vmatprep.subr.mxu0 %v1331_v34  ;;  %v1319_v45 = vsel %vm1108_vm13, %v4386_v43, 0.0 }
 0x62d   : > { %1320 = vadd.xlane.f32.xlu0 %v1319_v45  ;;  %4068 = vmatpush3.msra.mxu0 %v1331_v34  ;;  %v1858_v34 = vld [vmem:[%s5542_s7 + $0x30] sm:$0xff]  ;;  %v1852_v45 = vld [vmem:[%s5542_s7] sm:$0xff] }
 0x62e   : > { %4079 = vmatprep.subr.msk.mxu0 %vm855_vm9, %v1534_v46 }
 0x633   : > { %v4388_v47 = vpop.eup %4387 }
 0x634   : > { %v1521_v48 = vsel %vm1108_vm13, %v4388_v47, 0.0 }
 0x635   : > { %1522 = vadd.xlane.f32.xlu0 %v1521_v48 }
 0x637   : > { %v4390_v49 = vpop.eup %4389 }
 0x638   : > { %v1524_v50 = vsel %vm1112_vm12, %v4390_v49, 0.0 }
 0x639   : > { %1525 = vadd.xlane.f32.xlu1 %v1524_v50 }
 0x64a   : > { %1623 = vrot.lane.b32.xlu1 %v4854_v31, %s5564_s27 }
 0x64b   : > { %1625 = vrot.lane.b32.xlu0 %v4863_v37, %s5564_s27 }
 0x64e   : > { %1621 = vrot.lane.b32.xlu1 %v4863_v37, %s5562_s2 }
 0x64f   : > { %1619 = vrot.lane.b32.xlu0 %v4854_v31, %s5562_s2 }
 0x6b4   : > { %v1324_v53 = vpop.xlane.xlu1 %1323 }
 0x6b5   : > { %4391 = vrcp.f32 %v1324_v53 }
 0x6b6   : > { %v1321_v54 = vpop.xlane.xlu0 %1320 }
 0x6b7   : > { %4393 = vrcp.f32 %v1321_v54 }
 0x6be   : > { %v1523_v55 = vpop.xlane.xlu0 %1522 }
 0x6bf   : > { %4395 = vrcp.f32 %v1523_v55 }
 0x6c2   : > { %v1526_v56 = vpop.xlane.xlu1 %1525  ;;  %v4392_v52 = vpop.eup %4391 }
 0x6c3   : > { %4397 = vrcp.f32 %v1526_v56  ;;  %v1328_v59 = vmul.f32 %v4392_v52, %v4384_v38  ;;  %v1626_v31 = vpop.permute.xlu0 %1625  ;;  %v1856_v38 = vld [vmem:[%s5542_s7 + $0x20] sm:$0xff] }
 0x6c4   : > { %v4394_v57 = vpop.eup %4393 }
 0x6c5   : > { %v1327_v58 = vmul.f32 %v4394_v57, %v4386_v43  ;;  %v1853_v43 = vld [vmem:[%s5542_s7 + $0x8] sm:$0xff] }
 0x6c6   : > { %v1624_v1 = vpop.permute.xlu1 %1623 }
 0x6c7   : > { %4069 = vmatprep.mubr.msk.f32.mxu0 %vm1108_vm13, %v1327_v58  ;;  %v1620_v0 = vpop.permute.xlu0 %1619 }
 0x6c8   : > { %4070 = vmatmul.mubr.msk.f32.vlgmr.msra.gmra.mxu0 %vm1108_vm13, %v1328_v59 }
 0x6c9   : > { %4080 = vmatpush3.msk.msra.mxu0 %vm855_vm9, %v1534_v46 }
 0x6ca   : > { %4081 = vmatprep.subr.mxu0 %v1532_v51  ;;  %v1622_v2 = vpop.permute.xlu1 %1621 }
 0x6cb   : > { %4082 = vmatpush3.msra.mxu0 %v1532_v51 }
 0x6cc   : > { %v4396_v37 = vpop.eup %4395  ;;  %4086 = vmatprep.subr.msk.mxu0 %vm1024_vm11, %v1626_v31 }
 0x6cd   : > { %v1529_v60 = vmul.f32 %v4396_v37, %v4388_v47 }
 0x6cf   : > { %4083 = vmatprep.mubr.msk.f32.mxu0 %vm1108_vm13, %v1529_v60 }
 0x6d0   : > { %v4398_v62 = vpop.eup %4397 }
 0x6d1   : > { %v1530_v63 = vmul.f32 %v4398_v62, %v4390_v49 }
 0x6d3   : > { %4084 = vmatmul.mubr.msk.f32.vlgmr.msra.gmra.mxu0 %vm1108_vm13, %v1530_v63 }
 0x6d4   : > { %4087 = vmatpush3.xpose.msk.msra.mxu0 %vm1024_vm11, %v1626_v31  ;;  %4090 = vmatprep.mubr.msk.f32.mxu0 %vm1024_vm11, %v1620_v0 }
 0x6d5   : > { %4088 = vmatprep.subr.msk.mxu0 %vm1024_vm11, %v1624_v1 }
 0x6d8   : > { %4089 = vmatpush3.xpose.msk.msra.mxu0 %vm1024_vm11, %v1624_v1 }
 0x6db   : > { %4091 = vmatmul.mubr.msk.f32.vlgmr.msra.gmra.mxu0 %vm1024_vm11, %v1622_v2 }
 0x788   : > { %v4071_v3 = vpop.f32.mrf.mxu0 }
 0x78a   : > { %v1409_v4 = vpop.f32.mrf.mxu0 }
 0x793   : > { %v4085_v5 = vpop.f32.mrf.mxu0 }
 0x795   : > { %v1610_v6 = vpop.f32.mrf.mxu0 }
 0x79b   : > { %v4092_v7 = vpop.f32.mrf.mxu0 }
 0x79c   : > { %v1713_v8 = vsel %vm1112_vm12, %v4092_v7, -inf }
 0x79d   : > { %1714 = vmax.xlane.f32.xlu1 %v1713_v8  ;;  %v1701_v11 = vpop.f32.mrf.mxu0 }
 0x79e   : > { %v1710_v12 = vsel %vm1108_vm13, %v1701_v11, -inf }
 0x79f   : > { %1711 = vmax.xlane.f32.xlu0 %v1710_v12  ;;  %v2003_v12 = vld [vmem:[%s5546_s11 + $0x38] sm:$0xff] }
 0x7a0   : > { %4119 = vmatprep.subr.mxu0 %v2003_v12 }
 0x7a1   : > { %4120 = vmatpush3.msra.mxu0 %v2003_v12 }
 0x7ae   : > { %1732 = vrot.lane.b32.xlu1 %v4869_v40, %s5562_s2 }
 0x7b2   : > { %1822 = vrot.lane.b32.xlu1 %v1409_v4, %s5564_s27 }
 0x7b6   : > { %1824 = vrot.lane.b32.xlu1 %v4071_v3, %s5564_s27  ;;  %s5597_s27 = smov 112  }
 0x7ba   : > { %1832 = vrot.lane.b32.xlu1 %v4085_v5, %s5568_s22 }
 0x826   : > { %v1715_v13 = vpop.xlane.xlu1 %1714 }
 0x827   : > { %v1717_v14 = vsub.f32 %v4092_v7, %v1715_v13  ;;  %v2002_v13 = vld [vmem:[%s5546_s11 + $0x30] sm:$0xff] }
 0x828   : > { %v1712_v15 = vpop.xlane.xlu0 %1711  ;;  %4121 = vmatprep.subr.mxu0 %v2002_v13 }
 0x829   : > { %v1720_v16 = vmul.f32 1.442695, %v1717_v14  ;;  %v1716_v17 = vsub.f32 %v1701_v11, %v1712_v15  ;;  %v2001_v14 = vld [vmem:[%s5546_s11 + $0x28] sm:$0xff]  ;;  %4122 = vmatpush3.msra.mxu0 %v2002_v13  ;;  %v2000_v15 = vld [vmem:[%s5546_s11 + $0x20] sm:$0xff] }
 0x82a   : > { %v1733_v25 = vpop.permute.xlu1 %1732  ;;  %4123 = vmatprep.subr.mxu0 %v2001_v14 }
 0x82b   : > { %4399 = vpow2.f32 %v1720_v16  ;;  %v1718_v18 = vmul.f32 1.442695, %v1716_v17  ;;  %4124 = vmatpush3.msra.mxu0 %v2001_v14  ;;  %v1999_v16 = vld [vmem:[%s5546_s11 + $0x18] sm:$0xff]  ;;  %v1998_v17 = vld [vmem:[%s5546_s11 + $0x10] sm:$0xff] }
 0x82c   : > { %4125 = vmatprep.subr.mxu0 %v2000_v15 }
 0x82d   : > { %4401 = vpow2.f32 %v1718_v18  ;;  %4126 = vmatpush3.msra.mxu0 %v2000_v15  ;;  %v1997_v18 = vld [vmem:[%s5546_s11 + $0x8] sm:$0xff] }
 0x82e   : > { %v1823_v48 = vpop.permute.xlu1 %1822  ;;  %4127 = vmatprep.subr.mxu0 %v1999_v16 }
 0x82f   : > { %v1844_v53 = vsel %vm1024_vm11, %v4919_v10, %v1823_v48  ;;  %v3787_v10 = vld [vmem:[%s5543_s8] ss:$0 sm:$0xff]  ;;  %4128 = vmatpush3.msra.mxu0 %v1999_v16  ;;  %v2120_v48 = vld [vmem:[%s5548_s13 + $0x50] sm:$0xff] }
 0x830   : > { %4129 = vmatprep.subr.mxu0 %v1998_v17 }
 0x831   : > { %4130 = vmatpush3.msra.mxu0 %v1998_v17 }
 0x832   : > { %v1825_v49 = vpop.permute.xlu1 %1824  ;;  %4131 = vmatprep.subr.mxu0 %v1997_v18 }
 0x833   : > { %v1845_v55 = vsel %vm1024_vm11, %v4917_v9, %v1825_v49  ;;  %4132 = vmatpush3.msra.mxu0 %v1997_v18  ;;  %v2119_v49 = vld [vmem:[%s5548_s13 + $0x48] sm:$0xff]  ;;  %v3793_v18 = vld [vmem:[%s5549_s14] ss:$0 sm:$0xff] }
 0x836   : > { %v1833_v50 = vpop.permute.xlu1 %1832 }
 0x837   : > { %v1848_v57 = vsel %vm1846_vm14, %v1845_v55, %v1833_v50  ;;  %v2118_v50 = vld [vmem:[%s5548_s13 + $0x40] sm:$0xff] }
 0x838   : > { %v4400_v19 = vpop.eup %4399  ;;  %v2114_v55 = vld [vmem:[%s5548_s13 + $0x20] sm:$0xff] }
 0x839   : > { %v1725_v20 = vsel %vm1112_vm12, %v4400_v19, 0.0 }
 0x83a   : > { %v4402_v21 = vpop.eup %4401  ;;  %1726 = vadd.xlane.f32.xlu0 %v1725_v20 }
 0x83b   : > { %v1722_v40 = vsel %vm1108_vm13, %v4402_v21, 0.0 }
 0x83e   : > { %1723 = vadd.xlane.f32.xlu0 %v1722_v40 }
 0x854   : > { %1734 = vrot.lane.b32.xlu0 %v4865_v39, %s5562_s2  ;;  %v1859_v39 = vld [vmem:[%s5542_s7 + $0x38] sm:$0xff]  ;;  %s5598_s2 = smov 32  }
 0x858   : > { %1830 = vrot.lane.b32.xlu0 %v1610_v6, %s5568_s22  ;;  %s5599_s22 = smov 96  }
 0x8c3   : > { %v1727_v22 = vpop.xlane.xlu0 %1726 }
 0x8c4   : > { %4403 = vrcp.f32 %v1727_v22 }
 0x8c7   : > { %v1724_v23 = vpop.xlane.xlu0 %1723 }
 0x8c8   : > { %4405 = vrcp.f32 %v1724_v23 }
 0x8cb   : > { %v1735_v24 = vpop.permute.xlu0 %1734 }
 0x8cc   : > { %4093 = vmatprep.subr.msk.mxu1 %vm855_vm9, %v1735_v24 }
 0x8cd   : > { %4094 = vmatpush3.msk.msra.mxu1 %vm855_vm9, %v1735_v24 }
 0x8ce   : > { %4095 = vmatprep.subr.mxu1 %v1733_v25 }
 0x8cf   : > { %4096 = vmatpush3.msra.mxu1 %v1733_v25  ;;  %v1831_v51 = vpop.permute.xlu0 %1830 }
 0x8d0   : > { %4100 = vmatprep.subr.mxu1 %v1859_v39  ;;  %v1847_v56 = vsel %vm1846_vm14, %v1844_v53, %v1831_v51  ;;  %v2117_v51 = vld [vmem:[%s5548_s13 + $0x38] sm:$0xff]  ;;  %v2116_v53 = vld [vmem:[%s5548_s13 + $0x30] sm:$0xff] }
 0x8d1   : > { %v4404_v28 = vpop.eup %4403 }
 0x8d2   : > { %v1731_v32 = vmul.f32 %v4404_v28, %v4400_v19  ;;  %v1996_v19 = vld [vmem:[%s5546_s11] sm:$0xff] }
 0x8d3   : > { %4133 = vmatprep.subr.mxu0 %v1996_v19  ;;  %v3788_v28 = vld [vmem:[%s5544_s9] ss:$0 sm:$0xff] }
 0x8d4   : > { %4134 = vmatpush3.msra.mxu0 %v1996_v19 }
 0x8d5   : > { %v4406_v29 = vpop.eup %4405 }
 0x8d6   : > { %v1730_v30 = vmul.f32 %v4406_v29, %v4402_v21 }
 0x8d8   : > { %4097 = vmatprep.mubr.msk.f32.mxu1 %vm1108_vm13, %v1730_v30  ;;  %v3789_v30 = vld [vmem:[%s5545_s10] ss:$0 sm:$0xff] }
 0x8d9   : > { %4098 = vmatmul.mubr.msk.f32.vlgmr.msra.gmra.mxu1 %vm1108_vm13, %v1731_v32 }
 0x8da   : > { %4101 = vmatpush3.msra.mxu1 %v1859_v39 }
 0x8db   : > { %4102 = vmatprep.subr.mxu1 %v1858_v34 }
 0x8dc   : > { %4103 = vmatpush3.msra.mxu1 %v1858_v34 }
 0x8dd   : > { %4104 = vmatprep.subr.mxu1 %v1857_v35 }
 0x8de   : > { %4105 = vmatpush3.msra.mxu1 %v1857_v35 }
 0x8df   : > { %4106 = vmatprep.subr.mxu1 %v1856_v38 }
 0x8e0   : > { %4107 = vmatpush3.msra.mxu1 %v1856_v38 }
 0x8e1   : > { %4108 = vmatprep.subr.mxu1 %v1855_v41 }
 0x8e2   : > { %4109 = vmatpush3.msra.mxu1 %v1855_v41 }
 0x8e3   : > { %4110 = vmatprep.subr.mxu1 %v1854_v42 }
 0x8e4   : > { %4111 = vmatpush3.msra.mxu1 %v1854_v42  ;;  %v2125_v42 = vld [vmem:[%s5548_s13 + $0x78] sm:$0xff] }
 0x8e5   : > { %4112 = vmatprep.subr.mxu1 %v1853_v43 }
 0x8e6   : > { %4113 = vmatpush3.msra.mxu1 %v1853_v43  ;;  %v2124_v43 = vld [vmem:[%s5548_s13 + $0x70] sm:$0xff] }
 0x8e7   : > { %4114 = vmatprep.subr.mxu1 %v1852_v45 }
 0x8e8   : > { %4115 = vmatpush3.msra.mxu1 %v1852_v45  ;;  %v2123_v45 = vld [vmem:[%s5548_s13 + $0x68] sm:$0xff] }
 0x8e9   : > { %4138 = vmatprep.subr.mxu1 %v2125_v42 }
 0x999   : > { %v4099_v46 = vpop.f32.mrf.mxu1 }
 0x99a   : > { %1840 = vrot.lane.b32.xlu1 %v4099_v46, %s5574_s20  ;;  %v2122_v46 = vld [vmem:[%s5548_s13 + $0x60] sm:$0xff] }
 0x99b   : > { %v1811_v47 = vpop.f32.mrf.mxu1 }
 0x99c   : > { %1838 = vrot.lane.b32.xlu0 %v1811_v47, %s5574_s20  ;;  %v2121_v47 = vld [vmem:[%s5548_s13 + $0x58] sm:$0xff]  ;;  %s5596_s20 = smov 48  }
 0xa0c   : > { %v1841_v54 = vpop.permute.xlu1 %1840 }
 0xa0d   : > { %v1851_v59 = vsel %vm1849_vm15, %v1848_v57, %v1841_v54  ;;  %v2115_v54 = vld [vmem:[%s5548_s13 + $0x28] sm:$0xff] }
 0xa0e   : > { %v1839_v52 = vpop.permute.xlu0 %1838  ;;  %v2111_v57 = vld [vmem:[%s5548_s13 + $0x8] sm:$0xff] }
 0xa0f   : > { %v1850_v58 = vsel %vm1849_vm15, %v1847_v56, %v1839_v52  ;;  %v2113_v56 = vld [vmem:[%s5548_s13 + $0x18] sm:$0xff]  ;;  %v2112_v52 = vld [vmem:[%s5548_s13 + $0x10] sm:$0xff] }
 0xa10   : > { %4116 = vmatprep.mubr.msk.f32.mxu1 %vm734_vm1, %v1850_v58  ;;  %v2110_v58 = vld [vmem:[%s5548_s13] sm:$0xff] }
 0xa11   : > { %4117 = vmatmul.mubr.msk.f32.vlgmr.msra.gmra.mxu1 %vm734_vm1, %v1851_v59  ;;  %v3790_v59 = vld [vmem:[%s5547_s12] ss:$0 sm:$0xff] }
 0xa12   : > { %4139 = vmatpush3.msra.mxu1 %v2125_v42  ;;  %v3811_v42 = vld [vmem:[%s5540_s5 + $0xe8] sm:$0xff] }
 0xa13   : > { %4140 = vmatprep.subr.mxu1 %v2124_v43 }
 0xa14   : > { %4141 = vmatpush3.msra.mxu1 %v2124_v43  ;;  %v3810_v43 = vld [vmem:[%s5540_s5 + $0xe0] sm:$0xff] }
 0xa15   : > { %4142 = vmatprep.subr.mxu1 %v2123_v45 }
 0xa16   : > { %4143 = vmatpush3.msra.mxu1 %v2123_v45  ;;  %v3809_v45 = vld [vmem:[%s5540_s5 + $0xd8] sm:$0xff] }
 0xa17   : > { %4144 = vmatprep.subr.mxu1 %v2122_v46 }
 0xa18   : > { %4145 = vmatpush3.msra.mxu1 %v2122_v46  ;;  %v3808_v46 = vld [vmem:[%s5540_s5 + $0xd0] sm:$0xff] }
 0xa19   : > { %4146 = vmatprep.subr.mxu1 %v2121_v47 }
 0xa1a   : > { %4147 = vmatpush3.msra.mxu1 %v2121_v47  ;;  %v3807_v47 = vld [vmem:[%s5540_s5 + $0xc8] sm:$0xff] }
 0xa1b   : > { %4148 = vmatprep.subr.mxu1 %v2120_v48 }
 0xa1c   : > { %4149 = vmatpush3.msra.mxu1 %v2120_v48  ;;  %v3806_v48 = vld [vmem:[%s5540_s5 + $0xc0] sm:$0xff] }
 0xa1d   : > { %4150 = vmatprep.subr.mxu1 %v2119_v49 }
 0xa1e   : > { %4151 = vmatpush3.msra.mxu1 %v2119_v49  ;;  %v3805_v49 = vld [vmem:[%s5540_s5 + $0xb8] sm:$0xff] }
 0xa1f   : > { %4152 = vmatprep.subr.mxu1 %v2118_v50 }
 0xa20   : > { %4153 = vmatpush3.msra.mxu1 %v2118_v50  ;;  %v3804_v50 = vld [vmem:[%s5540_s5 + $0xb0] sm:$0xff] }
 0xa21   : > { %4154 = vmatprep.subr.mxu1 %v2117_v51 }
 0xa22   : > { %4155 = vmatpush3.msra.mxu1 %v2117_v51  ;;  %v3803_v51 = vld [vmem:[%s5540_s5 + $0xa8] sm:$0xff] }
 0xa23   : > { %4156 = vmatprep.subr.mxu1 %v2116_v53 }
 0xa24   : > { %4157 = vmatpush3.msra.mxu1 %v2116_v53  ;;  %v3802_v53 = vld [vmem:[%s5540_s5 + $0xa0] sm:$0xff] }
 0xa25   : > { %4158 = vmatprep.subr.mxu1 %v2115_v54 }
 0xa26   : > { %4159 = vmatpush3.msra.mxu1 %v2115_v54  ;;  %v3801_v54 = vld [vmem:[%s5540_s5 + $0x98] sm:$0xff] }
 0xa27   : > { %4160 = vmatprep.subr.mxu1 %v2114_v55 }
 0xa28   : > { %4161 = vmatpush3.msra.mxu1 %v2114_v55  ;;  %v3800_v55 = vld [vmem:[%s5540_s5 + $0x90] sm:$0xff] }
 0xa29   : > { %4162 = vmatprep.subr.mxu1 %v2113_v56 }
 0xa2a   : > { %4163 = vmatpush3.msra.mxu1 %v2113_v56  ;;  %v3799_v56 = vld [vmem:[%s5540_s5 + $0x88] sm:$0xff] }
 0xa2b   : > { %4164 = vmatprep.subr.mxu1 %v2112_v52 }
 0xa2c   : > { %4165 = vmatpush3.msra.mxu1 %v2112_v52  ;;  %v3798_v52 = vld [vmem:[%s5540_s5 + $0x80] sm:$0xff] }
 0xa2d   : > { %4166 = vmatprep.subr.mxu1 %v2111_v57 }
 0xa2e   : > { %4167 = vmatpush3.msra.mxu1 %v2111_v57 }
 0xa2f   : > { %4168 = vmatprep.subr.mxu1 %v2110_v58 }
 0xa30   : > { %4169 = vmatpush3.msra.mxu1 %v2110_v58 }
 0xad1   : > { %v4118_v31 = vpop.f32.mrf.mxu1 }
 0xad2   : > { %v1942_v9 = vadd.f32 %v4118_v31, %v4780_v44 }
 0xad3   : > { %v1932_v37 = vpop.f32.mrf.mxu1 }
 0xad4   : > { %v5015_v60 = vadd.f32 %v3787_v10, %v1942_v9  ;;  %v1941_v62 = vadd.f32 %v1932_v37, %v4773_v36 }
 0xad6   : > { %v5018_v63 = vadd.f32 %v3787_v10, %v1941_v62  ;;  %v1957_v0 = vsel %vm866_vm10, %v5015_v60, 0.0 }
 0xad7   : > { %1958 = vadd.xlane.f32.xlu1 %v1957_v0 }
 0xad8   : > { %v1954_v1 = vsel %vm734_vm1, %v5018_v63, 0.0 }
 0xad9   : > { %1955 = vadd.xlane.f32.xlu0 %v1954_v1 }
 0xb60   : > { %v1959_v2 = vpop.xlane.xlu1 %1958 }
 0xb61   : > { %v1961_v3 = vmul.f32 0.015625, %v1959_v2 }
 0xb62   : > { %v1956_v4 = vpop.xlane.xlu0 %1955 }
 0xb63   : > { %v1960_v5 = vmul.f32 0.015625, %v1956_v4  ;;  %v1963_v44 = vsub.f32 %v5015_v60, %v1961_v3 }
 0xb65   : > { %v1962_v6 = vsub.f32 %v5018_v63, %v1960_v5  ;;  %v1965_v8 = vmul.f32 %v1963_v44, %v1963_v44 }
 0xb67   : > { %v1964_v7 = vmul.f32 %v1962_v6, %v1962_v6  ;;  %v1969_v11 = vsel %vm866_vm10, %v1965_v8, 0.0 }
 0xb69   : > { %v1966_v36 = vsel %vm734_vm1, %v1964_v7, 0.0 }
 0xb6a   : > { %1967 = vadd.xlane.f32.xlu0 %v1966_v36 }
 0xb6e   : > { %1970 = vadd.xlane.f32.xlu0 %v1969_v11 }
 0xbf3   : > { %v1968_v20 = vpop.xlane.xlu0 %1967 }
 0xbf4   : > { %v1972_v21 = vmul.f32 0.015625, %v1968_v20 }
 0xbf6   : > { %v1974_v40 = vadd.f32 1e-05, %v1972_v21 }
 0xbf7   : > { %v1971_v22 = vpop.xlane.xlu0 %1970 }
 0xbf8   : > { %4407 = vrsqrt.f32 %v1974_v40  ;;  %v1973_v23 = vmul.f32 0.015625, %v1971_v22 }
 0xbfa   : > { %v1975_v24 = vadd.f32 1e-05, %v1973_v23 }
 0xbfc   : > { %4409 = vrsqrt.f32 %v1975_v24 }
 0xc05   : > { %v4408_v25 = vpop.eup %4407 }
 0xc06   : > { %v1978_v29 = vmul.f32 %v4408_v25, %v1962_v6 }
 0xc08   : > { %v1986_v32 = vmul.f32 %v3788_v28, %v1978_v29 }
 0xc09   : > { %v4410_v39 = vpop.eup %4409 }
 0xc0a   : > { %v1979_v34 = vmul.f32 %v4410_v39, %v1963_v44  ;;  %v1994_v35 = vadd.f32 %v3789_v30, %v1986_v32 }
 0xc0c   : > { %v1987_v38 = vmul.f32 %v3788_v28, %v1979_v34  ;;  %4135 = vmatprep.mubr.msk.f32.mxu0 %vm734_vm1, %v1994_v35 }
 0xc0e   : > { %v1995_v41 = vadd.f32 %v3789_v30, %v1987_v38  ;;  %v3813_v38 = vld [vmem:[%s5540_s5 + $0xf8] sm:$0xff] }
 0xc0f   : > { %2310 = vmatprep.subr.mxu0 %v3813_v38 }
 0xc10   : > { %4136 = vmatmul.mubr.msk.f32.vlgmr.msra.gmra.mxu0 %vm734_vm1, %v1995_v41  ;;  %v3812_v41 = vld [vmem:[%s5540_s5 + $0xf0] sm:$0xff] }
 0xc11   : > { %2358 = vmatprep.mubr.f32.mxu0 %v4523_v61  ;;  %2311 = vmatpush1.msra.mxu0 %v3812_v41 }
 0xc12   : > { %2312 = vmatprep.subr.mxu0 %v3811_v42 }
 0xc13   : > { %2313 = vmatpush1.msra.mxu0 %v3810_v43 }
 0xc14   : > { %2314 = vmatprep.subr.mxu0 %v3809_v45 }
 0xc15   : > { %2315 = vmatpush1.msra.mxu0 %v3808_v46 }
 0xc16   : > { %2316 = vmatprep.subr.mxu0 %v3807_v47 }
 0xc17   : > { %2317 = vmatpush1.msra.mxu0 %v3806_v48 }
 0xc18   : > { %2318 = vmatprep.subr.mxu0 %v3805_v49 }
 0xc19   : > { %2319 = vmatpush1.msra.mxu0 %v3804_v50 }
 0xc1a   : > { %2320 = vmatprep.subr.mxu0 %v3803_v51 }
 0xc1b   : > { %2321 = vmatpush1.msra.mxu0 %v3802_v53 }
 0xc1c   : > { %2322 = vmatprep.subr.mxu0 %v3801_v54 }
 0xc1d   : > { %2323 = vmatpush1.msra.mxu0 %v3800_v55 }
 0xc1e   : > { %2324 = vmatprep.subr.mxu0 %v3799_v56 }
 0xc1f   : > { %2325 = vmatpush1.msra.mxu0 %v3798_v52 }
 0xcd0   : > { %v4137_v31 = vpop.f32.mrf.mxu0 }
 0xcd1   : > { %v2089_v10 = vadd.f32 %v4137_v31, %v3790_v59 }
 0xcd2   : > { %v2083_v9 = vpop.f32.mrf.mxu0 }
 0xcd3   : > { %v2093_v37 = vmul.f32 %v2089_v10, %v2089_v10  ;;  %v2084_v62 = vadd.f32 %v3790_v59, %v2083_v9 }
 0xcd5   : > { %v2095_v0 = vmul.f32 %v2093_v37, %v2089_v10  ;;  %v2092_v1 = vmul.f32 %v2084_v62, %v2084_v62 }
 0xcd7   : > { %v2097_v2 = vmul.f32 0.044715, %v2095_v0  ;;  %v2094_v3 = vmul.f32 %v2092_v1, %v2084_v62 }
 0xcd9   : > { %v2099_v4 = vadd.f32 %v2097_v2, %v2089_v10  ;;  %v2096_v5 = vmul.f32 0.044715, %v2094_v3  ;;  %v3796_v2 = vld [vmem:[%s5593_s24 + $0x1] ss:$0 sm:$0xff] }
 0xcdb   : > { %v2101_v44 = vmul.f32 0.7978846, %v2099_v4  ;;  %v2098_v6 = vadd.f32 %v2096_v5, %v2084_v62  ;;  %v3797_v4 = vld [vmem:[%s5594_s4 + $0x1] ss:$0 sm:$0xff] }
 0xcdd   : > { %4411 = vtanh.f32 %v2101_v44  ;;  %v2100_v7 = vmul.f32 0.7978846, %v2098_v6 }
 0xcdf   : > { %4413 = vtanh.f32 %v2100_v7  ;;  %v3814_v7 = vld [vmem:[%s5541_s6 + $0x2] sm:$0x3] }
 0xcea   : > { %v4412_v36 = vpop.eup %4411 }
 0xceb   : > { %v2105_v8 = vadd.f32 1.0, %v4412_v36  ;;  %v2281_v36 = vrot.slane %v3814_v7, %v927_v27 }
 0xcec   : > { %v4414_v11 = vpop.eup %4413 }
 0xced   : > { %v2104_v12 = vadd.f32 1.0, %v4414_v11  ;;  %v2107_v13 = vmul.f32 0.5, %v2105_v8 }
 0xcef   : > { %v2106_v14 = vmul.f32 0.5, %v2104_v12  ;;  %v2109_v16 = vmul.f32 %v2107_v13, %v2089_v10 }
 0xcf1   : > { %v2108_v15 = vmul.f32 %v2106_v14, %v2084_v62 }
 0xcf3   : > { %4170 = vmatprep.mubr.f32.mxu1 %v2108_v15 }
 0xcf4   : > { %4171 = vmatmul.mubr.f32.vlgmr.msra.gmra.mxu1 %v2109_v16 }
 0xdb4   : > { %v4172_v17 = vpop.f32.mrf.mxu1 }
 0xdb5   : > { %v2202_v19 = vadd.f32 %v4172_v17, %v5015_v60  ;;  %v2285_v17 = vrot.slane %v3814_v7, %v931_v33 }
 0xdb6   : > { %v2192_v20 = vpop.f32.mrf.mxu1 }
 0xdb7   : > { %v5116_v21 = vadd.f32 %v3793_v18, %v2202_v19  ;;  %v2201_v40 = vadd.f32 %v2192_v20, %v5018_v63 }
 0xdb9   : > { %v5119_v22 = vadd.f32 %v3793_v18, %v2201_v40  ;;  %v2219_v23 = vsel %vm866_vm10, %v5116_v21, 0.0 }
 0xdba   : > { %2220 = vadd.xlane.f32.xlu1 %v2219_v23 }
 0xdbb   : > { %v2216_v24 = vsel %vm734_vm1, %v5119_v22, 0.0 }
 0xdbc   : > { %2217 = vadd.xlane.f32.xlu0 %v2216_v24 }
 0xe43   : > { %v2221_v25 = vpop.xlane.xlu1 %2220 }
 0xe44   : > { %v2223_v28 = vmul.f32 0.015625, %v2221_v25 }
 0xe45   : > { %v2218_v29 = vpop.xlane.xlu0 %2217 }
 0xe46   : > { %v2225_v60 = vsub.f32 %v5116_v21, %v2223_v28  ;;  %v2222_v30 = vmul.f32 0.015625, %v2218_v29 }
 0xe48   : > { %v2224_v32 = vsub.f32 %v5119_v22, %v2222_v30  ;;  %v2227_v39 = vmul.f32 %v2225_v60, %v2225_v60 }
 0xe4a   : > { %v2231_v63 = vsel %vm866_vm10, %v2227_v39, 0.0  ;;  %v2226_v34 = vmul.f32 %v2224_v32, %v2224_v32 }
 0xe4b   : > { %2232 = vadd.xlane.f32.xlu1 %v2231_v63 }
 0xe4c   : > { %v2228_v35 = vsel %vm734_vm1, %v2226_v34, 0.0 }
 0xe4d   : > { %2229 = vadd.xlane.f32.xlu0 %v2228_v35 }
 0xed4   : > { %v2233_v57 = vpop.xlane.xlu1 %2232 }
 0xed5   : > { %v2235_v58 = vmul.f32 0.015625, %v2233_v57 }
 0xed6   : > { %v2230_v59 = vpop.xlane.xlu0 %2229 }
 0xed7   : > { %v2237_v31 = vadd.f32 1e-05, %v2235_v58  ;;  %v2234_v10 = vmul.f32 0.015625, %v2230_v59 }
 0xed9   : > { %4415 = vrsqrt.f32 %v2237_v31  ;;  %v2236_v9 = vadd.f32 1e-05, %v2234_v10 }
 0xedb   : > { %4417 = vrsqrt.f32 %v2236_v9 }
 0xee6   : > { %v4416_v37 = vpop.eup %4415 }
 0xee7   : > { %v2241_v1 = vmul.f32 %v4416_v37, %v2225_v60 }
 0xee8   : > { %v4418_v62 = vpop.eup %4417 }
 0xee9   : > { %v2240_v0 = vmul.f32 %v4418_v62, %v2224_v32  ;;  %v2249_v44 = vmul.f32 %v3796_v2, %v2241_v1 }
 0xeeb   : > { %v2248_v3 = vmul.f32 %v3796_v2, %v2240_v0  ;;  %v2257_v6 = vadd.f32 %v3797_v4, %v2249_v44 }
 0xeed   : > { %v2256_v5 = vadd.f32 %v3797_v4, %v2248_v3 }
 0xeef   : > { %3815 = vmatmul.mubr.msk.f32.vlgmr.msra.gmra.mxu0 %vm734_vm1, %v2256_v5 }
 0xef0   : > { %2364 = vmatprep.mubr.f32.mxu0 %v4523_v61 }
 0xef3   : > { %3816 = vmatmul.mubr.msk.f32.gmra.mxu0 %vm734_vm1, %v2257_v6 }
 0xfaf   : > { %v2360_v8 = vpop.f32.mrf.mxu0 }
 0xfb0   : > { %v5191_v11 = vadd.f32 %v2360_v8, %v2281_v36 }
 0xfb1   : > { %v2362_v12 = vpop.f32.mrf.mxu0 }
 0xfb2   : > { %2373 = vrot.lane.b32.xlu1 %v5191_v11, %s5595_s0  ;;  %4177 = vmatprep.mubr.msk.f32.mxu0 %vm1024_vm11, %v5191_v11  ;;  %v5211_v19 = vadd.f32 %v2362_v12, %v2285_v17 }
 0xfb3   : > { %v2366_v13 = vpop.f32.mrf.mxu0 }
 0xfb4   : > { %v5197_v14 = vadd.f32 %v2366_v13, %v2281_v36 }
 0xfb5   : > { %v2368_v27 = vpop.f32.mrf.mxu0 }
 0xfb6   : > { %2375 = vrot.lane.b32.xlu0 %v5197_v14, %s5595_s0  ;;  %v5206_v18 = vadd.f32 %v2368_v27, %v2285_v17 }
0x1024   : > { %v2374_v16 = vpop.permute.xlu1 %2373 }
0x1028   : > { %v2376_v15 = vpop.permute.xlu0 %2375 }
0x1029   : > { %4173 = vmatprep.subr.msk.mxu0 %vm1024_vm11, %v2376_v15 }
0x102a   : > { %4174 = vmatpush3.xpose.msk.msra.mxu0 %vm1024_vm11, %v2376_v15 }
0x102b   : > { %4175 = vmatprep.subr.msk.mxu0 %vm1024_vm11, %v2374_v16 }
0x102e   : > { %4176 = vmatpush3.xpose.msk.msra.mxu0 %vm1024_vm11, %v2374_v16 }
0x102f   : > { %4180 = vmatprep.subr.msk.mxu0 %vm855_vm9, %v5206_v18 }
0x1031   : > { %4178 = vmatmul.mubr.msk.f32.vlgmr.msra.gmra.mxu0 %vm1024_vm11, %v5197_v14 }
0x1032   : > { %4181 = vmatpush3.msk.msra.mxu0 %vm855_vm9, %v5206_v18 }
0x1033   : > { %4182 = vmatprep.subr.mxu0 %v5211_v19 }
0x1034   : > { %4183 = vmatpush3.msra.mxu0 %v5211_v19 }
0x10f1   : > { %v4179_v26 = vpop.f32.mrf.mxu0 }
0x10f2   : > { %v2463_v33 = vsel %vm1112_vm12, %v4179_v26, -inf }
0x10f3   : > { %2464 = vmax.xlane.f32.xlu0 %v2463_v33  ;;  %v2451_v20 = vpop.f32.mrf.mxu0 }
0x10f4   : > { %v2460_v40 = vsel %vm1108_vm13, %v2451_v20, -inf }
0x10f5   : > { %2461 = vmax.xlane.f32.xlu1 %v2460_v40 }
0x117c   : > { %v2465_v23 = vpop.xlane.xlu0 %2464 }
0x117d   : > { %v2467_v24 = vsub.f32 %v4179_v26, %v2465_v23 }
0x117e   : > { %v2462_v25 = vpop.xlane.xlu1 %2461 }
0x117f   : > { %v2470_v28 = vmul.f32 1.442695, %v2467_v24  ;;  %v2466_v29 = vsub.f32 %v2451_v20, %v2462_v25 }
0x1181   : > { %4419 = vpow2.f32 %v2470_v28  ;;  %v2468_v60 = vmul.f32 1.442695, %v2466_v29 }
0x1183   : > { %4421 = vpow2.f32 %v2468_v60 }
0x118e   : > { %v4420_v30 = vpop.eup %4419 }
0x118f   : > { %v2475_v32 = vsel %vm1112_vm12, %v4420_v30, 0.0 }
0x1190   : > { %v4422_v39 = vpop.eup %4421  ;;  %2476 = vadd.xlane.f32.xlu1 %v2475_v32 }
0x1191   : > { %v2472_v63 = vsel %vm1108_vm13, %v4422_v39, 0.0 }
0x1192   : > { %2473 = vadd.xlane.f32.xlu0 %v2472_v63 }
0x11a1   : > { %2570 = vrot.lane.b32.xlu1 %v5191_v11, %s5596_s20 }
0x11a5   : > { %2566 = vrot.lane.b32.xlu1 %v5191_v11, %s5597_s27 }
0x11a8   : > { %2572 = vrot.lane.b32.xlu0 %v5197_v14, %s5596_s20 }
0x11a9   : > { %2568 = vrot.lane.b32.xlu1 %v5197_v14, %s5597_s27 }
0x1219   : > { %v2477_v34 = vpop.xlane.xlu1 %2476 }
0x121a   : > { %4423 = vrcp.f32 %v2477_v34 }
0x121b   : > { %v2474_v35 = vpop.xlane.xlu0 %2473 }
0x121c   : > { %4425 = vrcp.f32 %v2474_v35 }
0x121d   : > { %v2571_v41 = vpop.permute.xlu1 %2570 }
0x121f   : > { %v2573_v38 = vpop.permute.xlu0 %2572 }
0x1220   : > { %4187 = vmatprep.subr.msk.mxu0 %vm1024_vm11, %v2573_v38 }
0x1221   : > { %v2567_v47 = vpop.permute.xlu1 %2566 }
0x1225   : > { %v2569_v48 = vpop.permute.xlu1 %2568 }
0x1227   : > { %v4424_v42 = vpop.eup %4423 }
0x1228   : > { %v2481_v46 = vmul.f32 %v4424_v42, %v4420_v30 }
0x1229   : > { %v4426_v43 = vpop.eup %4425 }
0x122a   : > { %v2480_v45 = vmul.f32 %v4426_v43, %v4422_v39 }
0x122c   : > { %4184 = vmatprep.mubr.msk.f32.mxu0 %vm1108_vm13, %v2480_v45 }
0x122d   : > { %4185 = vmatmul.mubr.msk.f32.vlgmr.msra.gmra.mxu0 %vm1108_vm13, %v2481_v46 }
0x122e   : > { %4188 = vmatpush3.xpose.msk.msra.mxu0 %vm1024_vm11, %v2573_v38  ;;  %4191 = vmatprep.mubr.msk.f32.mxu0 %vm1024_vm11, %v2567_v47 }
0x122f   : > { %4189 = vmatprep.subr.msk.mxu0 %vm1024_vm11, %v2571_v41 }
0x1232   : > { %4190 = vmatpush3.xpose.msk.msra.mxu0 %vm1024_vm11, %v2571_v41 }
0x1235   : > { %4192 = vmatmul.mubr.msk.f32.vlgmr.msra.gmra.mxu0 %vm1024_vm11, %v2569_v48 }
0x12ed   : > { %v5239_v49 = vpop.f32.mrf.mxu0 }
0x12ef   : > { %v5241_v50 = vpop.f32.mrf.mxu0 }
0x12f5   : > { %v4193_v51 = vpop.f32.mrf.mxu0 }
0x12f6   : > { %v2660_v53 = vsel %vm1112_vm12, %v4193_v51, -inf }
0x12f7   : > { %2661 = vmax.xlane.f32.xlu1 %v2660_v53  ;;  %v2648_v54 = vpop.f32.mrf.mxu0 }
0x12f8   : > { %v2657_v55 = vsel %vm1108_vm13, %v2648_v54, -inf }
0x12f9   : > { %2658 = vmax.xlane.f32.xlu0 %v2657_v55 }
0x1308   : > { %2680 = vrot.lane.b32.xlu1 %v5211_v19, %s5597_s27 }
0x130c   : > { %2774 = vrot.lane.b32.xlu1 %v5197_v14, %s5598_s2 }
0x1310   : > { %2772 = vrot.lane.b32.xlu1 %v5191_v11, %s5598_s2 }
0x1314   : > { %2770 = vrot.lane.b32.xlu1 %v5197_v14, %s5599_s22 }
0x1380   : > { %v2662_v56 = vpop.xlane.xlu1 %2661 }
0x1381   : > { %v2664_v52 = vsub.f32 %v4193_v51, %v2662_v56 }
0x1382   : > { %v2659_v57 = vpop.xlane.xlu0 %2658 }
0x1383   : > { %v2667_v58 = vmul.f32 1.442695, %v2664_v52  ;;  %v2663_v59 = vsub.f32 %v2648_v54, %v2659_v57 }
0x1384   : > { %v2681_v2 = vpop.permute.xlu1 %2680 }
0x1385   : > { %4427 = vpow2.f32 %v2667_v58  ;;  %v2665_v31 = vmul.f32 1.442695, %v2663_v59 }
0x1387   : > { %4429 = vpow2.f32 %v2665_v31 }
0x1388   : > { %v2775_v4 = vpop.permute.xlu1 %2774 }
0x138c   : > { %v2773_v8 = vpop.permute.xlu1 %2772 }
0x1390   : > { %v2771_v12 = vpop.permute.xlu1 %2770 }
0x1392   : > { %v4428_v10 = vpop.eup %4427 }
0x1393   : > { %v2672_v9 = vsel %vm1112_vm12, %v4428_v10, 0.0 }
0x1394   : > { %v4430_v37 = vpop.eup %4429  ;;  %2673 = vadd.xlane.f32.xlu0 %v2672_v9 }
0x1395   : > { %v2669_v62 = vsel %vm1108_vm13, %v4430_v37, 0.0 }
0x1398   : > { %2670 = vadd.xlane.f32.xlu0 %v2669_v62 }
0x13ae   : > { %2682 = vrot.lane.b32.xlu0 %v5206_v18, %s5597_s27 }
0x13b2   : > { %2768 = vrot.lane.b32.xlu0 %v5191_v11, %s5599_s22 }
0x141d   : > { %v2674_v0 = vpop.xlane.xlu0 %2673 }
0x141e   : > { %4431 = vrcp.f32 %v2674_v0 }
0x1421   : > { %v2671_v1 = vpop.xlane.xlu0 %2670 }
0x1422   : > { %4433 = vrcp.f32 %v2671_v1 }
0x1425   : > { %v2683_v3 = vpop.permute.xlu0 %2682 }
0x1426   : > { %4194 = vmatprep.subr.msk.mxu1 %vm855_vm9, %v2683_v3 }
0x1427   : > { %4195 = vmatpush3.msk.msra.mxu1 %vm855_vm9, %v2683_v3 }
0x1428   : > { %4196 = vmatprep.subr.mxu1 %v2681_v2 }
0x1429   : > { %4197 = vmatpush3.msra.mxu1 %v2681_v2  ;;  %v2769_v36 = vpop.permute.xlu0 %2768 }
0x142a   : > { %4201 = vmatprep.subr.msk.mxu1 %vm1024_vm11, %v2775_v4 }
0x142b   : > { %v4432_v5 = vpop.eup %4431 }
0x142c   : > { %v2678_v7 = vmul.f32 %v4432_v5, %v4428_v10 }
0x142f   : > { %v4434_v44 = vpop.eup %4433 }
0x1430   : > { %v2677_v6 = vmul.f32 %v4434_v44, %v4430_v37  ;;  %v3851_v44 = vld [vmem:[%s5542_s7 + $0x70] sm:$0xff] }
0x1432   : > { %4198 = vmatprep.mubr.msk.f32.mxu1 %vm1108_vm13, %v2677_v6  ;;  %v3850_v6 = vld [vmem:[%s5542_s7 + $0x68] sm:$0xff] }
0x1433   : > { %4199 = vmatmul.mubr.msk.f32.vlgmr.msra.gmra.mxu1 %vm1108_vm13, %v2678_v7  ;;  %v3849_v7 = vld [vmem:[%s5542_s7 + $0x60] sm:$0xff] }
0x1434   : > { %4202 = vmatpush3.xpose.msk.msra.mxu1 %vm1024_vm11, %v2775_v4  ;;  %4205 = vmatprep.mubr.msk.f32.mxu1 %vm1024_vm11, %v2769_v36  ;;  %v3848_v36 = vld [vmem:[%s5542_s7 + $0x58] sm:$0xff] }
0x1435   : > { %4203 = vmatprep.subr.msk.mxu1 %vm1024_vm11, %v2773_v8 }
0x1438   : > { %4204 = vmatpush3.xpose.msk.msra.mxu1 %vm1024_vm11, %v2773_v8  ;;  %v3847_v8 = vld [vmem:[%s5542_s7 + $0x50] sm:$0xff] }
0x143b   : > { %4206 = vmatmul.mubr.msk.f32.vlgmr.msra.gmra.mxu1 %vm1024_vm11, %v2771_v12  ;;  %v3846_v12 = vld [vmem:[%s5542_s7 + $0x48] sm:$0xff] }
0x14f3   : > { %v5269_v13 = vpop.f32.mrf.mxu1 }
0x14f5   : > { %v2759_v15 = vpop.f32.mrf.mxu1 }
0x14fb   : > { %v4207_v27 = vpop.f32.mrf.mxu1 }
0x14fc   : > { %v2862_v16 = vsel %vm1112_vm12, %v4207_v27, -inf }
0x14fd   : > { %2863 = vmax.xlane.f32.xlu1 %v2862_v16  ;;  %v2850_v17 = vpop.f32.mrf.mxu1 }
0x14fe   : > { %v2859_v26 = vsel %vm1108_vm13, %v2850_v17, -inf }
0x14ff   : > { %2860 = vmax.xlane.f32.xlu0 %v2859_v26 }
0x150e   : > { %2881 = vrot.lane.b32.xlu1 %v5211_v19, %s5599_s22 }
0x1512   : > { %2975 = vrot.lane.b32.xlu1 %v5197_v14, %s5600_s23 }
0x1516   : > { %2973 = vrot.lane.b32.xlu1 %v5191_v11, %s5600_s23 }
0x151a   : > { %2971 = vrot.lane.b32.xlu1 %v5197_v14, %s5601_s29 }
0x1586   : > { %v2864_v33 = vpop.xlane.xlu1 %2863 }
0x1587   : > { %v2866_v20 = vsub.f32 %v4207_v27, %v2864_v33 }
0x1588   : > { %v2861_v40 = vpop.xlane.xlu0 %2860 }
0x1589   : > { %v2869_v23 = vmul.f32 1.442695, %v2866_v20  ;;  %v2865_v24 = vsub.f32 %v2850_v17, %v2861_v40 }
0x158a   : > { %v2882_v39 = vpop.permute.xlu1 %2881 }
0x158b   : > { %4435 = vpow2.f32 %v2869_v23  ;;  %v2867_v25 = vmul.f32 1.442695, %v2865_v24 }
0x158d   : > { %4437 = vpow2.f32 %v2867_v25 }
0x158e   : > { %v2976_v34 = vpop.permute.xlu1 %2975 }
0x1592   : > { %v2974_v43 = vpop.permute.xlu1 %2973 }
0x1596   : > { %v2972_v45 = vpop.permute.xlu1 %2971 }
0x1598   : > { %v4436_v28 = vpop.eup %4435 }
0x1599   : > { %v2874_v29 = vsel %vm1112_vm12, %v4436_v28, 0.0 }
0x159a   : > { %v4438_v60 = vpop.eup %4437  ;;  %2875 = vadd.xlane.f32.xlu0 %v2874_v29 }
0x159b   : > { %v2871_v30 = vsel %vm1108_vm13, %v4438_v60, 0.0 }
0x159e   : > { %2872 = vadd.xlane.f32.xlu0 %v2871_v30 }
0x15b4   : > { %2883 = vrot.lane.b32.xlu0 %v5206_v18, %s5599_s22 }
0x15b8   : > { %2969 = vrot.lane.b32.xlu0 %v5191_v11, %s5601_s29 }
0x1623   : > { %v2876_v14 = vpop.xlane.xlu0 %2875 }
0x1624   : > { %4439 = vrcp.f32 %v2876_v14 }
0x1627   : > { %v2873_v32 = vpop.xlane.xlu0 %2872 }
0x1628   : > { %4441 = vrcp.f32 %v2873_v32 }
0x162b   : > { %v2884_v63 = vpop.permute.xlu0 %2883 }
0x162c   : > { %4208 = vmatprep.subr.msk.mxu0 %vm855_vm9, %v2884_v63 }
0x162d   : > { %4209 = vmatpush3.msk.msra.mxu0 %vm855_vm9, %v2884_v63 }
0x162e   : > { %4210 = vmatprep.subr.mxu0 %v2882_v39 }
0x162f   : > { %4211 = vmatpush3.msra.mxu0 %v2882_v39  ;;  %v2970_v11 = vpop.permute.xlu0 %2969 }
0x1630   : > { %4215 = vmatprep.subr.msk.mxu0 %vm1024_vm11, %v2976_v34 }
0x1631   : > { %v4440_v35 = vpop.eup %4439 }
0x1632   : > { %v2880_v42 = vmul.f32 %v4440_v35, %v4436_v28 }
0x1635   : > { %v4442_v38 = vpop.eup %4441 }
0x1636   : > { %v2879_v41 = vmul.f32 %v4442_v38, %v4438_v60 }
0x1638   : > { %4212 = vmatprep.mubr.msk.f32.mxu0 %vm1108_vm13, %v2879_v41 }
0x1639   : > { %4213 = vmatmul.mubr.msk.f32.vlgmr.msra.gmra.mxu0 %vm1108_vm13, %v2880_v42 }
0x163a   : > { %4216 = vmatpush3.xpose.msk.msra.mxu0 %vm1024_vm11, %v2976_v34  ;;  %4219 = vmatprep.mubr.msk.f32.mxu0 %vm1024_vm11, %v2970_v11 }
0x163b   : > { %4217 = vmatprep.subr.msk.mxu0 %vm1024_vm11, %v2974_v43 }
0x163e   : > { %4218 = vmatpush3.xpose.msk.msra.mxu0 %vm1024_vm11, %v2974_v43 }
0x1641   : > { %4220 = vmatmul.mubr.msk.f32.vlgmr.msra.gmra.mxu0 %vm1024_vm11, %v2972_v45 }
0x16f9   : > { %v4214_v46 = vpop.f32.mrf.mxu0 }
0x16fb   : > { %v2960_v47 = vpop.f32.mrf.mxu0 }
0x1701   : > { %v4221_v48 = vpop.f32.mrf.mxu0 }
0x1702   : > { %v3063_v51 = vsel %vm1112_vm12, %v4221_v48, -inf }
0x1703   : > { %3064 = vmax.xlane.f32.xlu1 %v3063_v51  ;;  %v3051_v53 = vpop.f32.mrf.mxu0  ;;  %v3867_v51 = vld [vmem:[%s5546_s11 + $0x70] sm:$0xff] }
0x1704   : > { %v3060_v54 = vsel %vm1108_vm13, %v3051_v53, -inf }
0x1705   : > { %3061 = vmax.xlane.f32.xlu0 %v3060_v54  ;;  %v3865_v54 = vld [vmem:[%s5546_s11 + $0x60] sm:$0xff] }
0x1714   : > { %3082 = vrot.lane.b32.xlu1 %v5211_v19, %s5601_s29 }
0x1718   : > { %3172 = vrot.lane.b32.xlu1 %v2759_v15, %s5600_s23 }
0x171c   : > { %3174 = vrot.lane.b32.xlu1 %v5269_v13, %s5600_s23  ;;  %v3845_v13 = vld [vmem:[%s5542_s7 + $0x40] sm:$0xff]  ;;  %s3892_s23 = sshll.u32 %s4654_s1, 4  ;;  %s4532_s1 = smov [#allocation2]  }
0x171d   : > { %s5500_s0 = scalar_lea.hbm %s5554_s19, %s3892_s23  ;;  %s4465_s22 = sshll.u32 %s4532_s1, 4  ;;  %s4466_s22 = int_to_ptr.vmem [resolvable:$false] %s4465_s22 }
0x1720   : > { %3182 = vrot.lane.b32.xlu1 %v4214_v46, %s5598_s2 }
0x178c   : > { %v3065_v55 = vpop.xlane.xlu1 %3064 }
0x178d   : > { %v3067_v56 = vsub.f32 %v4221_v48, %v3065_v55  ;;  %v3868_v48 = vld [vmem:[%s5546_s11 + $0x78] sm:$0xff] }
0x178e   : > { %v3062_v52 = vpop.xlane.xlu0 %3061  ;;  %4248 = vmatprep.subr.mxu0 %v3868_v48  ;;  %v3864_v55 = vld [vmem:[%s5546_s11 + $0x58] sm:$0xff] }
0x178f   : > { %v3070_v57 = vmul.f32 1.442695, %v3067_v56  ;;  %v3066_v58 = vsub.f32 %v3051_v53, %v3062_v52  ;;  %4249 = vmatpush3.msra.mxu0 %v3868_v48  ;;  %v3866_v53 = vld [vmem:[%s5546_s11 + $0x68] sm:$0xff]  ;;  %v3863_v56 = vld [vmem:[%s5546_s11 + $0x50] sm:$0xff] }
0x1790   : > { %v3083_v1 = vpop.permute.xlu1 %3082  ;;  %4250 = vmatprep.subr.mxu0 %v3867_v51  ;;  %v3862_v52 = vld [vmem:[%s5546_s11 + $0x48] sm:$0xff] }
0x1791   : > { %4443 = vpow2.f32 %v3070_v57  ;;  %v3068_v59 = vmul.f32 1.442695, %v3066_v58  ;;  %4251 = vmatpush3.msra.mxu0 %v3867_v51  ;;  %v3861_v57 = vld [vmem:[%s5546_s11 + $0x40] sm:$0xff] }
0x1792   : > { %4252 = vmatprep.subr.mxu0 %v3866_v53 }
0x1793   : > { %4445 = vpow2.f32 %v3068_v59  ;;  %4253 = vmatpush3.msra.mxu0 %v3866_v53 }
0x1794   : > { %v3173_v16 = vpop.permute.xlu1 %3172  ;;  %4254 = vmatprep.subr.mxu0 %v3865_v54 }
0x1795   : > { %v3194_v20 = vsel %vm1024_vm11, %v5241_v50, %v3173_v16  ;;  %v3856_v50 = vld [vmem:[%s5543_s8 + $0x1] ss:$0 sm:$0xff]  ;;  %4255 = vmatpush3.msra.mxu0 %v3865_v54  ;;  %v3880_v16 = vld [vmem:[%s5548_s13 + $0xb8] sm:$0xff] }
0x1796   : > { %4256 = vmatprep.subr.mxu0 %v3864_v55  ;;  %v3890_v54 = vld [vmem:[%s5549_s14 + $0x1] ss:$0 sm:$0xff] }
0x1797   : > { %4257 = vmatpush3.msra.mxu0 %v3864_v55 }
0x1798   : > { %v3175_v17 = vpop.permute.xlu1 %3174  ;;  %4258 = vmatprep.subr.mxu0 %v3863_v56 }
0x1799   : > { %v3195_v23 = vsel %vm1024_vm11, %v5239_v49, %v3175_v17  ;;  %4259 = vmatpush3.msra.mxu0 %v3863_v56  ;;  %v3879_v17 = vld [vmem:[%s5548_s13 + $0xb0] sm:$0xff] }
0x179a   : > { %4260 = vmatprep.subr.mxu0 %v3862_v52 }
0x179b   : > { %4261 = vmatpush3.msra.mxu0 %v3862_v52 }
0x179c   : > { %v3183_v26 = vpop.permute.xlu1 %3182  ;;  %4262 = vmatprep.subr.mxu0 %v3861_v57 }
0x179d   : > { %v3197_v28 = vsel %vm1846_vm14, %v3195_v23, %v3183_v26  ;;  %4263 = vmatpush3.msra.mxu0 %v3861_v57  ;;  %v3878_v26 = vld [vmem:[%s5548_s13 + $0xa8] sm:$0xff] }
0x179e   : > { %v4444_v31 = vpop.eup %4443  ;;  %4302 = vmatprep.subr.mxu0 %v4523_v61  ;;  %v3874_v23 = vld [vmem:[%s5548_s13 + $0x88] sm:$0xff] }
0x179f   : > { %v3075_v10 = vsel %vm1112_vm12, %v4444_v31, 0.0 }
0x17a0   : > { %v4446_v9 = vpop.eup %4445  ;;  %3076 = vadd.xlane.f32.xlu0 %v3075_v10 }
0x17a1   : > { %v3072_v19 = vsel %vm1108_vm13, %v4446_v9, 0.0 }
0x17a4   : > { %3073 = vadd.xlane.f32.xlu0 %v3072_v19 }
0x17ba   : > { %3084 = vrot.lane.b32.xlu0 %v5206_v18, %s5601_s29  ;;  %v3852_v18 = vld [vmem:[%s5542_s7 + $0x78] sm:$0xff] }
0x17be   : > { %3180 = vrot.lane.b32.xlu0 %v2960_v47, %s5598_s2  ;;  %s608_s2 = sand.u32 1, %s4513_s30  }
0x17bf   : > { %s609_s29 = scalar_lea.vmem [#allocation2], %s608_s2  ;;  %s3668_s27 = scalar_lea.sflag [#allocation3], %s608_s2 }
0x17c0   : > { %s3680_s25 = sshll.u32 %s609_s29, 4  ;;  %s3681_s25 = int_to_ptr.vmem [resolvable:$true] %s3680_s25 }
0x17c1   : > { %s4461_s4 = scalar_lea.vmem %s3681_s25, 16  ;;  %p4468_p1 = scmp.lt.s32.totalorder %s3681_s25, %s4466_s22 }
0x17c2   : > { %p4462_p12 = scmp.ne.s32.totalorder %s3681_s25, %s4461_s4 }
0x17c4   : > { %p4463_p13 = pnand %p4462_p12, %p4671_p5 }
0x17c6   : > { %p4464_p0 = pneg %p4463_p13 }
0x1829   : > { %v3077_v37 = vpop.xlane.xlu0 %3076 }
0x182a   : > { %4447 = vrcp.f32 %v3077_v37 }
0x182d   : > { %v3074_v62 = vpop.xlane.xlu0 %3073 }
0x182e   : > { %4449 = vrcp.f32 %v3074_v62  ;;  %v3859_v62 = vld [vmem:[%s5544_s9 + $0x1] ss:$0 sm:$0xff] }
0x1831   : > { %v3085_v0 = vpop.permute.xlu0 %3084 }
0x1832   : > { %4222 = vmatprep.subr.msk.mxu1 %vm855_vm9, %v3085_v0 }
0x1833   : > { %4223 = vmatpush3.msk.msra.mxu1 %vm855_vm9, %v3085_v0 }
0x1834   : > { %4224 = vmatprep.subr.mxu1 %v3083_v1 }
0x1835   : > { %4225 = vmatpush3.msra.mxu1 %v3083_v1  ;;  %v3181_v33 = vpop.permute.xlu0 %3180  ;;  %v3860_v1 = vld [vmem:[%s5545_s10 + $0x1] ss:$0 sm:$0xff] }
0x1836   : > { %4229 = vmatprep.subr.mxu1 %v3852_v18  ;;  %v3196_v24 = vsel %vm1846_vm14, %v3194_v20, %v3181_v33  ;;  %v3877_v33 = vld [vmem:[%s5548_s13 + $0xa0] sm:$0xff]  ;;  %v3876_v20 = vld [vmem:[%s5548_s13 + $0x98] sm:$0xff] }
0x1837   : > { %v4448_v2 = vpop.eup %4447 }
0x1838   : > { %v3081_v5 = vmul.f32 %v4448_v2, %v4444_v31 }
0x183b   : > { %v4450_v3 = vpop.eup %4449 }
0x183c   : > { %v3080_v4 = vmul.f32 %v4450_v3, %v4446_v9 }
0x183e   : > { %4226 = vmatprep.mubr.msk.f32.mxu1 %vm1108_vm13, %v3080_v4 }
0x183f   : > { %4227 = vmatmul.mubr.msk.f32.vlgmr.msra.gmra.mxu1 %vm1108_vm13, %v3081_v5 }
0x1840   : > { %4230 = vmatpush3.msra.mxu1 %v3852_v18 }
0x1841   : > { %4231 = vmatprep.subr.mxu1 %v3851_v44 }
0x1842   : > { %4232 = vmatpush3.msra.mxu1 %v3851_v44 }
0x1843   : > { %4233 = vmatprep.subr.mxu1 %v3850_v6 }
0x1844   : > { %4234 = vmatpush3.msra.mxu1 %v3850_v6  ;;  %v3888_v6 = vld [vmem:[%s5548_s13 + $0xf8] sm:$0xff] }
0x1845   : > { %4235 = vmatprep.subr.mxu1 %v3849_v7 }
0x1846   : > { %4236 = vmatpush3.msra.mxu1 %v3849_v7  ;;  %v3887_v7 = vld [vmem:[%s5548_s13 + $0xf0] sm:$0xff] }
0x1847   : > { %4237 = vmatprep.subr.mxu1 %v3848_v36 }
0x1848   : > { %4238 = vmatpush3.msra.mxu1 %v3848_v36  ;;  %v3886_v36 = vld [vmem:[%s5548_s13 + $0xe8] sm:$0xff] }
0x1849   : > { %4239 = vmatprep.subr.mxu1 %v3847_v8 }
0x184a   : > { %4240 = vmatpush3.msra.mxu1 %v3847_v8  ;;  %v3885_v8 = vld [vmem:[%s5548_s13 + $0xe0] sm:$0xff] }
0x184b   : > { %4241 = vmatprep.subr.mxu1 %v3846_v12 }
0x184c   : > { %4242 = vmatpush3.msra.mxu1 %v3846_v12  ;;  %v3884_v12 = vld [vmem:[%s5548_s13 + $0xd8] sm:$0xff] }
0x184d   : > { %4243 = vmatprep.subr.mxu1 %v3845_v13 }
0x184e   : > { %4244 = vmatpush3.msra.mxu1 %v3845_v13  ;;  %v3883_v13 = vld [vmem:[%s5548_s13 + $0xd0] sm:$0xff] }
0x184f   : > { %4267 = vmatprep.subr.mxu1 %v3888_v6 }
0x18ff   : > { %v4228_v15 = vpop.f32.mrf.mxu1 }
0x1900   : > { %3190 = vrot.lane.b32.xlu1 %v4228_v15, %s5596_s20  ;;  %v3882_v15 = vld [vmem:[%s5548_s13 + $0xc8] sm:$0xff] }
0x1901   : > { %v3161_v27 = vpop.f32.mrf.mxu1 }
0x1902   : > { %3188 = vrot.lane.b32.xlu0 %v3161_v27, %s5596_s20  ;;  %v3881_v27 = vld [vmem:[%s5548_s13 + $0xc0] sm:$0xff]  ;;  %s4467_s20 = scalar_lea.vmem %s4466_s22, 32 }
0x1903   : > { %p4469_p2 = scmp.lt.s32.totalorder %s4467_s20, %s4461_s4 }
0x1905   : > { %p4470_p3 = por %p4469_p2, %p4468_p1 }
0x1907   : > { %p4471_p4 = pnand %p4470_p3, %p4464_p0 }
0x1972   : > { %v3191_v40 = vpop.permute.xlu1 %3190 }
0x1973   : > { %v3199_v60 = vsel %vm1849_vm15, %v3197_v28, %v3191_v40  ;;  %v3875_v40 = vld [vmem:[%s5548_s13 + $0x90] sm:$0xff] }
0x1974   : > { %v3189_v25 = vpop.permute.xlu0 %3188 }
0x1975   : > { %v3198_v29 = vsel %vm1849_vm15, %v3196_v24, %v3189_v25  ;;  %v3873_v24 = vld [vmem:[%s5548_s13 + $0x80] sm:$0xff] }
0x1976   : > { %4245 = vmatprep.mubr.msk.f32.mxu1 %vm734_vm1, %v3198_v29  ;;  %v3870_v25 = vld [vmem:[%s5547_s12 + $0x1] ss:$0 sm:$0xff] }
0x1977   : > { %4246 = vmatmul.mubr.msk.f32.vlgmr.msra.gmra.mxu1 %vm734_vm1, %v3199_v60 }
0x1978   : > { %4268 = vmatpush3.msra.mxu1 %v3888_v6 }
0x1979   : > { %4269 = vmatprep.subr.mxu1 %v3887_v7 }
0x197a   : > { %4270 = vmatpush3.msra.mxu1 %v3887_v7  ;;  %v3566_v7 = vld [vmem:[%s5551_s16] sm:$0x1] }
0x197b   : > { %4271 = vmatprep.subr.mxu1 %v3886_v36 }
0x197c   : > { %4272 = vmatpush3.msra.mxu1 %v3886_v36 }
0x197d   : > { %4273 = vmatprep.subr.mxu1 %v3885_v8 }
0x197e   : > { %4274 = vmatpush3.msra.mxu1 %v3885_v8 }
0x197f   : > { %4275 = vmatprep.subr.mxu1 %v3884_v12 }
0x1980   : > { %4276 = vmatpush3.msra.mxu1 %v3884_v12 }
0x1981   : > { %4277 = vmatprep.subr.mxu1 %v3883_v13 }
0x1982   : > { %4278 = vmatpush3.msra.mxu1 %v3883_v13 }
0x1983   : > { %4279 = vmatprep.subr.mxu1 %v3882_v15 }
0x1984   : > { %4280 = vmatpush3.msra.mxu1 %v3882_v15 }
0x1985   : > { %4281 = vmatprep.subr.mxu1 %v3881_v27 }
0x1986   : > { %4282 = vmatpush3.msra.mxu1 %v3881_v27 }
0x1987   : > { %4283 = vmatprep.subr.mxu1 %v3880_v16 }
0x1988   : > { %4284 = vmatpush3.msra.mxu1 %v3880_v16 }
0x1989   : > { %4285 = vmatprep.subr.mxu1 %v3879_v17 }
0x198a   : > { %4286 = vmatpush3.msra.mxu1 %v3879_v17 }
0x198b   : > { %4287 = vmatprep.subr.mxu1 %v3878_v26 }
0x198c   : > { %4288 = vmatpush3.msra.mxu1 %v3878_v26 }
0x198d   : > { %4289 = vmatprep.subr.mxu1 %v3877_v33 }
0x198e   : > { %4290 = vmatpush3.msra.mxu1 %v3877_v33 }
0x198f   : > { %4291 = vmatprep.subr.mxu1 %v3876_v20 }
0x1990   : > { %4292 = vmatpush3.msra.mxu1 %v3876_v20 }
0x1991   : > { %4293 = vmatprep.subr.mxu1 %v3875_v40 }
0x1992   : > { %4294 = vmatpush3.msra.mxu1 %v3875_v40 }
0x1993   : > { %4295 = vmatprep.subr.mxu1 %v3874_v23 }
0x1994   : > { %4296 = vmatpush3.msra.mxu1 %v3874_v23 }
0x1995   : > { %4297 = vmatprep.subr.mxu1 %v3873_v24 }
0x1996   : > { %4298 = vmatpush3.msra.mxu1 %v3873_v24 }
0x1a37   : > { %v4247_v30 = vpop.f32.mrf.mxu1 }
0x1a38   : > { %v3291_v49 = vadd.f32 %v4247_v30, %v5116_v21 }
0x1a39   : > { %v3281_v14 = vpop.f32.mrf.mxu1 }
0x1a3a   : > { %v3301_v32 = vadd.f32 %v3856_v50, %v3291_v49  ;;  %v3290_v39 = vadd.f32 %v3281_v14, %v5119_v22 }
0x1a3c   : > { %v5355_v63 = vadd.f32 %v3856_v50, %v3290_v39  ;;  %v3309_v34 = vsel %vm866_vm10, %v3301_v32, 0.0 }
0x1a3d   : > { %3310 = vadd.xlane.f32.xlu1 %v3309_v34 }
0x1a3e   : > { %v3306_v35 = vsel %vm734_vm1, %v5355_v63, 0.0 }
0x1a3f   : > { %3307 = vadd.xlane.f32.xlu0 %v3306_v35 }
0x1ac6   : > { %v3311_v38 = vpop.xlane.xlu1 %3310 }
0x1ac7   : > { %v3313_v41 = vmul.f32 0.015625, %v3311_v38 }
0x1ac8   : > { %v3308_v42 = vpop.xlane.xlu0 %3307 }
0x1ac9   : > { %v3312_v11 = vmul.f32 0.015625, %v3308_v42  ;;  %v3315_v43 = vsub.f32 %v3301_v32, %v3313_v41 }
0x1acb   : > { %v3314_v21 = vsub.f32 %v5355_v63, %v3312_v11  ;;  %v3317_v22 = vmul.f32 %v3315_v43, %v3315_v43 }
0x1acd   : > { %v3316_v45 = vmul.f32 %v3314_v21, %v3314_v21  ;;  %v3321_v47 = vsel %vm866_vm10, %v3317_v22, 0.0 }
0x1acf   : > { %v3318_v46 = vsel %vm734_vm1, %v3316_v45, 0.0 }
0x1ad0   : > { %3319 = vadd.xlane.f32.xlu0 %v3318_v46 }
0x1ad4   : > { %3322 = vadd.xlane.f32.xlu0 %v3321_v47 }
0x1b59   : > { %v3320_v58 = vpop.xlane.xlu0 %3319 }
0x1b5a   : > { %v3324_v59 = vmul.f32 0.015625, %v3320_v58 }
0x1b5c   : > { %v3326_v31 = vadd.f32 1e-05, %v3324_v59 }
0x1b5d   : > { %v3323_v10 = vpop.xlane.xlu0 %3322 }
0x1b5e   : > { %4451 = vrsqrt.f32 %v3326_v31  ;;  %v3325_v9 = vmul.f32 0.015625, %v3323_v10 }
0x1b60   : > { %v3327_v19 = vadd.f32 1e-05, %v3325_v9  ;;  %v3590_v9 = vld [vmem:[%s5552_s17 + $0x38] sm:$0xff] }
0x1b62   : > { %4453 = vrsqrt.f32 %v3327_v19  ;;  %v3588_v19 = vld [vmem:[%s5552_s17 + $0x28] sm:$0xff] }
0x1b6b   : > { %v4452_v37 = vpop.eup %4451 }
0x1b6c   : > { %v3330_v0 = vmul.f32 %v4452_v37, %v3314_v21  ;;  %v3587_v37 = vld [vmem:[%s5552_s17 + $0x20] sm:$0xff] }
0x1b6e   : > { %v3338_v2 = vmul.f32 %v3859_v62, %v3330_v0  ;;  %v3585_v0 = vld [vmem:[%s5552_s17 + $0x10] sm:$0xff] }
0x1b6f   : > { %v4454_v3 = vpop.eup %4453 }
0x1b70   : > { %v3331_v4 = vmul.f32 %v4454_v3, %v3315_v43  ;;  %v3346_v5 = vadd.f32 %v3860_v1, %v3338_v2  ;;  %v3583_v2 = vld [vmem:[%s5552_s17] sm:$0xff] }
0x1b72   : > { %v3339_v18 = vmul.f32 %v3859_v62, %v3331_v4  ;;  %4264 = vmatprep.mubr.msk.f32.mxu0 %vm734_vm1, %v3346_v5  ;;  %v3586_v62 = vld [vmem:[%s5552_s17 + $0x18] sm:$0xff] }
0x1b74   : > { %v3347_v44 = vadd.f32 %v3860_v1, %v3339_v18  ;;  %v3584_v1 = vld [vmem:[%s5552_s17 + $0x8] sm:$0xff] }
0x1b76   : > { %4265 = vmatmul.mubr.msk.f32.vlgmr.msra.gmra.mxu0 %vm734_vm1, %v3347_v44  ;;  %v3565_v44 = vld [vmem:[%s5550_s15] sm:$0x1] }
0x1b77   : > { %4303 = vmatpush3.msra.mxu0 %v3590_v9  ;;  %4318 = vmatprep.mubr.msk.f32.mxu0 %vm4531_vm0, %v4523_v61 }
0x1b78   : > { %4304 = vmatprep.subr.mxu0 %v4523_v61 }
0x1c36   : > { %v4266_v28 = vpop.f32.mrf.mxu0 }
0x1c37   : > { %v3443_v29 = vadd.f32 %v4266_v28, %v3870_v25 }
0x1c38   : > { %v3437_v60 = vpop.f32.mrf.mxu0 }
0x1c39   : > { %v3447_v30 = vmul.f32 %v3443_v29, %v3443_v29  ;;  %v3438_v50 = vadd.f32 %v3870_v25, %v3437_v60 }
0x1c3b   : > { %v3449_v49 = vmul.f32 %v3447_v30, %v3443_v29  ;;  %v3446_v14 = vmul.f32 %v3438_v50, %v3438_v50 }
0x1c3d   : > { %v3451_v32 = vmul.f32 0.044715, %v3449_v49  ;;  %v3448_v39 = vmul.f32 %v3446_v14, %v3438_v50 }
0x1c3f   : > { %v3453_v34 = vadd.f32 %v3451_v32, %v3443_v29  ;;  %v3450_v35 = vmul.f32 0.044715, %v3448_v39 }
0x1c41   : > { %v3455_v38 = vmul.f32 0.7978846, %v3453_v34  ;;  %v3452_v41 = vadd.f32 %v3450_v35, %v3438_v50 }
0x1c43   : > { %4455 = vtanh.f32 %v3455_v38  ;;  %v3454_v42 = vmul.f32 0.7978846, %v3452_v41 }
0x1c45   : > { %4457 = vtanh.f32 %v3454_v42 }
0x1c50   : > { %v4456_v11 = vpop.eup %4455 }
0x1c51   : > { %v3459_v43 = vadd.f32 1.0, %v4456_v11 }
0x1c52   : > { %v4458_v21 = vpop.eup %4457 }
0x1c53   : > { %v3458_v45 = vadd.f32 1.0, %v4458_v21  ;;  %v3461_v46 = vmul.f32 0.5, %v3459_v43 }
0x1c55   : > { %v3460_v22 = vmul.f32 0.5, %v3458_v45  ;;  %v3463_v48 = vmul.f32 %v3461_v46, %v3443_v29 }
0x1c57   : > { %v3462_v47 = vmul.f32 %v3460_v22, %v3438_v50 }
0x1c59   : > { %4299 = vmatprep.mubr.f32.mxu1 %v3462_v47 }
0x1c5a   : > { %4300 = vmatmul.mubr.f32.vlgmr.msra.gmra.mxu1 %v3463_v48 }
0x1d1a   : > { %v4301_v51 = vpop.f32.mrf.mxu1 }
0x1d1c   : > { %v3547_v53 = vpop.f32.mrf.mxu1 }
0x1d1d   : > { %v3555_v55 = vadd.f32 %v3547_v53, %v5355_v63  ;;  %v3589_v63 = vld [vmem:[%s5552_s17 + $0x30] sm:$0xff] }
0x1d1e   : > { %4305 = vmatpush3.msra.mxu0 %v3589_v63 }
0x1d1f   : > { %v3564_v56 = vadd.f32 %v3890_v54, %v3555_v55  ;;  %4306 = vmatprep.subr.mxu0 %v4523_v61 }
0x1d20   : > { %4307 = vmatpush3.msra.mxu0 %v3588_v19 }
0x1d21   : > { %v3567_v52 = vsel %vm866_vm10, %v3564_v56, 0.0  ;;  %4308 = vmatprep.subr.mxu0 %v4523_v61 }
0x1d22   : > { %3568 = vadd.xlane.f32.xlu0 %v3567_v52  ;;  %4309 = vmatpush3.msra.mxu0 %v3587_v37 }
0x1d23   : > { %4310 = vmatprep.subr.mxu0 %v4523_v61 }
0x1d24   : > { %4311 = vmatpush3.msra.mxu0 %v3586_v62 }
0x1d25   : > { %4312 = vmatprep.subr.mxu0 %v4523_v61 }
0x1d26   : > { %4313 = vmatpush3.msra.mxu0 %v3585_v0 }
0x1d27   : > { %4314 = vmatprep.subr.mxu0 %v4523_v61 }
0x1d28   : > { %4315 = vmatpush3.msra.mxu0 %v3584_v1 }
0x1d29   : > { %4316 = vmatprep.subr.mxu0 %v4523_v61  ;;  %v3591_v61 = vld [vmem:[%s5553_s18] sm:$0x1] }
0x1d2a   : > { %4317 = vmatpush3.msra.mxu0 %v3583_v2 }
0x1dab   : > { %v3569_v57 = vpop.xlane.xlu0 %3568 }
0x1dac   : > { %v3570_v58 = vmul.f32 0.015625, %v3569_v57 }
0x1dae   : > { %v3571_v59 = vsub.f32 %v3564_v56, %v3570_v58 }
0x1db0   : > { %v3572_v31 = vmul.f32 %v3571_v59, %v3571_v59 }
0x1db2   : > { %v3573_v10 = vsel %vm866_vm10, %v3572_v31, 0.0 }
0x1db3   : > { %3574 = vadd.xlane.f32.xlu1 %v3573_v10 }
0x1e3c   : > { %v3575_v3 = vpop.xlane.xlu1 %3574 }
0x1e3d   : > { %v3576_v4 = vmul.f32 0.015625, %v3575_v3 }
0x1e3f   : > { %v3577_v5 = vadd.f32 1e-06, %v3576_v4 }
0x1e41   : > { %4459 = vrsqrt.f32 %v3577_v5 }
0x1e4e   : > { %v4460_v18 = vpop.eup %4459 }
0x1e4f   : > { %v3579_v6 = vmul.f32 %v4460_v18, %v3571_v59 }
0x1e51   : > { %v3580_v36 = vmul.f32 %v3579_v6, %v3565_v44 }
0x1e53   : > { %v3581_v8 = vadd.f32 %v3580_v36, %v3566_v7 }
0x1e55   : > { %v3582_v12 = vmax.f32 %v3581_v8, 0.0 }
0x1e57   : > { %4319 = vmatmul.mubr.msk.f32.vlgmr.msra.gmra.mxu0 %vm734_vm1, %v3582_v12 }
0x1f17   : > { %v3661_v13 = vpop.f32.mrf.mxu0 }
0x1f18   : > { %v3662_v15 = vadd.f32 %v3661_v13, %v3591_v61 }
0x1f19   : > { %v4320_v27 = vpop.f32.mrf.mxu0 }
0x1f1a   : > { %3666 = vst.msk [vmem:[%s609_s29] sm:$0x1] %vm3665_vm2, %v3662_v15 }
0x1f1b   : > { %4474 = shalt.err (!%p4471_p4)
}
0x1f1c   : > { %s4475_s23 = scalar_lea.hbm %s5500_s0, 16  ;;  %s4479_s26 = scalar_lea.hbm %s5554_s19, 32 }
0x1f1d   : > { %p4476_p7 = scmp.ne.s32.totalorder %s5500_s0, %s4475_s23  ;;  %p4480_p10 = scmp.lt.s32.totalorder %s5500_s0, %s5554_s19 }
0x1f1e   : > { %p4481_p11 = scmp.lt.s32.totalorder %s4479_s26, %s4475_s23 }
0x1f1f   : > { %p4477_p8 = pnand %p4476_p7, %p4671_p5 }
0x1f20   : > { %p4482_p12 = por %p4481_p11, %p4480_p10 }
0x1f21   : > { %p4478_p9 = pneg %p4477_p8 }
0x1f23   : > { %p4483_p13 = pnand %p4482_p12, %p4478_p9 }
0x1f25   : > { %4486 = shalt.err (!%p4483_p13)
}
0x1f26   : > { %4323 = dma.vmem_to_hbm [thread:$0]  (%p4671_p5), %s3681_s25, 16, %s5500_s0, %s3668_s27  }
0x1f27 PF: > { %s5602_s4 = sld [smem:[#allocation5_spill]]  ;;  %p4329_p0 = scmp.ge.s32.totalorder %s4521_s21, 2 }
0x1f29   : > { %p4326_p1 = pnand %p4329_p0, %p4675_p6 }
0x1f2b   : > { %p4327_p2 = pneg %p4326_p1 }
0x1f2d   : > { %s3692_s20 = sand.u32 1, %s5602_s4  }
0x1f2e   : > { %s3693_s2 = scalar_lea.sflag [#allocation3], %s3692_s20 }
0x1f2f   : > { %4504 = dma.done.wait (%p4327_p2), %s3693_s2, 16  }
0x1f30   : > { %4506 = vsyncadd (%p4327_p2), %s3693_s2, 4294967280  ;;  %s5604_s21 = sld [smem:[#allocation7_spill]]  ;;  %s5607_s0 = smov %s4513_s30 }
0x1f31   : > { %s5605_s23 = sld [smem:[#allocation6_spill]] }
0x1f32   : > { %s5606_s20 = sld [smem:[#allocation8_spill]] }
0x1f36   : > { %p29_p3 = scmp.ge.s32.totalorder %s5604_s21, 4  }
0x1f37   : > { %s5608_s30 = smov %s5605_s23 }
0x1f38   :  { %31 = sbr.rel (!%p29_p3) target bundleno = 9 (0x9), region = 146 }
0x1f3d   :  { %3697 = vsyncpa [#allocation3], 1 }
0x1f3e   :  { %3699 = vsyncpa [#allocation3 + $0x1], 1 }

</bundles_post_ra>
